<compile_context>
chip_gen: v5e
topology: v5e:2x2
jax: 0.10.0
libtpu: 0.0.40
codegen_flags: <defaults>
</compile_context>

<pallas_src>
import functools

import jax
import jax.numpy as jnp
import numpy as np
from jax.experimental import pallas as pl
from jax.experimental.pallas import tpu as pltpu


def _window_attention_kernel(x_ref, kv_ref, wq_ref, bq_ref, wkv_ref, bkv_ref,
                             inv_tau_ref, bias_ref, wp_ref, bp_ref,
                             o_ref, acc_ref, *, num_heads):
    # x_ref / kv_ref : (BW, N, C)  BW windows' tokens (activation/compute dtype)
    # wq_ref         : (C, C)      q weight, pre-transposed & pre-scaled
    # bq_ref         : (1, C)      f32, pre-scaled
    # wkv_ref        : (C, 2C)     kv weight, pre-transposed
    # bkv_ref        : (1, 2C)     f32
    # inv_tau_ref    : (H, N, N)   f32, 1 / clip(tau, 0.01)   (precomputed)
    # bias_ref       : (H, N, N)   f32, continuous rel-pos bias (precomputed)
    # wp_ref / bp_ref: (C, C) / (1, C)
    # o_ref          : (BW, N, C)
    # acc_ref        : (BW*N, C)   VMEM scratch holding assembled head outputs
    bw, n, c = x_ref.shape
    d = c // num_heads
    cdt = x_ref.dtype            # MXU operand dtype (bf16 or f32); accum is f32

    x2 = x_ref[...].reshape(bw * n, c)
    kv2 = kv_ref[...].reshape(bw * n, c)

    # Full-width projections: single large MXU dots with f32 accumulation.
    q = jnp.dot(x2, wq_ref[...], preferred_element_type=jnp.float32) + bq_ref[...]
    kvp = jnp.dot(kv2, wkv_ref[...], preferred_element_type=jnp.float32) + bkv_ref[...]
    k = kvp[:, :c]                                   # (BW*N, C) f32
    v = kvp[:, c:]                                   # (BW*N, C) f32

    ones_b = jnp.ones((bw, 1, d), jnp.float32)       # hoisted: batched key-norm rows

    for h in range(num_heads):                       # static unroll; heads are few
        qh = q[:, h * d:(h + 1) * d].reshape(bw, n, d)   # (BW, N, D) f32
        kh = k[:, h * d:(h + 1) * d].reshape(bw, n, d)
        vh = v[:, h * d:(h + 1) * d].reshape(bw, n, d)

        # Cosine attention, batched over the BW windows in this block.
        s = jnp.einsum("bqd,bkd->bqk", qh.astype(cdt), kh.astype(cdt),
                       preferred_element_type=jnp.float32)            # (BW, N, N)
        qn = jnp.sqrt(jnp.sum(qh * qh, axis=-1, keepdims=True))        # (BW, N, 1)
        kn = jnp.sqrt(jnp.einsum("bod,bkd->bok", ones_b, kh * kh,
                                 preferred_element_type=jnp.float32))  # (BW, 1, N)
        s = s * pl.reciprocal(jnp.maximum(qn * kn, 1e-6))

        # Learned temperature (reciprocal hoisted to wrapper) + rel-pos bias.
        s = s * inv_tau_ref[h][None] + bias_ref[h][None]

        # Softmax over keys (f32); normalisation via EUP reciprocal.
        s = s - jnp.max(s, axis=-1, keepdims=True)
        e = jnp.exp(s)
        p = e * pl.reciprocal(jnp.sum(e, axis=-1, keepdims=True), approx=True)

        oh = jnp.einsum("bqk,bkd->bqd", p.astype(cdt), vh.astype(cdt),
                        preferred_element_type=jnp.float32)            # (BW, N, D)
        acc_ref[:, h * d:(h + 1) * d] = oh.reshape(bw * n, d).astype(acc_ref.dtype)

    # Output projection on the assembled (BW*N, C) head outputs.
    out = jnp.dot(acc_ref[...], wp_ref[...],
                  preferred_element_type=jnp.float32) + bp_ref[...]
    o_ref[...] = out.reshape(bw, n, c).astype(o_ref.dtype)


def _log_relative_position_index(window_size):
    wh, ww = window_size
    ch, cw = jnp.meshgrid(jnp.arange(wh), jnp.arange(ww), indexing="ij")
    coords = jnp.stack([ch, cw]).reshape(2, -1)               # (2, M)
    rel = coords[:, :, None] - coords[:, None, :]             # (2, M, M)
    rel = jnp.transpose(rel, (1, 2, 0)).astype(jnp.float32)   # (M, M, 2)
    return jnp.sign(rel) * jnp.log1p(jnp.abs(rel))


def _cpb_bias(log_rel_idx, w1, b1, w2, b2, n):
    """Continuous relative position bias MLP -> (H, n, n).

    Input-independent (parameters + window geometry only), so it is computed
    once per forward in plain JAX instead of once per grid step in the kernel.
    """
    flat = log_rel_idx[:n, :n].reshape(n * n, 2)
    h = jnp.maximum(flat @ w1.T + b1, 0.0)                    # (n*n, hidden)
    bias = h @ w2.T + b2                                      # (n*n, H)
    return jnp.transpose(bias.reshape(n, n, -1), (2, 0, 1))   # (H, n, n)


def window_attention_up(x, kv, params, *, num_heads, window_size, mask=None,
                        block_windows=8):
    """x, kv: (B_, N, C) = (num_windows*B, tokens, dim). Returns (B_, N, C)."""
    # TODO(synk): shifted-window mask path not wired in (mask=None only); adding it
    # needs one extra (nW, N, N) input with index_map lambda b: (b % nW_blocks, 0, 0).
    assert mask is None
    B_, N, C = x.shape
    H = num_heads
    D = C // H
    scale = D ** (-0.5)
    f32 = jnp.float32
    cdt = x.dtype                 # compute dtype for the MXU operands

    # Input-independent precomputation (hoisted out of the kernel).
    log_idx = _log_relative_position_index(window_size)
    rel_bias = _cpb_bias(log_idx, params["cpb_w1"], params["cpb_b1"],
                         params["cpb_w2"], params["cpb_b2"], N).astype(f32)   # (H, N, N)
    inv_tau = 1.0 / jnp.maximum(jnp.asarray(params["tau"], f32)[:, :N, :N], 0.01)

    # Pre-transpose weights (row-major MXU dots) and fold the q scale in
    # (exact: (xW + b) * s == x (sW) + (sb)).  Weights follow the activation
    # dtype so bf16 activations feed the MXU bf16 operands; biases stay f32.
    wq_t = (jnp.asarray(params["wq"], f32).T * scale).astype(cdt)     # (C, C)
    bq = (jnp.asarray(params["bq"], f32) * scale).reshape(1, C)
    wkv_t = jnp.asarray(params["wkv"], f32).T.astype(cdt)             # (C, 2C)
    bkv = jnp.asarray(params["bkv"], f32).reshape(1, 2 * C)
    wp_t = jnp.asarray(params["wp"], f32).T.astype(cdt)               # (C, C)
    bp = jnp.asarray(params["bp"], f32).reshape(1, C)

    # Window batching: BW windows per grid step (pad B_ up to a multiple).
    bw = max(1, min(block_windows, B_))
    num_steps = int(pl.cdiv(B_, bw))
    B_pad = num_steps * bw
    if B_pad != B_:
        pad = B_pad - B_
        x_in = jnp.concatenate([x, jnp.zeros((pad, N, C), x.dtype)], axis=0)
        kv_in = jnp.concatenate([kv, jnp.zeros((pad, N, C), kv.dtype)], axis=0)
    else:
        x_in, kv_in = x, kv

    kernel = functools.partial(_window_attention_kernel, num_heads=H)

    out = pl.pallas_call(
        kernel,
        out_shape=jax.ShapeDtypeStruct((B_pad, N, C), x.dtype),
        grid_spec=pltpu.PrefetchScalarGridSpec(
            num_scalar_prefetch=0,
            grid=(num_steps,),
            in_specs=[
                pl.BlockSpec((bw, N, C), lambda b: (b, 0, 0)),    # x
                pl.BlockSpec((bw, N, C), lambda b: (b, 0, 0)),    # KV
                pl.BlockSpec((C, C), lambda b: (0, 0)),           # Wq^T*s  (resident)
                pl.BlockSpec((1, C), lambda b: (0, 0)),           # bq*s
                pl.BlockSpec((C, 2 * C), lambda b: (0, 0)),       # Wkv^T   (resident)
                pl.BlockSpec((1, 2 * C), lambda b: (0, 0)),       # bkv
                pl.BlockSpec((H, N, N), lambda b: (0, 0, 0)),     # 1/clip(tau) (resident)
                pl.BlockSpec((H, N, N), lambda b: (0, 0, 0)),     # cpb bias    (resident)
                pl.BlockSpec((C, C), lambda b: (0, 0)),           # Wp^T    (resident)
                pl.BlockSpec((1, C), lambda b: (0, 0)),           # bp
            ],
            out_specs=pl.BlockSpec((bw, N, C), lambda b: (b, 0, 0)),
            scratch_shapes=[pltpu.VMEM((bw * N, C), cdt)],        # head-output slab
        ),
        compiler_params=pltpu.CompilerParams(
            # "parallel" shards the window-batch axis across v7x's 2 TensorCores.
            dimension_semantics=("parallel",),
            # Explicit budget (v5e scoped default is 16 MiB); resident weights +
            # batched I/O tiles here are << 1 MiB, so 32 MiB leaves ample headroom.
            vmem_limit_bytes=32 * 1024 * 1024,
        ),
    )(x_in, kv_in, wq_t, bq, wkv_t, bkv, inv_tau, rel_bias, wp_t, bp)

    if B_pad != B_:
        out = out[:B_]
    return out


def reference(x, kv, params, *, num_heads, window_size, mask=None):
    """Pure-JAX mirror of the PyTorch forward (eval mode)."""
    B_, N, C = x.shape
    H = num_heads
    D = C // H
    scale = D ** (-0.5)
    hi = jax.lax.Precision.HIGHEST

    q = jnp.einsum("bnc,dc->bnd", x, params["wq"], precision=hi) + params["bq"]
    q = q.reshape(B_, N, H, D).transpose(0, 2, 1, 3) * scale              # (B, H, N, D)
    kvp = jnp.einsum("bnc,dc->bnd", kv, params["wkv"], precision=hi) + params["bkv"]
    kvp = kvp.reshape(B_, N, 2, H, D).transpose(2, 0, 3, 1, 4)
    k, v = kvp[0], kvp[1]                                                 # (B, H, N, D)

    attn = jnp.einsum("bhqd,bhkd->bhqk", q, k, precision=hi)
    qn = jnp.sqrt(jnp.sum(q * q, axis=-1, keepdims=True))
    kn = jnp.sqrt(jnp.sum(k * k, axis=-1, keepdims=True))
    attn = attn / jnp.maximum(qn * jnp.swapaxes(kn, -2, -1), 1e-6)
    attn = attn / jnp.maximum(params["tau"][:, :N, :N][None], 0.01)

    log_idx = _log_relative_position_index(window_size)
    rel_bias = _cpb_bias(log_idx, params["cpb_w1"], params["cpb_b1"],
                         params["cpb_w2"], params["cpb_b2"], N)           # (H, N, N)
    attn = attn + rel_bias[None]
    attn = jax.nn.softmax(attn, axis=-1)

    out = jnp.einsum("bhqk,bhkd->bhqd", attn, v, precision=hi)
    out = out.transpose(0, 2, 1, 3).reshape(B_, N, C)
    out = jnp.einsum("bnc,dc->bnd", out, params["wp"], precision=hi) + params["bp"]
    return out


if __name__ == "__main__":
    # WindowAttentionUp(dim=32, window_size=(4, 4), num_heads=4), B_ = 16 windows.
    # block_windows=8 -> 2 grid steps (even, so both v7x TensorCores get work).
    B_, dim, num_heads = 16, 32, 4
    window_size = (4, 4)
    N = window_size[0] * window_size[1]     # 16 tokens per window
    hidden_cpb = 256                        # cpb Mlp_Relu hidden width (module default)

    key = jax.random.PRNGKey(0)
    keys = jax.random.split(key, 12)

    x = jax.random.normal(keys[0], (B_, N, dim), dtype=jnp.float32)
    kv = jax.random.normal(keys[1], (B_, N, dim), dtype=jnp.float32)

    params = {
        "wq": jax.random.normal(keys[2], (dim, dim), jnp.float32) * 0.1,
        "bq": jax.random.normal(keys[3], (dim,), jnp.float32) * 0.1,
        "wkv": jax.random.normal(keys[4], (2 * dim, dim), jnp.float32) * 0.1,
        "bkv": jax.random.normal(keys[5], (2 * dim,), jnp.float32) * 0.1,
        "wp": jax.random.normal(keys[6], (dim, dim), jnp.float32) * 0.1,
        "bp": jax.random.normal(keys[7], (dim,), jnp.float32) * 0.1,
        # module inits tau to ones; perturb slightly so the clip path is exercised
        "tau": 1.0 + 0.1 * jax.random.normal(keys[8], (num_heads, N, N), jnp.float32),
        "cpb_w1": jax.random.normal(keys[9], (hidden_cpb, 2), jnp.float32) * 0.1,
        "cpb_b1": jax.random.normal(keys[10], (hidden_cpb,), jnp.float32) * 0.1,
        "cpb_w2": jax.random.normal(keys[11], (num_heads, hidden_cpb), jnp.float32) * 0.05,
        "cpb_b2": jnp.zeros((num_heads,), jnp.float32),
    }

    ref = reference(x, kv, params, num_heads=num_heads, window_size=window_size)

    # 1) f32 path, B_ a multiple of the window-batch size.
    out = window_attention_up(x, kv, params, num_heads=num_heads,
                              window_size=window_size, block_windows=8)
    out = jax.block_until_ready(out)
    np.testing.assert_allclose(np.asarray(out), np.asarray(ref), rtol=5e-3, atol=5e-3)

    # 2) f32 path with B_ not a multiple of block_windows (exercises padding).
    out_pad = window_attention_up(x[:11], kv[:11], params, num_heads=num_heads,
                                  window_size=window_size, block_windows=8)
    out_pad = jax.block_until_ready(out_pad)
    np.testing.assert_allclose(np.asarray(out_pad), np.asarray(ref[:11]),
                               rtol=5e-3, atol=5e-3)

    # 3) bf16 activation/weight path (MXU fed bf16 operands, f32 accumulation).
    out_bf16 = window_attention_up(x.astype(jnp.bfloat16), kv.astype(jnp.bfloat16),
                                   params, num_heads=num_heads,
                                   window_size=window_size, block_windows=8)
    out_bf16 = jax.block_until_ready(out_bf16)
    np.testing.assert_allclose(np.asarray(out_bf16.astype(jnp.float32)),
                               np.asarray(ref), rtol=0.1, atol=0.1)

    print("KERNEL_OK")
</pallas_src>

<mosaic_0001>
module attributes {stable_mosaic.version = 11 : i64} {
  func.func @_window_attention_kernel(%arg0: i32, %arg1: memref<8x16x32xf32, #tpu.memory_space<vmem>>, %arg2: memref<8x16x32xf32, #tpu.memory_space<vmem>>, %arg3: memref<32x32xf32, #tpu.memory_space<vmem>>, %arg4: memref<1x32xf32, #tpu.memory_space<vmem>>, %arg5: memref<32x64xf32, #tpu.memory_space<vmem>>, %arg6: memref<1x64xf32, #tpu.memory_space<vmem>>, %arg7: memref<4x16x16xf32, #tpu.memory_space<vmem>>, %arg8: memref<4x16x16xf32, #tpu.memory_space<vmem>>, %arg9: memref<32x32xf32, #tpu.memory_space<vmem>>, %arg10: memref<1x32xf32, #tpu.memory_space<vmem>>, %arg11: memref<8x16x32xf32, #tpu.memory_space<vmem>>, %arg12: memref<128x32xf32, #tpu.memory_space<vmem>>) attributes {dimension_semantics = [#tpu.dimension_semantics<parallel>], iteration_bounds = array<i64: 2>, scalar_prefetch = 0 : i64, scratch_operands = 1 : i64, tpu.core_type = #tpu.core_type<tc>, window_params = [{transform_indices = @transform_0, window_bounds = array<i64: 8, 16, 32>}, {transform_indices = @transform_1, window_bounds = array<i64: 8, 16, 32>}, {pipeline_mode = #tpu.pipeline_mode<synchronous>, transform_indices = @transform_2, window_bounds = array<i64: 32, 32>}, {pipeline_mode = #tpu.pipeline_mode<synchronous>, transform_indices = @transform_3, window_bounds = array<i64: 1, 32>}, {pipeline_mode = #tpu.pipeline_mode<synchronous>, transform_indices = @transform_4, window_bounds = array<i64: 32, 64>}, {pipeline_mode = #tpu.pipeline_mode<synchronous>, transform_indices = @transform_5, window_bounds = array<i64: 1, 64>}, {pipeline_mode = #tpu.pipeline_mode<synchronous>, transform_indices = @transform_6, window_bounds = array<i64: 4, 16, 16>}, {pipeline_mode = #tpu.pipeline_mode<synchronous>, transform_indices = @transform_7, window_bounds = array<i64: 4, 16, 16>}, {pipeline_mode = #tpu.pipeline_mode<synchronous>, transform_indices = @transform_8, window_bounds = array<i64: 32, 32>}, {pipeline_mode = #tpu.pipeline_mode<synchronous>, transform_indices = @transform_9, window_bounds = array<i64: 1, 32>}, {transform_indices = @transform_10, window_bounds = array<i64: 8, 16, 32>}]} {
    %c0 = arith.constant 0 : index
    %c0_0 = arith.constant 0 : index
    %c0_1 = arith.constant 0 : index
    %0 = vector.load %arg1[%c0, %c0_0, %c0_1] : memref<8x16x32xf32, #tpu.memory_space<vmem>>, vector<8x16x32xf32>
    %1 = vector.shape_cast %0 : vector<8x16x32xf32> to vector<128x32xf32>
    %c0_2 = arith.constant 0 : index
    %c0_3 = arith.constant 0 : index
    %c0_4 = arith.constant 0 : index
    %2 = vector.load %arg2[%c0_2, %c0_3, %c0_4] : memref<8x16x32xf32, #tpu.memory_space<vmem>>, vector<8x16x32xf32>
    %3 = vector.shape_cast %2 : vector<8x16x32xf32> to vector<128x32xf32>
    %c0_5 = arith.constant 0 : index
    %c0_6 = arith.constant 0 : index
    %4 = vector.load %arg3[%c0_5, %c0_6] : memref<32x32xf32, #tpu.memory_space<vmem>>, vector<32x32xf32>
    %cst = arith.constant dense<0.000000e+00> : vector<128x32xf32>
    %5 = tpu.matmul %1, %4, %cst {dimension_numbers = #tpu.dot_dimension_numbers<[1], [0], [0], [1], [0, 0, 1, 1], [], []>} : vector<128x32xf32>, vector<32x32xf32>, vector<128x32xf32> -> vector<128x32xf32>
    %c0_7 = arith.constant 0 : index
    %c0_8 = arith.constant 0 : index
    %6 = vector.load %arg4[%c0_7, %c0_8] : memref<1x32xf32, #tpu.memory_space<vmem>>, vector<1x32xf32>
    %7 = vector.broadcast %6 : vector<1x32xf32> to vector<128x32xf32>
    %8 = arith.addf %5, %7 : vector<128x32xf32>
    %c0_9 = arith.constant 0 : index
    %c0_10 = arith.constant 0 : index
    %9 = vector.load %arg5[%c0_9, %c0_10] : memref<32x64xf32, #tpu.memory_space<vmem>>, vector<32x64xf32>
    %cst_11 = arith.constant dense<0.000000e+00> : vector<128x64xf32>
    %10 = tpu.matmul %3, %9, %cst_11 {dimension_numbers = #tpu.dot_dimension_numbers<[1], [0], [0], [1], [0, 0, 1, 1], [], []>} : vector<128x32xf32>, vector<32x64xf32>, vector<128x64xf32> -> vector<128x64xf32>
    %c0_12 = arith.constant 0 : index
    %c0_13 = arith.constant 0 : index
    %11 = vector.load %arg6[%c0_12, %c0_13] : memref<1x64xf32, #tpu.memory_space<vmem>>, vector<1x64xf32>
    %12 = vector.broadcast %11 : vector<1x64xf32> to vector<128x64xf32>
    %13 = arith.addf %10, %12 : vector<128x64xf32>
    %14 = vector.extract_strided_slice %13 {offsets = [0, 0], sizes = [128, 32], strides = [1, 1]} : vector<128x64xf32> to vector<128x32xf32>
    %15 = vector.extract_strided_slice %13 {offsets = [0, 32], sizes = [128, 32], strides = [1, 1]} : vector<128x64xf32> to vector<128x32xf32>
    %cst_14 = arith.constant 1.000000e+00 : f32
    %16 = vector.broadcast %cst_14 : f32 to vector<8x1x8xf32>
    %17 = vector.extract_strided_slice %8 {offsets = [0, 0], sizes = [128, 8], strides = [1, 1]} : vector<128x32xf32> to vector<128x8xf32>
    %18 = vector.shape_cast %17 : vector<128x8xf32> to vector<8x16x8xf32>
    %19 = vector.extract_strided_slice %14 {offsets = [0, 0], sizes = [128, 8], strides = [1, 1]} : vector<128x32xf32> to vector<128x8xf32>
    %20 = vector.shape_cast %19 : vector<128x8xf32> to vector<8x16x8xf32>
    %21 = vector.extract_strided_slice %15 {offsets = [0, 0], sizes = [128, 8], strides = [1, 1]} : vector<128x32xf32> to vector<128x8xf32>
    %22 = vector.shape_cast %21 : vector<128x8xf32> to vector<8x16x8xf32>
    "tpu.trace_start"() <{level = 10 : i32, message = "bqd,bkd->bqk"}> : () -> ()
    %cst_15 = arith.constant dense<0.000000e+00> : vector<8x16x16xf32>
    %23 = tpu.matmul %18, %20, %cst_15 {dimension_numbers = #tpu.dot_dimension_numbers<[2], [2], [1], [1], [0, 0, 0, 1, 1, 1], [0], [0]>} : vector<8x16x8xf32>, vector<8x16x8xf32>, vector<8x16x16xf32> -> vector<8x16x16xf32>
    "tpu.trace_stop"() : () -> ()
    %24 = arith.mulf %18, %18 : vector<8x16x8xf32>
    %cst_16 = arith.constant dense<0.000000e+00> : vector<8x16xf32>
    %25 = vector.multi_reduction <add>, %24, %cst_16 [2] : vector<8x16x8xf32> to vector<8x16xf32>
    %26 = vector.shape_cast %25 : vector<8x16xf32> to vector<8x16x1xf32>
    %27 = math.sqrt %26 : vector<8x16x1xf32>
    %28 = arith.mulf %20, %20 : vector<8x16x8xf32>
    "tpu.trace_start"() <{level = 10 : i32, message = "bod,bkd->bok"}> : () -> ()
    %cst_17 = arith.constant dense<0.000000e+00> : vector<8x1x16xf32>
    %29 = tpu.matmul %16, %28, %cst_17 {dimension_numbers = #tpu.dot_dimension_numbers<[2], [2], [1], [1], [0, 0, 0, 1, 1, 1], [0], [0]>} : vector<8x1x8xf32>, vector<8x16x8xf32>, vector<8x1x16xf32> -> vector<8x1x16xf32>
    "tpu.trace_stop"() : () -> ()
    %30 = math.sqrt %29 : vector<8x1x16xf32>
    %31 = vector.broadcast %27 : vector<8x16x1xf32> to vector<8x16x16xf32>
    %32 = vector.broadcast %30 : vector<8x1x16xf32> to vector<8x16x16xf32>
    %33 = arith.mulf %31, %32 : vector<8x16x16xf32>
    %cst_18 = arith.constant 9.99999997E-7 : f32
    %34 = vector.broadcast %cst_18 : f32 to vector<8x16x16xf32>
    %35 = arith.maximumf %33, %34 : vector<8x16x16xf32>
    %36 = tpu.reciprocal %35 : vector<8x16x16xf32> -> vector<8x16x16xf32>
    %37 = arith.mulf %23, %36 : vector<8x16x16xf32>
    %c0_19 = arith.constant 0 : index
    %c0_20 = arith.constant 0 : index
    %c0_21 = arith.constant 0 : index
    %38 = vector.load %arg7[%c0_19, %c0_20, %c0_21] : memref<4x16x16xf32, #tpu.memory_space<vmem>>, vector<1x16x16xf32>
    %39 = vector.shape_cast %38 : vector<1x16x16xf32> to vector<16x16xf32>
    %40 = vector.shape_cast %39 : vector<16x16xf32> to vector<1x16x16xf32>
    %41 = vector.broadcast %40 : vector<1x16x16xf32> to vector<8x16x16xf32>
    %42 = arith.mulf %37, %41 : vector<8x16x16xf32>
    %c0_22 = arith.constant 0 : index
    %c0_23 = arith.constant 0 : index
    %c0_24 = arith.constant 0 : index
    %43 = vector.load %arg8[%c0_22, %c0_23, %c0_24] : memref<4x16x16xf32, #tpu.memory_space<vmem>>, vector<1x16x16xf32>
    %44 = vector.shape_cast %43 : vector<1x16x16xf32> to vector<16x16xf32>
    %45 = vector.shape_cast %44 : vector<16x16xf32> to vector<1x16x16xf32>
    %46 = vector.broadcast %45 : vector<1x16x16xf32> to vector<8x16x16xf32>
    %47 = arith.addf %42, %46 : vector<8x16x16xf32>
    %cst_25 = arith.constant dense<0xFF800000> : vector<8x16xf32>
    %48 = vector.multi_reduction <maximumf>, %47, %cst_25 [2] : vector<8x16x16xf32> to vector<8x16xf32>
    %49 = vector.shape_cast %48 : vector<8x16xf32> to vector<8x16x1xf32>
    %50 = vector.broadcast %49 : vector<8x16x1xf32> to vector<8x16x16xf32>
    %51 = arith.subf %47, %50 : vector<8x16x16xf32>
    %52 = math.exp %51 : vector<8x16x16xf32>
    %cst_26 = arith.constant dense<0.000000e+00> : vector<8x16xf32>
    %53 = vector.multi_reduction <add>, %52, %cst_26 [2] : vector<8x16x16xf32> to vector<8x16xf32>
    %54 = vector.shape_cast %53 : vector<8x16xf32> to vector<8x16x1xf32>
    %55 = tpu.reciprocal %54 {approx = true} : vector<8x16x1xf32> -> vector<8x16x1xf32>
    %56 = vector.broadcast %55 : vector<8x16x1xf32> to vector<8x16x16xf32>
    %57 = arith.mulf %52, %56 : vector<8x16x16xf32>
    "tpu.trace_start"() <{level = 10 : i32, message = "bqk,bkd->bqd"}> : () -> ()
    %cst_27 = arith.constant dense<0.000000e+00> : vector<8x16x8xf32>
    %58 = tpu.matmul %57, %22, %cst_27 {dimension_numbers = #tpu.dot_dimension_numbers<[2], [1], [1], [2], [0, 0, 0, 1, 1, 2], [0], [0]>} : vector<8x16x16xf32>, vector<8x16x8xf32>, vector<8x16x8xf32> -> vector<8x16x8xf32>
    "tpu.trace_stop"() : () -> ()
    %59 = vector.shape_cast %58 : vector<8x16x8xf32> to vector<128x8xf32>
    %c0_28 = arith.constant 0 : index
    %c0_29 = arith.constant 0 : index
    %60 = vector.load %arg12[%c0_28, %c0_29] : memref<128x32xf32, #tpu.memory_space<vmem>>, vector<128x8xf32>
    tpu.vector_store %arg12[%c0_28, %c0_29], %59 {strides = array<i32>} : memref<128x32xf32, #tpu.memory_space<vmem>>, vector<128x8xf32>,
    %61 = vector.extract_strided_slice %8 {offsets = [0, 8], sizes = [128, 8], strides = [1, 1]} : vector<128x32xf32> to vector<128x8xf32>
    %62 = vector.shape_cast %61 : vector<128x8xf32> to vector<8x16x8xf32>
    %63 = vector.extract_strided_slice %14 {offsets = [0, 8], sizes = [128, 8], strides = [1, 1]} : vector<128x32xf32> to vector<128x8xf32>
    %64 = vector.shape_cast %63 : vector<128x8xf32> to vector<8x16x8xf32>
    %65 = vector.extract_strided_slice %15 {offsets = [0, 8], sizes = [128, 8], strides = [1, 1]} : vector<128x32xf32> to vector<128x8xf32>
    %66 = vector.shape_cast %65 : vector<128x8xf32> to vector<8x16x8xf32>
    "tpu.trace_start"() <{level = 10 : i32, message = "bqd,bkd->bqk"}> : () -> ()
    %cst_30 = arith.constant dense<0.000000e+00> : vector<8x16x16xf32>
    %67 = tpu.matmul %62, %64, %cst_30 {dimension_numbers = #tpu.dot_dimension_numbers<[2], [2], [1], [1], [0, 0, 0, 1, 1, 1], [0], [0]>} : vector<8x16x8xf32>, vector<8x16x8xf32>, vector<8x16x16xf32> -> vector<8x16x16xf32>
    "tpu.trace_stop"() : () -> ()
    %68 = arith.mulf %62, %62 : vector<8x16x8xf32>
    %cst_31 = arith.constant dense<0.000000e+00> : vector<8x16xf32>
    %69 = vector.multi_reduction <add>, %68, %cst_31 [2] : vector<8x16x8xf32> to vector<8x16xf32>
    %70 = vector.shape_cast %69 : vector<8x16xf32> to vector<8x16x1xf32>
    %71 = math.sqrt %70 : vector<8x16x1xf32>
    %72 = arith.mulf %64, %64 : vector<8x16x8xf32>
    "tpu.trace_start"() <{level = 10 : i32, message = "bod,bkd->bok"}> : () -> ()
    %cst_32 = arith.constant dense<0.000000e+00> : vector<8x1x16xf32>
    %73 = tpu.matmul %16, %72, %cst_32 {dimension_numbers = #tpu.dot_dimension_numbers<[2], [2], [1], [1], [0, 0, 0, 1, 1, 1], [0], [0]>} : vector<8x1x8xf32>, vector<8x16x8xf32>, vector<8x1x16xf32> -> vector<8x1x16xf32>
    "tpu.trace_stop"() : () -> ()
    %74 = math.sqrt %73 : vector<8x1x16xf32>
    %75 = vector.broadcast %71 : vector<8x16x1xf32> to vector<8x16x16xf32>
    %76 = vector.broadcast %74 : vector<8x1x16xf32> to vector<8x16x16xf32>
    %77 = arith.mulf %75, %76 : vector<8x16x16xf32>
    %cst_33 = arith.constant 9.99999997E-7 : f32
    %78 = vector.broadcast %cst_33 : f32 to vector<8x16x16xf32>
    %79 = arith.maximumf %77, %78 : vector<8x16x16xf32>
    %80 = tpu.reciprocal %79 : vector<8x16x16xf32> -> vector<8x16x16xf32>
    %81 = arith.mulf %67, %80 : vector<8x16x16xf32>
    %c1 = arith.constant 1 : index
    %c0_34 = arith.constant 0 : index
    %c0_35 = arith.constant 0 : index
    %82 = vector.load %arg7[%c1, %c0_34, %c0_35] : memref<4x16x16xf32, #tpu.memory_space<vmem>>, vector<1x16x16xf32>
    %83 = vector.shape_cast %82 : vector<1x16x16xf32> to vector<16x16xf32>
    %84 = vector.shape_cast %83 : vector<16x16xf32> to vector<1x16x16xf32>
    %85 = vector.broadcast %84 : vector<1x16x16xf32> to vector<8x16x16xf32>
    %86 = arith.mulf %81, %85 : vector<8x16x16xf32>
    %c1_36 = arith.constant 1 : index
    %c0_37 = arith.constant 0 : index
    %c0_38 = arith.constant 0 : index
    %87 = vector.load %arg8[%c1_36, %c0_37, %c0_38] : memref<4x16x16xf32, #tpu.memory_space<vmem>>, vector<1x16x16xf32>
    %88 = vector.shape_cast %87 : vector<1x16x16xf32> to vector<16x16xf32>
    %89 = vector.shape_cast %88 : vector<16x16xf32> to vector<1x16x16xf32>
    %90 = vector.broadcast %89 : vector<1x16x16xf32> to vector<8x16x16xf32>
    %91 = arith.addf %86, %90 : vector<8x16x16xf32>
    %cst_39 = arith.constant dense<0xFF800000> : vector<8x16xf32>
    %92 = vector.multi_reduction <maximumf>, %91, %cst_39 [2] : vector<8x16x16xf32> to vector<8x16xf32>
    %93 = vector.shape_cast %92 : vector<8x16xf32> to vector<8x16x1xf32>
    %94 = vector.broadcast %93 : vector<8x16x1xf32> to vector<8x16x16xf32>
    %95 = arith.subf %91, %94 : vector<8x16x16xf32>
    %96 = math.exp %95 : vector<8x16x16xf32>
    %cst_40 = arith.constant dense<0.000000e+00> : vector<8x16xf32>
    %97 = vector.multi_reduction <add>, %96, %cst_40 [2] : vector<8x16x16xf32> to vector<8x16xf32>
    %98 = vector.shape_cast %97 : vector<8x16xf32> to vector<8x16x1xf32>
    %99 = tpu.reciprocal %98 {approx = true} : vector<8x16x1xf32> -> vector<8x16x1xf32>
    %100 = vector.broadcast %99 : vector<8x16x1xf32> to vector<8x16x16xf32>
    %101 = arith.mulf %96, %100 : vector<8x16x16xf32>
    "tpu.trace_start"() <{level = 10 : i32, message = "bqk,bkd->bqd"}> : () -> ()
    %cst_41 = arith.constant dense<0.000000e+00> : vector<8x16x8xf32>
    %102 = tpu.matmul %101, %66, %cst_41 {dimension_numbers = #tpu.dot_dimension_numbers<[2], [1], [1], [2], [0, 0, 0, 1, 1, 2], [0], [0]>} : vector<8x16x16xf32>, vector<8x16x8xf32>, vector<8x16x8xf32> -> vector<8x16x8xf32>
    "tpu.trace_stop"() : () -> ()
    %103 = vector.shape_cast %102 : vector<8x16x8xf32> to vector<128x8xf32>
    %c0_42 = arith.constant 0 : index
    %c8 = arith.constant 8 : index
    %104 = vector.load %arg12[%c0_42, %c8] : memref<128x32xf32, #tpu.memory_space<vmem>>, vector<128x8xf32>
    tpu.vector_store %arg12[%c0_42, %c8], %103 {strides = array<i32>} : memref<128x32xf32, #tpu.memory_space<vmem>>, vector<128x8xf32>,
    %105 = vector.extract_strided_slice %8 {offsets = [0, 16], sizes = [128, 8], strides = [1, 1]} : vector<128x32xf32> to vector<128x8xf32>
    %106 = vector.shape_cast %105 : vector<128x8xf32> to vector<8x16x8xf32>
    %107 = vector.extract_strided_slice %14 {offsets = [0, 16], sizes = [128, 8], strides = [1, 1]} : vector<128x32xf32> to vector<128x8xf32>
    %108 = vector.shape_cast %107 : vector<128x8xf32> to vector<8x16x8xf32>
    %109 = vector.extract_strided_slice %15 {offsets = [0, 16], sizes = [128, 8], strides = [1, 1]} : vector<128x32xf32> to vector<128x8xf32>
    %110 = vector.shape_cast %109 : vector<128x8xf32> to vector<8x16x8xf32>
    "tpu.trace_start"() <{level = 10 : i32, message = "bqd,bkd->bqk"}> : () -> ()
    %cst_43 = arith.constant dense<0.000000e+00> : vector<8x16x16xf32>
    %111 = tpu.matmul %106, %108, %cst_43 {dimension_numbers = #tpu.dot_dimension_numbers<[2], [2], [1], [1], [0, 0, 0, 1, 1, 1], [0], [0]>} : vector<8x16x8xf32>, vector<8x16x8xf32>, vector<8x16x16xf32> -> vector<8x16x16xf32>
    "tpu.trace_stop"() : () -> ()
    %112 = arith.mulf %106, %106 : vector<8x16x8xf32>
    %cst_44 = arith.constant dense<0.000000e+00> : vector<8x16xf32>
    %113 = vector.multi_reduction <add>, %112, %cst_44 [2] : vector<8x16x8xf32> to vector<8x16xf32>
    %114 = vector.shape_cast %113 : vector<8x16xf32> to vector<8x16x1xf32>
    %115 = math.sqrt %114 : vector<8x16x1xf32>
    %116 = arith.mulf %108, %108 : vector<8x16x8xf32>
    "tpu.trace_start"() <{level = 10 : i32, message = "bod,bkd->bok"}> : () -> ()
    %cst_45 = arith.constant dense<0.000000e+00> : vector<8x1x16xf32>
    %117 = tpu.matmul %16, %116, %cst_45 {dimension_numbers = #tpu.dot_dimension_numbers<[2], [2], [1], [1], [0, 0, 0, 1, 1, 1], [0], [0]>} : vector<8x1x8xf32>, vector<8x16x8xf32>, vector<8x1x16xf32> -> vector<8x1x16xf32>
    "tpu.trace_stop"() : () -> ()
    %118 = math.sqrt %117 : vector<8x1x16xf32>
    %119 = vector.broadcast %115 : vector<8x16x1xf32> to vector<8x16x16xf32>
    %120 = vector.broadcast %118 : vector<8x1x16xf32> to vector<8x16x16xf32>
    %121 = arith.mulf %119, %120 : vector<8x16x16xf32>
    %cst_46 = arith.constant 9.99999997E-7 : f32
    %122 = vector.broadcast %cst_46 : f32 to vector<8x16x16xf32>
    %123 = arith.maximumf %121, %122 : vector<8x16x16xf32>
    %124 = tpu.reciprocal %123 : vector<8x16x16xf32> -> vector<8x16x16xf32>
    %125 = arith.mulf %111, %124 : vector<8x16x16xf32>
    %c2 = arith.constant 2 : index
    %c0_47 = arith.constant 0 : index
    %c0_48 = arith.constant 0 : index
    %126 = vector.load %arg7[%c2, %c0_47, %c0_48] : memref<4x16x16xf32, #tpu.memory_space<vmem>>, vector<1x16x16xf32>
    %127 = vector.shape_cast %126 : vector<1x16x16xf32> to vector<16x16xf32>
    %128 = vector.shape_cast %127 : vector<16x16xf32> to vector<1x16x16xf32>
    %129 = vector.broadcast %128 : vector<1x16x16xf32> to vector<8x16x16xf32>
    %130 = arith.mulf %125, %129 : vector<8x16x16xf32>
    %c2_49 = arith.constant 2 : index
    %c0_50 = arith.constant 0 : index
    %c0_51 = arith.constant 0 : index
    %131 = vector.load %arg8[%c2_49, %c0_50, %c0_51] : memref<4x16x16xf32, #tpu.memory_space<vmem>>, vector<1x16x16xf32>
    %132 = vector.shape_cast %131 : vector<1x16x16xf32> to vector<16x16xf32>
    %133 = vector.shape_cast %132 : vector<16x16xf32> to vector<1x16x16xf32>
    %134 = vector.broadcast %133 : vector<1x16x16xf32> to vector<8x16x16xf32>
    %135 = arith.addf %130, %134 : vector<8x16x16xf32>
    %cst_52 = arith.constant dense<0xFF800000> : vector<8x16xf32>
    %136 = vector.multi_reduction <maximumf>, %135, %cst_52 [2] : vector<8x16x16xf32> to vector<8x16xf32>
    %137 = vector.shape_cast %136 : vector<8x16xf32> to vector<8x16x1xf32>
    %138 = vector.broadcast %137 : vector<8x16x1xf32> to vector<8x16x16xf32>
    %139 = arith.subf %135, %138 : vector<8x16x16xf32>
    %140 = math.exp %139 : vector<8x16x16xf32>
    %cst_53 = arith.constant dense<0.000000e+00> : vector<8x16xf32>
    %141 = vector.multi_reduction <add>, %140, %cst_53 [2] : vector<8x16x16xf32> to vector<8x16xf32>
    %142 = vector.shape_cast %141 : vector<8x16xf32> to vector<8x16x1xf32>
    %143 = tpu.reciprocal %142 {approx = true} : vector<8x16x1xf32> -> vector<8x16x1xf32>
    %144 = vector.broadcast %143 : vector<8x16x1xf32> to vector<8x16x16xf32>
    %145 = arith.mulf %140, %144 : vector<8x16x16xf32>
    "tpu.trace_start"() <{level = 10 : i32, message = "bqk,bkd->bqd"}> : () -> ()
    %cst_54 = arith.constant dense<0.000000e+00> : vector<8x16x8xf32>
    %146 = tpu.matmul %145, %110, %cst_54 {dimension_numbers = #tpu.dot_dimension_numbers<[2], [1], [1], [2], [0, 0, 0, 1, 1, 2], [0], [0]>} : vector<8x16x16xf32>, vector<8x16x8xf32>, vector<8x16x8xf32> -> vector<8x16x8xf32>
    "tpu.trace_stop"() : () -> ()
    %147 = vector.shape_cast %146 : vector<8x16x8xf32> to vector<128x8xf32>
    %c0_55 = arith.constant 0 : index
    %c16 = arith.constant 16 : index
    %148 = vector.load %arg12[%c0_55, %c16] : memref<128x32xf32, #tpu.memory_space<vmem>>, vector<128x8xf32>
    tpu.vector_store %arg12[%c0_55, %c16], %147 {strides = array<i32>} : memref<128x32xf32, #tpu.memory_space<vmem>>, vector<128x8xf32>,
    %149 = vector.extract_strided_slice %8 {offsets = [0, 24], sizes = [128, 8], strides = [1, 1]} : vector<128x32xf32> to vector<128x8xf32>
    %150 = vector.shape_cast %149 : vector<128x8xf32> to vector<8x16x8xf32>
    %151 = vector.extract_strided_slice %14 {offsets = [0, 24], sizes = [128, 8], strides = [1, 1]} : vector<128x32xf32> to vector<128x8xf32>
    %152 = vector.shape_cast %151 : vector<128x8xf32> to vector<8x16x8xf32>
    %153 = vector.extract_strided_slice %15 {offsets = [0, 24], sizes = [128, 8], strides = [1, 1]} : vector<128x32xf32> to vector<128x8xf32>
    %154 = vector.shape_cast %153 : vector<128x8xf32> to vector<8x16x8xf32>
    "tpu.trace_start"() <{level = 10 : i32, message = "bqd,bkd->bqk"}> : () -> ()
    %cst_56 = arith.constant dense<0.000000e+00> : vector<8x16x16xf32>
    %155 = tpu.matmul %150, %152, %cst_56 {dimension_numbers = #tpu.dot_dimension_numbers<[2], [2], [1], [1], [0, 0, 0, 1, 1, 1], [0], [0]>} : vector<8x16x8xf32>, vector<8x16x8xf32>, vector<8x16x16xf32> -> vector<8x16x16xf32>
    "tpu.trace_stop"() : () -> ()
    %156 = arith.mulf %150, %150 : vector<8x16x8xf32>
    %cst_57 = arith.constant dense<0.000000e+00> : vector<8x16xf32>
    %157 = vector.multi_reduction <add>, %156, %cst_57 [2] : vector<8x16x8xf32> to vector<8x16xf32>
    %158 = vector.shape_cast %157 : vector<8x16xf32> to vector<8x16x1xf32>
    %159 = math.sqrt %158 : vector<8x16x1xf32>
    %160 = arith.mulf %152, %152 : vector<8x16x8xf32>
    "tpu.trace_start"() <{level = 10 : i32, message = "bod,bkd->bok"}> : () -> ()
    %cst_58 = arith.constant dense<0.000000e+00> : vector<8x1x16xf32>
    %161 = tpu.matmul %16, %160, %cst_58 {dimension_numbers = #tpu.dot_dimension_numbers<[2], [2], [1], [1], [0, 0, 0, 1, 1, 1], [0], [0]>} : vector<8x1x8xf32>, vector<8x16x8xf32>, vector<8x1x16xf32> -> vector<8x1x16xf32>
    "tpu.trace_stop"() : () -> ()
    %162 = math.sqrt %161 : vector<8x1x16xf32>
    %163 = vector.broadcast %159 : vector<8x16x1xf32> to vector<8x16x16xf32>
    %164 = vector.broadcast %162 : vector<8x1x16xf32> to vector<8x16x16xf32>
    %165 = arith.mulf %163, %164 : vector<8x16x16xf32>
    %cst_59 = arith.constant 9.99999997E-7 : f32
    %166 = vector.broadcast %cst_59 : f32 to vector<8x16x16xf32>
    %167 = arith.maximumf %165, %166 : vector<8x16x16xf32>
    %168 = tpu.reciprocal %167 : vector<8x16x16xf32> -> vector<8x16x16xf32>
    %169 = arith.mulf %155, %168 : vector<8x16x16xf32>
    %c3 = arith.constant 3 : index
    %c0_60 = arith.constant 0 : index
    %c0_61 = arith.constant 0 : index
    %170 = vector.load %arg7[%c3, %c0_60, %c0_61] : memref<4x16x16xf32, #tpu.memory_space<vmem>>, vector<1x16x16xf32>
    %171 = vector.shape_cast %170 : vector<1x16x16xf32> to vector<16x16xf32>
    %172 = vector.shape_cast %171 : vector<16x16xf32> to vector<1x16x16xf32>
    %173 = vector.broadcast %172 : vector<1x16x16xf32> to vector<8x16x16xf32>
    %174 = arith.mulf %169, %173 : vector<8x16x16xf32>
    %c3_62 = arith.constant 3 : index
    %c0_63 = arith.constant 0 : index
    %c0_64 = arith.constant 0 : index
    %175 = vector.load %arg8[%c3_62, %c0_63, %c0_64] : memref<4x16x16xf32, #tpu.memory_space<vmem>>, vector<1x16x16xf32>
    %176 = vector.shape_cast %175 : vector<1x16x16xf32> to vector<16x16xf32>
    %177 = vector.shape_cast %176 : vector<16x16xf32> to vector<1x16x16xf32>
    %178 = vector.broadcast %177 : vector<1x16x16xf32> to vector<8x16x16xf32>
    %179 = arith.addf %174, %178 : vector<8x16x16xf32>
    %cst_65 = arith.constant dense<0xFF800000> : vector<8x16xf32>
    %180 = vector.multi_reduction <maximumf>, %179, %cst_65 [2] : vector<8x16x16xf32> to vector<8x16xf32>
    %181 = vector.shape_cast %180 : vector<8x16xf32> to vector<8x16x1xf32>
    %182 = vector.broadcast %181 : vector<8x16x1xf32> to vector<8x16x16xf32>
    %183 = arith.subf %179, %182 : vector<8x16x16xf32>
    %184 = math.exp %183 : vector<8x16x16xf32>
    %cst_66 = arith.constant dense<0.000000e+00> : vector<8x16xf32>
    %185 = vector.multi_reduction <add>, %184, %cst_66 [2] : vector<8x16x16xf32> to vector<8x16xf32>
    %186 = vector.shape_cast %185 : vector<8x16xf32> to vector<8x16x1xf32>
    %187 = tpu.reciprocal %186 {approx = true} : vector<8x16x1xf32> -> vector<8x16x1xf32>
    %188 = vector.broadcast %187 : vector<8x16x1xf32> to vector<8x16x16xf32>
    %189 = arith.mulf %184, %188 : vector<8x16x16xf32>
    "tpu.trace_start"() <{level = 10 : i32, message = "bqk,bkd->bqd"}> : () -> ()
    %cst_67 = arith.constant dense<0.000000e+00> : vector<8x16x8xf32>
    %190 = tpu.matmul %189, %154, %cst_67 {dimension_numbers = #tpu.dot_dimension_numbers<[2], [1], [1], [2], [0, 0, 0, 1, 1, 2], [0], [0]>} : vector<8x16x16xf32>, vector<8x16x8xf32>, vector<8x16x8xf32> -> vector<8x16x8xf32>
    "tpu.trace_stop"() : () -> ()
    %191 = vector.shape_cast %190 : vector<8x16x8xf32> to vector<128x8xf32>
    %c0_68 = arith.constant 0 : index
    %c24 = arith.constant 24 : index
    %192 = vector.load %arg12[%c0_68, %c24] : memref<128x32xf32, #tpu.memory_space<vmem>>, vector<128x8xf32>
    tpu.vector_store %arg12[%c0_68, %c24], %191 {strides = array<i32>} : memref<128x32xf32, #tpu.memory_space<vmem>>, vector<128x8xf32>,
    %c0_69 = arith.constant 0 : index
    %c0_70 = arith.constant 0 : index
    %193 = vector.load %arg12[%c0_69, %c0_70] : memref<128x32xf32, #tpu.memory_space<vmem>>, vector<128x32xf32>
    %c0_71 = arith.constant 0 : index
    %c0_72 = arith.constant 0 : index
    %194 = vector.load %arg9[%c0_71, %c0_72] : memref<32x32xf32, #tpu.memory_space<vmem>>, vector<32x32xf32>
    %cst_73 = arith.constant dense<0.000000e+00> : vector<128x32xf32>
    %195 = tpu.matmul %193, %194, %cst_73 {dimension_numbers = #tpu.dot_dimension_numbers<[1], [0], [0], [1], [0, 0, 1, 1], [], []>} : vector<128x32xf32>, vector<32x32xf32>, vector<128x32xf32> -> vector<128x32xf32>
    %c0_74 = arith.constant 0 : index
    %c0_75 = arith.constant 0 : index
    %196 = vector.load %arg10[%c0_74, %c0_75] : memref<1x32xf32, #tpu.memory_space<vmem>>, vector<1x32xf32>
    %197 = vector.broadcast %196 : vector<1x32xf32> to vector<128x32xf32>
    %198 = arith.addf %195, %197 : vector<128x32xf32>
    %199 = vector.shape_cast %198 : vector<128x32xf32> to vector<8x16x32xf32>
    %c0_76 = arith.constant 0 : index
    %c0_77 = arith.constant 0 : index
    %c0_78 = arith.constant 0 : index
    %200 = vector.load %arg11[%c0_76, %c0_77, %c0_78] : memref<8x16x32xf32, #tpu.memory_space<vmem>>, vector<8x16x32xf32>
    tpu.vector_store %arg11[%c0_76, %c0_77, %c0_78], %199 {strides = array<i32>} : memref<8x16x32xf32, #tpu.memory_space<vmem>>, vector<8x16x32xf32>,
    return
  }
  func.func @transform_0(%arg0: i32) -> (i32, i32, i32) {
    %c0_i32 = arith.constant 0 : i32
    %c0_i32_0 = arith.constant 0 : i32
    %c0_i32_1 = arith.constant 0 : i32
    return %arg0, %c0_i32, %c0_i32_0 : i32, i32, i32
  }
  func.func @transform_1(%arg0: i32) -> (i32, i32, i32) {
    %c0_i32 = arith.constant 0 : i32
    %c0_i32_0 = arith.constant 0 : i32
    %c0_i32_1 = arith.constant 0 : i32
    return %arg0, %c0_i32, %c0_i32_0 : i32, i32, i32
  }
  func.func @transform_2(%arg0: i32) -> (i32, i32) {
    %c0_i32 = arith.constant 0 : i32
    %c0_i32_0 = arith.constant 0 : i32
    %c0_i32_1 = arith.constant 0 : i32
    return %c0_i32, %c0_i32_0 : i32, i32
  }
  func.func @transform_3(%arg0: i32) -> (i32, i32) {
    %c0_i32 = arith.constant 0 : i32
    %c0_i32_0 = arith.constant 0 : i32
    %c0_i32_1 = arith.constant 0 : i32
    return %c0_i32, %c0_i32_0 : i32, i32
  }
  func.func @transform_4(%arg0: i32) -> (i32, i32) {
    %c0_i32 = arith.constant 0 : i32
    %c0_i32_0 = arith.constant 0 : i32
    %c0_i32_1 = arith.constant 0 : i32
    return %c0_i32, %c0_i32_0 : i32, i32
  }
  func.func @transform_5(%arg0: i32) -> (i32, i32) {
    %c0_i32 = arith.constant 0 : i32
    %c0_i32_0 = arith.constant 0 : i32
    %c0_i32_1 = arith.constant 0 : i32
    return %c0_i32, %c0_i32_0 : i32, i32
  }
  func.func @transform_6(%arg0: i32) -> (i32, i32, i32) {
    %c0_i32 = arith.constant 0 : i32
    %c0_i32_0 = arith.constant 0 : i32
    %c0_i32_1 = arith.constant 0 : i32
    %c0_i32_2 = arith.constant 0 : i32
    return %c0_i32, %c0_i32_0, %c0_i32_1 : i32, i32, i32
  }
  func.func @transform_7(%arg0: i32) -> (i32, i32, i32) {
    %c0_i32 = arith.constant 0 : i32
    %c0_i32_0 = arith.constant 0 : i32
    %c0_i32_1 = arith.constant 0 : i32
    %c0_i32_2 = arith.constant 0 : i32
    return %c0_i32, %c0_i32_0, %c0_i32_1 : i32, i32, i32
  }
  func.func @transform_8(%arg0: i32) -> (i32, i32) {
    %c0_i32 = arith.constant 0 : i32
    %c0_i32_0 = arith.constant 0 : i32
    %c0_i32_1 = arith.constant 0 : i32
    return %c0_i32, %c0_i32_0 : i32, i32
  }
  func.func @transform_9(%arg0: i32) -> (i32, i32) {
    %c0_i32 = arith.constant 0 : i32
    %c0_i32_0 = arith.constant 0 : i32
    %c0_i32_1 = arith.constant 0 : i32
    return %c0_i32, %c0_i32_0 : i32, i32
  }
  func.func @transform_10(%arg0: i32) -> (i32, i32, i32) {
    %c0_i32 = arith.constant 0 : i32
    %c0_i32_0 = arith.constant 0 : i32
    %c0_i32_1 = arith.constant 0 : i32
    return %arg0, %c0_i32, %c0_i32_0 : i32, i32, i32
  }
}

</mosaic_0001>

<bundles_post_ra>
// kernel: tpu_custom_call.1
= control target key start
LH: loop header
LB: loop body
LE: loop exit
PB: predicated region body
PF: predicated region fallthrough
CT: control target
= control target key end

     0   :  { %s15435_s0 = inlined_call_operand.hbm [shape: f32[16,16,32], index: 0, kind: input, shape index: {}]   ;;  %s15436_s1 = inlined_call_operand.hbm [shape: f32[16,16,32], index: 1, kind: input, shape index: {}]   ;;  %s15437_s2 = inlined_call_operand.hbm [shape: f32[32,32], index: 2, kind: input, shape index: {}]   ;;  %s15438_s3 = inlined_call_operand.vmem [shape: f32[1,32], index: 3, kind: input, shape index: {}]   ;;  %s15439_s4 = inlined_call_operand.hbm [shape: f32[32,64], index: 4, kind: input, shape index: {}]   ;;  %s15440_s5 = inlined_call_operand.vmem [shape: f32[1,64], index: 5, kind: input, shape index: {}]   ;;  %s15441_s6 = inlined_call_operand.hbm [shape: f32[4,16,16], index: 6, kind: input, shape index: {}]   ;;  %s15442_s7 = inlined_call_operand.hbm [shape: f32[4,16,16], index: 7, kind: input, shape index: {}]   ;;  %s15443_s8 = inlined_call_operand.hbm [shape: f32[32,32], index: 8, kind: input, shape index: {}]   ;;  %s15444_s9 = inlined_call_operand.vmem [shape: f32[1,32], index: 9, kind: input, shape index: {}]   ;;  %s15445_s10 = inlined_call_operand.hbm [shape: f32[16,16,32], index: 10, kind: output, shape index: {}]  }
   0x1   :  { %15613 = sst [smem:[#allocation150_spill]] %s15435_s0 }
   0x2   :  { %15614 = sst [smem:[#allocation151_spill]] %s15437_s2 }
   0x3   :  { %15615 = sst [smem:[#allocation152_spill]] %s15439_s4 }
   0x4   :  { %15616 = sst [smem:[#allocation153_spill]] %s15441_s6 }
   0x5   :  { %15617 = sst [smem:[#allocation154_spill]] %s15442_s7 }
   0x6   :  { %15618 = sst [smem:[#allocation155_spill]] %s15443_s8 }
   0x7   :  { %15 = vsyncpa [#allocation4], 0 }
   0x8   :  { %17 = vsyncpa [#allocation4 + $0x1], 0 }
   0x9   :  { %18 = vsyncpa [#allocation7], 0 }
   0xa   :  { %20 = vsyncpa [#allocation7 + $0x1], 0 }
   0xb   :  { %21 = vsyncpa [#allocation10], 0 }
   0xc   :  { %22 = vsyncpa [#allocation13], 0 }
   0xd   :  { %23 = vsyncpa [#allocation5], 0 }
   0xe   :  { %25 = vsyncpa [#allocation5 + $0x1], 0  ;;  %s9699_s13 = smov 0   ;;  %s9701_s14 = smov 0  }
   0xf   :  { %s9703_s15 = smov 0   ;;  %s9705_s16 = smov 0  }
  0x10 LB: > { %15619 = sst [smem:[#allocation22_spill]] %s9619_s15  ;;  %s9723_s20 = sadd.s32 4294967295, %s9623_s16   ;;  %s9623_s16 = sphi %s9705_s16, %s16315_s16   ;;  %s9619_s15 = sphi %s9703_s15, %s16312_s15   ;;  %s9615_s14 = sphi %s9701_s14, %s16314_s14   ;;  %s9611_s13 = sphi %s9699_s13, %s16313_s13  }
  0x11   : > { %s15620_s2 = sld [smem:[#allocation151_spill]]  ;;  %p8088_p0 = scmp.ge.s32.totalorder %s9623_s16, 1 }
  0x12   : > { %p52_p1 = scmp.eq.s32.totalorder %s9723_s20, 0  ;;  %p282_p2 = scmp.lt.s32.totalorder %s9623_s16, 3 }
  0x13   : > { %s9625_s22 = smov [#allocation8]   ;;  %s15622_s4 = sld [smem:[#allocation152_spill]] }
  0x14   : > { %p9728_p3 = pnand %p8088_p0, %p282_p2  ;;  %s295_s23 = sshll.u32 %s9625_s22, 4  ;;  %s296_s23 = int_to_ptr.vmem [resolvable:$true] %s295_s23 }
  0x15   : > { %s15624_s7 = sld [smem:[#allocation154_spill]]  ;;  %s9626_s11 = smov [#allocation9]  }
  0x16   : > { %p8498_p4 = pneg %p9728_p3  ;;  %s312_s12 = sshll.u32 %s9626_s11, 4  ;;  %s313_s12 = int_to_ptr.vmem [resolvable:$true] %s312_s12 }
  0x17   : > { %s293_s19 = sshll.u32 %s15620_s2, 4  ;;  %s15446_s17 = smov 128   ;;  %s294_s19 = int_to_ptr.hbm [resolvable:$true] %s293_s19 }
  0x18   : > { %p9740_p6 = pnand %p8498_p4, %p52_p1  ;;  %s15448_s18 = smov 8  }
  0x19   : > { %s310_s26 = sshll.u32 %s15622_s4, 4  ;;  %s15625_s6 = sld [smem:[#allocation153_spill]]  ;;  %s311_s26 = int_to_ptr.hbm [resolvable:$true] %s310_s26 }
  0x1a   : > { %8501 = dma.hbm_to_vmem [thread:$0]  (!%p9740_p6), %s294_s19, 512, %s296_s23, [#allocation7], %s15446_s17, %s15446_s17, %s15448_s18  }
  0x1b   : > { %s341_s30 = sshll.u32 %s15624_s7, 4  ;;  %s9629_s28 = smov [#allocation12]   ;;  %s342_s30 = int_to_ptr.hbm [resolvable:$true] %s341_s30 }
  0x1c   : > { %8504 = dma.hbm_to_vmem [thread:$0]  (!%p9740_p6), %s311_s26, 512, %s313_s12, [#allocation10], %s15446_s17, %s15446_s17, %s15448_s18  }
  0x1d   : > { %s343_s29 = sshll.u32 %s9629_s28, 4  ;;  %s9630_s19 = smov [#allocation11]   ;;  %s344_s29 = int_to_ptr.vmem [resolvable:$true] %s343_s29 }
  0x1e   : > { %8510 = dma.hbm_to_vmem [thread:$0]  (!%p9740_p6), %s342_s30, 1024, %s344_s29, [#allocation13], %s15446_s17, %s15446_s17, %s15448_s18  }
  0x1f   : > { %s327_s25 = sshll.u32 %s15625_s6, 4  ;;  %s329_s23 = sshll.u32 %s9630_s19, 4  ;;  %s328_s25 = int_to_ptr.hbm [resolvable:$true] %s327_s25  ;;  %s330_s23 = int_to_ptr.vmem [resolvable:$true] %s329_s23 }
  0x20   : > { %s15626_s8 = sld [smem:[#allocation155_spill]]  ;;  %s9631_s30 = smov [#allocation14]  }
  0x21   : > { %8507 = dma.hbm_to_vmem [thread:$0]  (!%p9740_p6), %s328_s25, 1024, %s330_s23, [#allocation10], %s15446_s17, %s15446_s17, %s15448_s18  }
  0x22   : > { %s357_s22 = sshll.u32 %s9631_s30, 4  ;;  %s8087_s24 = sadd.s32 4294967294, %s9623_s16   ;;  %s358_s22 = int_to_ptr.vmem [resolvable:$true] %s357_s22 }
  0x23   : > { %s9780_s28 = sadd.s32 1, %s9623_s16   ;;  %s38_s29 = sadd.s32 1, %s9619_s15 }
  0x24   : > { %s35_s19 = ssub.s32 %s9623_s16, %s9780_s28  ;;  %p45_p7 = scmp.ne.s32.totalorder %s9619_s15, %s9615_s14 }
  0x25   : > { %p36_p8 = scmp.eq.s32.totalorder %s35_s19, 0  ;;  %p46_p9 = scmp.eq.s32.totalorder %s9623_s16, 0 }
  0x26   : > { %s355_s12 = sshll.u32 %s15626_s8, 4  ;;  %p51_p10 = scmp.ne.s32.totalorder %s9615_s14, %s9611_s13  ;;  %s356_s12 = int_to_ptr.hbm [resolvable:$true] %s355_s12 }
  0x27   : > { %8513 = dma.hbm_to_vmem [thread:$0]  (!%p9740_p6), %s356_s12, 512, %s358_s22, [#allocation13], %s15446_s17, %s15446_s17, %s15448_s18  }
  0x28   : > { %p269_p11 = scmp.eq.s32.totalorder %s9723_s20, 1  ;;  %p9794_p12 = por %p46_p9, %p45_p7 }
  0x29   : > { %s9792_s25 = scalar_select %p36_p8, %s9619_s15, %s38_s29  }
  0x2a   : > { %p9800_p13 = por %p52_p1, %p51_p10  ;;  %p9804_p0 = por %p269_p11, %p45_p7 }
  0x2b   : > { %15627 = sst [smem:[#allocation23_spill]] %s9792_s25  ;;  %p275_p2 = scmp.eq.s32.totalorder %s8087_s24, 1 }
  0x2c   : > { %p8530_p4 = scmp.lt.s32.totalorder %s9623_s16, 2  ;;  %s374_s11 = sand.u32 1, %s9619_s15  }
  0x2d   : > { %p9810_p6 = por %p275_p2, %p51_p10  ;;  %s8095_s30 = sshll.u32 %s374_s11, 7 }
  0x2e   : > { %s8455_s22 = sshll.u32 %s9623_s16, 7  ;;  %s15632_s0 = sld [smem:[#allocation150_spill]] }
  0x2f   : > { %s378_s2 = scalar_lea.vmem [#allocation3], %s8095_s30  ;;  %p9820_p7 = pnand %p8530_p4, %p9794_p12 }
  0x30   : > { %s387_s4 = sshll.u32 %s378_s2, 4  ;;  %s407_s8 = scalar_lea.hbm %s15436_s1, %s8455_s22  ;;  %s388_s4 = int_to_ptr.vmem [resolvable:$true] %s387_s4 }
  0x31   : > { %s401_s25 = scalar_lea.vmem [#allocation6], %s8095_s30  ;;  %s408_s29 = sshll.u32 %s407_s8, 4  ;;  %s409_s29 = int_to_ptr.hbm [resolvable:$true] %s408_s29 }
  0x32   : > { %s9827_s15 = sshll.u32 %s401_s25, 4  ;;  %p9485_p9 = pneg %p9820_p7  ;;  %s411_s15 = int_to_ptr.vmem [resolvable:$true] %s9827_s15 }
  0x34   : > { %s384_s17 = scalar_lea.hbm %s15632_s0, %s8455_s22  ;;  %s9488_s7 = scalar_lea.hbm %s15632_s0, 256 }
  0x35   : > { %s385_s18 = sshll.u32 %s384_s17, 4  ;;  %s375_s17 = scalar_lea.sflag [#allocation4], %s374_s11  ;;  %s386_s18 = int_to_ptr.hbm [resolvable:$true] %s385_s18 }
  0x36   : > { %s9481_s19 = sshra.s32 %s386_s18, 4  ;;  %s9482_s19 = int_to_ptr.hbm [resolvable:$true] %s9481_s19 }
  0x37   : > { %s9483_s2 = scalar_lea.hbm %s9482_s19, 128  ;;  %p9489_p12 = scmp.lt.s32.totalorder %s9482_s19, %s15632_s0 }
  0x38   : > { %p9484_p8 = scmp.ne.s32.totalorder %s9482_s19, %s9483_s2  ;;  %p9490_p2 = scmp.lt.s32.totalorder %s9488_s7, %s9483_s2 }
  0x3a   : > { %p9486_p10 = pnand %p9485_p9, %p9484_p8  ;;  %p9491_p4 = por %p9490_p2, %p9489_p12 }
  0x3c   : > { %p9487_p11 = pneg %p9486_p10 }
  0x3e   : > { %p9492_p5 = pnand %p9491_p4, %p9487_p11 }
  0x40   : > { %9495 = shalt.err (!%p9492_p5)
}
  0x41   : > { %s15634_s8 = smov 8   ;;  %s15635_s25 = smov 128  }
  0x42   : > { %8517 = dma.hbm_to_vmem [thread:$0]  (!%p9820_p7), %s386_s18, 2048, %s388_s4, %s375_s17, %s15635_s25, %s15635_s25, %s15634_s8  }
  0x43   : > { %s397_s11 = sand.u32 1, %s9623_s16   ;;  %s9511_s6 = sshra.s32 %s409_s29, 4  ;;  %s9512_s6 = int_to_ptr.hbm [resolvable:$true] %s9511_s6 }
  0x44   : > { %s398_s27 = scalar_lea.sflag [#allocation7], %s397_s11  ;;  %s9513_s19 = scalar_lea.hbm %s9512_s6, 128 }
  0x45   : > { %p9514_p8 = scmp.ne.s32.totalorder %s9512_s6, %s9513_s19  ;;  %s9518_s22 = scalar_lea.hbm %s15436_s1, 256 }
  0x46   : > { %p9519_p11 = scmp.lt.s32.totalorder %s9512_s6, %s15436_s1  ;;  %p9520_p12 = scmp.lt.s32.totalorder %s9518_s22, %s9513_s19 }
  0x47   : > { %p9516_p5 = pnand %p9514_p8, %p9485_p9 }
  0x48   : > { %p9521_p2 = por %p9520_p12, %p9519_p11 }
  0x49   : > { %p9517_p10 = pneg %p9516_p5 }
  0x4b   : > { %p9522_p4 = pnand %p9521_p2, %p9517_p10 }
  0x4d   : > { %9525 = shalt.err (!%p9522_p4)
}
  0x4e   : > { %8520 = dma.hbm_to_vmem [thread:$0]  (!%p9820_p7), %s409_s29, 2048, %s411_s15, %s398_s27, %s15635_s25, %s15635_s25, %s15634_s8  }
  0x4f   : > { %422 = sbr.rel (%p9728_p3) target bundleno = 3593 (0xe09), region = 60 }
  0x54   : > { %s9864_s4 = sand.u32 1, %s9615_s14  }
  0x55   : > { %s9867_s0 = sshll.u32 %s9864_s4, 7  ;;  %s425_s18 = scalar_lea.sflag [#allocation4], %s9864_s4 }
  0x56   : > { %s9871_s17 = scalar_lea.vmem [#allocation3], %s9867_s0 }
  0x57   : > { %9586 = dma.done.wait (%p9800_p13), %s425_s18, 2048  }
  0x58   : > { %9588 = vsyncadd (%p9800_p13), %s425_s18, 4294965248  ;;  %s434_s15 = sand.u32 1, %s9723_s20   ;;  %s9879_s24 = scalar_lea.vmem [#allocation6], %s9867_s0 }
  0x59   : > { %s435_s21 = scalar_lea.sflag [#allocation7], %s434_s15 }
  0x5a   : > { %9590 = dma.done.wait (%p9800_p13), %s435_s21, 2048  }
  0x5b   : > { %9592 = vsyncadd (%p9800_p13), %s435_s21, 4294965248 }
  0x5c   : > { %9594 = dma.done.wait (%p52_p1), [#allocation7], 512  }
  0x5d   : > { %9596 = vsyncadd (%p52_p1), [#allocation7], 4294966784 }
  0x5e   : > { %9598 = dma.done.wait (%p52_p1), [#allocation10], 1536  }
  0x5f   : > { %9600 = vsyncadd (%p52_p1), [#allocation10], 4294965760 }
  0x60   : > { %9602 = dma.done.wait (%p52_p1), [#allocation13], 1536  }
  0x61   : > { %9604 = vsyncadd (%p52_p1), [#allocation13], 4294965760  ;;  %v544_v0 = vld [vmem:[#allocation8 + $0x18] sm:$0xff]  ;;  %v543_v1 = vld [vmem:[#allocation8 + $0x10] sm:$0xff]  ;;  %vm15602_vm0 = vcmask 261120   ;;  %s9632_s8 = smov 120  }
  0x62   : > { %610 = vmatpush.msra.mxu0 %v544_v0  ;;  %8460 = vmatpush.msra.mxu1 %v544_v0  ;;  %v542_v2 = vld [vmem:[#allocation8 + $0x8] sm:$0xff]  ;;  %v541_v3 = vld [vmem:[#allocation8] sm:$0xff]  ;;  %v666_v6 = vld [vmem:[#allocation9 + $0x18] sm:$0xff]  ;;  %vm784_vm1 = vcmask 64512   ;;  %s9634_s27 = smov 96   ;;  %s9635_s6 = smov 88  }
  0x63   : > { %8462 = vmatpush.msra.mxu3 %v544_v0  ;;  %8461 = vmatpush.msra.mxu2 %v544_v0  ;;  %v509_v4 = vld [vmem:[%s9871_s17] sm:$0xff]  ;;  %v665_v8 = vld [vmem:[#allocation9 + $0x10] sm:$0xff]  ;;  %v664_v9 = vld [vmem:[#allocation9 + $0x8] sm:$0xff]  ;;  %s9636_s19 = smov 112   ;;  %s9637_s2 = smov 80  }
  0x64   : > { %611 = vmatpush.msra.mxu0 %v543_v1  ;;  %8463 = vmatpush.msra.mxu1 %v543_v1  ;;  %v513_v5 = vld [vmem:[%s9871_s17 + $0x20] sm:$0xff]  ;;  %v514_v11 = vld [vmem:[%s9871_s17 + $0x28] sm:$0xff]  ;;  %v515_v12 = vld [vmem:[%s9871_s17 + $0x30] sm:$0xff]  ;;  %s9638_s7 = smov 104   ;;  %s9639_s22 = smov 72  }
  0x65   : > { %8465 = vmatpush.msra.mxu3 %v543_v1  ;;  %8464 = vmatpush.msra.mxu2 %v543_v1  ;;  %v521_v7 = vld [vmem:[%s9871_s17 + $0x60] sm:$0xff]  ;;  %v516_v13 = vld [vmem:[%s9871_s17 + $0x38] sm:$0xff]  ;;  %v510_v16 = vld [vmem:[%s9871_s17 + $0x8] sm:$0xff]  ;;  %s9640_s30 = smov 16   ;;  %s9641_s18 = smov 8  }
  0x66   : > { %612 = vmatpush.msra.mxu0 %v542_v2  ;;  %8466 = vmatpush.msra.mxu1 %v542_v2  ;;  %v663_v10 = vld [vmem:[#allocation9] sm:$0xff]  ;;  %v526_v17 = vld [vmem:[%s9879_s24 + $0x8] sm:$0xff]  ;;  %v527_v18 = vld [vmem:[%s9879_s24 + $0x10] sm:$0xff] }
  0x67   : > { %8468 = vmatpush.msra.mxu3 %v542_v2  ;;  %8467 = vmatpush.msra.mxu2 %v542_v2  ;;  %v517_v14 = vld [vmem:[%s9871_s17 + $0x40] sm:$0xff]  ;;  %v511_v19 = vld [vmem:[%s9871_s17 + $0x10] sm:$0xff]  ;;  %v522_v20 = vld [vmem:[%s9871_s17 + $0x68] sm:$0xff] }
  0x68   : > { %613 = vmatpush.msra.mxu0 %v541_v3  ;;  %8469 = vmatpush.msra.mxu1 %v541_v3  ;;  %v525_v15 = vld [vmem:[%s9879_s24] sm:$0xff]  ;;  %v528_v21 = vld [vmem:[%s9879_s24 + $0x18] sm:$0xff]  ;;  %v518_v23 = vld [vmem:[%s9871_s17 + $0x48] sm:$0xff] }
  0x69   : > { %8112 = vmatmul.msk.f32.vlgmr.msra.gmra.mxu0 %vm15602_vm0, %v509_v4  ;;  %8116 = vmatmul.msk.f32.vlgmr.msra.gmra.mxu1 %vm15602_vm0, %v513_v5  ;;  %v529_v22 = vld [vmem:[%s9879_s24 + $0x20] sm:$0xff]  ;;  %v530_v24 = vld [vmem:[%s9879_s24 + $0x28] sm:$0xff]  ;;  %v531_v25 = vld [vmem:[%s9879_s24 + $0x30] sm:$0xff] }
  0x6a   : > { %8471 = vmatpush.msra.mxu3 %v541_v3  ;;  %731 = vmatpush.msrb.mxu1 %v666_v6  ;;  %v512_v26 = vld [vmem:[%s9871_s17 + $0x18] sm:$0xff]  ;;  %v533_v28 = vld [vmem:[%s9879_s24 + $0x40] sm:$0xff]  ;;  %v534_v29 = vld [vmem:[%s9879_s24 + $0x48] sm:$0xff] }
  0x6b   : > { %8124 = vmatmul.msk.f32.vlgmr.msra.gmra.mxu3 %vm15602_vm0, %v521_v7  ;;  %8470 = vmatpush.msra.mxu2 %v541_v3  ;;  %v532_v27 = vld [vmem:[%s9879_s24 + $0x38] sm:$0xff]  ;;  %v519_v30 = vld [vmem:[%s9871_s17 + $0x50] sm:$0xff]  ;;  %v9954_v35 = vld [vmem:[%s15438_s3] ss:$0 sm:$0xff] }
  0x6c   : > { %732 = vmatpush.msrb.mxu1 %v665_v8  ;;  %8120 = vmatmul.msk.f32.vlgmr.msra.gmra.mxu2 %vm15602_vm0, %v517_v14  ;;  %v535_v31 = vld [vmem:[%s9879_s24 + $0x50] sm:$0xff]  ;;  %v520_v32 = vld [vmem:[%s9871_s17 + $0x58] sm:$0xff]  ;;  %v537_v38 = vld [vmem:[%s9879_s24 + $0x60] sm:$0xff] }
  0x6d   : > { %v536_v33 = vld [vmem:[%s9879_s24 + $0x58] sm:$0xff]  ;;  %v523_v34 = vld [vmem:[%s9871_s17 + $0x70] sm:$0xff]  ;;  %v538_v46 = vld [vmem:[%s9879_s24 + $0x68] sm:$0xff] }
  0x6e   : > { %733 = vmatpush.msrb.mxu1 %v664_v9  ;;  %v524_v41 = vld [vmem:[%s9871_s17 + $0x78] sm:$0xff]  ;;  %v539_v49 = vld [vmem:[%s9879_s24 + $0x70] sm:$0xff]  ;;  %v10006_v54 = vld [vmem:[%s15440_s5] ss:$0 sm:$0xff]  ;;  %s9642_s17 = smov 24  }
  0x6f   : > { %v540_v52 = vld [vmem:[%s9879_s24 + $0x78] sm:$0xff]  ;;  %s15343_s24 = scalar_lea.vmem [#allocation15], %s9867_s0  ;;  %s8459_s0 = sshll.u32 %s9723_s20, 7 }
  0x70   : > { %734 = vmatpush.msrb.mxu1 %v663_v10  ;;  %s7941_s25 = sshll.u32 %s15343_s24, 4  ;;  %s7942_s25 = int_to_ptr.vmem [resolvable:$true] %s7941_s25 }
  0x71   : > { %8117 = vmatmul.msk.f32.gmra.mxu1 %vm15602_vm0, %v514_v11  ;;  %8113 = vmatmul.msk.f32.gmra.mxu0 %vm15602_vm0, %v510_v16 }
  0x73   : > { %8125 = vmatmul.msk.f32.gmra.mxu3 %vm15602_vm0, %v522_v20 }
  0x74   : > { %8121 = vmatmul.msk.f32.gmra.mxu2 %vm15602_vm0, %v518_v23 }
  0x79   : > { %8118 = vmatmul.msk.f32.gmra.mxu1 %vm15602_vm0, %v515_v12  ;;  %8114 = vmatmul.msk.f32.gmra.mxu0 %vm15602_vm0, %v511_v19 }
  0x7b   : > { %8126 = vmatmul.msk.f32.gmra.mxu3 %vm15602_vm0, %v523_v34 }
  0x7c   : > { %8122 = vmatmul.msk.f32.gmra.mxu2 %vm15602_vm0, %v519_v30 }
  0x81   : > { %8119 = vmatmul.msk.f32.gmra.mxu1 %vm15602_vm0, %v516_v13  ;;  %8115 = vmatmul.msk.f32.gmra.mxu0 %vm15602_vm0, %v512_v26 }
  0x83   : > { %8127 = vmatmul.msk.f32.gmra.mxu3 %vm15602_vm0, %v524_v41 }
  0x84   : > { %8123 = vmatmul.msk.f32.gmra.mxu2 %vm15602_vm0, %v520_v32 }
  0x89   : > { %8128 = vmatmul.msk.f32.vlgmr.msrb.gmra.mxu1 %vm15602_vm0, %v525_v15 }
  0x91   : > { %8129 = vmatmul.msk.f32.gmra.mxu1 %vm15602_vm0, %v526_v17 }
  0x99   : > { %8130 = vmatmul.msk.f32.gmra.mxu1 %vm15602_vm0, %v527_v18 }
  0xa1   : > { %8131 = vmatmul.msk.f32.gmra.mxu1 %vm15602_vm0, %v528_v21 }
  0xa9   : > { %8132 = vmatmul.msk.f32.gmra.mxu1 %vm15602_vm0, %v529_v22 }
  0xb1   : > { %8133 = vmatmul.msk.f32.gmra.mxu1 %vm15602_vm0, %v530_v24 }
  0xb9   : > { %8134 = vmatmul.msk.f32.gmra.mxu1 %vm15602_vm0, %v531_v25 }
  0xc1   : > { %8135 = vmatmul.msk.f32.gmra.mxu1 %vm15602_vm0, %v532_v27 }
  0xc9   : > { %8136 = vmatmul.msk.f32.gmra.mxu1 %vm15602_vm0, %v533_v28 }
  0xd1   : > { %8137 = vmatmul.msk.f32.gmra.mxu1 %vm15602_vm0, %v534_v29 }
  0xd9   : > { %8138 = vmatmul.msk.f32.gmra.mxu1 %vm15602_vm0, %v535_v31 }
  0xe1   : > { %8139 = vmatmul.msk.f32.gmra.mxu1 %vm15602_vm0, %v536_v33 }
  0xe6   : > { %v615_v36 = vpop.f32.mrf.mxu0  ;;  %v627_v37 = vpop.f32.mrf.mxu1 }
  0xe7   : > { %v9958_v39 = vadd.f32 %v9954_v35, %v615_v36  ;;  %v9961_v40 = vadd.f32 %v9954_v35, %v627_v37 }
  0xe9   : > { %15636 = vst [vmem:[#allocation24_spill] sm:$0xff] %v9958_v39  ;;  %8140 = vmatmul.msk.f32.gmra.mxu1 %vm15602_vm0, %v537_v38  ;;  %2511 = vrot.lane.b32.xlu0 %v9961_v40, %s9632_s8  ;;  %v9969_v42 = vmul.f32 %v9958_v39, %v9958_v39  ;;  %v9978_v43 = vmul.f32 %v9961_v40, %v9961_v40 }
  0xea   : > { %15637 = vst [vmem:[#allocation25_spill] sm:$0xff] %v9961_v40  ;;  %2433 = vrot.lane.b32.xlu1 %v9958_v39, %s9632_s8 }
  0xeb   : > { %15638 = vst [vmem:[#allocation26_spill] sm:$0xff] %v9969_v42  ;;  %2761 = vrot.lane.b32.xlu2 %v9969_v42, %s9632_s8  ;;  %v1093_v58 = vsel %vm784_vm1, %v9978_v43, 0.0  ;;  %v1081_v62 = vsel %vm784_vm1, %v9969_v42, 0.0 }
  0xec   : > { %15639 = vst [vmem:[#allocation27_spill] sm:$0xff] %v9978_v43 }
  0xee   : > { %v630_v44 = vpop.f32.mrf.mxu1  ;;  %v651_v45 = vpop.f32.mrf.mxu3 }
  0xef   : > { %v9982_v47 = vadd.f32 %v9954_v35, %v651_v45  ;;  %v10023_v60 = vadd.f32 %v9954_v35, %v630_v44  ;;  %v618_v61 = vpop.f32.mrf.mxu0  ;;  %v639_v8 = vpop.f32.mrf.mxu2 }
  0xf0   : > { %v10028_v63 = vadd.f32 %v9954_v35, %v618_v61  ;;  %v10054_v9 = vadd.f32 %v9954_v35, %v639_v8 }
  0xf1   : > { %15640 = vst [vmem:[#allocation28_spill] sm:$0xff] %v9982_v47  ;;  %8141 = vmatmul.msk.f32.gmra.mxu1 %vm15602_vm0, %v538_v46  ;;  %2769 = vrot.lane.b32.xlu0 %v9978_v43, %s9632_s8  ;;  %v9995_v50 = vmul.f32 %v9982_v47, %v9982_v47  ;;  %v10032_v0 = vmul.f32 %v10023_v60, %v10023_v60 }
  0xf2   : > { %15644 = vst [vmem:[#allocation32_spill] sm:$0xff] %v10023_v60  ;;  %v10070_v13 = vmul.f32 %v10054_v9, %v10054_v9  ;;  %v10082_v16 = vmul.f32 %v10028_v63, %v10028_v63 }
  0xf3   : > { %2667 = vrot.lane.b32.xlu2 %v9982_v47, %s9632_s8  ;;  %15641 = vst [vmem:[#allocation29_spill] sm:$0xff] %v9995_v50  ;;  %v1096_v4 = vsel %vm784_vm1, %v10032_v0, 0.0  ;;  %v1117_v46 = vsel %vm784_vm1, %v9995_v50, 0.0 }
  0xf4   : > { %15645 = vst [vmem:[#allocation33_spill] sm:$0xff] %v10028_v63  ;;  %v1105_v38 = vsel %vm784_vm1, %v10070_v13, 0.0 }
  0xf5   : > { %15646 = vst [vmem:[#allocation34_spill] sm:$0xff] %v10032_v0 }
  0xf6   : > { %v9989_v48 = vpop.f32.mrf.mxu1  ;;  %15650 = vst [vmem:[#allocation38_spill] sm:$0xff] %v10054_v9  ;;  %v654_v15 = vpop.f32.mrf.mxu3 }
  0xf7   : > { %v621_v5 = vpop.f32.mrf.mxu0  ;;  %15653 = vst [vmem:[#allocation41_spill] sm:$0xff] %v10070_v13  ;;  %v10087_v17 = vadd.f32 %v9954_v35, %v654_v15  ;;  %v10118_v24 = vadd.f32 %v9954_v35, %v9989_v48  ;;  %v642_v26 = vpop.f32.mrf.mxu2 }
  0xf8   : > { %v10047_v6 = vadd.f32 %v9954_v35, %v621_v5  ;;  %15654 = vst [vmem:[#allocation42_spill] sm:$0xff] %v10082_v16  ;;  %v10129_v28 = vadd.f32 %v9954_v35, %v642_v26 }
  0xf9   : > { %8142 = vmatmul.msk.f32.gmra.mxu1 %vm15602_vm0, %v539_v49  ;;  %15655 = vst [vmem:[#allocation43_spill] sm:$0xff] %v10087_v17  ;;  %v10103_v22 = vmul.f32 %v10087_v17, %v10087_v17  ;;  %v10235_v15 = vmul.f32 %v10118_v24, %v10118_v24 }
  0xfa   : > { %15649 = vst [vmem:[#allocation37_spill] sm:$0xff] %v10047_v6  ;;  %v10143_v32 = vmul.f32 %v10129_v28, %v10129_v28 }
  0xfb   : > { %2785 = vrot.lane.b32.xlu2 %v9995_v50, %s9632_s8  ;;  %15658 = vst [vmem:[#allocation46_spill] sm:$0xff] %v10103_v22 }
  0xfc   : > { %15660 = vst [vmem:[#allocation48_spill] sm:$0xff] %v10118_v24  ;;  %v1108_v49 = vsel %vm784_vm1, %v10143_v32, 0.0 }
  0xfd   : > { %15662 = vst [vmem:[#allocation50_spill] sm:$0xff] %v10129_v28 }
  0xfe   : > { %v9999_v51 = vpop.f32.mrf.mxu1  ;;  %15665 = vst [vmem:[#allocation53_spill] sm:$0xff] %v10143_v32 }
  0xff   : > { %v624_v18 = vpop.f32.mrf.mxu0  ;;  %v10124_v27 = vadd.f32 %v9954_v35, %v9999_v51  ;;  %v645_v37 = vpop.f32.mrf.mxu2  ;;  %15679 = vst [vmem:[#allocation67_spill] sm:$0xff] %v10235_v15 }
 0x100   : > { %v10092_v19 = vadd.f32 %v9954_v35, %v624_v18  ;;  %v10164_v44 = vadd.f32 %v9954_v35, %v645_v37 }
 0x101   : > { %8143 = vmatmul.msk.f32.gmra.mxu1 %vm15602_vm0, %v540_v52  ;;  %15661 = vst [vmem:[#allocation49_spill] sm:$0xff] %v10124_v27 }
 0x102   : > { %15656 = vst [vmem:[#allocation44_spill] sm:$0xff] %v10092_v19 }
 0x103   : > { %15668 = vst [vmem:[#allocation56_spill] sm:$0xff] %v10164_v44 }
 0x106   : > { %v736_v53 = vpop.f32.mrf.mxu1 }
 0x107   : > { %v10012_v57 = vadd.f32 %v10006_v54, %v736_v53  ;;  %v648_v48 = vpop.f32.mrf.mxu2 }
 0x108   : > { %v10175_v51 = vadd.f32 %v9954_v35, %v648_v48 }
 0x109   : > { %15643 = vst [vmem:[#allocation31_spill] sm:$0xff] %v10012_v57  ;;  %v10197_v61 = vmul.f32 %v10012_v57, %v10012_v57 }
 0x10a   : > { %15669 = vst [vmem:[#allocation57_spill] sm:$0xff] %v10175_v51 }
 0x10b   : > { %15673 = vst [vmem:[#allocation61_spill] sm:$0xff] %v10197_v61 }
 0x10e   : > { %v739_v55 = vpop.f32.mrf.mxu1 }
 0x10f   : > { %v10009_v56 = vadd.f32 %v10006_v54, %v739_v55 }
 0x111   : > { %15642 = vst [vmem:[#allocation30_spill] sm:$0xff] %v10009_v56  ;;  %8144 = vmatpush.xpose.msk.msrb.mxu2 %vm784_vm1, %v10009_v56 }
 0x114   : > { %1094 = vadd.xlane.f32.xlu1 %v1093_v58  ;;  %v10189_v58 = vmul.f32 %v10009_v56, %v10009_v56 }
 0x115   : > { %8145 = vmatpush.xpose.msk.msrb.mxu2 %vm784_vm1, %v10012_v57 }
 0x116   : > { %v742_v59 = vpop.f32.mrf.mxu1  ;;  %15672 = vst [vmem:[#allocation60_spill] sm:$0xff] %v10189_v58 }
 0x117   : > { %v10040_v3 = vadd.f32 %v10006_v54, %v742_v59 }
 0x118   : > { %8146 = vmatmul.msk.f32.vlgmr.msrb.gmra.mxu2 %vm784_vm1, %v9958_v39 }
 0x119   : > { %15648 = vst [vmem:[#allocation36_spill] sm:$0xff] %v10040_v3  ;;  %v10258_v26 = vmul.f32 %v10040_v3, %v10040_v3 }
 0x11b   : > { %1082 = vadd.xlane.f32.xlu0 %v1081_v62  ;;  %15683 = vst [vmem:[#allocation71_spill] sm:$0xff] %v10258_v26 }
 0x11e   : > { %v745_v1 = vpop.f32.mrf.mxu1 }
 0x11f   : > { %v10035_v2 = vadd.f32 %v10006_v54, %v745_v1  ;;  %v10207_v1 = vmul.f32 %v10047_v6, %v10047_v6 }
 0x120   : > { %8147 = vmatmul.msk.f32.gmra.mxu2 %vm784_vm1, %v10028_v63 }
 0x121   : > { %15647 = vst [vmem:[#allocation35_spill] sm:$0xff] %v10035_v2  ;;  %8148 = vmatpush.xpose.msk.msrb.mxu3 %vm784_vm1, %v10035_v2  ;;  %v10239_v18 = vmul.f32 %v10035_v2, %v10035_v2 }
 0x122   : > { %15675 = vst [vmem:[#allocation63_spill] sm:$0xff] %v10207_v1 }
 0x123   : > { %15680 = vst [vmem:[#allocation68_spill] sm:$0xff] %v10239_v18 }
 0x124   : > { %1097 = vadd.xlane.f32.xlu2 %v1096_v4 }
 0x125   : > { %8149 = vmatpush.xpose.msk.msrb.mxu3 %vm784_vm1, %v10040_v3 }
 0x126   : > { %v748_v7 = vpop.f32.mrf.mxu1 }
 0x127   : > { %v10064_v12 = vadd.f32 %v10006_v54, %v748_v7  ;;  %v1087_v7 = vsel %vm784_vm1, %v10207_v1, 0.0 }
 0x128   : > { %8150 = vmatmul.msk.f32.vlgmr.msrb.gmra.mxu3 %vm784_vm1, %v10047_v6 }
 0x129   : > { %15652 = vst [vmem:[#allocation40_spill] sm:$0xff] %v10064_v12  ;;  %v10215_v4 = vmul.f32 %v10064_v12, %v10064_v12 }
 0x12b   : > { %15676 = vst [vmem:[#allocation64_spill] sm:$0xff] %v10215_v4 }
 0x12d   : > { %2513 = vrot.lane.b32.xlu1 %v10023_v60, %s9632_s8 }
 0x12e   : > { %v751_v10 = vpop.f32.mrf.mxu1 }
 0x12f   : > { %v10059_v11 = vadd.f32 %v10006_v54, %v751_v10  ;;  %2589 = vrot.lane.b32.xlu0 %v10054_v9, %s9632_s8  ;;  %v657_v10 = vpop.f32.mrf.mxu3 }
 0x130   : > { %8151 = vmatmul.msk.f32.gmra.mxu3 %vm784_vm1, %v10092_v19 }
 0x131   : > { %15651 = vst [vmem:[#allocation39_spill] sm:$0xff] %v10059_v11  ;;  %8152 = vmatpush.xpose.msk.msra.mxu2 %vm784_vm1, %v10059_v11  ;;  %v10201_v62 = vmul.f32 %v10059_v11, %v10059_v11 }
 0x133   : > { %15674 = vst [vmem:[#allocation62_spill] sm:$0xff] %v10201_v62 }
 0x135   : > { %2777 = vrot.lane.b32.xlu1 %v10070_v13, %s9632_s8  ;;  %8153 = vmatpush.xpose.msk.msra.mxu2 %vm784_vm1, %v10064_v12 }
 0x136   : > { %v754_v14 = vpop.f32.mrf.mxu1 }
 0x137   : > { %2435 = vrot.lane.b32.xlu0 %v10028_v63, %s9632_s8  ;;  %v10106_v23 = vadd.f32 %v10006_v54, %v754_v14 }
 0x138   : > { %8154 = vmatmul.msk.f32.vlgmr.msra.gmra.mxu2 %vm784_vm1, %v9961_v40 }
 0x139   : > { %15659 = vst [vmem:[#allocation47_spill] sm:$0xff] %v10106_v23 }
 0x13c   : > { %2472 = vrot.lane.b32.xlu2 %v10047_v6, %s9632_s8 }
 0x13d   : > { %2763 = vrot.lane.b32.xlu1 %v10082_v16, %s9632_s8 }
 0x13e   : > { %v757_v20 = vpop.f32.mrf.mxu1 }
 0x13f   : > { %v10095_v21 = vadd.f32 %v10006_v54, %v757_v20  ;;  %v10242_v20 = vadd.f32 %v9954_v35, %v657_v10 }
 0x140   : > { %8155 = vmatmul.msk.f32.gmra.mxu2 %vm784_vm1, %v10023_v60 }
 0x141   : > { %15657 = vst [vmem:[#allocation45_spill] sm:$0xff] %v10095_v21  ;;  %8156 = vmatpush.xpose.msk.msra.mxu3 %vm784_vm1, %v10095_v21 }
 0x142   : > { %15681 = vst [vmem:[#allocation69_spill] sm:$0xff] %v10242_v20 }
 0x144   : > { %2787 = vrot.lane.b32.xlu2 %v10103_v22, %s9632_s8 }
 0x145   : > { %2669 = vrot.lane.b32.xlu1 %v10087_v17, %s9632_s8  ;;  %8157 = vmatpush.xpose.msk.msra.mxu3 %vm784_vm1, %v10106_v23 }
 0x146   : > { %v760_v25 = vpop.f32.mrf.mxu1 }
 0x147   : > { %v10137_v31 = vadd.f32 %v10006_v54, %v760_v25  ;;  %v1099_v25 = vsel %vm784_vm1, %v10235_v15, 0.0 }
 0x148   : > { %8158 = vmatmul.msk.f32.vlgmr.msra.gmra.mxu3 %vm784_vm1, %v10118_v24 }
 0x149   : > { %15664 = vst [vmem:[#allocation52_spill] sm:$0xff] %v10137_v31  ;;  %v10272_v37 = vmul.f32 %v10137_v31, %v10137_v31 }
 0x14b   : > { %15685 = vst [vmem:[#allocation73_spill] sm:$0xff] %v10272_v37 }
 0x14d   : > { %2550 = vrot.lane.b32.xlu1 %v10118_v24, %s9632_s8 }
 0x14e   : > { %v763_v29 = vpop.f32.mrf.mxu1 }
 0x14f   : > { %v10132_v30 = vadd.f32 %v10006_v54, %v763_v29  ;;  %v10262_v29 = vmul.f32 %v10095_v21, %v10095_v21 }
 0x150   : > { %8159 = vmatmul.msk.f32.gmra.mxu3 %vm784_vm1, %v10124_v27 }
 0x151   : > { %15663 = vst [vmem:[#allocation51_spill] sm:$0xff] %v10132_v30  ;;  %8160 = vmatpush.xpose.msk.msrb.mxu2 %vm784_vm1, %v10132_v30 }
 0x152   : > { %15684 = vst [vmem:[#allocation72_spill] sm:$0xff] %v10262_v29 }
 0x155   : > { %2779 = vrot.lane.b32.xlu1 %v10143_v32, %s9632_s8  ;;  %8161 = vmatpush.xpose.msk.msrb.mxu2 %vm784_vm1, %v10137_v31 }
 0x156   : > { %v766_v33 = vpop.f32.mrf.mxu1 }
 0x157   : > { %v10159_v41 = vadd.f32 %v10006_v54, %v766_v33  ;;  %v15451_v33 = vmov 1.0  }
 0x158   : > { %8162 = vmatmul.msk.f32.vlgmr.msrb.gmra.mxu2 %vm784_vm1, %v10054_v9 }
 0x159   : > { %15667 = vst [vmem:[#allocation55_spill] sm:$0xff] %v10159_v41 }
 0x15b   : > { %v10433_v50 = vpop.permute.xlu0 %2511 }
 0x15c   : > { %15704 = vst [vmem:[#allocation92_spill] sm:$0xff] %v10433_v50  ;;  %v8593_v50 = vpack.i.bf16 %v10064_v12, %v10040_v3 }
 0x15e   : > { %v769_v34 = vpop.f32.mrf.mxu1 }
 0x15f   : > { %v10152_v36 = vadd.f32 %v10006_v54, %v769_v34  ;;  %v660_v34 = vpop.f32.mrf.mxu3 }
 0x160   : > { %8163 = vmatmul.msk.f32.gmra.mxu2 %vm784_vm1, %v10129_v28 }
 0x161   : > { %15666 = vst [vmem:[#allocation54_spill] sm:$0xff] %v10152_v36  ;;  %1106 = vadd.xlane.f32.xlu0 %v1105_v38  ;;  %8164 = vmatpush.xpose.msk.msrb.mxu3 %vm784_vm1, %v10152_v36  ;;  %v10280_v38 = vmul.f32 %v10106_v23, %v10106_v23  ;;  %v10311_v48 = vmul.f32 %v10152_v36, %v10152_v36 }
 0x163   : > { %15686 = vst [vmem:[#allocation74_spill] sm:$0xff] %v10280_v38 }
 0x164   : > { %15690 = vst [vmem:[#allocation78_spill] sm:$0xff] %v10311_v48 }
 0x165   : > { %8165 = vmatpush.xpose.msk.msrb.mxu3 %vm784_vm1, %v10159_v41 }
 0x166   : > { %v772_v45 = vpop.f32.mrf.mxu1 }
 0x167   : > { %v10183_v55 = vadd.f32 %v10006_v54, %v772_v45  ;;  %v10283_v45 = vadd.f32 %v9954_v35, %v660_v34 }
 0x168   : > { %8166 = vmatmul.msk.f32.vlgmr.msrb.gmra.mxu3 %vm784_vm1, %v10164_v44 }
 0x169   : > { %1118 = vadd.xlane.f32.xlu0 %v1117_v46  ;;  %15671 = vst [vmem:[#allocation59_spill] sm:$0xff] %v10183_v55  ;;  %v10303_v35 = vmul.f32 %v10183_v55, %v10183_v55 }
 0x16a   : > { %15687 = vst [vmem:[#allocation75_spill] sm:$0xff] %v10283_v45 }
 0x16b   : > { %15689 = vst [vmem:[#allocation77_spill] sm:$0xff] %v10303_v35 }
 0x16d   : > { %1109 = vadd.xlane.f32.xlu2 %v1108_v49  ;;  %v10321_v49 = vmul.f32 %v10159_v41, %v10159_v41 }
 0x16e   : > { %v775_v52 = vpop.f32.mrf.mxu1 }
 0x16f   : > { %v10178_v53 = vadd.f32 %v10006_v54, %v775_v52  ;;  %15691 = vst [vmem:[#allocation79_spill] sm:$0xff] %v10321_v49 }
 0x170   : > { %8167 = vmatmul.msk.f32.gmra.mxu3 %vm784_vm1, %v10175_v51 }
 0x171   : > { %15670 = vst [vmem:[#allocation58_spill] sm:$0xff] %v10178_v53  ;;  %8168 = vmatpush.xpose.msk.msra.mxu2 %vm784_vm1, %v10178_v53  ;;  %v10291_v46 = vmul.f32 %v10178_v53, %v10178_v53 }
 0x173   : > { %15688 = vst [vmem:[#allocation76_spill] sm:$0xff] %v10291_v46 }
 0x175   : > { %8169 = vmatpush.xpose.msk.msra.mxu2 %vm784_vm1, %v10183_v55 }
 0x176   : > { %v778_v59 = vpop.f32.mrf.mxu1 }
 0x177   : > { %v10229_v14 = vadd.f32 %v10006_v54, %v778_v59 }
 0x178   : > { %8170 = vmatmul.msk.f32.vlgmr.msra.gmra.mxu2 %vm784_vm1, %v9982_v47 }
 0x179   : > { %8176 = vmatpush.xpose.msk.msrb.mxu2 %vm784_vm1, %v10189_v58  ;;  %15678 = vst [vmem:[#allocation66_spill] sm:$0xff] %v10229_v14  ;;  %v10339_v59 = vmul.f32 %v10229_v14, %v10229_v14 }
 0x17b   : > { %15693 = vst [vmem:[#allocation81_spill] sm:$0xff] %v10339_v59 }
 0x17d   : > { %8177 = vmatpush.xpose.msk.msrb.mxu2 %vm784_vm1, %v10197_v61  ;;  %2771 = vrot.lane.b32.xlu0 %v10032_v0, %s9632_s8 }
 0x17e   : > { %v781_v5 = vpop.f32.mrf.mxu1 }
 0x17f   : > { %v10222_v8 = vadd.f32 %v10006_v54, %v781_v5  ;;  %1088 = vadd.xlane.f32.xlu1 %v1087_v7  ;;  %v10250_v54 = vmul.f32 %v10132_v30, %v10132_v30  ;;  %v10345_v5 = vmul.f32 %v10164_v44, %v10164_v44  ;;  %v1084_v7 = vsel %vm784_vm1, %v10082_v16, 0.0 }
 0x180   : > { %8171 = vmatmul.msk.f32.gmra.mxu2 %vm784_vm1, %v10087_v17 }
 0x181   : > { %8182 = vmatpush.xpose.msk.msra.mxu2 %vm784_vm1, %v10201_v62  ;;  %15677 = vst [vmem:[#allocation65_spill] sm:$0xff] %v10222_v8  ;;  %8172 = vmatpush.xpose.msk.msra.mxu3 %vm784_vm1, %v10222_v8  ;;  %v10327_v52 = vmul.f32 %v10222_v8, %v10222_v8  ;;  %v1111_v10 = vsel %vm784_vm1, %v10345_v5, 0.0 }
 0x182   : > { %15682 = vst [vmem:[#allocation70_spill] sm:$0xff] %v10250_v54 }
 0x183   : > { %15692 = vst [vmem:[#allocation80_spill] sm:$0xff] %v10327_v52 }
 0x184   : > { %15694 = vst [vmem:[#allocation82_spill] sm:$0xff] %v10345_v5 }
 0x185   : > { %8183 = vmatpush.xpose.msk.msra.mxu2 %vm784_vm1, %v10215_v4  ;;  %8173 = vmatpush.xpose.msk.msra.mxu3 %vm784_vm1, %v10229_v14 }
 0x186   : > { %2765 = vrot.lane.b32.xlu2 %v10207_v1, %s9632_s8 }
 0x187   : > { %1100 = vadd.xlane.f32.xlu1 %v1099_v25  ;;  %v10361_v25 = vmul.f32 %v10242_v20, %v10242_v20 }
 0x188   : > { %8174 = vmatmul.msk.f32.vlgmr.msra.gmra.mxu3 %vm784_vm1, %v10242_v20  ;;  %8178 = vmatmul.msk.f32.vlgmr.msrb.gmra.mxu2 %vm784_vm1, %v15451_v33 }
 0x189   : > { %8179 = vmatpush.xpose.msk.msrb.mxu3 %vm784_vm1, %v10239_v18  ;;  %8188 = vmatpush.xpose.msk.msrb.mxu2 %vm784_vm1, %v10250_v54  ;;  %15695 = vst [vmem:[#allocation83_spill] sm:$0xff] %v10361_v25  ;;  %v1123_v34 = vsel %vm784_vm1, %v10361_v25, 0.0 }
 0x18d   : > { %8180 = vmatpush.xpose.msk.msrb.mxu3 %vm784_vm1, %v10258_v26  ;;  %8189 = vmatpush.xpose.msk.msrb.mxu2 %vm784_vm1, %v10272_v37 }
 0x18e   : > { %2628 = vrot.lane.b32.xlu2 %v10164_v44, %s9632_s8 }
 0x190   : > { %8175 = vmatmul.msk.f32.gmra.mxu3 %vm784_vm1, %v10283_v45  ;;  %8184 = vmatmul.msk.f32.vlgmr.msra.gmra.mxu2 %vm784_vm1, %v15451_v33 }
 0x191   : > { %8185 = vmatpush.xpose.msk.msra.mxu3 %vm784_vm1, %v10262_v29  ;;  %8194 = vmatpush.xpose.msk.msra.mxu2 %vm784_vm1, %v10291_v46 }
 0x195   : > { %8186 = vmatpush.xpose.msk.msra.mxu3 %vm784_vm1, %v10280_v38  ;;  %8195 = vmatpush.xpose.msk.msra.mxu2 %vm784_vm1, %v10303_v35 }
 0x196   : > { %2474 = vrot.lane.b32.xlu2 %v10092_v19, %s9632_s8 }
 0x198   : > { %8181 = vmatmul.msk.f32.vlgmr.msrb.gmra.mxu3 %vm784_vm1, %v15451_v33  ;;  %8190 = vmatmul.msk.f32.vlgmr.msrb.gmra.mxu2 %vm784_vm1, %v15451_v33 }
 0x199   : > { %8191 = vmatpush.xpose.msk.msrb.mxu3 %vm784_vm1, %v10311_v48 }
 0x19b   : > { %v10599_v47 = vpop.f32.mrf.mxu2 }
 0x19c   : > { %15726 = vst [vmem:[#allocation114_spill] sm:$0xff] %v10599_v47 }
 0x19d   : > { %8192 = vmatpush.xpose.msk.msrb.mxu3 %vm784_vm1, %v10321_v49 }
 0x1a0   : > { %2706 = vrot.lane.b32.xlu1 %v10242_v20, %s9632_s8  ;;  %8187 = vmatmul.msk.f32.vlgmr.msra.gmra.mxu3 %vm784_vm1, %v15451_v33 }
 0x1a1   : > { %8196 = vmatmul.msk.f32.vlgmr.msra.gmra.mxu2 %vm784_vm1, %v15451_v33  ;;  %8197 = vmatpush.xpose.msk.msra.mxu3 %vm784_vm1, %v10327_v52 }
 0x1a5   : > { %8198 = vmatpush.xpose.msk.msra.mxu3 %vm784_vm1, %v10339_v59 }
 0x1a7   : > { %1085 = vadd.xlane.f32.xlu0 %v1084_v7  ;;  %v10367_v7 = vmul.f32 %v10124_v27, %v10124_v27 }
 0x1a8   : > { %2781 = vrot.lane.b32.xlu1 %v10345_v5, %s9632_s8  ;;  %8193 = vmatmul.msk.f32.vlgmr.msrb.gmra.mxu3 %vm784_vm1, %v15451_v33  ;;  %v10373_v5 = vmul.f32 %v10092_v19, %v10092_v19  ;;  %v10607_v19 = vpop.f32.mrf.mxu2 }
 0x1a9   : > { %15696 = vst [vmem:[#allocation84_spill] sm:$0xff] %v10367_v7 }
 0x1aa   : > { %15697 = vst [vmem:[#allocation85_spill] sm:$0xff] %v10373_v5 }
 0x1ab   : > { %15729 = vst [vmem:[#allocation117_spill] sm:$0xff] %v10607_v19 }
 0x1b0   : > { %8199 = vmatmul.msk.f32.vlgmr.msra.gmra.mxu3 %vm784_vm1, %v15451_v33  ;;  %v1102_v33 = vsel %vm784_vm1, %v10367_v7, 0.0 }
 0x1bb   : > { %2591 = vrot.lane.b32.xlu0 %v10129_v28, %s9632_s8  ;;  %v10625_v9 = vpop.f32.mrf.mxu2 }
 0x1bc   : > { %15733 = vst [vmem:[#allocation121_spill] sm:$0xff] %v10625_v9 }
 0x1bf   : > { %1112 = vadd.xlane.f32.xlu2 %v1111_v10  ;;  %v1120_v10 = vsel %vm784_vm1, %v10103_v22, 0.0 }
 0x1c7   : > { %1124 = vadd.xlane.f32.xlu2 %v1123_v34  ;;  %v10383_v34 = vpop.permute.xlu2 %2761 }
 0x1cf   : > { %v10391_v22 = vpop.permute.xlu2 %2667 }
 0x1d0   : > { %15698 = vst [vmem:[#allocation86_spill] sm:$0xff] %v10391_v22 }
 0x1d2   : > { %1103 = vadd.xlane.f32.xlu1 %v1102_v33  ;;  %v1090_v33 = vsel %vm784_vm1, %v10373_v5, 0.0 }
 0x1d7   : > { %v10399_v20 = vpop.permute.xlu2 %2785 }
 0x1df   : > { %2767 = vrot.lane.b32.xlu2 %v10373_v5, %s9632_s8  ;;  %v10403_v32 = vpop.xlane.xlu2 %1097 }
 0x1e0   : > { %vm1196_vm6 = vcmp.eq.f32.partialorder %v10403_v32, inf  ;;  %vm1198_vm7 = vcmp.eq.f32.partialorder %v10403_v32, 0.0 }
 0x1e5   : > { %1121 = vadd.xlane.f32.xlu0 %v1120_v10  ;;  %v10395_v10 = vmul.f32 %v10175_v51, %v10175_v51 }
 0x1e7   : > { %15699 = vst [vmem:[#allocation87_spill] sm:$0xff] %v10395_v10  ;;  %v1114_v1 = vsel %vm784_vm1, %v10395_v10, 0.0  ;;  %v10409_v5 = vpop.permute.xlu2 %2472 }
 0x1e8   : > { %15701 = vst [vmem:[#allocation89_spill] sm:$0xff] %v10409_v5 }
 0x1eb   : > { %2437 = vrot.lane.b32.xlu1 %v10012_v57, %s9632_s8 }
 0x1f9   : > { %2773 = vrot.lane.b32.xlu0 %v10235_v15, %s9632_s8  ;;  %v10401_v15 = vpop.permute.xlu1 %2433 }
 0x1fa   : > { %15700 = vst [vmem:[#allocation88_spill] sm:$0xff] %v10401_v15 }
 0x201   : > { %2552 = vrot.lane.b32.xlu0 %v10124_v27, %s9632_s8  ;;  %v10559_v27 = vpack.i.bf16 %v10183_v55, %v10106_v23 }
 0x203   : > { %15719 = vst [vmem:[#allocation107_spill] sm:$0xff] %v10559_v27 }
 0x208   : > { %1091 = vadd.xlane.f32.xlu2 %v1090_v33  ;;  %v10407_v33 = vpop.xlane.xlu1 %1094 }
 0x209   : > { %2775 = vrot.lane.b32.xlu0 %v10367_v7, %s9632_s8  ;;  %v10417_v7 = vmul.f32 %v10283_v45, %v10283_v45  ;;  %8751 = vrsqrt.f32 %v10407_v33  ;;  %vm1184_vm2 = vcmp.eq.f32.partialorder %v10407_v33, inf  ;;  %vm1186_vm3 = vcmp.eq.f32.partialorder %v10407_v33, 0.0 }
 0x20b   : > { %15703 = vst [vmem:[#allocation91_spill] sm:$0xff] %v10417_v7  ;;  %v1126_v15 = vsel %vm784_vm1, %v10417_v7, 0.0 }
 0x210   : > { %v10413_v22 = vpop.permute.xlu1 %2513 }
 0x211   : > { %15702 = vst [vmem:[#allocation90_spill] sm:$0xff] %v10413_v22  ;;  %v8598_v22 = vpack.i.bf16 %v10059_v11, %v10035_v2 }
 0x215   : > { %1115 = vadd.xlane.f32.xlu1 %v1114_v1  ;;  %v10423_v1 = vpop.permute.xlu2 %2787 }
 0x218   : > { %v10427_v5 = vpop.permute.xlu1 %2777 }
 0x21d   : > { %v10436_v44 = vpop.xlane.xlu2 %1109 }
 0x21e   : > { %vm1244_vm12 = vcmp.eq.f32.partialorder %v10436_v44, inf  ;;  %vm1246_vm13 = vcmp.eq.f32.partialorder %v10436_v44, 0.0 }
 0x220   : > { %2630 = vrot.lane.b32.xlu2 %v10175_v51, %s9632_s8  ;;  %v10438_v13 = vpop.permute.xlu1 %2763 }
 0x225   : > { %v10446_v0 = vpop.permute.xlu2 %2765 }
 0x228   : > { %2708 = vrot.lane.b32.xlu2 %v10283_v45, %s9632_s8 }
 0x22d   : > { %v10463_v43 = vpop.permute.xlu2 %2628 }
 0x22e   : > { %3049 = vrot.lane.b32.xlu1 %v10197_v61, %s9632_s8  ;;  %v10459_v61 = vpop.permute.xlu1 %2669  ;;  %15707 = vst [vmem:[#allocation95_spill] sm:$0xff] %v10463_v43 }
 0x22f   : > { %15706 = vst [vmem:[#allocation94_spill] sm:$0xff] %v10459_v61 }
 0x230   : > { %2478 = vrot.lane.b32.xlu2 %v10035_v2, %s9632_s8 }
 0x233   : > { %1127 = vadd.xlane.f32.xlu0 %v1126_v15  ;;  %v10444_v15 = vpop.permute.xlu0 %2769 }
 0x235   : > { %v10475_v45 = vpop.permute.xlu2 %2474 }
 0x236   : > { %2439 = vrot.lane.b32.xlu1 %v10009_v56, %s9632_s8  ;;  %15710 = vst [vmem:[#allocation98_spill] sm:$0xff] %v10475_v45 }
 0x238   : > { %8599 = vrot.lane.b32.xlu2 %v8598_v22, %s9634_s27  ;;  %v10452_v22 = vpack.i.bf16 %v10012_v57, %v10009_v56 }
 0x23a   : > { %15705 = vst [vmem:[#allocation93_spill] sm:$0xff] %v10452_v22 }
 0x23b   : > { %v10461_v42 = vpop.xlane.xlu0 %1082 }
 0x23c   : > { %8753 = vrsqrt.f32 %v10461_v42  ;;  %vm1136_vm4 = vcmp.eq.f32.partialorder %v10461_v42, inf  ;;  %vm1138_vm5 = vcmp.eq.f32.partialorder %v10461_v42, 0.0 }
 0x23d   : > { %8755 = vrsqrt.f32 %v10403_v32 }
 0x23e   : > { %3077 = vrot.lane.b32.xlu1 %v10258_v26, %s9632_s8 }
 0x240   : > { %3107 = vrot.lane.b32.xlu2 %v10201_v62, %s9632_s8 }
 0x243   : > { %v10473_v16 = vpop.permute.xlu0 %2589 }
 0x244   : > { %15709 = vst [vmem:[#allocation97_spill] sm:$0xff] %v10473_v16  ;;  %v10491_v16 = vpop.xlane.xlu2 %1112 }
 0x246   : > { %8594 = vrot.lane.b32.xlu1 %v8593_v50, %s9634_s27  ;;  %v10471_v50 = vpop.permute.xlu1 %2550 }
 0x247   : > { %8589 = vrot.lane.b32.xlu0 %v10452_v22, %s9634_s27  ;;  %15708 = vst [vmem:[#allocation96_spill] sm:$0xff] %v10471_v50  ;;  %v10489_v50 = vpack.i.bf16 %v10137_v31, %v10132_v30 }
 0x248   : > { %2554 = vrot.lane.b32.xlu2 %v10106_v23, %s9632_s8 }
 0x249   : > { %15712 = vst [vmem:[#allocation100_spill] sm:$0xff] %v10489_v50 }
 0x24b   : > { %v10485_v43 = vpop.permute.xlu0 %2435 }
 0x24c   : > { %15711 = vst [vmem:[#allocation99_spill] sm:$0xff] %v10485_v43  ;;  %v10509_v43 = vpop.xlane.xlu2 %1124 }
 0x24d   : > { %15713 = vst [vmem:[#allocation101_spill] sm:$0xff] %v10509_v43 }
 0x24e   : > { %2515 = vrot.lane.b32.xlu1 %v10064_v12, %s9632_s8  ;;  %v10483_v61 = vpop.permute.xlu1 %2779 }
 0x24f   : > { %3051 = vrot.lane.b32.xlu0 %v10189_v58, %s9632_s8  ;;  %v10603_v58 = vpop.f32.mrf.mxu3 }
 0x250   : > { %3133 = vrot.lane.b32.xlu2 %v10280_v38, %s9632_s8  ;;  %15727 = vst [vmem:[#allocation115_spill] sm:$0xff] %v10603_v58 }
 0x253   : > { %v10501_v45 = vpop.xlane.xlu0 %1106 }
 0x254   : > { %8757 = vrsqrt.f32 %v10501_v45  ;;  %vm1232_vm8 = vcmp.eq.f32.partialorder %v10501_v45, inf  ;;  %vm1234_vm9 = vcmp.eq.f32.partialorder %v10501_v45, 0.0 }
 0x256   : > { %2783 = vrot.lane.b32.xlu1 %v10395_v10, %s9632_s8  ;;  %v10499_v10 = vpop.xlane.xlu1 %1088 }
 0x257   : > { %2476 = vrot.lane.b32.xlu0 %v10040_v3, %s9632_s8 }
 0x258   : > { %2556 = vrot.lane.b32.xlu2 %v10095_v21, %s9632_s8 }
 0x25e   : > { %3135 = vrot.lane.b32.xlu1 %v10262_v29, %s9632_s8  ;;  %v10511_v38 = vpop.xlane.xlu1 %1100  ;;  %v10537_v29 = vpack.i.bf16 %v10229_v14, %v10222_v8 }
 0x25f   : > { %3079 = vrot.lane.b32.xlu0 %v10239_v18, %s9632_s8  ;;  %v10521_v18 = vpop.permute.xlu2 %2767 }
 0x260   : > { %8604 = vrot.lane.b32.xlu2 %v10489_v50, %s9634_s27  ;;  %v10513_v50 = vpop.xlane.xlu0 %1118  ;;  %15715 = vst [vmem:[#allocation103_spill] sm:$0xff] %v10537_v29 }
 0x261   : > { %8759 = vrsqrt.f32 %v10513_v50  ;;  %vm1280_vm10 = vcmp.eq.f32.partialorder %v10513_v50, inf  ;;  %vm1282_vm11 = vcmp.eq.f32.partialorder %v10513_v50, 0.0 }
 0x262   : > { %8761 = vrsqrt.f32 %v10436_v44 }
 0x266   : > { %2634 = vrot.lane.b32.xlu1 %v10152_v36, %s9632_s8  ;;  %v10523_v26 = vpop.permute.xlu1 %2706 }
 0x267   : > { %3105 = vrot.lane.b32.xlu0 %v10215_v4, %s9632_s8  ;;  %15714 = vst [vmem:[#allocation102_spill] sm:$0xff] %v10523_v26  ;;  %v10543_v26 = vpack.i.bf16 %v10159_v41, %v10152_v36 }
 0x268   : > { %3163 = vrot.lane.b32.xlu2 %v10250_v54, %s9632_s8  ;;  %v10525_v4 = vpop.permute.xlu0 %2771 }
 0x269   : > { %15716 = vst [vmem:[#allocation104_spill] sm:$0xff] %v10543_v26 }
 0x26e   : > { %3217 = vrot.lane.b32.xlu1 %v10303_v35, %s9632_s8  ;;  %v10545_v62 = vpop.permute.xlu1 %2781 }
 0x26f   : > { %2517 = vrot.lane.b32.xlu0 %v10059_v11, %s9632_s8 }
 0x270   : > { %2632 = vrot.lane.b32.xlu2 %v10159_v41, %s9632_s8  ;;  %v10539_v54 = vpop.xlane.xlu0 %1085 }
 0x276   : > { %2710 = vrot.lane.b32.xlu1 %v10229_v14, %s9632_s8  ;;  %v10561_v51 = vpop.xlane.xlu1 %1103 }
 0x277   : > { %2593 = vrot.lane.b32.xlu0 %v10137_v31, %s9632_s8 }
 0x278   : > { %3189 = vrot.lane.b32.xlu2 %v10321_v49, %s9632_s8  ;;  %v10555_v14 = vpop.permute.xlu0 %2591 }
 0x279   : > { %15718 = vst [vmem:[#allocation106_spill] sm:$0xff] %v10555_v14 }
 0x27b   : > { %v10533_v35 = vpop.xlane.xlu2 %1091 }
 0x27e   : > { %8624 = vrot.lane.b32.xlu1 %v10537_v29, %s9634_s27  ;;  %v10573_v14 = vpop.permute.xlu1 %2437 }
 0x27f   : > { %3161 = vrot.lane.b32.xlu0 %v10272_v37, %s9632_s8 }
 0x280   : > { %8609 = vrot.lane.b32.xlu2 %v10543_v26, %s9634_s27 }
 0x283   : > { %v10553_v49 = vpop.permute.xlu2 %2630 }
 0x284   : > { %15717 = vst [vmem:[#allocation105_spill] sm:$0xff] %v10553_v49  ;;  %v10571_v49 = vpop.xlane.xlu0 %1121 }
 0x285   : > { %15721 = vst [vmem:[#allocation109_spill] sm:$0xff] %v10571_v49 }
 0x286   : > { %3247 = vrot.lane.b32.xlu1 %v10327_v52, %s9632_s8 }
 0x287   : > { %2595 = vrot.lane.b32.xlu0 %v10132_v30, %s9632_s8 }
 0x288   : > { %8614 = vrot.lane.b32.xlu2 %v10559_v27, %s9634_s27  ;;  %v10585_v27 = vpop.xlane.xlu1 %1115 }
 0x28b   : > { %v10569_v26 = vpop.permute.xlu2 %2708 }
 0x28c   : > { %15720 = vst [vmem:[#allocation108_spill] sm:$0xff] %v10569_v26  ;;  %v2774_v52 = vpop.permute.xlu0 %2773 }
 0x28f   : > { %3191 = vrot.lane.b32.xlu0 %v10311_v48, %s9632_s8 }
 0x290   : > { %2789 = vrot.lane.b32.xlu2 %v10361_v25, %s9632_s8  ;;  %v10589_v25 = vpack.i.bf16 %v10178_v53, %v10095_v21 }
 0x292   : > { %15722 = vst [vmem:[#allocation110_spill] sm:$0xff] %v10589_v25 }
 0x293   : > { %v10579_v37 = vpop.permute.xlu2 %2478 }
 0x294   : > { %v10591_v17 = vpop.permute.xlu0 %2552 }
 0x295   : > { %15723 = vst [vmem:[#allocation111_spill] sm:$0xff] %v10591_v17  ;;  %v2812_v17 = vsel %vm784_vm1, %v10438_v13, 0.0 }
 0x297   : > { %2671 = vrot.lane.b32.xlu0 %v10183_v55, %s9632_s8 }
 0x298   : > { %2791 = vrot.lane.b32.xlu2 %v10417_v7, %s9632_s8 }
 0x29b   : > { %v8600_v26 = vpop.permute.xlu2 %8599 }
 0x29c   : > { %v8601_v24 = vunpack.i.l.bf16 %v8600_v26  ;;  %v2776_v60 = vpop.permute.xlu0 %2775 }
 0x29e   : > { %2198 = vmatpush.msrb.mxu3 %v8601_v24 }
 0x29f   : > { %8619 = vrot.lane.b32.xlu0 %v10589_v25, %s9634_s27  ;;  %s7928_s27 = scalar_lea.sflag [#allocation5], %s9864_s4 }
 0x2a0   : > { %v10595_v48 = vpop.permute.xlu1 %3049 }
 0x2a1   : > { %15724 = vst [vmem:[#allocation112_spill] sm:$0xff] %v10595_v48  ;;  %v10613_v48 = vpop.f32.mrf.mxu3 }
 0x2a2   : > { %15730 = vst [vmem:[#allocation118_spill] sm:$0xff] %v10613_v48 }
 0x2a3   : > { %v10597_v7 = vpop.permute.xlu2 %3107 }
 0x2a4   : > { %15725 = vst [vmem:[#allocation113_spill] sm:$0xff] %v10597_v7 }
 0x2a7   : > { %2673 = vrot.lane.b32.xlu0 %v10178_v53, %s9632_s8  ;;  %v10617_v53 = vpop.xlane.xlu0 %1127 }
 0x2a8   : > { %v2440_v24 = vpop.permute.xlu1 %2439 }
 0x2a9   : > { %v10627_v47 = vpop.f32.mrf.mxu3 }
 0x2aa   : > { %15734 = vst [vmem:[#allocation122_spill] sm:$0xff] %v10627_v47 }
 0x2ab   : > { %v10605_v28 = vpop.permute.xlu2 %2554 }
 0x2ac   : > { %15728 = vst [vmem:[#allocation116_spill] sm:$0xff] %v10605_v28  ;;  %v2833_v28 = vsel %vm784_vm1, %v10427_v5, 0.0 }
 0x2af   : > { %3219 = vrot.lane.b32.xlu0 %v10291_v46, %s9632_s8 }
 0x2b0   : > { %2813 = vadd.xlane.f32.xlu1 %v2812_v17  ;;  %v10615_v7 = vpop.permute.xlu1 %3077 }
 0x2b1   : > { %15731 = vst [vmem:[#allocation119_spill] sm:$0xff] %v10615_v7 }
 0x2b3   : > { %v10619_v21 = vpop.permute.xlu2 %3133 }
 0x2b4   : > { %15732 = vst [vmem:[#allocation120_spill] sm:$0xff] %v10619_v21  ;;  %v8602_v21 = vunpack.i.h.bf16 %v8600_v26  ;;  %v10641_v26 = vpop.f32.mrf.mxu3 }
 0x2b5   : > { %15738 = vst [vmem:[#allocation126_spill] sm:$0xff] %v10641_v26 }
 0x2b7   : > { %3245 = vrot.lane.b32.xlu0 %v10339_v59, %s9632_s8  ;;  %v2818_v59 = vsel %vm784_vm1, %v10521_v18, 0.0 }
 0x2b8   : > { %2834 = vadd.xlane.f32.xlu1 %v2833_v28  ;;  %v8595_v13 = vpop.permute.xlu1 %8594  ;;  %v2821_v28 = vsel %vm784_vm1, %v10444_v15, 0.0 }
 0x2b9   : > { %v8596_v46 = vunpack.i.l.bf16 %v8595_v13  ;;  %v8590_v58 = vpop.permute.xlu0 %8589  ;;  %v8597_v5 = vunpack.i.h.bf16 %v8595_v13  ;;  %v2845_v13 = vsel %vm784_vm1, %v10399_v20, 0.0  ;;  %v2848_v20 = vsel %vm784_vm1, %v10423_v1, 0.0 }
 0x2ba   : > { %v8591_v17 = vunpack.i.l.bf16 %v8590_v58  ;;  %v8592_v6 = vunpack.i.h.bf16 %v8590_v58 }
 0x2bb   : > { %v10629_v7 = vpop.permute.xlu2 %2556  ;;  %2199 = vmatpush.msrb.mxu3 %v8596_v46  ;;  %v10639_v46 = vpop.f32.mrf.mxu2 }
 0x2bc   : > { %15735 = vst [vmem:[#allocation123_spill] sm:$0xff] %v10629_v7  ;;  %2163 = vmatpush.msrb.mxu2 %v8591_v17 }
 0x2bd   : > { %15737 = vst [vmem:[#allocation125_spill] sm:$0xff] %v10639_v46 }
 0x2be   : > { %2164 = vmatpush.msrb.mxu2 %v8592_v6 }
 0x2bf   : > { %2712 = vrot.lane.b32.xlu0 %v10222_v8, %s9632_s8  ;;  %s7940_s8 = scalar_lea.hbm %s15445_s10, %s8459_s0 }
 0x2c0   : > { %2233 = vmatpush.msra.mxu2 %v8602_v21  ;;  %2819 = vadd.xlane.f32.xlu1 %v2818_v59  ;;  %v2827_v21 = vsel %vm784_vm1, %v2774_v52, 0.0  ;;  %s7943_s11 = sshll.u32 %s7940_s8, 4  ;;  %s7944_s11 = int_to_ptr.hbm [resolvable:$true] %s7943_s11 }
 0x2c1   : > { %2822 = vadd.xlane.f32.xlu2 %v2821_v28  ;;  %v10637_v9 = vpop.permute.xlu0 %3051  ;;  %v2830_v28 = vsel %vm784_vm1, %v2776_v60, 0.0  ;;  %s9555_s20 = sshra.s32 %s7944_s11, 4  ;;  %s9556_s20 = int_to_ptr.hbm [resolvable:$true] %s9555_s20 }
 0x2c2   : > { %15736 = vst [vmem:[#allocation124_spill] sm:$0xff] %v10637_v9  ;;  %2234 = vmatpush.msra.mxu2 %v8597_v5  ;;  %v10653_v5 = vpop.f32.mrf.mxu3  ;;  %v2809_v9 = vsel %vm784_vm1, %v10383_v34, 0.0  ;;  %p9562_p7 = scmp.lt.s32.totalorder %s9556_s20, %s15445_s10 }
 0x2c3   : > { %v8605_v58 = vpop.permute.xlu2 %8604  ;;  %v10649_v17 = vpop.f32.mrf.mxu2  ;;  %15741 = vst [vmem:[#allocation129_spill] sm:$0xff] %v10653_v5 }
 0x2c4   : > { %v8606_v6 = vunpack.i.l.bf16 %v8605_v58  ;;  %v8607_v18 = vunpack.i.h.bf16 %v8605_v58  ;;  %15740 = vst [vmem:[#allocation128_spill] sm:$0xff] %v10649_v17 }
 0x2c6   : > { %2303 = vmatpush.msrb.mxu0 %v8606_v6 }
 0x2c8   : > { %2304 = vmatpush.msrb.mxu0 %v8607_v18  ;;  %2846 = vadd.xlane.f32.xlu1 %v2845_v13 }
 0x2c9   : > { %2828 = vadd.xlane.f32.xlu2 %v2827_v21  ;;  %v2477_v59 = vpop.permute.xlu0 %2476 }
 0x2ca   : > { %8216 = vmatpush.xpose.msk.msra.mxu0 %vm784_vm1, %v2440_v24  ;;  %v10664_v6 = vpop.f32.mrf.mxu3 }
 0x2cb   : > { %v10647_v15 = vpop.permute.xlu2 %3163  ;;  %v10662_v58 = vpop.f32.mrf.mxu2  ;;  %15745 = vst [vmem:[#allocation133_spill] sm:$0xff] %v10664_v6 }
 0x2cc   : > { %15739 = vst [vmem:[#allocation127_spill] sm:$0xff] %v10647_v15 }
 0x2cd   : > { %15744 = vst [vmem:[#allocation132_spill] sm:$0xff] %v10662_v58 }
 0x2ce   : > { %8217 = vmatpush.xpose.msk.msra.mxu0 %vm784_vm1, %v10573_v14 }
 0x2d0   : > { %2849 = vadd.xlane.f32.xlu1 %v2848_v20 }
 0x2d1   : > { %2831 = vadd.xlane.f32.xlu2 %v2830_v28  ;;  %v10658_v24 = vpop.permute.xlu0 %3079 }
 0x2d2   : > { %15742 = vst [vmem:[#allocation130_spill] sm:$0xff] %v10658_v24  ;;  %v10676_v60 = vpop.f32.mrf.mxu3 }
 0x2d3   : > { %v10660_v52 = vpop.permute.xlu2 %2632  ;;  %v10670_v13 = vpop.f32.mrf.mxu2  ;;  %15750 = vst [vmem:[#allocation138_spill] sm:$0xff] %v10676_v60 }
 0x2d4   : > { %15743 = vst [vmem:[#allocation131_spill] sm:$0xff] %v10660_v52 }
 0x2d5   : > { %15748 = vst [vmem:[#allocation136_spill] sm:$0xff] %v10670_v13 }
 0x2d9   : > { %v10666_v18 = vpop.permute.xlu0 %3105 }
 0x2da   : > { %15746 = vst [vmem:[#allocation134_spill] sm:$0xff] %v10666_v18  ;;  %v8752_v18 = vpop.eup %8751 }
 0x2db   : > { %v10668_v14 = vpop.permute.xlu2 %3189  ;;  %v10679_v28 = vpop.f32.mrf.mxu2  ;;  %v1178_v52 = vmul.f32 %v8752_v18, %v10407_v33 }
 0x2dc   : > { %15747 = vst [vmem:[#allocation135_spill] sm:$0xff] %v10668_v14  ;;  %v8754_v14 = vpop.eup %8753 }
 0x2dd   : > { %15751 = vst [vmem:[#allocation139_spill] sm:$0xff] %v10679_v28  ;;  %v8756_v7 = vpop.eup %8755 }
 0x2e1   : > { %v10673_v1 = vpop.permute.xlu0 %2517 }
 0x2e2   : > { %15749 = vst [vmem:[#allocation137_spill] sm:$0xff] %v10673_v1 }
 0x2e3   : > { %v8610_v21 = vpop.permute.xlu2 %8609 }
 0x2e4   : > { %v8611_v20 = vunpack.i.l.bf16 %v8610_v21  ;;  %v8612_v15 = vunpack.i.h.bf16 %v8610_v21  ;;  %v1130_v21 = vmul.f32 %v8754_v14, %v10461_v42 }
 0x2e6   : > { %2338 = vmatpush.msra.mxu1 %v8611_v20  ;;  %v10691_v20 = vpop.f32.mrf.mxu3  ;;  %v1131_v34 = vmul.f32 %v8754_v14, %v1130_v21 }
 0x2e7   : > { %15753 = vst [vmem:[#allocation141_spill] sm:$0xff] %v10691_v20 }
 0x2e8   : > { %2339 = vmatpush.msra.mxu1 %v8612_v15  ;;  %v1190_v15 = vmul.f32 %v8756_v7, %v10403_v32  ;;  %v1132_v60 = vmul.f32 0.5, %v1131_v34 }
 0x2e9   : > { %2810 = vadd.xlane.f32.xlu0 %v2809_v9  ;;  %v10685_v8 = vpop.permute.xlu0 %2593  ;;  %v10697_v9 = vpop.f32.mrf.mxu2 }
 0x2ea   : > { %8220 = vmatpush.xpose.msk.msrb.mxu1 %vm784_vm1, %v10579_v37  ;;  %15752 = vst [vmem:[#allocation140_spill] sm:$0xff] %v10685_v8  ;;  %v1179_v37 = vmul.f32 %v8752_v18, %v1178_v52  ;;  %v2815_v8 = vsel %vm784_vm1, %v10446_v0, 0.0  ;;  %v1191_v28 = vmul.f32 %v8756_v7, %v1190_v15  ;;  %v10705_v52 = vpop.eup %8757  ;;  %8763 = vrsqrt.f32 %v10697_v9 }
 0x2eb   : > { %v10687_v24 = vpop.permute.xlu2 %8614  ;;  %v10707_v21 = vpop.eup %8759  ;;  %v1226_v15 = vmul.f32 %v10705_v52, %v10501_v45  ;;  %8765 = vrsqrt.f32 %v10499_v10  ;;  %vm1555_vm14 = vcmp.eq.f32.partialorder %v10697_v9, inf  ;;  %vm1557_vm15 = vcmp.eq.f32.partialorder %v10697_v9, 0.0 }
 0x2ec   : > { %v1180_v13 = vmul.f32 0.5, %v1179_v37  ;;  %v10709_v5 = vpop.eup %8761  ;;  %v1192_v58 = vmul.f32 0.5, %v1191_v28  ;;  %v1274_v37 = vmul.f32 %v10707_v21, %v10513_v50  ;;  %8767 = vrsqrt.f32 %v10539_v54 }
 0x2ed   : > { %v1238_v28 = vmul.f32 %v10709_v5, %v10436_v44  ;;  %v1227_v46 = vmul.f32 %v10705_v52, %v1226_v15 }
 0x2ee   : > { %8221 = vmatpush.xpose.msk.msrb.mxu1 %vm784_vm1, %v2477_v59  ;;  %v10711_v20 = vpop.f32.mrf.mxu3  ;;  %v1181_v0 = vsub.f32 1.5, %v1180_v13 }
 0x2ef   : > { %v1239_v48 = vmul.f32 %v10709_v5, %v1238_v28  ;;  %v1187_v28 = vand.u32 2147483648, %v10407_v33 }
 0x2f0   : > { %v10732_v47 = vpop.eup %8763 }
 0x2f1   : > { %2816 = vadd.xlane.f32.xlu0 %v2815_v8  ;;  %v10702_v1 = vpop.permute.xlu0 %3161  ;;  %v1133_v8 = vsub.f32 1.5, %v1132_v60  ;;  %v10723_v34 = vpop.f32.mrf.mxu2  ;;  %v1193_v60 = vsub.f32 1.5, %v1192_v58  ;;  %v1549_v15 = vmul.f32 %v10732_v47, %v10697_v9 }
 0x2f2   : > { %15754 = vst [vmem:[#allocation142_spill] sm:$0xff] %v10702_v1  ;;  %v1182_v1 = vmul.f32 %v8752_v18, %v1181_v0  ;;  %8769 = vrsqrt.f32 %v10723_v34 }
 0x2f3   : > { %v2790_v59 = vpop.permute.xlu2 %2789  ;;  %v1134_v6 = vmul.f32 %v8754_v14, %v1133_v8  ;;  %8771 = vrsqrt.f32 %v10511_v38  ;;  %v1194_v58 = vmul.f32 %v8756_v7, %v1193_v60  ;;  %v2836_v7 = vsel %vm784_vm1, %v10483_v61, 0.0 }
 0x2f4   : > { %v2851_v17 = vsel %vm784_vm1, %v2790_v59, 0.0  ;;  %8773 = vrsqrt.f32 %v10711_v20  ;;  %v1183_v14 = vmul.f32 %v1182_v1, %v10407_v33  ;;  %v1240_v60 = vmul.f32 0.5, %v1239_v48 }
 0x2f5   : > { %2852 = vadd.xlane.f32.xlu2 %v2851_v17  ;;  %v2824_v17 = vsel %vm784_vm1, %v10525_v4, 0.0  ;;  %v1275_v4 = vmul.f32 %v10707_v21, %v1274_v37  ;;  %v1135_v0 = vmul.f32 %v1134_v6, %v10461_v42  ;;  %8775 = vrsqrt.f32 %v10533_v35 }
 0x2f6   : > { %v10746_v37 = vpop.f32.mrf.mxu3  ;;  %v1185_v48 = vsel %vm1184_vm2, %v10407_v33, %v1183_v14  ;;  %v1550_v49 = vmul.f32 %v10732_v47, %v1549_v15  ;;  %v1241_v63 = vsub.f32 1.5, %v1240_v60  ;;  %v2839_v33 = vsel %vm784_vm1, %v10545_v62, 0.0 }
 0x2f7   : > { %v1276_v8 = vmul.f32 0.5, %v1275_v4  ;;  %8777 = vrsqrt.f32 %v10746_v37  ;;  %v10817_v62 = vpack.i.bf16 %v10137_v31, %v10040_v3  ;;  %vm1579_vm2 = vcmp.eq.f32.partialorder %v10723_v34, inf }
 0x2f9   : > { %2825 = vadd.xlane.f32.xlu0 %v2824_v17  ;;  %v10726_v13 = vpop.permute.xlu0 %2595  ;;  %v10736_v17 = vpop.eup %8765  ;;  %v1277_v19 = vsub.f32 1.5, %v1276_v8  ;;  %15760 = vst [vmem:[#allocation148_spill] sm:$0xff] %v10817_v62 }
 0x2fa   : > { %15755 = vst [vmem:[#allocation143_spill] sm:$0xff] %v10726_v13  ;;  %v10739_v18 = vpop.eup %8767  ;;  %v1154_v1 = vmul.f32 %v10736_v17, %v10499_v10  ;;  %v1137_v13 = vsel %vm1136_vm4, %v10461_v42, %v1135_v0  ;;  %vm1160_vm4 = vcmp.eq.f32.partialorder %v10499_v10, inf }
 0x2fb   : > { %v2792_v59 = vpop.permute.xlu2 %2791  ;;  %v1142_v61 = vmul.f32 %v10739_v18, %v10539_v54 }
 0x2fc   : > { %v2854_v26 = vsel %vm784_vm1, %v2792_v59, 0.0  ;;  %v1195_v59 = vmul.f32 %v1194_v58, %v10403_v32  ;;  %v1155_v14 = vmul.f32 %v10736_v17, %v1154_v1 }
 0x2fd   : > { %2855 = vadd.xlane.f32.xlu1 %v2854_v26  ;;  %v1228_v26 = vmul.f32 0.5, %v1227_v46  ;;  %v10756_v46 = vpop.eup %8769  ;;  %v1143_v0 = vmul.f32 %v10739_v18, %v1142_v61  ;;  %v1551_v61 = vmul.f32 0.5, %v1550_v49  ;;  %v10813_v49 = vpop.f32.mrf.mxu2 }
 0x2fe   : > { %v10763_v4 = vpop.eup %8771  ;;  %v1573_v57 = vmul.f32 %v10756_v46, %v10723_v34  ;;  %v1197_v43 = vsel %vm1196_vm6, %v10403_v32, %v1195_v59  ;;  %v1278_v59 = vmul.f32 %v10707_v21, %v1277_v19  ;;  %v1235_v19 = vand.u32 2147483648, %v10501_v45 }
 0x2ff   : > { %v10773_v58 = vpop.eup %8773  ;;  %v1229_v29 = vsub.f32 1.5, %v1228_v26  ;;  %v10787_v26 = vsel %vm1186_vm3, %v1187_v28, %v1185_v48  ;;  %v1202_v15 = vmul.f32 %v10763_v4, %v10511_v38  ;;  %v1156_v48 = vmul.f32 0.5, %v1155_v14 }
 0x300   : > { %15758 = vst [vmem:[#allocation146_spill] sm:$0xff] %v10787_v26  ;;  %v1561_v60 = vmul.f32 %v10773_v58, %v10711_v20  ;;  %v10797_v1 = vpop.eup %8775  ;;  %v1552_v21 = vsub.f32 1.5, %v1551_v61  ;;  %8779 = vrsqrt.f32 %v10813_v49  ;;  %v1247_v61 = vand.u32 2147483648, %v10436_v44 }
 0x301   : > { %2837 = vadd.xlane.f32.xlu0 %v2836_v7  ;;  %v10754_v6 = vpop.permute.xlu0 %3191  ;;  %v1139_v7 = vand.u32 2147483648, %v10461_v42  ;;  %v10803_v28 = vpop.eup %8777  ;;  %8781 = vrsqrt.f32 %v10561_v51  ;;  %vm1148_vm3 = vcmp.eq.f32.partialorder %v10539_v54, inf  ;;  %vm1567_vm6 = vcmp.eq.f32.partialorder %v10711_v20, inf }
 0x302   : > { %15756 = vst [vmem:[#allocation144_spill] sm:$0xff] %v10754_v6  ;;  %v10771_v6 = vpop.permute.xlu1 %2515 }
 0x303   : > { %15757 = vst [vmem:[#allocation145_spill] sm:$0xff] %v10771_v6  ;;  %v1199_v6 = vand.u32 2147483648, %v10403_v32  ;;  %v10791_v8 = vsel %vm1138_vm5, %v1139_v7, %v1137_v13  ;;  %v1230_v32 = vmul.f32 %v10705_v52, %v1229_v29  ;;  %v1242_v13 = vmul.f32 %v10709_v5, %v1241_v63 }
 0x304   : > { %v1574_v7 = vmul.f32 %v10756_v46, %v1573_v57  ;;  %v1144_v29 = vmul.f32 0.5, %v1143_v0  ;;  %v1562_v57 = vmul.f32 %v10773_v58, %v1561_v60  ;;  %v1166_v63 = vmul.f32 %v10797_v1, %v10533_v35 }
 0x305   : > { %v10805_v42 = vsel %vm1198_vm7, %v1199_v6, %v1197_v43  ;;  %v1203_v43 = vmul.f32 %v10763_v4, %v1202_v15  ;;  %v1231_v5 = vmul.f32 %v1230_v32, %v10501_v45  ;;  %v1279_v52 = vmul.f32 %v1278_v59, %v10513_v50 }
 0x306   : > { %v1585_v6 = vmul.f32 %v10803_v28, %v10746_v37  ;;  %v1243_v14 = vmul.f32 %v1242_v13, %v10436_v44  ;;  %v1157_v0 = vsub.f32 1.5, %v1156_v48  ;;  %v1575_v15 = vmul.f32 0.5, %v1574_v7 }
 0x307   : > { %v1283_v32 = vand.u32 2147483648, %v10513_v50  ;;  %v1145_v59 = vsub.f32 1.5, %v1144_v29  ;;  %v1233_v13 = vsel %vm1232_vm8, %v10501_v45, %v1231_v5  ;;  %v1553_v48 = vmul.f32 %v10732_v47, %v1552_v21 }
 0x308   : > { %v1586_v7 = vmul.f32 %v10803_v28, %v1585_v6  ;;  %v1281_v29 = vsel %vm1280_vm10, %v10513_v50, %v1279_v52  ;;  %v1245_v3 = vsel %vm1244_vm12, %v10436_v44, %v1243_v14  ;;  %v8653_v21 = vpack.i.bf16 %v10152_v36, %v10106_v23  ;;  %v10857_v6 = vpop.eup %8779  ;;  %v10859_v14 = vpop.f32.mrf.mxu3 }
 0x309   : > { %2840 = vadd.xlane.f32.xlu0 %v2839_v33  ;;  %v10809_v26 = vpop.permute.xlu0 %2671  ;;  %v1204_v33 = vmul.f32 0.5, %v1203_v43  ;;  %v1158_v43 = vmul.f32 %v10736_v17, %v1157_v0  ;;  %v1146_v5 = vmul.f32 %v10739_v18, %v1145_v59  ;;  %v1554_v18 = vmul.f32 %v1553_v48, %v10697_v9 }
 0x30a   : > { %15759 = vst [vmem:[#allocation147_spill] sm:$0xff] %v10809_v26  ;;  %v2784_v60 = vpop.permute.xlu1 %2783  ;;  %v1563_v26 = vmul.f32 0.5, %v1562_v57  ;;  %v1576_v57 = vsub.f32 1.5, %v1575_v15  ;;  %v1587_v0 = vmul.f32 0.5, %v1586_v7  ;;  %v8616_v15 = vunpack.i.l.bf16 %v10687_v24 }
 0x30b   : > { %v2842_v31 = vsel %vm784_vm1, %v2784_v60, 0.0  ;;  %v1205_v52 = vsub.f32 1.5, %v1204_v33  ;;  %v10870_v59 = vsel %vm1282_vm11, %v1283_v32, %v1281_v29  ;;  %v1163_v45 = vand.u32 2147483648, %v10499_v10 }
 0x30c   : > { %v1564_v60 = vsub.f32 1.5, %v1563_v26  ;;  %v10874_v26 = vsel %vm1246_vm13, %v1247_v61, %v1245_v3  ;;  %v1147_v50 = vmul.f32 %v1146_v5, %v10539_v54  ;;  %v1597_v32 = vmul.f32 %v10857_v6, %v10813_v49 }
 0x30d   : > { %8644 = vrot.lane.b32.xlu2 %v10817_v62, %s9635_s6  ;;  %v1167_v62 = vmul.f32 %v10797_v1, %v1166_v63  ;;  %v10888_v3 = vmul.f32 %v10763_v4, %v1205_v52  ;;  %v1558_v44 = vand.u32 2147483648, %v10697_v9  ;;  %v1556_v48 = vsel %vm1555_vm14, %v10697_v9, %v1554_v18 }
 0x30e   : > { %v1565_v61 = vmul.f32 %v10773_v58, %v1564_v60  ;;  %8783 = vrsqrt.f32 %v10859_v14  ;;  %v1151_v4 = vand.u32 2147483648, %v10539_v54  ;;  %v8638_v7 = vpack.i.bf16 %v10132_v30, %v10064_v12 }
 0x30f   : > { %v1168_v17 = vmul.f32 0.5, %v1167_v62  ;;  %v1577_v62 = vmul.f32 %v10756_v46, %v1576_v57  ;;  %v1588_v46 = vsub.f32 1.5, %v1587_v0  ;;  %v1149_v29 = vsel %vm1148_vm3, %v10539_v54, %v1147_v50  ;;  %v10905_v57 = vpop.f32.mrf.mxu2 }
 0x310   : > { %8785 = vrsqrt.f32 %v10585_v27  ;;  %v10908_v9 = vsel %vm1557_vm15, %v1558_v44, %v1556_v48  ;;  %v1566_v5 = vmul.f32 %v1565_v61, %v10711_v20  ;;  %vm1150_vm5 = vcmp.eq.f32.partialorder %v10539_v54, 0.0  ;;  %v10925_v18 = vpop.f32.mrf.mxu3 }
 0x311   : > { %2843 = vadd.xlane.f32.xlu0 %v2842_v31  ;;  %v10850_v63 = vpop.permute.xlu0 %8619  ;;  %v10863_v31 = vsel %vm1234_vm9, %v1235_v19, %v1233_v13  ;;  %v10881_v19 = vmul.f32 %v1158_v43, %v10499_v10  ;;  %v1169_v33 = vsub.f32 1.5, %v1168_v17  ;;  %v10892_v13 = vpop.eup %8781  ;;  %v1578_v58 = vmul.f32 %v1577_v62, %v10723_v34 }
 0x312   : > { %v8621_v47 = vunpack.i.l.bf16 %v10850_v63  ;;  %v1598_v43 = vmul.f32 %v10857_v6, %v1597_v32  ;;  %v1589_v52 = vmul.f32 %v10803_v28, %v1588_v46  ;;  %v8633_v60 = vpack.i.bf16 %v10035_v2, %v10059_v11 }
 0x313   : > { %vm1581_vm7 = vcmp.eq.f32.partialorder %v10723_v34, 0.0  ;;  %v1582_v17 = vand.u32 2147483648, %v10723_v34  ;;  %8787 = vrsqrt.f32 %v10905_v57  ;;  %v1644_v28 = vperm.slane %v10908_v9, 0 }
 0x314   : > { %2268 = vmatpush.msra.mxu3 %v8621_v47  ;;  %v1214_v47 = vmul.f32 %v10892_v13, %v10561_v51  ;;  %v10928_v54 = vpop.eup %8783  ;;  %v1580_v0 = vsel %vm1579_vm2, %v10723_v34, %v1578_v58  ;;  %v1599_v62 = vmul.f32 0.5, %v1598_v43  ;;  %vm1162_vm8 = vcmp.eq.f32.partialorder %v10499_v10, 0.0 }
 0x315   : > { %8654 = vrot.lane.b32.xlu2 %v8653_v21, %s9635_s6  ;;  %v1170_v21 = vmul.f32 %v10797_v1, %v1169_v33  ;;  %v1152_v1 = vsel %vm1150_vm5, %v1151_v4, %v1149_v29  ;;  %v1568_v50 = vsel %vm1567_vm6, %v10711_v20, %v1566_v5  ;;  %vm1569_vm9 = vcmp.eq.f32.partialorder %v10711_v20, 0.0 }
 0x316   : > { %8629 = vrot.lane.b32.xlu1 %v10452_v22, %s9635_s6  ;;  %2269 = vmatpush.msra.mxu3 %v8616_v15  ;;  %v1570_v15 = vand.u32 2147483648, %v10711_v20  ;;  %v1215_v32 = vmul.f32 %v10892_v13, %v1214_v47  ;;  %v10942_v61 = vpop.eup %8785  ;;  %vm1208_vm10 = vcmp.eq.f32.partialorder %v10511_v38, inf  ;;  %v1653_v33 = vmul.f32 %v1644_v28, %v1152_v1 }
 0x317   : > { %v1171_v44 = vmul.f32 %v1170_v21, %v10533_v35  ;;  %v1590_v48 = vmul.f32 %v1589_v52, %v10746_v37  ;;  %vm1591_vm11 = vcmp.eq.f32.partialorder %v10746_v37, inf  ;;  %8789 = vrsqrt.f32 %v10925_v18 }
 0x318   : > { %v10952_v20 = vsel %vm1581_vm7, %v1582_v17, %v1580_v0  ;;  %vm1593_vm12 = vcmp.eq.f32.partialorder %v10746_v37, 0.0  ;;  %v1594_v46 = vand.u32 2147483648, %v10746_v37  ;;  %v1609_v4 = vmul.f32 %v10928_v54, %v10859_v14 }
 0x319   : > { %v1600_v58 = vsub.f32 1.5, %v1599_v62  ;;  %vm1172_vm13 = vcmp.eq.f32.partialorder %v10533_v35, inf  ;;  %8791 = vrsqrt.f32 %v10617_v53  ;;  %v10962_v29 = vpop.eup %8787  ;;  %vm1210_vm14 = vcmp.eq.f32.partialorder %v10511_v38, 0.0 }
 0x31a   : > { %v1216_v34 = vmul.f32 0.5, %v1215_v32  ;;  %v1173_v43 = vsel %vm1172_vm13, %v10533_v35, %v1171_v44  ;;  %v1262_v5 = vmul.f32 %v10942_v61, %v10585_v27  ;;  %v15568_v47 = vperm.slane %v10952_v20, 0 }
 0x31b   : > { %v1592_v21 = vsel %vm1591_vm11, %v10746_v37, %v1590_v48  ;;  %v1175_v52 = vand.u32 2147483648, %v10533_v35  ;;  %v10975_v17 = vmax.f32 %v1653_v33, 1e-06  ;;  %v1161_v1 = vsel %vm1160_vm4, %v10499_v10, %v10881_v19 }
 0x31c   : > { %v1207_v0 = vmul.f32 %v10888_v3, %v10511_v38  ;;  %vm1174_vm15 = vcmp.eq.f32.partialorder %v10533_v35, 0.0  ;;  %v1601_v32 = vmul.f32 %v10857_v6, %v1600_v58  ;;  %v1621_v19 = vmul.f32 %v10962_v29, %v10905_v57 }
 0x31d   : > { %4224 = vrot.lane.b32.xlu2 %v9958_v39, %s9636_s19  ;;  %v10988_v62 = vpop.eup %8789  ;;  %v1176_v44 = vsel %vm1174_vm15, %v1175_v52, %v1173_v43  ;;  %v10996_v3 = vsel %vm1593_vm12, %v1594_v46, %v1592_v21  ;;  %8793 = vrsqrt.f32 %v10491_v16  ;;  %v1217_v35 = vsub.f32 1.5, %v1216_v34 }
 0x31e   : > { %8639 = vrot.lane.b32.xlu1 %v8638_v7, %s9635_s6  ;;  %v10958_v7 = vsel %vm1569_vm9, %v1570_v15, %v1568_v50  ;;  %v1610_v15 = vmul.f32 %v10928_v54, %v1609_v4  ;;  %v1263_v33 = vmul.f32 %v10942_v61, %v1262_v5  ;;  %v11006_v6 = vsel %vm1162_vm8, %v1163_v45, %v1161_v1 }
 0x31f   : > { %v15569_v50 = vperm.slane %v10958_v7, 0  ;;  %v1211_v48 = vand.u32 2147483648, %v10511_v38  ;;  %8795 = vrcp.f32 %v10975_v17  ;;  %v1657_v37 = vmul.f32 %v15568_v47, %v10805_v42 }
 0x320   : > { %v1209_v46 = vsel %vm1208_vm10, %v10511_v38, %v1207_v0  ;;  %v1611_v4 = vmul.f32 0.5, %v1610_v15  ;;  %v1633_v58 = vmul.f32 %v10988_v62, %v10925_v18  ;;  %v1602_v45 = vmul.f32 %v1601_v32, %v10813_v49  ;;  %v11032_v0 = vpop.permute.xlu1 %3135 }
 0x321   : > { %v1655_v10 = vmul.f32 %v15569_v50, %v1176_v44  ;;  %vm1603_vm2 = vcmp.eq.f32.partialorder %v10813_v49, inf  ;;  %v15570_v34 = vperm.slane %v10996_v3, 0  ;;  %v1622_v43 = vmul.f32 %v10962_v29, %v1621_v19 }
 0x322   : > { %v1218_v42 = vmul.f32 %v10892_v13, %v1217_v35  ;;  %v1264_v5 = vmul.f32 0.5, %v1263_v33  ;;  %v8658_v52 = vpack.i.bf16 %v10159_v41, %v10183_v55  ;;  %v1212_v1 = vsel %vm1210_vm14, %v1211_v48, %v1209_v46 }
 0x323   : > { %vm1605_vm3 = vcmp.eq.f32.partialorder %v10813_v49, 0.0  ;;  %v11036_v15 = vmax.f32 %v1657_v37, 1e-06  ;;  %v1652_v13 = vmul.f32 %v1644_v28, %v10791_v8  ;;  %v1606_v19 = vand.u32 2147483648, %v10813_v49  ;;  %v15761_v37 = vld [vmem:[#allocation101_spill] sm:$0xff] }
 0x324   : > { %v1612_v44 = vsub.f32 1.5, %v1611_v4  ;;  %v1634_v38 = vmul.f32 %v10988_v62, %v1633_v58  ;;  %v11048_v35 = vmax.f32 %v1655_v10, 1e-06  ;;  %v1604_v8 = vsel %vm1603_vm2, %v10813_v49, %v1602_v45 }
 0x325   : > { %4306 = vrot.lane.b32.xlu2 %v10064_v12, %s9636_s19  ;;  %8634 = vrot.lane.b32.xlu0 %v8633_v60, %s9635_s6  ;;  %v11000_v60 = vpop.eup %8791  ;;  %v1623_v9 = vmul.f32 0.5, %v1622_v43  ;;  %v1658_v48 = vmul.f32 %v15570_v34, %v1212_v1  ;;  %8797 = vrsqrt.f32 %v15761_v37  ;;  %v1219_v46 = vmul.f32 %v1218_v42, %v10561_v51 }
 0x326   : > { %8649 = vrot.lane.b32.xlu1 %v10589_v25, %s9635_s6  ;;  %v1310_v21 = vmul.f32 %v11000_v60, %v10617_v53  ;;  %v11041_v32 = vpop.eup %8793  ;;  %v1265_v4 = vsub.f32 1.5, %v1264_v5  ;;  %vm1220_vm4 = vcmp.eq.f32.partialorder %v10561_v51, inf  ;;  %8799 = vrcp.f32 %v11036_v15 }
 0x327   : > { %v11050_v33 = vpop.eup %8795  ;;  %v1250_v10 = vmul.f32 %v11041_v32, %v10491_v16  ;;  %v11065_v45 = vmax.f32 %v1652_v13, 1e-06  ;;  %v1613_v43 = vmul.f32 %v10928_v54, %v1612_v44  ;;  %8801 = vrcp.f32 %v11048_v35 }
 0x328   : > { %v1311_v58 = vmul.f32 %v11000_v60, %v1310_v21  ;;  %v1699_v1 = vmul.f32 %v11050_v33, %v10975_v17  ;;  %v11073_v42 = vsel %vm1605_vm3, %v1606_v19, %v1604_v8  ;;  %v1624_v5 = vsub.f32 1.5, %v1623_v9  ;;  %v11084_v19 = vpop.permute.xlu1 %2634 }
 0x329   : > { %v1223_v21 = vand.u32 2147483648, %v10561_v51  ;;  %v11076_v28 = vmax.f32 %v1658_v48, 1e-06  ;;  %v1221_v13 = vsel %vm1220_vm4, %v10561_v51, %v1219_v46  ;;  %vm1222_vm5 = vcmp.eq.f32.partialorder %v10561_v51, 0.0  ;;  %v15762_v48 = vld [vmem:[#allocation31_spill] sm:$0xff] }
 0x32a   : > { %v1266_v54 = vmul.f32 %v10942_v61, %v1265_v4  ;;  %v1312_v44 = vmul.f32 0.5, %v1311_v58  ;;  %vm1627_vm6 = vcmp.eq.f32.partialorder %v10905_v57, inf  ;;  %vm1615_vm7 = vcmp.eq.f32.partialorder %v10859_v14, inf }
 0x32b   : > { %v1251_v49 = vmul.f32 %v11041_v32, %v1250_v10  ;;  %8803 = vrcp.f32 %v11065_v45  ;;  %v11088_v8 = vpop.eup %8797  ;;  %v1614_v9 = vmul.f32 %v1613_v43, %v10859_v14  ;;  %vm1617_vm8 = vcmp.eq.f32.partialorder %v10859_v14, 0.0 }
 0x32c   : > { %v1700_v46 = vsub.f32 1.0, %v1699_v1  ;;  %v11096_v4 = vpop.eup %8799  ;;  %v1618_v10 = vand.u32 2147483648, %v10859_v14  ;;  %v1224_v43 = vsel %vm1222_vm5, %v1223_v21, %v1221_v13  ;;  %v1267_v50 = vmul.f32 %v1266_v54, %v10585_v27 }
 0x32d   : > { %4302 = vrot.lane.b32.xlu2 %v9961_v40, %s9636_s19  ;;  %4230 = vrot.lane.b32.xlu0 %v10009_v56, %s9636_s19  ;;  %v11103_v47 = vpop.eup %8801  ;;  %v1313_v34 = vsub.f32 1.5, %v1312_v44  ;;  %8805 = vrcp.f32 %v11076_v28  ;;  %v1252_v1 = vmul.f32 0.5, %v1251_v49  ;;  %vm1639_vm9 = vcmp.eq.f32.partialorder %v10925_v18, inf  ;;  %v15777_v40 = vld [vmem:[#allocation52_spill] sm:$0xff] }
 0x32e   : > { %8659 = vrot.lane.b32.xlu1 %v8658_v52, %s9635_s6  ;;  %v1635_v52 = vmul.f32 0.5, %v1634_v38  ;;  %v1298_v58 = vmul.f32 %v11088_v8, %v15761_v37  ;;  %vm1268_vm10 = vcmp.eq.f32.partialorder %v10585_v27, inf  ;;  %v1616_v51 = vsel %vm1615_vm7, %v10859_v14, %v1614_v9 }
 0x32f   : > { %vm1641_vm11 = vcmp.eq.f32.partialorder %v10925_v18, 0.0  ;;  %v1701_v13 = vmul.f32 %v11050_v33, %v1700_v46  ;;  %v1642_v44 = vand.u32 2147483648, %v10925_v18  ;;  %v1271_v49 = vand.u32 2147483648, %v10585_v27 }
 0x330   : > { %v1636_v61 = vsub.f32 1.5, %v1635_v52  ;;  %v1625_v52 = vmul.f32 %v10962_v29, %v1624_v5  ;;  %v15763_v29 = vperm.slane %v10996_v3, 0  ;;  %v1727_v38 = vmul.f32 %v11103_v47, %v11048_v35  ;;  %v11137_v39 = vpop.permute.xlu1 %3217 }
 0x331   : > { %v11120_v54 = vpop.eup %8803  ;;  %v1755_v9 = vmul.f32 %v11096_v4, %v11036_v15  ;;  %vm1270_vm12 = vcmp.eq.f32.partialorder %v10585_v27, 0.0  ;;  %v1314_v3 = vmul.f32 %v11000_v60, %v1313_v34  ;;  %v11134_v46 = vsel %vm1617_vm8, %v1618_v10, %v1616_v51 }
 0x332   : > { %v1637_v21 = vmul.f32 %v10988_v62, %v1636_v61  ;;  %v1659_v5 = vmul.f32 %v15763_v29, %v1224_v43  ;;  %v1626_v62 = vmul.f32 %v1625_v52, %v10905_v57  ;;  %v1269_v61 = vsel %vm1268_vm10, %v10585_v27, %v1267_v50  ;;  %v15764_v27 = vld [vmem:[#allocation33_spill] sm:$0xff] }
 0x333   : > { %v1253_v43 = vsub.f32 1.5, %v1252_v1  ;;  %v1299_v29 = vmul.f32 %v11088_v8, %v1298_v58  ;;  %vm1703_vm13 = vweird.f32 %v10975_v17  ;;  %v1702_v14 = vadd.f32 %v11050_v33, %v1701_v13 }
 0x334   : > { %v1638_v52 = vmul.f32 %v1637_v21, %v10925_v18  ;;  %vm1704_vm14 = vweird.f32 %v11050_v33  ;;  %v11149_v50 = vmax.f32 %v1659_v5, 1e-06  ;;  %v1272_v60 = vsel %vm1270_vm12, %v1271_v49, %v1269_v61 }
 0x335   : > { %4308 = vrot.lane.b32.xlu0 %v10059_v11, %s9636_s19  ;;  %v1707_v34 = vand.u32 2147483647, %v10975_v17  ;;  %v1709_v58 = vand.u32 2147483648, %v10975_v17  ;;  %v1728_v10 = vsub.f32 1.0, %v1727_v38  ;;  %v11156_v1 = vsel %vm1627_vm6, %v10905_v57, %v1626_v62  ;;  %vm11165_vm2 = vmor %vm1703_vm13, %vm1704_vm14 }
 0x336   : > { %4228 = vrot.lane.b32.xlu1 %v15762_v48, %s9636_s19  ;;  %v11140_v48 = vpop.eup %8805  ;;  %v15572_v51 = vperm.slane %v11134_v46, 0  ;;  %v1315_v21 = vmul.f32 %v1314_v3, %v10617_v53  ;;  %v1756_v13 = vsub.f32 1.0, %v1755_v9  ;;  %vm1256_vm15 = vcmp.eq.f32.partialorder %v10491_v16, inf }
 0x337   : > { %v1300_v5 = vmul.f32 0.5, %v1299_v29  ;;  %v1769_v62 = vmul.f32 %v11140_v48, %v11076_v28  ;;  %v1640_v9 = vsel %vm1639_vm9, %v10925_v18, %v1638_v52  ;;  %v1706_v61 = vsel %vm11165_vm2, %v11050_v33, %v1702_v14 }
 0x338   : > { %8807 = vrcp.f32 %v11149_v50  ;;  %vm1316_vm3 = vcmp.eq.f32.partialorder %v10617_v53, inf  ;;  %vm1708_vm4 = vcmp.eq.f32.partialorder %v1707_v34, 8.507059e+37  ;;  %v1710_v17 = vor.u32 1.1754944e-38, %v1709_v58 }
 0x339   : > { %v1729_v3 = vmul.f32 %v11103_v47, %v1728_v10  ;;  %v1317_v29 = vsel %vm1316_vm3, %v10617_v53, %v1315_v21  ;;  %v1757_v52 = vmul.f32 %v11096_v4, %v1756_v13  ;;  %v11188_v38 = vsel %vm1641_vm11, %v1642_v44, %v1640_v9  ;;  %v15768_v10 = vld [vmem:[#allocation36_spill] sm:$0xff]  ;;  %v11201_v21 = vpop.permute.xlu1 %2710 }
 0x33a   : > { %v1319_v33 = vand.u32 2147483648, %v10617_v53  ;;  %v1711_v14 = vsel %vm1708_vm4, %v1710_v17, %v1706_v61  ;;  %v1770_v49 = vsub.f32 1.0, %v1769_v62  ;;  %vm1258_vm5 = vcmp.eq.f32.partialorder %v10491_v16, 0.0 }
 0x33b   : > { %v1301_v58 = vsub.f32 1.5, %v1300_v5  ;;  %vm1318_vm6 = vcmp.eq.f32.partialorder %v10617_v53, 0.0  ;;  %vm1760_vm7 = vweird.f32 %v11096_v4  ;;  %vm1732_vm8 = vweird.f32 %v11103_v47  ;;  %v15769_v5 = vld [vmem:[#allocation117_spill] sm:$0xff] }
 0x33c   : > { %v1320_v44 = vsel %vm1318_vm6, %v1319_v33, %v1317_v29  ;;  %vm1773_vm9 = vweird.f32 %v11076_v28  ;;  %v15573_v13 = vperm.slane %v11188_v38, 0  ;;  %v1909_v62 = vmul.f32 %v1711_v14, %v15769_v5 }
 0x33d   : > { %4226 = vrot.lane.b32.xlu0 %v15764_v27, %s9636_s19  ;;  %v1254_v27 = vmul.f32 %v11041_v32, %v1253_v43  ;;  %v1663_v32 = vmul.f32 %v15572_v51, %v1272_v60  ;;  %v15767_v43 = vld [vmem:[#allocation109_spill] sm:$0xff]  ;;  %v1763_v60 = vand.u32 2147483647, %v11036_v15  ;;  %v1737_v9 = vand.u32 2147483648, %v11048_v35 }
 0x33e   : > { %4269 = vrot.lane.b32.xlu1 %v10035_v2, %s9636_s19  ;;  %8809 = vrsqrt.f32 %v15767_v43  ;;  %v11206_v53 = vpop.eup %8807  ;;  %vm1759_vm10 = vweird.f32 %v11036_v15  ;;  %vm1731_vm11 = vweird.f32 %v11048_v35  ;;  %v1735_v61 = vand.u32 2147483647, %v11048_v35 }
 0x33f   : > { %v1255_v34 = vmul.f32 %v1254_v27, %v10491_v16  ;;  %v11198_v18 = vmax.f32 %v1663_v32, 1e-06  ;;  %v1730_v27 = vadd.f32 %v11103_v47, %v1729_v3  ;;  %v1777_v32 = vand.u32 2147483647, %v11076_v28  ;;  %vm11230_vm13 = vmor %vm1731_vm11, %vm1732_vm8 }
 0x340   : > { %v1771_v17 = vmul.f32 %v11140_v48, %v1770_v49  ;;  %v15770_v3 = vperm.slane %v10958_v7, 0  ;;  %v1302_v5 = vmul.f32 %v11088_v8, %v1301_v58  ;;  %vm1304_vm12 = vcmp.eq.f32.partialorder %v15761_v37, inf  ;;  %v11235_v7 = vld [vmem:[#allocation11 + $0x8] sm:$0xff] }
 0x341   : > { %v1257_v14 = vsel %vm1256_vm15, %v10491_v16, %v1255_v34  ;;  %v1667_v51 = vmul.f32 %v15573_v13, %v1320_v44  ;;  %8811 = vrcp.f32 %v11198_v18  ;;  %vm1960_vm14 = vcmask 130048   ;;  %v15773_v44 = vld [vmem:[#allocation146_spill] sm:$0xff] }
 0x342   : > { %v1654_v29 = vmul.f32 %v15770_v3, %v11006_v6  ;;  %v1734_v6 = vsel %vm11230_vm13, %v11103_v47, %v1730_v27  ;;  %vm1774_vm15 = vweird.f32 %v11140_v48  ;;  %v1783_v8 = vmul.f32 %v11206_v53, %v11149_v50 }
 0x343   : > { %v1685_v49 = vmul.f32 %v11120_v54, %v11065_v45  ;;  %vm1629_vm2 = vcmp.eq.f32.partialorder %v10905_v57, 0.0  ;;  %v1927_v34 = vmul.f32 %v11235_v7, %v1909_v62  ;;  %v1738_v58 = vor.u32 1.1754944e-38, %v1737_v9  ;;  %v15778_v62 = vld [vmem:[#allocation103_spill] sm:$0xff]  ;;  %vm11285_vm8 = vmor %vm1773_vm9, %vm1774_vm15 }
 0x344   : > { %v11219_v33 = vpop.eup %8809  ;;  %v15774_v3 = vperm.slane %v10952_v20, 0  ;;  %vm1736_vm3 = vcmp.eq.f32.partialorder %v1735_v61, 8.507059e+37  ;;  %v1772_v27 = vadd.f32 %v11140_v48, %v1771_v17  ;;  %vm11253_vm4 = vcmp.eq.f32.partialorder %v1763_v60, 8.507059e+37  ;;  %vm11308_vm9 = vmor %vm1759_vm10, %vm1760_vm7 }
 0x345   : > { %4386 = vrot.lane.b32.xlu0 %v10132_v30, %s9636_s19  ;;  %v1286_v47 = vmul.f32 %v11219_v33, %v15767_v43  ;;  %v11257_v11 = vmax.f32 %v1654_v29, 1e-06  ;;  %v1739_v20 = vsel %vm1736_vm3, %v1738_v58, %v1734_v6  ;;  %v1779_v9 = vand.u32 2147483648, %v11076_v28 }
 0x346   : > { %4267 = vrot.lane.b32.xlu1 %v15768_v10, %s9636_s19  ;;  %v1656_v13 = vmul.f32 %v15774_v3, %v15773_v44  ;;  %v1758_v44 = vadd.f32 %v11096_v4, %v1757_v52  ;;  %v11265_v61 = vmax.f32 %v1667_v51, 1e-06  ;;  %v15779_v60 = vand.u32 2147483648, %v10491_v16  ;;  %v11273_v3 = vld [vmem:[#allocation12 + $0x8] sm:$0xff] }
 0x347   : > { %v1303_v29 = vmul.f32 %v1302_v5, %v15761_v37  ;;  %vm1306_vm6 = vcmp.eq.f32.partialorder %v15761_v37, 0.0  ;;  %v1765_v6 = vand.u32 2147483648, %v11036_v15  ;;  %v11276_v58 = vpop.eup %8811  ;;  %v11279_v52 = vadd.f32 %v11273_v3, %v1927_v34  ;;  %v11298_v34 = vpop.permute.xlu0 %2673 }
 0x348   : > { %v1260_v17 = vsel %vm1258_vm5, %v15779_v60, %v1257_v14  ;;  %vm11289_vm5 = vcmp.eq.f32.partialorder %v1777_v32, 8.507059e+37  ;;  %v1686_v14 = vsub.f32 1.0, %v1685_v49  ;;  %v11293_v5 = vmax.f32 %v1656_v13, 1e-06  ;;  %v11296_v60 = vpop.permute.xlu1 %8624 }
 0x349   : > { %v1776_v28 = vsel %vm11285_vm8, %v11140_v48, %v1772_v27  ;;  %8813 = vrcp.f32 %v11257_v11  ;;  %v1780_v13 = vor.u32 1.1754944e-38, %v1779_v9  ;;  %v1762_v49 = vsel %vm11308_vm9, %v11096_v4, %v1758_v44 }
 0x34a   : > { %8815 = vrcp.f32 %v11265_v61  ;;  %v15787_v48 = vperm.slane %v11073_v42, 0  ;;  %v1305_v15 = vsel %vm1304_vm12, %v15761_v37, %v1303_v29  ;;  %vm1689_vm7 = vweird.f32 %v11065_v45 }
 0x34b   : > { %v1964_v4 = vsel %vm1960_vm14, %v11279_v52, -inf  ;;  %v1781_v9 = vsel %vm11289_vm5, %v1780_v13, %v1776_v28  ;;  %8817 = vrcp.f32 %v11293_v5  ;;  %vm1787_vm10 = vweird.f32 %v11149_v50 }
 0x34c   : > { %vm1788_vm11 = vweird.f32 %v11206_v53  ;;  %v1793_v16 = vand.u32 2147483648, %v11149_v50  ;;  %v15790_v32 = vperm.slane %v11134_v46, 0  ;;  %v15791_v35 = vand.u32 2147483648, %v15761_v37  ;;  %v15795_v37 = vld [vmem:[#allocation125_spill] sm:$0xff] }
 0x34d   : > { %8664 = vrot.lane.b32.xlu0 %v15778_v62, %s9635_s6  ;;  %v15784_v62 = vld [vmem:[#allocation118_spill] sm:$0xff]  ;;  %vm11367_vm12 = vmor %vm1787_vm10, %vm1788_vm11  ;;  %vm1690_vm13 = vweird.f32 %v11120_v54  ;;  %v1695_v46 = vand.u32 2147483648, %v11065_v45  ;;  %vm1844_vm3 = vweird.f32 %v11276_v58  ;;  %vm1292_vm8 = vcmp.eq.f32.partialorder %v15767_v43, inf  ;;  %s9557_s6 = scalar_lea.hbm %s9556_s20, 128 }
 0x34e   : > { %4384 = vrot.lane.b32.xlu1 %v15777_v40, %s9636_s19  ;;  %v1784_v40 = vsub.f32 1.0, %v1783_v8  ;;  %v1287_v8 = vmul.f32 %v11219_v33, %v1286_v47  ;;  %v1911_v12 = vmul.f32 %v1739_v20, %v15784_v62  ;;  %v1661_v47 = vmul.f32 %v15787_v48, %v10874_v26  ;;  %p9558_p1 = scmp.ne.s32.totalorder %s9556_s20, %s9557_s6 }
 0x34f   : > { %v1839_v62 = vmul.f32 %v11276_v58, %v11198_v18  ;;  %v1766_v20 = vor.u32 1.1754944e-38, %v1765_v6  ;;  %v1687_v26 = vmul.f32 %v11120_v54, %v1686_v14  ;;  %v1791_v6 = vand.u32 2147483647, %v11149_v50 }
 0x350   : > { %v1785_v27 = vmul.f32 %v11206_v53, %v1784_v40  ;;  %v1288_v44 = vmul.f32 0.5, %v1287_v8  ;;  %v1929_v29 = vmul.f32 %v11235_v7, %v1911_v12  ;;  %v15788_v40 = vld [vmem:[#allocation37_spill] sm:$0xff]  ;;  %v11342_v14 = vmax.f32 %v1661_v47, 1e-06  ;;  %v11344_v8 = vpop.eup %8813  ;;  %v15792_v47 = vld [vmem:[#allocation122_spill] sm:$0xff]  ;;  %p9559_p3 = pnand %p9558_p1, %p9804_p0 }
 0x351   : > { %v1767_v51 = vsel %vm11253_vm4, %v1766_v20, %v1762_v49  ;;  %v15789_v12 = vand.u32 2147483648, %v10905_v57  ;;  %v1662_v13 = vmul.f32 %v15790_v32, %v1260_v17  ;;  %v1308_v49 = vsel %vm1306_vm6, %v15791_v35, %v1305_v15 }
 0x352   : > { %v1786_v48 = vadd.f32 %v11206_v53, %v1785_v27  ;;  %v1914_v20 = vmul.f32 %v1781_v9, %v15792_v47  ;;  %v11374_v17 = vadd.f32 %v11273_v3, %v1929_v29  ;;  %v1913_v15 = vmul.f32 %v1767_v51, %v15795_v37  ;;  %v11391_v29 = vpop.permute.xlu0 %3219  ;;  %v11393_v51 = vld [vmem:[#allocation11] sm:$0xff]  ;;  %p9560_p13 = pneg %p9559_p3 }
 0x353   : > { %v11351_v28 = vsel %vm1629_vm2, %v15789_v12, %v11156_v1  ;;  %v1289_v1 = vsub.f32 1.5, %v1288_v44  ;;  %v11378_v27 = vadd.f32 %v11120_v54, %v1687_v26  ;;  %vm11382_vm15 = vcmp.eq.f32.partialorder %v1791_v6, 8.507059e+37  ;;  %v11389_v44 = vpop.permute.xlu1 %3247  ;;  %vm11412_vm2 = vmor %vm1689_vm7, %vm1690_vm13 }
 0x354   : > { %v1794_v9 = vor.u32 1.1754944e-38, %v1793_v16  ;;  %v1713_v12 = vmul.f32 %v11344_v8, %v11257_v11  ;;  %8819 = vrcp.f32 %v11342_v14  ;;  %v1790_v26 = vsel %vm11367_vm12, %v11206_v53, %v1786_v48 }
 0x355   : > { %v15798_v32 = vperm.slane %v11073_v42, 0  ;;  %v15583_v47 = vperm.slane %v11351_v28, 0  ;;  %v15799_v37 = vperm.slane %v11188_v38, 0  ;;  %v1932_v25 = vmul.f32 %v11393_v51, %v1914_v20 }
 0x356   : > { %4263 = vrot.lane.b32.xlu1 %v15788_v40, %s9636_s19  ;;  %1965 = vmax.xlane.f32.xlu2 %v1964_v4  ;;  %v1840_v4 = vsub.f32 1.0, %v1839_v62  ;;  %v11356_v40 = vpop.eup %8815  ;;  %v11416_v48 = vor.u32 1.1754944e-38, %v1695_v46  ;;  %v1290_v42 = vmul.f32 %v11219_v33, %v1289_v1  ;;  %v11422_v38 = vmul.f32 %v11235_v7, %v1913_v15  ;;  %v11434_v46 = vld [vmem:[#allocation12] sm:$0xff] }
 0x357   : > { %v11380_v62 = vpop.eup %8817  ;;  %v1895_v16 = vmul.f32 %v11356_v40, %v11265_v61  ;;  %v1660_v35 = vmul.f32 %v15798_v32, %v10863_v31  ;;  %v1666_v10 = vmul.f32 %v15799_v37, %v1308_v49  ;;  %v1970_v31 = vsel %vm1960_vm14, %v11374_v17, -inf }
 0x358   : > { %v1841_v6 = vmul.f32 %v11276_v58, %v1840_v4  ;;  %v1795_v49 = vsel %vm11382_vm15, %v1794_v9, %v1790_v26  ;;  %v1714_v20 = vsub.f32 1.0, %v1713_v12  ;;  %v1741_v57 = vmul.f32 %v11380_v62, %v11293_v5 }
 0x359   : > { %v11432_v33 = vmax.f32 %v1662_v13, 1e-06  ;;  %v1896_v15 = vsub.f32 1.0, %v1895_v16  ;;  %v11438_v32 = vmax.f32 %v1660_v35, 1e-06  ;;  %v11443_v50 = vadd.f32 %v11434_v46, %v1932_v25 }
 0x35a   : > { %v1842_v1 = vadd.f32 %v11276_v58, %v1841_v6  ;;  %v11440_v37 = vpop.eup %8819  ;;  %v1849_v9 = vand.u32 2147483648, %v11198_v18  ;;  %vm1717_vm4 = vweird.f32 %v11257_v11  ;;  %v1723_v12 = vand.u32 2147483648, %v11257_v11  ;;  %v15802_v6 = vld [vmem:[#allocation126_spill] sm:$0xff]  ;;  %v11475_v25 = vpop.permute.xlu0 %3245 }
 0x35b   : > { %v1291_v26 = vmul.f32 %v1290_v42, %v15767_v43  ;;  %vm1843_vm6 = vweird.f32 %v11198_v18  ;;  %v1847_v16 = vand.u32 2147483647, %v11198_v18  ;;  %v1715_v35 = vmul.f32 %v11344_v8, %v1714_v20  ;;  %v11460_v13 = vpop.xlane.xlu1 %2813 }
 0x35c   : > { %vm11454_vm5 = vmor %vm1843_vm6, %vm1844_vm3  ;;  %v1742_v4 = vsub.f32 1.0, %v1741_v57  ;;  %8821 = vrcp.f32 %v11432_v33  ;;  %v1811_v18 = vmul.f32 %v11440_v37, %v11342_v14  ;;  %vm1294_vm9 = vcmp.eq.f32.partialorder %v15767_v43, 0.0 }
 0x35d   : > { %v1846_v42 = vsel %vm11454_vm5, %v11276_v58, %v1842_v1  ;;  %8823 = vrcp.f32 %v11438_v32  ;;  %v1295_v20 = vand.u32 2147483648, %v15767_v43  ;;  %v1850_v57 = vor.u32 1.1754944e-38, %v1849_v9 }
 0x35e   : > { %1971 = vmax.xlane.f32.xlu2 %v1970_v31  ;;  %v1915_v31 = vmul.f32 %v1795_v49, %v15802_v6  ;;  %v1897_v49 = vmul.f32 %v11356_v40, %v1896_v15  ;;  %v1664_v6 = vmul.f32 %v15583_v47, %v10870_v59  ;;  %v1293_v56 = vsel %vm1292_vm8, %v15767_v43, %v1291_v26 }
 0x35f   : > { %v1979_v58 = vsel %vm1960_vm14, %v11443_v50, -inf  ;;  %vm1848_vm7 = vcmp.eq.f32.partialorder %v1847_v16, 8.507059e+37  ;;  %v15805_v15 = vand.u32 2147483647, %v11065_v45  ;;  %v1716_v59 = vadd.f32 %v11344_v8, %v1715_v35 }
 0x360   : > { %v1933_v1 = vmul.f32 %v11235_v7, %v1915_v31  ;;  %v1851_v9 = vsel %vm1848_vm7, %v1850_v57, %v1846_v42  ;;  %vm1718_vm11 = vweird.f32 %v11344_v8  ;;  %v1743_v26 = vmul.f32 %v11380_v62, %v1742_v4 }
 0x361   : > { %vm11482_vm10 = vcmp.eq.f32.partialorder %v15805_v15, 8.507059e+37  ;;  %v1898_v47 = vadd.f32 %v11356_v40, %v1897_v49  ;;  %vm1900_vm12 = vweird.f32 %v11356_v40  ;;  %v1812_v31 = vsub.f32 1.0, %v1811_v18  ;;  %v15808_v49 = vld [vmem:[#allocation133_spill] sm:$0xff]  ;;  %vm11513_vm3 = vmor %vm1717_vm4, %vm1718_vm11 }
 0x362   : > { %v11491_v16 = vmax.f32 %v1666_v10, 1e-06  ;;  %v11493_v45 = vpop.eup %8821  ;;  %v1296_v15 = vsel %vm1294_vm9, %v1295_v20, %v1293_v56  ;;  %v1905_v42 = vand.u32 2147483648, %v11265_v61  ;;  %vm1745_vm13 = vweird.f32 %v11293_v5 }
 0x363   : > { %v11499_v35 = vmax.f32 %v1664_v6, 1e-06  ;;  %v11501_v57 = vpop.eup %8823  ;;  %v11504_v4 = vadd.f32 %v11273_v3, %v1933_v1  ;;  %v1919_v18 = vmul.f32 %v1851_v9, %v15808_v49  ;;  %vm1899_vm15 = vweird.f32 %v11265_v61 }
 0x364   : > { %v1903_v10 = vand.u32 2147483647, %v11265_v61  ;;  %vm11517_vm6 = vmor %vm1899_vm15, %vm1900_vm12  ;;  %v1720_v20 = vsel %vm11513_vm3, %v11344_v8, %v1716_v59  ;;  %v1724_v6 = vor.u32 1.1754944e-38, %v1723_v12  ;;  %vm1746_vm8 = vweird.f32 %v11380_v62  ;;  %v11538_v59 = vpop.xlane.xlu1 %2834 }
 0x365   : > { %v1902_v61 = vsel %vm11517_vm6, %v11356_v40, %v1898_v47  ;;  %v1813_v1 = vmul.f32 %v11440_v37, %v1812_v31  ;;  %v1825_v9 = vmul.f32 %v11493_v45, %v11432_v33  ;;  %8825 = vrcp.f32 %v11491_v16  ;;  %vm11558_vm9 = vmor %vm1745_vm13, %vm1746_vm8 }
 0x366   : > { %1980 = vmax.xlane.f32.xlu2 %v1979_v58  ;;  %v1744_v58 = vadd.f32 %v11380_v62, %v1743_v26  ;;  %v15813_v49 = vperm.slane %v11351_v28, 0  ;;  %v1906_v8 = vor.u32 1.1754944e-38, %v1905_v42  ;;  %v1797_v12 = vmul.f32 %v11501_v57, %v11438_v32 }
 0x367   : > { %8827 = vrcp.f32 %v11499_v35  ;;  %v1982_v40 = vsel %vm1960_vm14, %v11504_v4, -inf  ;;  %v1937_v47 = vmul.f32 %v11235_v7, %v1919_v18  ;;  %vm1904_vm4 = vcmp.eq.f32.partialorder %v1903_v10, 8.507059e+37  ;;  %v11563_v10 = vpop.permute.xlu0 %2712 }
 0x368   : > { %v1665_v56 = vmul.f32 %v15813_v49, %v1296_v15  ;;  %v1751_v26 = vand.u32 2147483648, %v11293_v5  ;;  %v1907_v31 = vsel %vm1904_vm4, %v1906_v8, %v1902_v61  ;;  %v15814_v28 = vsel %vm11412_vm2, %v11120_v54, %v11378_v27 }
 0x369   : > { %v1697_v15 = vsel %vm11482_vm10, %v11416_v48, %v15814_v28  ;;  %v15815_v42 = vand.u32 2147483647, %v11257_v11  ;;  %v1749_v53 = vand.u32 2147483647, %v11293_v5  ;;  %v1748_v30 = vsel %vm11558_vm9, %v11380_v62, %v1744_v58  ;;  %v15818_v62 = vld [vmem:[#allocation141_spill] sm:$0xff] }
 0x36a   : > { %vm1816_vm2 = vweird.f32 %v11440_v37  ;;  %v1821_v11 = vand.u32 2147483648, %v11342_v14  ;;  %v1814_v27 = vadd.f32 %v11440_v37, %v1813_v1  ;;  %v1826_v48 = vsub.f32 1.0, %v1825_v9 }
 0x36b   : > { %vm1722_vm5 = vcmp.eq.f32.partialorder %v15815_v42, 8.507059e+37  ;;  %v1798_v43 = vsub.f32 1.0, %v1797_v12  ;;  %v11571_v61 = vmax.f32 %v1665_v56, 1e-06  ;;  %v11573_v49 = vpop.eup %8825  ;;  %v11576_v5 = vadd.f32 %v11273_v3, %v1937_v47  ;;  %v15820_v56 = vld [vmem:[#allocation115_spill] sm:$0xff] }
 0x36c   : > { %v1725_v54 = vsel %vm1722_vm5, %v1724_v6, %v1720_v20  ;;  %v11580_v20 = vadd.f32 %v11273_v3, %v11422_v38  ;;  %v1923_v6 = vmul.f32 %v1907_v31, %v15818_v62  ;;  %v1752_v58 = vor.u32 1.1754944e-38, %v1751_v26 }
 0x36d   : > { %v11583_v8 = vpop.eup %8827  ;;  %vm1750_vm7 = vcmp.eq.f32.partialorder %v1749_v53, 8.507059e+37  ;;  %vm1815_vm10 = vweird.f32 %v11342_v14  ;;  %v1819_v9 = vand.u32 2147483647, %v11342_v14  ;;  %v1910_v12 = vmul.f32 %v1725_v54, %v15820_v56 }
 0x36e   : > { %1983 = vmax.xlane.f32.xlu2 %v1982_v40  ;;  %v15819_v40 = vld [vmem:[#allocation114_spill] sm:$0xff]  ;;  %v1753_v47 = vsel %vm1750_vm7, %v1752_v58, %v1748_v30  ;;  %vm11591_vm11 = vmor %vm1815_vm10, %vm1816_vm2  ;;  %v1822_v31 = vor.u32 1.1754944e-38, %v1821_v11  ;;  %v1827_v28 = vmul.f32 %v11493_v45, %v1826_v48  ;;  %8829 = vrcp.f32 %v11571_v61  ;;  %v11612_v11 = vpop.xlane.xlu1 %2819 }
 0x36f   : > { %v1908_v1 = vmul.f32 %v1697_v15, %v15819_v40  ;;  %v1818_v26 = vsel %vm11591_vm11, %v11440_v37, %v1814_v27  ;;  %v1799_v15 = vmul.f32 %v11501_v57, %v1798_v43  ;;  %v1994_v14 = vsel %vm1960_vm14, %v11576_v5, -inf  ;;  %v11614_v27 = vpop.xlane.xlu0 %2810  ;;  %v15823_v43 = vld [vmem:[#allocation121_spill] sm:$0xff] }
 0x370   : > { %v1941_v42 = vmul.f32 %v11235_v7, %v1923_v6  ;;  %v1881_v18 = vmul.f32 %v11573_v49, %v11491_v16  ;;  %v1853_v53 = vmul.f32 %v11583_v8, %v11499_v35  ;;  %v1976_v37 = vsel %vm1960_vm14, %v11580_v20, -inf }
 0x371   : > { %v1926_v54 = vmul.f32 %v11393_v51, %v1908_v1  ;;  %vm1820_vm12 = vcmp.eq.f32.partialorder %v1819_v9, 8.507059e+37  ;;  %v1835_v30 = vand.u32 2147483648, %v11432_v33  ;;  %v1928_v48 = vmul.f32 %v11393_v51, %v1910_v12 }
 0x372   : > { %v1912_v62 = vmul.f32 %v1753_v47, %v15823_v43  ;;  %v1823_v6 = vsel %vm1820_vm12, %v1822_v31, %v1818_v26  ;;  %vm1830_vm13 = vweird.f32 %v11493_v45  ;;  %v1828_v58 = vadd.f32 %v11493_v45, %v1827_v28 }
 0x373   : > { %v1800_v40 = vadd.f32 %v11501_v57, %v1799_v15  ;;  %vm1802_vm15 = vweird.f32 %v11501_v57  ;;  %v1807_v1 = vand.u32 2147483648, %v11438_v32  ;;  %v11624_v9 = vadd.f32 %v11273_v3, %v1941_v42 }
 0x374   : > { %vm1829_vm3 = vweird.f32 %v11432_v33  ;;  %v1882_v56 = vsub.f32 1.0, %v1881_v18  ;;  %v1854_v12 = vsub.f32 1.0, %v1853_v53  ;;  %v11627_v47 = vpop.eup %8829  ;;  %v11630_v38 = vadd.f32 %v11434_v46, %v1926_v54 }
 0x375   : > { %vm11632_vm6 = vmor %vm1829_vm3, %vm1830_vm13  ;;  %v1833_v26 = vand.u32 2147483647, %v11432_v33  ;;  %vm1801_vm8 = vweird.f32 %v11438_v32  ;;  %v1805_v28 = vand.u32 2147483647, %v11438_v32  ;;  %v11640_v15 = vadd.f32 %v11434_v46, %v1928_v48 }
 0x376   : > { %1995 = vmax.xlane.f32.xlu2 %v1994_v14  ;;  %v15826_v14 = vld [vmem:[#allocation132_spill] sm:$0xff]  ;;  %v1836_v18 = vor.u32 1.1754944e-38, %v1835_v30  ;;  %vm11645_vm4 = vmor %vm1801_vm8, %vm1802_vm15  ;;  %v1832_v33 = vsel %vm11632_vm6, %v11493_v45, %v1828_v58  ;;  %v1808_v54 = vor.u32 1.1754944e-38, %v1807_v1  ;;  %v2006_v30 = vsel %vm1960_vm14, %v11624_v9, -inf }
 0x377   : > { %1977 = vmax.xlane.f32.xlu0 %v1976_v37  ;;  %v1917_v42 = vmul.f32 %v1823_v6, %v15826_v14  ;;  %v1930_v37 = vmul.f32 %v11393_v51, %v1912_v62  ;;  %v1804_v32 = vsel %vm11645_vm4, %v11501_v57, %v1800_v40  ;;  %v1883_v48 = vmul.f32 %v11573_v49, %v1882_v56  ;;  %v11672_v56 = vpop.xlane.xlu1 %2846  ;;  %v15830_v14 = vld [vmem:[#allocation129_spill] sm:$0xff] }
 0x378   : > { %v1855_v43 = vmul.f32 %v11583_v8, %v1854_v12  ;;  %v1867_v6 = vmul.f32 %v11627_v47, %v11571_v61  ;;  %v1961_v62 = vsel %vm1960_vm14, %v11630_v38, -inf  ;;  %vm1834_vm5 = vcmp.eq.f32.partialorder %v1833_v26, 8.507059e+37  ;;  %v11674_v12 = vpop.xlane.xlu0 %2816 }
 0x379   : > { %vm1806_vm9 = vcmp.eq.f32.partialorder %v1805_v28, 8.507059e+37  ;;  %v1967_v45 = vsel %vm1960_vm14, %v11640_v15, -inf  ;;  %v1935_v57 = vmul.f32 %v11235_v7, %v1917_v42  ;;  %v1837_v58 = vsel %vm1834_vm5, %v1836_v18, %v1832_v33  ;;  %15829 = vst [vmem:[#allocation101_spill] sm:$0xff] %v11674_v12  ;;  %v15831_v18 = vld [vmem:[#allocation128_spill] sm:$0xff] }
 0x37a   : > { %v1809_v40 = vsel %vm1806_vm9, %v1808_v54, %v1804_v32  ;;  %v11668_v1 = vadd.f32 %v11434_v46, %v1930_v37  ;;  %vm1885_vm2 = vweird.f32 %v11491_v16  ;;  %vm1886_vm7 = vweird.f32 %v11573_v49 }
 0x37b   : > { %v1884_v31 = vadd.f32 %v11573_v49, %v1883_v48  ;;  %v1856_v26 = vadd.f32 %v11583_v8, %v1855_v43  ;;  %vm1858_vm10 = vweird.f32 %v11583_v8  ;;  %v1868_v28 = vsub.f32 1.0, %v1867_v6  ;;  %vm11686_vm11 = vmor %vm1885_vm2, %vm1886_vm7 }
 0x37c   : > { %v1918_v42 = vmul.f32 %v1837_v58, %v15830_v14  ;;  %v1916_v53 = vmul.f32 %v1809_v40, %v15831_v18  ;;  %v1891_v37 = vand.u32 2147483648, %v11491_v16  ;;  %v1863_v33 = vand.u32 2147483648, %v11499_v35 }
 0x37d   : > { %v11684_v32 = vadd.f32 %v11273_v3, %v1935_v57  ;;  %vm1857_vm12 = vweird.f32 %v11499_v35  ;;  %v1861_v48 = vand.u32 2147483647, %v11499_v35  ;;  %v1888_v6 = vsel %vm11686_vm11, %v11573_v49, %v1884_v31  ;;  %v11710_v49 = vpop.xlane.xlu2 %2822 }
 0x37e   : > { %2007 = vmax.xlane.f32.xlu2 %v2006_v30  ;;  %v1889_v30 = vand.u32 2147483647, %v11491_v16  ;;  %vm11693_vm13 = vmor %vm1857_vm12, %vm1858_vm10  ;;  %v1936_v16 = vmul.f32 %v11393_v51, %v1918_v42  ;;  %v1934_v57 = vmul.f32 %v11393_v51, %v1916_v53  ;;  %v1892_v58 = vor.u32 1.1754944e-38, %v1891_v37 }
 0x37f   : > { %1968 = vmax.xlane.f32.xlu0 %v1967_v45  ;;  %v1869_v45 = vmul.f32 %v11627_v47, %v1868_v28  ;;  %v1864_v35 = vor.u32 1.1754944e-38, %v1863_v33  ;;  %v1973_v40 = vsel %vm1960_vm14, %v11668_v1, -inf  ;;  %v1988_v14 = vsel %vm1960_vm14, %v11684_v32, -inf  ;;  %v11721_v53 = vpop.xlane.xlu1 %2849  ;;  %v15837_v33 = vld [vmem:[#allocation138_spill] sm:$0xff] }
 0x380   : > { %1962 = vmax.xlane.f32.xlu1 %v1961_v62  ;;  %v1860_v62 = vsel %vm11693_vm13, %v11583_v8, %v1856_v26  ;;  %vm1890_vm15 = vcmp.eq.f32.partialorder %v1889_v30, 8.507059e+37  ;;  %vm1862_vm3 = vcmp.eq.f32.partialorder %v1861_v48, 8.507059e+37  ;;  %vm1872_vm6 = vweird.f32 %v11627_v47  ;;  %v11723_v37 = vpop.xlane.xlu0 %2825  ;;  %v15838_v30 = vld [vmem:[#allocation136_spill] sm:$0xff] }
 0x381   : > { %v1893_v8 = vsel %vm1890_vm15, %v1892_v58, %v1888_v6  ;;  %v1865_v31 = vsel %vm1862_vm3, %v1864_v35, %v1860_v62  ;;  %v1870_v26 = vadd.f32 %v11627_v47, %v1869_v45  ;;  %v11715_v28 = vadd.f32 %v11434_v46, %v1936_v16  ;;  %15836 = vst [vmem:[#allocation109_spill] sm:$0xff] %v11723_v37 }
 0x382   : > { %v11718_v42 = vadd.f32 %v11434_v46, %v1934_v57  ;;  %v1877_v18 = vand.u32 2147483648, %v11571_v61  ;;  %v1922_v54 = vmul.f32 %v1893_v8, %v15837_v33  ;;  %v1920_v48 = vmul.f32 %v1865_v31, %v15838_v30  ;;  %v15840_v8 = vld [vmem:[#allocation139_spill] sm:$0xff] }
 0x383   : > { %vm1871_vm8 = vweird.f32 %v11571_v61  ;;  %v1875_v43 = vand.u32 2147483647, %v11571_v61  ;;  %v1991_v62 = vsel %vm1960_vm14, %v11715_v28, -inf  ;;  %vm2876_vm9 = vcmp.eq.f32.partialorder %v11460_v13, inf }
 0x384   : > { %vm1873_vm4 = vmor %vm1871_vm8, %vm1872_vm6  ;;  %v1878_v45 = vor.u32 1.1754944e-38, %v1877_v18  ;;  %v1985_v16 = vsel %vm1960_vm14, %v11718_v42, -inf  ;;  %v1940_v57 = vmul.f32 %v11393_v51, %v1922_v54  ;;  %v1938_v58 = vmul.f32 %v11393_v51, %v1920_v48  ;;  %v15842_v51 = vld [vmem:[#allocation38_spill] sm:$0xff] }
 0x385   : > { %v1874_v6 = vsel %vm1873_vm4, %v11627_v47, %v1870_v26  ;;  %vm1876_vm5 = vcmp.eq.f32.partialorder %v1875_v43, 8.507059e+37  ;;  %vm2878_vm2 = vcmp.eq.f32.partialorder %v11460_v13, 0.0  ;;  %vm2960_vm7 = vcmp.eq.f32.partialorder %v11538_v59, inf }
 0x386   : > { %v1879_v35 = vsel %vm1876_vm5, %v1878_v45, %v1874_v6  ;;  %v11741_v47 = vadd.f32 %v11434_v46, %v1940_v57  ;;  %vm2962_vm10 = vcmp.eq.f32.partialorder %v11538_v59, 0.0  ;;  %vm2900_vm11 = vcmp.eq.f32.partialorder %v11612_v11, inf }
 0x387   : > { %1989 = vmax.xlane.f32.xlu0 %v1988_v14  ;;  %v11738_v61 = vpop.xlane.xlu1 %2855  ;;  %v11744_v14 = vadd.f32 %v11434_v46, %v1938_v58  ;;  %v1921_v31 = vmul.f32 %v1879_v35, %v15840_v8  ;;  %vm2912_vm12 = vcmp.eq.f32.partialorder %v11710_v49, inf  ;;  %vm2902_vm13 = vcmp.eq.f32.partialorder %v11612_v11, 0.0 }
 0x388   : > { %1974 = vmax.xlane.f32.xlu1 %v1973_v40  ;;  %v11736_v40 = vpop.xlane.xlu2 %2828  ;;  %15839 = vst [vmem:[#allocation117_spill] sm:$0xff] %v11738_v61  ;;  %v11747_v26 = vpop.xlane.xlu0 %2837  ;;  %v2003_v18 = vsel %vm1960_vm14, %v11741_v47, -inf  ;;  %vm3008_vm15 = vcmp.eq.f32.partialorder %v11672_v56, inf  ;;  %vm2914_vm3 = vcmp.eq.f32.partialorder %v11710_v49, 0.0  ;;  %vm3010_vm6 = vcmp.eq.f32.partialorder %v11672_v56, 0.0 }
 0x389   : > { %15841 = vst [vmem:[#allocation146_spill] sm:$0xff] %v11747_v26  ;;  %v1997_v33 = vsel %vm1960_vm14, %v11744_v14, -inf  ;;  %v1939_v54 = vmul.f32 %v11235_v7, %v1921_v31  ;;  %vm2936_vm8 = vcmp.eq.f32.partialorder %v11736_v40, inf  ;;  %vm3020_vm4 = vcmp.eq.f32.partialorder %v11721_v53, inf }
 0x38a   : > { %vm2864_vm5 = vcmp.eq.f32.partialorder %v11614_v27, inf }
 0x38b   : > { %v11759_v46 = vadd.f32 %v11273_v3, %v1939_v54 }
 0x38d   : > { %v2000_v6 = vsel %vm1960_vm14, %v11759_v46, -inf }
 0x38f   : > { %1992 = vmax.xlane.f32.xlu0 %v1991_v62  ;;  %v11756_v30 = vpop.permute.xlu1 %8629 }
 0x390   : > { %1986 = vmax.xlane.f32.xlu1 %v1985_v16  ;;  %v11761_v48 = vpop.xlane.xlu2 %2831  ;;  %v11763_v43 = vpop.xlane.xlu0 %2840 }
 0x391   : > { %15843 = vst [vmem:[#allocation118_spill] sm:$0xff] %v11763_v43 }
 0x396   : > { %4380 = vrot.lane.b32.xlu2 %v15842_v51, %s9636_s19 }
 0x397   : > { %2004 = vmax.xlane.f32.xlu0 %v2003_v18  ;;  %v11769_v45 = vpop.permute.xlu1 %8639 }
 0x398   : > { %1998 = vmax.xlane.f32.xlu1 %v1997_v33  ;;  %v11767_v62 = vpop.xlane.xlu2 %2852  ;;  %v11771_v7 = vpop.xlane.xlu0 %2843 }
 0x399   : > { %15844 = vst [vmem:[#allocation122_spill] sm:$0xff] %v11767_v62 }
 0x39a   : > { %15845 = vst [vmem:[#allocation125_spill] sm:$0xff] %v11771_v7 }
 0x39f   : > { %v11775_v57 = vpop.permute.xlu1 %8649 }
 0x3a0   : > { %2001 = vmax.xlane.f32.xlu1 %v2000_v6  ;;  %v11773_v16 = vpop.permute.xlu2 %8644  ;;  %v11777_v3 = vpop.permute.xlu0 %8634 }
 0x3a7   : > { %v11781_v35 = vpop.permute.xlu1 %8659 }
 0x3a8   : > { %v11779_v58 = vpop.permute.xlu2 %8654  ;;  %v11783_v8 = vpop.permute.xlu0 %4230 }
 0x3a9   : > { %15846 = vst [vmem:[#allocation126_spill] sm:$0xff] %v11783_v8 }
 0x3af   : > { %v11787_v18 = vpop.permute.xlu1 %4228 }
 0x3b0   : > { %v11785_v31 = vpop.permute.xlu2 %4224  ;;  %15848 = vst [vmem:[#allocation141_spill] sm:$0xff] %v11787_v18  ;;  %v11789_v33 = vpop.permute.xlu0 %4308 }
 0x3b1   : > { %15847 = vst [vmem:[#allocation133_spill] sm:$0xff] %v11785_v31 }
 0x3b2   : > { %15849 = vst [vmem:[#allocation114_spill] sm:$0xff] %v11789_v33 }
 0x3b7   : > { %v11793_v6 = vpop.permute.xlu1 %4269 }
 0x3b8   : > { %v11791_v54 = vpop.permute.xlu2 %4306  ;;  %15851 = vst [vmem:[#allocation121_spill] sm:$0xff] %v11793_v6  ;;  %v11795_v51 = vpop.permute.xlu0 %4226 }
 0x3b9   : > { %15850 = vst [vmem:[#allocation115_spill] sm:$0xff] %v11791_v54 }
 0x3ba   : > { %15852 = vst [vmem:[#allocation132_spill] sm:$0xff] %v11795_v51 }
 0x3bf   : > { %v11799_v2 = vpop.permute.xlu1 %4267 }
 0x3c0   : > { %v11797_v22 = vpop.permute.xlu2 %4302  ;;  %15854 = vst [vmem:[#allocation128_spill] sm:$0xff] %v11799_v2  ;;  %v11801_v61 = vpop.permute.xlu0 %4386 }
 0x3c1   : > { %15853 = vst [vmem:[#allocation129_spill] sm:$0xff] %v11797_v22 }
 0x3c2   : > { %15855 = vst [vmem:[#allocation138_spill] sm:$0xff] %v11801_v61 }
 0x3c7   : > { %v11803_v8 = vpop.permute.xlu1 %4384 }
 0x3c8   : > { %15856 = vst [vmem:[#allocation136_spill] sm:$0xff] %v11803_v8  ;;  %v11805_v31 = vpop.permute.xlu0 %8664 }
 0x3c9   : > { %v1966_v7 = vpop.xlane.xlu2 %1965 }
 0x3ca   : > { %v2010_v8 = vsub.f32 %v11279_v52, %v1966_v7 }
 0x3cf   : > { %v11807_v43 = vpop.permute.xlu1 %4263 }
 0x3d0   : > { %15857 = vst [vmem:[#allocation139_spill] sm:$0xff] %v11807_v43 }
 0x3d1   : > { %v1972_v18 = vpop.xlane.xlu2 %1971 }
 0x3d9   : > { %v1981_v51 = vpop.xlane.xlu2 %1980 }
 0x3da   : > { %v2015_v43 = vsub.f32 %v11443_v50, %v1981_v51 }
 0x3ea   : > { %v1978_v33 = vpop.xlane.xlu0 %1977 }
 0x3eb   : > { %v2014_v54 = vsub.f32 %v11580_v20, %v1978_v33  ;;  %v2027_v33 = vmul.f32 1.442695, %v2010_v8  ;;  %v2012_v8 = vsub.f32 %v11374_v17, %v1972_v18 }
 0x3ed   : > { %v2035_v6 = vmul.f32 1.442695, %v2014_v54  ;;  %v2037_v54 = vmul.f32 1.442695, %v2015_v43 }
 0x3ef   : > { %8831 = vpow2.f32 %v2035_v6 }
 0x3f2   : > { %v1969_v22 = vpop.xlane.xlu0 %1968 }
 0x3f3   : > { %v1963_v62 = vpop.xlane.xlu1 %1962  ;;  %v2011_v61 = vsub.f32 %v11640_v15, %v1969_v22  ;;  %v1984_v22 = vpop.xlane.xlu2 %1983 }
 0x3f4   : > { %v2009_v2 = vsub.f32 %v11630_v38, %v1963_v62  ;;  %v2016_v50 = vsub.f32 %v11504_v4, %v1984_v22 }
 0x3f5   : > { %v11812_v26 = vpop.eup %8831  ;;  %v2029_v12 = vmul.f32 1.442695, %v2011_v61 }
 0x3f6   : > { %v2025_v37 = vmul.f32 1.442695, %v2009_v2  ;;  %v2072_v20 = vsel %vm1960_vm14, %v11812_v26, 0.0  ;;  %v2039_v51 = vmul.f32 1.442695, %v2016_v50 }
 0x3f7   : > { %2073 = vadd.xlane.f32.xlu0 %v2072_v20 }
 0x3f8   : > { %8833 = vpow2.f32 %v2025_v37 }
 0x3f9   : > { %8835 = vpow2.f32 %v2029_v12 }
 0x3fa   : > { %v11818_v38 = vpop.xlane.xlu0 %1989  ;;  %8837 = vpow2.f32 %v2027_v33 }
 0x3fb   : > { %v1975_v6 = vpop.xlane.xlu1 %1974  ;;  %8839 = vpow2.f32 %v2037_v54  ;;  %v2031_v54 = vmul.f32 1.442695, %v2012_v8  ;;  %v1996_v50 = vpop.xlane.xlu2 %1995 }
 0x3fc   : > { %v2013_v2 = vsub.f32 %v11668_v1, %v1975_v6 }
 0x3fe   : > { %v11820_v15 = vpop.eup %8833  ;;  %v2033_v61 = vmul.f32 1.442695, %v2013_v2 }
 0x3ff   : > { %v11823_v52 = vpop.eup %8835  ;;  %v2057_v37 = vsel %vm1960_vm14, %v11820_v15, 0.0 }
 0x400   : > { %v2063_v12 = vsel %vm1960_vm14, %v11823_v52, 0.0  ;;  %2058 = vadd.xlane.f32.xlu1 %v2057_v37  ;;  %v11830_v62 = vpop.eup %8837  ;;  %8841 = vpow2.f32 %v2033_v61 }
 0x401   : > { %2064 = vadd.xlane.f32.xlu2 %v2063_v12  ;;  %v11832_v1 = vpop.eup %8839  ;;  %8843 = vpow2.f32 %v2039_v51  ;;  %v2060_v20 = vsel %vm1960_vm14, %v11830_v62, 0.0  ;;  %v2020_v12 = vsub.f32 %v11576_v5, %v1996_v50  ;;  %v2018_v5 = vsub.f32 %v11684_v32, %v11818_v38 }
 0x402   : > { %v1993_v7 = vpop.xlane.xlu0 %1992  ;;  %v2075_v33 = vsel %vm1960_vm14, %v11832_v1, 0.0  ;;  %8845 = vpow2.f32 %v2031_v54 }
 0x403   : > { %v1987_v43 = vpop.xlane.xlu1 %1986  ;;  %v2019_v4 = vsub.f32 %v11715_v28, %v1993_v7  ;;  %v2043_v32 = vmul.f32 1.442695, %v2018_v5  ;;  %v15860_v5 = vld [vmem:[#allocation50_spill] sm:$0xff] }
 0x404   : > { %v2017_v28 = vsub.f32 %v11718_v42, %v1987_v43 }
 0x405   : > { %v2045_v6 = vmul.f32 1.442695, %v2019_v4 }
 0x406   : > { %v11840_v2 = vpop.eup %8841  ;;  %v2041_v7 = vmul.f32 1.442695, %v2017_v28 }
 0x407   : > { %v11843_v18 = vpop.eup %8843  ;;  %8847 = vpow2.f32 %v2045_v6  ;;  %v2069_v61 = vsel %vm1960_vm14, %v11840_v2, 0.0 }
 0x408   : > { %2061 = vadd.xlane.f32.xlu1 %v2060_v20  ;;  %v2078_v51 = vsel %vm1960_vm14, %v11843_v18, 0.0  ;;  %v11851_v4 = vpop.eup %8845 }
 0x409   : > { %2076 = vadd.xlane.f32.xlu2 %v2075_v33 }
 0x40a   : > { %v2005_v20 = vpop.xlane.xlu0 %2004 }
 0x40b   : > { %v1999_v22 = vpop.xlane.xlu1 %1998  ;;  %v2023_v6 = vsub.f32 %v11741_v47, %v2005_v20  ;;  %v15858_v20 = vld [vmem:[#allocation45_spill] sm:$0xff] }
 0x40c   : > { %v2021_v17 = vsub.f32 %v11744_v14, %v1999_v22  ;;  %v2047_v14 = vmul.f32 1.442695, %v2020_v12  ;;  %v2066_v22 = vsel %vm1960_vm14, %v11851_v4, 0.0 }
 0x40d   : > { %v11854_v43 = vpop.eup %8847  ;;  %v2053_v38 = vmul.f32 1.442695, %v2023_v6  ;;  %v15862_v6 = vld [vmem:[#allocation60_spill] sm:$0xff] }
 0x40e   : > { %v2049_v37 = vmul.f32 1.442695, %v2021_v17  ;;  %v2087_v50 = vsel %vm1960_vm14, %v11854_v43, 0.0 }
 0x410   : > { %2070 = vadd.xlane.f32.xlu1 %v2069_v61  ;;  %8849 = vpow2.f32 %v2049_v37 }
 0x411   : > { %2079 = vadd.xlane.f32.xlu2 %v2078_v51  ;;  %8851 = vpow2.f32 %v2041_v7 }
 0x412   : > { %8853 = vpow2.f32 %v2047_v14 }
 0x413   : > { %v2002_v8 = vpop.xlane.xlu1 %2001 }
 0x414   : > { %v2022_v42 = vsub.f32 %v11759_v46, %v2002_v8 }
 0x416   : > { %v2051_v33 = vmul.f32 1.442695, %v2022_v42  ;;  %v11858_v54 = vpop.eup %8849  ;;  %v15859_v42 = vld [vmem:[#allocation44_spill] sm:$0xff] }
 0x417   : > { %v2093_v46 = vsel %vm1960_vm14, %v11858_v54, 0.0  ;;  %v11867_v17 = vpop.eup %8851 }
 0x418   : > { %8855 = vpow2.f32 %v2051_v33  ;;  %2067 = vadd.xlane.f32.xlu1 %v2066_v22  ;;  %2094 = vadd.xlane.f32.xlu0 %v2093_v46  ;;  %v11869_v28 = vpop.eup %8853  ;;  %v2081_v37 = vsel %vm1960_vm14, %v11867_v17, 0.0  ;;  %v15861_v33 = vld [vmem:[#allocation32_spill] sm:$0xff]  ;;  %v2008_v46 = vpop.xlane.xlu2 %2007 }
 0x419   : > { %2088 = vadd.xlane.f32.xlu2 %v2087_v50  ;;  %8857 = vpow2.f32 %v2043_v32  ;;  %v2090_v61 = vsel %vm1960_vm14, %v11869_v28, 0.0  ;;  %v15863_v22 = vld [vmem:[#allocation28_spill] sm:$0xff]  ;;  %v15864_v50 = vld [vmem:[#allocation43_spill] sm:$0xff]  ;;  %v2024_v32 = vsub.f32 %v11624_v9, %v2008_v46 }
 0x41a   : > { %8859 = vpow2.f32 %v2053_v38  ;;  %v15865_v38 = vld [vmem:[#allocation48_spill] sm:$0xff] }
 0x41e   : > { %v11871_v47 = vpop.eup %8855 }
 0x41f   : > { %v2096_v12 = vsel %vm1960_vm14, %v11871_v47, 0.0  ;;  %v11879_v51 = vpop.eup %8857 }
 0x420   : > { %2082 = vadd.xlane.f32.xlu1 %v2081_v37  ;;  %2097 = vadd.xlane.f32.xlu0 %v2096_v12  ;;  %v11881_v7 = vpop.eup %8859  ;;  %v2084_v14 = vsel %vm1960_vm14, %v11879_v51, 0.0  ;;  %v2055_v37 = vmul.f32 1.442695, %v2024_v32  ;;  %v15866_v12 = vld [vmem:[#allocation57_spill] sm:$0xff]  ;;  %v11920_v46 = vpop.permute.xlu2 %4380 }
 0x421   : > { %2091 = vadd.xlane.f32.xlu2 %v2090_v61  ;;  %v2099_v8 = vsel %vm1960_vm14, %v11881_v7, 0.0  ;;  %v15867_v61 = vld [vmem:[#allocation49_spill] sm:$0xff]  ;;  %15870 = vst [vmem:[#allocation149_spill] sm:$0xff] %v11920_v46 }
 0x422   : > { %8861 = vpow2.f32 %v2055_v37  ;;  %v15871_v32 = vld [vmem:[#allocation73_spill] sm:$0xff]  ;;  %v15872_v37 = vld [vmem:[#allocation70_spill] sm:$0xff] }
 0x428   : > { %2085 = vadd.xlane.f32.xlu1 %v2084_v14  ;;  %2100 = vadd.xlane.f32.xlu0 %v2099_v8  ;;  %v15868_v14 = vld [vmem:[#allocation66_spill] sm:$0xff]  ;;  %v11914_v8 = vpop.eup %8861 }
 0x429   : > { %v2102_v9 = vsel %vm1960_vm14, %v11914_v8, 0.0 }
 0x439   : > { %4347 = vrot.lane.b32.xlu2 %v15858_v20, %s9636_s19 }
 0x43c   : > { %4265 = vrot.lane.b32.xlu0 %v15859_v42, %s9636_s19 }
 0x441   : > { %4382 = vrot.lane.b32.xlu2 %v15860_v5, %s9636_s19  ;;  %4304 = vrot.lane.b32.xlu1 %v15861_v33, %s9636_s19 }
 0x444   : > { %4423 = vrot.lane.b32.xlu0 %v10159_v41, %s9636_s19 }
 0x449   : > { %4826 = vrot.lane.b32.xlu2 %v15862_v6, %s9636_s19 }
 0x44c   : > { %4458 = vrot.lane.b32.xlu0 %v15863_v22, %s9636_s19 }
 0x451   : > { %4462 = vrot.lane.b32.xlu2 %v10183_v55, %s9636_s19 }
 0x454   : > { %4460 = vrot.lane.b32.xlu0 %v15864_v50, %s9636_s19  ;;  %v15869_v50 = vld [vmem:[#allocation62_spill] sm:$0xff] }
 0x459   : > { %4341 = vrot.lane.b32.xlu2 %v15865_v38, %s9636_s19 }
 0x45c   : > { %4421 = vrot.lane.b32.xlu0 %v15866_v12, %s9636_s19 }
 0x461   : > { %4343 = vrot.lane.b32.xlu2 %v15867_v61, %s9636_s19 }
 0x464   : > { %4501 = vrot.lane.b32.xlu0 %v15868_v14, %s9636_s19  ;;  %v15873_v14 = vld [vmem:[#allocation72_spill] sm:$0xff] }
 0x469   : > { %4882 = vrot.lane.b32.xlu2 %v15869_v50, %s9636_s19  ;;  %v15874_v50 = vld [vmem:[#allocation71_spill] sm:$0xff] }
 0x46b   : > { %2103 = vadd.xlane.f32.xlu1 %v2102_v9 }
 0x46c   : > { %4936 = vrot.lane.b32.xlu0 %v15871_v32, %s9636_s19  ;;  %v8622_v32 = vunpack.i.h.bf16 %v10850_v63  ;;  %v15876_v63 = vld [vmem:[#allocation75_spill] sm:$0xff] }
 0x471   : > { %4938 = vrot.lane.b32.xlu2 %v15872_v37, %s9636_s19 }
 0x473   : > { %v2059_v61 = vpop.xlane.xlu1 %2058 }
 0x474   : > { %v2065_v22 = vpop.xlane.xlu2 %2064  ;;  %8863 = vrcp.f32 %v2059_v61  ;;  %4910 = vrot.lane.b32.xlu0 %v15873_v14, %s9636_s19  ;;  %v8626_v61 = vunpack.i.l.bf16 %v11296_v60  ;;  %v8617_v14 = vunpack.i.h.bf16 %v10687_v24  ;;  %v15878_v24 = vld [vmem:[#allocation80_spill] sm:$0xff] }
 0x475   : > { %8865 = vrcp.f32 %v2065_v22  ;;  %v15875_v22 = vld [vmem:[#allocation74_spill] sm:$0xff] }
 0x479   : > { %4852 = vrot.lane.b32.xlu2 %v15874_v50, %s9636_s19 }
 0x47a   : > { %v8864_v55 = vpop.eup %8863 }
 0x47b   : > { %v8866_v9 = vpop.eup %8865  ;;  %v2121_v41 = vmul.f32 %v8864_v55, %v11820_v15  ;;  %v2062_v33 = vpop.xlane.xlu1 %2061  ;;  %v8627_v55 = vunpack.i.h.bf16 %v11296_v60  ;;  %v15879_v60 = vld [vmem:[#allocation78_spill] sm:$0xff] }
 0x47c   : > { %v2123_v12 = vmul.f32 %v8866_v9, %v11823_v52  ;;  %v2077_v37 = vpop.xlane.xlu2 %2076  ;;  %8867 = vrcp.f32 %v2062_v33  ;;  %4908 = vrot.lane.b32.xlu0 %v15875_v22, %s9636_s19  ;;  %v2074_v9 = vpop.xlane.xlu0 %2073 }
 0x47d   : > { %8200 = vmatmul.msk.f32.vlgmr.msrb.gmra.mxu2 %vm1960_vm14, %v2121_v41  ;;  %v15877_v41 = vld [vmem:[#allocation58_spill] sm:$0xff] }
 0x47e   : > { %8202 = vmatmul.msk.f32.vlgmr.msrb.gmra.mxu3 %vm1960_vm14, %v2123_v12  ;;  %2373 = vmatpush.msrb.mxu2 %v8622_v32 }
 0x47f   : > { %2408 = vmatpush.msrb.mxu3 %v8626_v61 }
 0x480   : > { %2374 = vmatpush.msrb.mxu2 %v8617_v14 }
 0x481   : > { %2409 = vmatpush.msrb.mxu3 %v8627_v55  ;;  %4499 = vrot.lane.b32.xlu2 %v15876_v63, %s9636_s19  ;;  %v15880_v55 = vld [vmem:[#allocation42_spill] sm:$0xff] }
 0x482   : > { %v8868_v15 = vpop.eup %8867 }
 0x483   : > { %v2071_v52 = vpop.xlane.xlu1 %2070  ;;  %v2122_v33 = vmul.f32 %v8868_v15, %v11830_v62  ;;  %v15881_v15 = vld [vmem:[#allocation137_spill] sm:$0xff] }
 0x484   : > { %v2080_v50 = vpop.xlane.xlu2 %2079  ;;  %8869 = vrcp.f32 %v2071_v52  ;;  %4464 = vrot.lane.b32.xlu1 %v15877_v41, %s9636_s19  ;;  %5022 = vrot.lane.b32.xlu0 %v15878_v24, %s9636_s19 }
 0x485   : > { %8201 = vmatmul.msk.f32.gmra.mxu2 %vm1960_vm14, %v2122_v33  ;;  %8871 = vrcp.f32 %v2074_v9  ;;  %v15882_v33 = vld [vmem:[#allocation79_spill] sm:$0xff]  ;;  %v15883_v9 = vld [vmem:[#allocation145_spill] sm:$0xff] }
 0x489   : > { %4966 = vrot.lane.b32.xlu2 %v15879_v60, %s9636_s19 }
 0x48a   : > { %v8870_v12 = vpop.eup %8869 }
 0x48b   : > { %v2125_v14 = vmul.f32 %v8870_v12, %v11840_v2  ;;  %v2068_v32 = vpop.xlane.xlu1 %2067  ;;  %v2095_v61 = vpop.xlane.xlu0 %2094 }
 0x48c   : > { %v2089_v62 = vpop.xlane.xlu2 %2088  ;;  %8873 = vrcp.f32 %v2068_v32  ;;  %4425 = vrot.lane.b32.xlu1 %v10152_v36, %s9636_s19  ;;  %4538 = vrot.lane.b32.xlu0 %v15880_v55, %s9636_s19  ;;  %v8872_v52 = vpop.eup %8871 }
 0x48d   : > { %8875 = vrcp.f32 %v2089_v62  ;;  %8204 = vmatmul.msk.f32.vlgmr.msra.gmra.mxu2 %vm1960_vm14, %v2125_v14 }
 0x48e   : > { %8224 = vmatpush.xpose.msk.msra.mxu2 %vm784_vm1, %v15881_v15  ;;  %8877 = vrcp.f32 %v2077_v37  ;;  %v2126_v15 = vmul.f32 %v8872_v52, %v11812_v26  ;;  %v15884_v37 = vld [vmem:[#allocation27_spill] sm:$0xff] }
 0x48f   : > { %8879 = vrcp.f32 %v2095_v61  ;;  %v15885_v61 = vld [vmem:[#allocation26_spill] sm:$0xff] }
 0x491   : > { %4964 = vrot.lane.b32.xlu2 %v15882_v33, %s9636_s19 }
 0x492   : > { %v8874_v2 = vpop.eup %8873  ;;  %8225 = vmatpush.xpose.msk.msra.mxu2 %vm784_vm1, %v15883_v9 }
 0x493   : > { %v8876_v12 = vpop.eup %8875  ;;  %v2083_v32 = vpop.xlane.xlu1 %2082  ;;  %v2124_v62 = vmul.f32 %v8874_v2, %v11851_v4 }
 0x494   : > { %v2131_v24 = vmul.f32 %v8876_v12, %v11854_v43  ;;  %v2092_v14 = vpop.xlane.xlu2 %2091  ;;  %8881 = vrcp.f32 %v2083_v32  ;;  %4345 = vrot.lane.b32.xlu1 %v10106_v23, %s9636_s19  ;;  %4544 = vrot.lane.b32.xlu0 %v15884_v37, %s9636_s19  ;;  %v2098_v9 = vpop.xlane.xlu0 %2097  ;;  %v15886_v12 = vld [vmem:[#allocation131_spill] sm:$0xff]  ;;  %v15941_v37 = vld [vmem:[#allocation77_spill] sm:$0xff] }
 0x495   : > { %8883 = vrcp.f32 %v2092_v14  ;;  %8203 = vmatmul.msk.f32.gmra.mxu3 %vm1960_vm14, %v2124_v62  ;;  %8205 = vmatmul.msk.f32.gmra.mxu2 %vm1960_vm14, %v2126_v15  ;;  %v8878_v4 = vpop.eup %8877  ;;  %v15889_v15 = vld [vmem:[#allocation34_spill] sm:$0xff] }
 0x496   : > { %8210 = vmatmul.msk.f32.vlgmr.msra.gmra.mxu1 %vm1960_vm14, %v2131_v24  ;;  %v8880_v43 = vpop.eup %8879  ;;  %8885 = vrcp.f32 %v2080_v50  ;;  %v2127_v2 = vmul.f32 %v8878_v4, %v11832_v1  ;;  %v15890_v1 = vld [vmem:[#allocation123_spill] sm:$0xff] }
 0x497   : > { %8236 = vmatpush.xpose.msk.msra.mxu1 %vm784_vm1, %v11084_v19  ;;  %8887 = vrcp.f32 %v2098_v9  ;;  %v15888_v19 = vld [vmem:[#allocation61_spill] sm:$0xff]  ;;  %v2133_v50 = vmul.f32 %v8880_v43, %v11858_v54  ;;  %v15891_v4 = vld [vmem:[#allocation143_spill] sm:$0xff] }
 0x499   : > { %4536 = vrot.lane.b32.xlu2 %v15885_v61, %s9636_s19  ;;  %v8652_v61 = vunpack.i.h.bf16 %v11775_v57 }
 0x49a   : > { %v8882_v26 = vpop.eup %8881 }
 0x49b   : > { %v8884_v52 = vpop.eup %8883  ;;  %8237 = vmatpush.xpose.msk.msra.mxu1 %vm784_vm1, %v15886_v12  ;;  %v2086_v32 = vpop.xlane.xlu1 %2085  ;;  %v2129_v24 = vmul.f32 %v8882_v26, %v11867_v17  ;;  %v15893_v26 = vld [vmem:[#allocation116_spill] sm:$0xff]  ;;  %v15895_v12 = vld [vmem:[#allocation147_spill] sm:$0xff] }
 0x49c   : > { %v11980_v62 = vpop.permute.xlu2 %4347  ;;  %8889 = vrcp.f32 %v2086_v32  ;;  %4824 = vrot.lane.b32.xlu1 %v15888_v19, %s9636_s19  ;;  %v2132_v14 = vmul.f32 %v8884_v52, %v11869_v28  ;;  %4546 = vrot.lane.b32.xlu0 %v15889_v15, %s9636_s19  ;;  %v8886_v17 = vpop.eup %8885  ;;  %v15892_v28 = vld [vmem:[#allocation41_spill] sm:$0xff]  ;;  %v8641_v15 = vunpack.i.l.bf16 %v11769_v45 }
 0x49d   : > { %15887 = vst [vmem:[#allocation137_spill] sm:$0xff] %v11980_v62  ;;  %8206 = vmatmul.msk.f32.vlgmr.msra.gmra.mxu3 %vm1960_vm14, %v2127_v2  ;;  %8208 = vmatmul.msk.f32.vlgmr.msrb.gmra.mxu0 %vm1960_vm14, %v2129_v24  ;;  %v2101_v9 = vpop.xlane.xlu0 %2100  ;;  %v8888_v54 = vpop.eup %8887  ;;  %v15894_v2 = vld [vmem:[#allocation140_spill] sm:$0xff] }
 0x49e   : > { %8211 = vmatmul.msk.f32.gmra.mxu1 %vm1960_vm14, %v2132_v14  ;;  %8212 = vmatmul.msk.f32.vlgmr.msrb.gmra.mxu2 %vm1960_vm14, %v2133_v50  ;;  %8891 = vrcp.f32 %v2101_v9  ;;  %v15897_v24 = vld [vmem:[#allocation56_spill] sm:$0xff]  ;;  %v15898_v14 = vld [vmem:[#allocation29_spill] sm:$0xff]  ;;  %v2134_v50 = vmul.f32 %v8888_v54, %v11871_v47 }
 0x49f   : > { %8228 = vmatpush.xpose.msk.msra.mxu3 %vm784_vm1, %v15890_v1  ;;  %8232 = vmatpush.xpose.msk.msrb.mxu0 %vm784_vm1, %v15891_v4  ;;  %v15900_v1 = vld [vmem:[#allocation130_spill] sm:$0xff]  ;;  %v15902_v4 = vld [vmem:[#allocation119_spill] sm:$0xff]  ;;  %v15904_v54 = vld [vmem:[#allocation65_spill] sm:$0xff] }
 0x4a0   : > { %8240 = vmatpush.xpose.msk.msrb.mxu2 %vm784_vm1, %v11298_v34  ;;  %v2128_v34 = vmul.f32 %v8886_v17, %v11843_v18  ;;  %v15901_v17 = vld [vmem:[#allocation53_spill] sm:$0xff] }
 0x4a1   : > { %4552 = vrot.lane.b32.xlu2 %v15892_v28, %s9636_s19  ;;  %v8631_v28 = vunpack.i.l.bf16 %v11756_v30 }
 0x4a2   : > { %v8890_v43 = vpop.eup %8889 }
 0x4a3   : > { %8229 = vmatpush.xpose.msk.msra.mxu3 %vm784_vm1, %v15893_v26  ;;  %v2130_v52 = vmul.f32 %v8890_v43, %v11879_v51  ;;  %8233 = vmatpush.xpose.msk.msrb.mxu0 %vm784_vm1, %v15894_v2  ;;  %v15899_v51 = vld [vmem:[#allocation89_spill] sm:$0xff]  ;;  %v15905_v43 = vld [vmem:[#allocation84_spill] sm:$0xff] }
 0x4a4   : > { %8241 = vmatpush.xpose.msk.msrb.mxu2 %vm784_vm1, %v15895_v12  ;;  %v12007_v32 = vpop.permute.xlu2 %4382  ;;  %4419 = vrot.lane.b32.xlu1 %v15897_v24, %s9636_s19  ;;  %v8892_v18 = vpop.eup %8891  ;;  %v15906_v26 = vld [vmem:[#allocation88_spill] sm:$0xff] }
 0x4a5   : > { %15896 = vst [vmem:[#allocation145_spill] sm:$0xff] %v12007_v32  ;;  %4560 = vrot.lane.b32.xlu0 %v15898_v14, %s9636_s19  ;;  %8207 = vmatmul.msk.f32.gmra.mxu3 %vm1960_vm14, %v2128_v34  ;;  %v2135_v9 = vmul.f32 %v8892_v18, %v11881_v7  ;;  %v15908_v7 = vld [vmem:[#allocation92_spill] sm:$0xff]  ;;  %v15911_v34 = vld [vmem:[#allocation113_spill] sm:$0xff]  ;;  %v15915_v18 = vld [vmem:[#allocation134_spill] sm:$0xff] }
 0x4a6   : > { %8209 = vmatmul.msk.f32.gmra.mxu0 %vm1960_vm14, %v2130_v52  ;;  %8213 = vmatmul.msk.f32.gmra.mxu2 %vm1960_vm14, %v2134_v50  ;;  %v15907_v52 = vld [vmem:[#allocation98_spill] sm:$0xff]  ;;  %v15910_v12 = vld [vmem:[#allocation124_spill] sm:$0xff]  ;;  %v15912_v50 = vld [vmem:[#allocation67_spill] sm:$0xff] }
 0x4a7   : > { %8222 = vmatmul.msk.f32.vlgmr.msrb.gmra.mxu1 %vm784_vm1, %v15899_v51  ;;  %v15913_v51 = vld [vmem:[#allocation112_spill] sm:$0xff] }
 0x4a8   : > { %8251 = vmatpush.xpose.msk.msrb.mxu1 %vm784_vm1, %v15900_v1  ;;  %v15938_v14 = vld [vmem:[#allocation76_spill] sm:$0xff] }
 0x4a9   : > { %4554 = vrot.lane.b32.xlu2 %v15901_v17, %s9636_s19 }
 0x4ac   : > { %8252 = vmatpush.xpose.msk.msrb.mxu1 %vm784_vm1, %v15902_v4  ;;  %v12027_v47 = vpop.permute.xlu2 %4826  ;;  %4503 = vrot.lane.b32.xlu1 %v15904_v54, %s9636_s19  ;;  %v15918_v4 = vld [vmem:[#allocation90_spill] sm:$0xff] }
 0x4ad   : > { %15903 = vst [vmem:[#allocation131_spill] sm:$0xff] %v12027_v47  ;;  %4550 = vrot.lane.b32.xlu0 %v15905_v43, %s9636_s19  ;;  %8214 = vmatmul.msk.f32.vlgmr.msrb.gmra.mxu3 %vm1960_vm14, %v2135_v9  ;;  %v15917_v9 = vld [vmem:[#allocation99_spill] sm:$0xff] }
 0x4ae   : > { %8218 = vmatmul.msk.f32.vlgmr.msra.gmra.mxu0 %vm784_vm1, %v15906_v26  ;;  %8226 = vmatmul.msk.f32.vlgmr.msra.gmra.mxu2 %vm784_vm1, %v15908_v7  ;;  %v12040_v2 = vpop.permute.xlu0 %4265  ;;  %v15919_v26 = vld [vmem:[#allocation95_spill] sm:$0xff] }
 0x4af   : > { %8223 = vmatmul.msk.f32.gmra.mxu1 %vm784_vm1, %v15907_v52  ;;  %15909 = vst [vmem:[#allocation123_spill] sm:$0xff] %v12040_v2  ;;  %8244 = vmatpush.xpose.msk.msrb.mxu3 %vm784_vm1, %v11563_v10  ;;  %v15916_v10 = vld [vmem:[#allocation68_spill] sm:$0xff]  ;;  %v15922_v7 = vld [vmem:[#allocation135_spill] sm:$0xff] }
 0x4b0   : > { %8248 = vmatpush.xpose.msk.msra.mxu0 %vm784_vm1, %v15910_v12  ;;  %8254 = vmatpush.xpose.msk.msra.mxu2 %vm784_vm1, %v15911_v34  ;;  %v15921_v52 = vld [vmem:[#allocation144_spill] sm:$0xff] }
 0x4b1   : > { %4548 = vrot.lane.b32.xlu2 %v15912_v50, %s9636_s19  ;;  %v15924_v34 = vld [vmem:[#allocation64_spill] sm:$0xff]  ;;  %v8642_v50 = vunpack.i.h.bf16 %v11769_v45  ;;  %v8661_v45 = vunpack.i.l.bf16 %v11781_v35 }
 0x4b3   : > { %8245 = vmatpush.xpose.msk.msrb.mxu3 %vm784_vm1, %v11201_v21 }
 0x4b4   : > { %8249 = vmatpush.xpose.msk.msra.mxu0 %vm784_vm1, %v15913_v51  ;;  %v12054_v1 = vpop.permute.xlu2 %4462  ;;  %8255 = vmatpush.xpose.msk.msra.mxu2 %vm784_vm1, %v15915_v18  ;;  %v15925_v51 = vld [vmem:[#allocation97_spill] sm:$0xff] }
 0x4b5   : > { %15914 = vst [vmem:[#allocation143_spill] sm:$0xff] %v12054_v1  ;;  %4854 = vrot.lane.b32.xlu1 %v15916_v10, %s9636_s19  ;;  %v15926_v18 = vld [vmem:[#allocation105_spill] sm:$0xff] }
 0x4b6   : > { %8219 = vmatmul.msk.f32.gmra.mxu0 %vm784_vm1, %v15917_v9  ;;  %8227 = vmatmul.msk.f32.gmra.mxu2 %vm784_vm1, %v15918_v4  ;;  %v12066_v21 = vpop.permute.xlu0 %4423  ;;  %v15927_v9 = vld [vmem:[#allocation86_spill] sm:$0xff] }
 0x4b7   : > { %8238 = vmatmul.msk.f32.vlgmr.msra.gmra.mxu1 %vm784_vm1, %v15919_v26  ;;  %15920 = vst [vmem:[#allocation116_spill] sm:$0xff] %v12066_v21  ;;  %v15929_v26 = vld [vmem:[#allocation127_spill] sm:$0xff] }
 0x4b8   : > { %8263 = vmatpush.xpose.msk.msra.mxu1 %vm784_vm1, %v15921_v52  ;;  %v15930_v52 = vld [vmem:[#allocation142_spill] sm:$0xff] }
 0x4bc   : > { %8264 = vmatpush.xpose.msk.msra.mxu1 %vm784_vm1, %v15922_v7  ;;  %v12072_v12 = vpop.permute.xlu2 %4341 }
 0x4bd   : > { %15923 = vst [vmem:[#allocation140_spill] sm:$0xff] %v12072_v12  ;;  %4880 = vrot.lane.b32.xlu1 %v15924_v34, %s9636_s19 }
 0x4be   : > { %8234 = vmatmul.msk.f32.vlgmr.msrb.gmra.mxu0 %vm784_vm1, %v15925_v51  ;;  %8242 = vmatmul.msk.f32.vlgmr.msrb.gmra.mxu2 %vm784_vm1, %v15927_v9  ;;  %v12082_v4 = vpop.permute.xlu0 %4458  ;;  %v15932_v51 = vld [vmem:[#allocation69_spill] sm:$0xff]  ;;  %v15933_v9 = vld [vmem:[#allocation106_spill] sm:$0xff] }
 0x4bf   : > { %8239 = vmatmul.msk.f32.gmra.mxu1 %vm784_vm1, %v15926_v18  ;;  %15928 = vst [vmem:[#allocation147_spill] sm:$0xff] %v12082_v4  ;;  %8260 = vmatpush.xpose.msk.msrb.mxu0 %vm784_vm1, %v15929_v26  ;;  %v8637_v18 = vunpack.i.h.bf16 %v11777_v3  ;;  %v15934_v26 = vld [vmem:[#allocation94_spill] sm:$0xff] }
 0x4c0   : > { %8266 = vmatpush.xpose.msk.msrb.mxu2 %vm784_vm1, %v11391_v29  ;;  %v15935_v29 = vmov 1.0  }
 0x4c3   : > { %8261 = vmatpush.xpose.msk.msrb.mxu0 %vm784_vm1, %v15930_v52 }
 0x4c4   : > { %8267 = vmatpush.xpose.msk.msrb.mxu2 %vm784_vm1, %v11137_v39  ;;  %v12092_v7 = vpop.permute.xlu2 %4343  ;;  %v8646_v39 = vunpack.i.l.bf16 %v11773_v16 }
 0x4c5   : > { %15931 = vst [vmem:[#allocation89_spill] sm:$0xff] %v12092_v7  ;;  %4497 = vrot.lane.b32.xlu1 %v15932_v51, %s9636_s19  ;;  %v15962_v7 = vld [vmem:[#allocation102_spill] sm:$0xff] }
 0x4c6   : > { %8235 = vmatmul.msk.f32.gmra.mxu0 %vm784_vm1, %v15933_v9  ;;  %8243 = vmatmul.msk.f32.gmra.mxu2 %vm784_vm1, %v15934_v26  ;;  %v12103_v52 = vpop.permute.xlu0 %4460  ;;  %v8636_v9 = vunpack.i.l.bf16 %v11777_v3  ;;  %v8657_v26 = vunpack.i.h.bf16 %v11779_v58  ;;  %v8662_v3 = vunpack.i.h.bf16 %v11781_v35 }
 0x4c7   : > { %8253 = vmatmul.msk.f32.vlgmr.msrb.gmra.mxu1 %vm784_vm1, %v15935_v29  ;;  %15936 = vst [vmem:[#allocation130_spill] sm:$0xff] %v12103_v52 }
 0x4c8   : > { %3924 = vmatpush.msrb.mxu1 %v8637_v18 }
 0x4ca   : > { %3925 = vmatpush.msrb.mxu1 %v8646_v39  ;;  %v8632_v39 = vunpack.i.h.bf16 %v11756_v30  ;;  %v12130_v30 = vpop.permute.xlu1 %4304 }
 0x4cb   : > { %15942 = vst [vmem:[#allocation92_spill] sm:$0xff] %v12130_v30 }
 0x4cc   : > { %v12106_v17 = vpop.permute.xlu2 %4882 }
 0x4cd   : > { %15937 = vst [vmem:[#allocation119_spill] sm:$0xff] %v12106_v17  ;;  %4994 = vrot.lane.b32.xlu1 %v15938_v14, %s9636_s19 }
 0x4ce   : > { %8250 = vmatmul.msk.f32.vlgmr.msra.gmra.mxu0 %vm784_vm1, %v15935_v29  ;;  %8256 = vmatmul.msk.f32.vlgmr.msra.gmra.mxu2 %vm784_vm1, %v15935_v29  ;;  %v12119_v18 = vpop.permute.xlu0 %4421 }
 0x4cf   : > { %8265 = vmatmul.msk.f32.vlgmr.msra.gmra.mxu1 %vm784_vm1, %v15935_v29  ;;  %15939 = vst [vmem:[#allocation88_spill] sm:$0xff] %v12119_v18  ;;  %3889 = vmatpush.msra.mxu0 %v8631_v28  ;;  %v8647_v28 = vunpack.i.h.bf16 %v11773_v16 }
 0x4d0   : > { %3959 = vmatpush.msra.mxu2 %v8636_v9  ;;  %4064 = vmatpush.msra.mxu1 %v8657_v26  ;;  %v15945_v26 = vld [vmem:[#allocation81_spill] sm:$0xff] }
 0x4d1   : > { %3890 = vmatpush.msra.mxu0 %v8632_v39 }
 0x4d2   : > { %3960 = vmatpush.msra.mxu2 %v8641_v15  ;;  %4065 = vmatpush.msra.mxu1 %v8662_v3 }
 0x4d4   : > { %v12124_v43 = vpop.permute.xlu2 %4938 }
 0x4d5   : > { %15940 = vst [vmem:[#allocation98_spill] sm:$0xff] %v12124_v43  ;;  %4992 = vrot.lane.b32.xlu1 %v15941_v37, %s9636_s19 }
 0x4d6   : > { %8262 = vmatmul.msk.f32.vlgmr.msrb.gmra.mxu0 %vm784_vm1, %v15935_v29  ;;  %8268 = vmatmul.msk.f32.vlgmr.msrb.gmra.mxu2 %vm784_vm1, %v15935_v29  ;;  %v12137_v15 = vpop.permute.xlu0 %4501 }
 0x4d7   : > { %4029 = vmatpush.msrb.mxu0 %v8642_v50  ;;  %15943 = vst [vmem:[#allocation124_spill] sm:$0xff] %v12137_v15  ;;  %4099 = vmatpush.msrb.mxu2 %v8652_v61  ;;  %v15948_v50 = vld [vmem:[#allocation63_spill] sm:$0xff] }
 0x4d9   : > { %4030 = vmatpush.msrb.mxu0 %v8647_v28  ;;  %4100 = vmatpush.msrb.mxu2 %v8661_v45  ;;  %v15951_v45 = vld [vmem:[#allocation85_spill] sm:$0xff] }
 0x4dc   : > { %v12140_v9 = vpop.permute.xlu2 %4852 }
 0x4dd   : > { %15944 = vst [vmem:[#allocation113_spill] sm:$0xff] %v12140_v9  ;;  %5020 = vrot.lane.b32.xlu1 %v15945_v26, %s9636_s19 }
 0x4de   : > { %v2104_v39 = vpop.xlane.xlu1 %2103  ;;  %v12144_v3 = vpop.permute.xlu0 %4936 }
 0x4df   : > { %15946 = vst [vmem:[#allocation112_spill] sm:$0xff] %v12144_v3  ;;  %8893 = vrcp.f32 %v2104_v39  ;;  %v15953_v39 = vld [vmem:[#allocation96_spill] sm:$0xff] }
 0x4e0   : > { %8895 = vrsqrt.f32 %v11460_v13 }
 0x4e1   : > { %8897 = vrsqrt.f32 %v11538_v59 }
 0x4e2   : > { %8899 = vrsqrt.f32 %v11612_v11 }
 0x4e3   : > { %8901 = vrsqrt.f32 %v11710_v49 }
 0x4e4   : > { %v12146_v16 = vpop.permute.xlu2 %4499  ;;  %8903 = vrsqrt.f32 %v11672_v56 }
 0x4e5   : > { %15947 = vst [vmem:[#allocation134_spill] sm:$0xff] %v12146_v16  ;;  %v8894_v55 = vpop.eup %8893  ;;  %4540 = vrot.lane.b32.xlu1 %v15948_v50, %s9636_s19  ;;  %8905 = vrsqrt.f32 %v11736_v40 }
 0x4e6   : > { %v2136_v35 = vmul.f32 %v8894_v55, %v11914_v8  ;;  %v12151_v61 = vpop.permute.xlu0 %4910  ;;  %v15955_v8 = vld [vmem:[#allocation82_spill] sm:$0xff]  ;;  %v15956_v55 = vld [vmem:[#allocation120_spill] sm:$0xff]  ;;  %8907 = vrsqrt.f32 %v11721_v53 }
 0x4e7   : > { %15949 = vst [vmem:[#allocation99_spill] sm:$0xff] %v12151_v61  ;;  %8909 = vrsqrt.f32 %v11761_v48 }
 0x4e8   : > { %8215 = vmatmul.msk.f32.gmra.mxu3 %vm1960_vm14, %v2136_v35  ;;  %8911 = vrsqrt.f32 %v11614_v27 }
 0x4ec   : > { %v12154_v28 = vpop.permute.xlu2 %4966 }
 0x4ed   : > { %15950 = vst [vmem:[#allocation90_spill] sm:$0xff] %v12154_v28  ;;  %4542 = vrot.lane.b32.xlu1 %v15951_v45, %s9636_s19  ;;  %v15959_v45 = vld [vmem:[#allocation111_spill] sm:$0xff] }
 0x4ee   : > { %v12158_v26 = vpop.permute.xlu0 %4908 }
 0x4ef   : > { %15952 = vst [vmem:[#allocation95_spill] sm:$0xff] %v12158_v26 }
 0x4f0   : > { %8230 = vmatmul.msk.f32.vlgmr.msra.gmra.mxu3 %vm784_vm1, %v15953_v39  ;;  %v15960_v39 = vld [vmem:[#allocation87_spill] sm:$0xff] }
 0x4f1   : > { %8257 = vmatpush.xpose.msk.msra.mxu3 %vm784_vm1, %v11032_v0 }
 0x4f4   : > { %v12164_v50 = vpop.permute.xlu2 %4964 }
 0x4f5   : > { %15954 = vst [vmem:[#allocation144_spill] sm:$0xff] %v12164_v50  ;;  %4556 = vrot.lane.b32.xlu1 %v15955_v8, %s9636_s19  ;;  %8258 = vmatpush.xpose.msk.msra.mxu3 %vm784_vm1, %v15956_v55 }
 0x4f6   : > { %v12170_v35 = vpop.permute.xlu1 %4464  ;;  %v12172_v33 = vpop.permute.xlu0 %5022 }
 0x4f7   : > { %15957 = vst [vmem:[#allocation135_spill] sm:$0xff] %v12170_v35 }
 0x4f8   : > { %15958 = vst [vmem:[#allocation97_spill] sm:$0xff] %v12172_v33  ;;  %8231 = vmatmul.msk.f32.gmra.mxu3 %vm784_vm1, %v15959_v45  ;;  %v15963_v45 = vld [vmem:[#allocation46_spill] sm:$0xff] }
 0x4fc   : > { %v4537_v14 = vpop.permute.xlu2 %4536 }
 0x4fd   : > { %4558 = vrot.lane.b32.xlu1 %v15960_v39, %s9636_s19  ;;  %v4584_v0 = vsel %vm784_vm1, %v4537_v14, 0.0 }
 0x4fe   : > { %4585 = vadd.xlane.f32.xlu2 %v4584_v0  ;;  %v12179_v37 = vpop.permute.xlu1 %4425  ;;  %v4539_v8 = vpop.permute.xlu0 %4538  ;;  %v15965_v0 = vld [vmem:[#allocation108_spill] sm:$0xff] }
 0x4ff   : > { %15961 = vst [vmem:[#allocation105_spill] sm:$0xff] %v12179_v37  ;;  %v4587_v16 = vsel %vm784_vm1, %v4539_v8, 0.0 }
 0x500   : > { %v2166_v55 = vpop.f32.mrf.mxu2  ;;  %8246 = vmatmul.msk.f32.vlgmr.msrb.gmra.mxu3 %vm784_vm1, %v15962_v7  ;;  %4588 = vadd.xlane.f32.xlu0 %v4587_v16 }
 0x501   : > { %v2201_v33 = vpop.f32.mrf.mxu3  ;;  %2417 = vst.msk [vmem:[#allocation2] sm:$0xff] %vm784_vm1, %v2166_v55  ;;  %8269 = vmatpush.xpose.msk.msrb.mxu3 %vm784_vm1, %v11389_v44  ;;  %v15966_v44 = vld [vmem:[#allocation83_spill] sm:$0xff]  ;;  %v8651_v55 = vunpack.i.l.bf16 %v11775_v57  ;;  %v8667_v57 = vunpack.i.h.bf16 %v11805_v31 }
 0x502   : > { %2419 = vst.msk [vmem:[#allocation2 + $0x10] sm:$0xff] %vm784_vm1, %v2201_v33 }
 0x504   : > { %v4553_v14 = vpop.permute.xlu2 %4552 }
 0x505   : > { %4562 = vrot.lane.b32.xlu1 %v15963_v45, %s9636_s19  ;;  %8270 = vmatpush.xpose.msk.msrb.mxu3 %vm784_vm1, %v11475_v25  ;;  %v4608_v8 = vsel %vm784_vm1, %v4553_v14, 0.0  ;;  %v8656_v25 = vunpack.i.l.bf16 %v11779_v58 }
 0x506   : > { %4609 = vadd.xlane.f32.xlu2 %v4608_v8  ;;  %v12193_v7 = vpop.permute.xlu1 %4345  ;;  %v8666_v8 = vunpack.i.l.bf16 %v11805_v31 }
 0x507   : > { %15964 = vst [vmem:[#allocation86_spill] sm:$0xff] %v12193_v7 }
 0x508   : > { %v2169_v16 = vpop.f32.mrf.mxu2  ;;  %8247 = vmatmul.msk.f32.gmra.mxu3 %vm784_vm1, %v15965_v0 }
 0x509   : > { %2418 = vst.msk [vmem:[#allocation2 + $0x8] sm:$0xff] %vm784_vm1, %v2169_v16 }
 0x50d   : > { %4564 = vrot.lane.b32.xlu1 %v15966_v44, %s9636_s19 }
 0x50e   : > { %v12200_v33 = vpop.permute.xlu1 %4824 }
 0x50f   : > { %15967 = vst [vmem:[#allocation127_spill] sm:$0xff] %v12200_v33 }
 0x510   : > { %v2236_v45 = vpop.f32.mrf.mxu2  ;;  %8259 = vmatmul.msk.f32.vlgmr.msra.gmra.mxu3 %vm784_vm1, %v15935_v29 }
 0x511   : > { %2421 = vst.msk [vmem:[#allocation2 + $0x20] sm:$0xff] %vm784_vm1, %v2236_v45  ;;  %3994 = vmatpush.msra.mxu3 %v8651_v55 }
 0x513   : > { %v2341_v14 = vpop.f32.mrf.mxu1  ;;  %3995 = vmatpush.msra.mxu3 %v8656_v25 }
 0x514   : > { %2427 = vst.msk [vmem:[#allocation2 + $0x50] sm:$0xff] %vm784_vm1, %v2341_v14 }
 0x516   : > { %v12209_v16 = vpop.permute.xlu1 %4419 }
 0x517   : > { %15968 = vst [vmem:[#allocation142_spill] sm:$0xff] %v12209_v16 }
 0x518   : > { %v2204_v0 = vpop.f32.mrf.mxu3  ;;  %8271 = vmatmul.msk.f32.vlgmr.msrb.gmra.mxu3 %vm784_vm1, %v15935_v29  ;;  %v2239_v58 = vpop.f32.mrf.mxu2 }
 0x519   : > { %2420 = vst.msk [vmem:[#allocation2 + $0x18] sm:$0xff] %vm784_vm1, %v2204_v0  ;;  %4134 = vmatpush.msrb.mxu3 %v8666_v8 }
 0x51a   : > { %2422 = vst.msk [vmem:[#allocation2 + $0x28] sm:$0xff] %vm784_vm1, %v2239_v58  ;;  %v2306_v45 = vpop.f32.mrf.mxu0 }
 0x51b   : > { %v2344_v55 = vpop.f32.mrf.mxu1  ;;  %4135 = vmatpush.msrb.mxu3 %v8667_v57  ;;  %2425 = vst.msk [vmem:[#allocation2 + $0x40] sm:$0xff] %vm784_vm1, %v2306_v45 }
 0x51c   : > { %2428 = vst.msk [vmem:[#allocation2 + $0x58] sm:$0xff] %vm784_vm1, %v2344_v55 }
 0x51e   : > { %v12218_v25 = vpop.permute.xlu1 %4503 }
 0x51f   : > { %15969 = vst [vmem:[#allocation106_spill] sm:$0xff] %v12218_v25 }
 0x520   : > { %v2271_v14 = vpop.f32.mrf.mxu3 }
 0x521   : > { %2423 = vst.msk [vmem:[#allocation2 + $0x30] sm:$0xff] %vm784_vm1, %v2271_v14  ;;  %v2376_v44 = vpop.f32.mrf.mxu2 }
 0x522   : > { %2429 = vst.msk [vmem:[#allocation2 + $0x60] sm:$0xff] %vm784_vm1, %v2376_v44  ;;  %v8896_v44 = vpop.eup %8895 }
 0x523   : > { %v2309_v31 = vpop.f32.mrf.mxu0  ;;  %v2870_v39 = vmul.f32 %v8896_v44, %v11460_v13 }
 0x524   : > { %2426 = vst.msk [vmem:[#allocation2 + $0x48] sm:$0xff] %vm784_vm1, %v2309_v31  ;;  %v12223_v8 = vpop.f32.mrf.mxu1 }
 0x525   : > { %v2871_v12 = vmul.f32 %v8896_v44, %v2870_v39 }
 0x527   : > { %v12225_v0 = vpop.permute.xlu1 %4854  ;;  %v2872_v63 = vmul.f32 0.5, %v2871_v12 }
 0x528   : > { %15970 = vst [vmem:[#allocation94_spill] sm:$0xff] %v12225_v0  ;;  %v2274_v57 = vpop.f32.mrf.mxu3 }
 0x529   : > { %2424 = vst.msk [vmem:[#allocation2 + $0x38] sm:$0xff] %vm784_vm1, %v2274_v57  ;;  %v2379_v58 = vpop.f32.mrf.mxu2 }
 0x52a   : > { %2430 = vst.msk [vmem:[#allocation2 + $0x68] sm:$0xff] %vm784_vm1, %v2379_v58  ;;  %v8898_v58 = vpop.eup %8897 }
 0x52b   : > { %v12230_v45 = vpop.f32.mrf.mxu0  ;;  %v2954_v34 = vmul.f32 %v8898_v58, %v11538_v59  ;;  %v12249_v60 = vpop.eup %8899 }
 0x52c   : > { %v12232_v55 = vpop.f32.mrf.mxu1  ;;  %v8902_v51 = vpop.eup %8901  ;;  %v2894_v39 = vmul.f32 %v12249_v60, %v11612_v11 }
 0x52d   : > { %v2955_v24 = vmul.f32 %v8898_v58, %v2954_v34  ;;  %v2906_v10 = vmul.f32 %v8902_v51, %v11710_v49  ;;  %v2873_v34 = vsub.f32 1.5, %v2872_v63 }
 0x52e   : > { %v2895_v15 = vmul.f32 %v12249_v60, %v2894_v39 }
 0x52f   : > { %v12235_v14 = vpop.permute.xlu1 %4880  ;;  %v2956_v38 = vmul.f32 0.5, %v2955_v24  ;;  %v2907_v23 = vmul.f32 %v8902_v51, %v2906_v10  ;;  %v2874_v50 = vmul.f32 %v8896_v44, %v2873_v34  ;;  %v15975_v44 = vld [vmem:[#allocation101_spill] sm:$0xff] }
 0x530   : > { %15971 = vst [vmem:[#allocation96_spill] sm:$0xff] %v12235_v14  ;;  %v2411_v31 = vpop.f32.mrf.mxu3  ;;  %v2896_v39 = vmul.f32 0.5, %v2895_v15 }
 0x531   : > { %2431 = vst.msk [vmem:[#allocation2 + $0x70] sm:$0xff] %vm784_vm1, %v2411_v31  ;;  %v12241_v57 = vpop.f32.mrf.mxu2  ;;  %v12255_v31 = vpop.eup %8903  ;;  %v2957_v63 = vsub.f32 1.5, %v2956_v38  ;;  %v2908_v10 = vmul.f32 0.5, %v2907_v23  ;;  %v2875_v38 = vmul.f32 %v2874_v50, %v11460_v13  ;;  %v2963_v50 = vand.u32 2147483648, %v11538_v59 }
 0x532   : > { %v3002_v36 = vmul.f32 %v12255_v31, %v11672_v56  ;;  %v12269_v5 = vpop.eup %8905 }
 0x533   : > { %v12244_v26 = vpop.f32.mrf.mxu0  ;;  %v12271_v12 = vpop.eup %8907  ;;  %v2930_v18 = vmul.f32 %v12269_v5, %v11736_v40  ;;  %v2958_v15 = vmul.f32 %v8898_v58, %v2957_v63 }
 0x534   : > { %v12246_v61 = vpop.f32.mrf.mxu1  ;;  %v3003_v52 = vmul.f32 %v12255_v31, %v3002_v36  ;;  %v3014_v41 = vmul.f32 %v12271_v12, %v11721_v53  ;;  %v12282_v4 = vpop.eup %8909 }
 0x535   : > { %v2931_v36 = vmul.f32 %v12269_v5, %v2930_v18  ;;  %v2942_v20 = vmul.f32 %v12282_v4, %v11761_v48  ;;  %v12297_v23 = vpop.eup %8911  ;;  %v2909_v18 = vsub.f32 1.5, %v2908_v10  ;;  %v2959_v10 = vmul.f32 %v2958_v15, %v11538_v59 }
 0x536   : > { %v3015_v16 = vmul.f32 %v12271_v12, %v3014_v41  ;;  %v2879_v41 = vand.u32 2147483648, %v11460_v13 }
 0x537   : > { %v12252_v22 = vpop.permute.xlu1 %4497  ;;  %v2932_v30 = vmul.f32 0.5, %v2931_v36  ;;  %v2943_v63 = vmul.f32 %v12282_v4, %v2942_v20  ;;  %v2910_v20 = vmul.f32 %v8902_v51, %v2909_v18 }
 0x538   : > { %15972 = vst [vmem:[#allocation120_spill] sm:$0xff] %v12252_v22  ;;  %v3016_v58 = vmul.f32 0.5, %v3015_v16 }
 0x539   : > { %v12257_v54 = vpop.f32.mrf.mxu2  ;;  %v2933_v6 = vsub.f32 1.5, %v2932_v30 }
 0x53a   : > { %v3017_v51 = vsub.f32 1.5, %v3016_v58  ;;  %v3011_v58 = vand.u32 2147483648, %v11672_v56 }
 0x53b   : > { %v12262_v19 = vpop.f32.mrf.mxu0 }
 0x53c   : > { %v12267_v22 = vpop.f32.mrf.mxu1 }
 0x53d   : > { %15973 = vst [vmem:[#allocation111_spill] sm:$0xff] %v12267_v22 }
 0x53f   : > { %v12274_v25 = vpop.permute.xlu1 %4994 }
 0x540   : > { %15974 = vst [vmem:[#allocation102_spill] sm:$0xff] %v12274_v25  ;;  %v3004_v25 = vmul.f32 0.5, %v3003_v52  ;;  %v2897_v52 = vsub.f32 1.5, %v2896_v39  ;;  %v2877_v39 = vsel %vm2876_vm9, %v11460_v13, %v2875_v38  ;;  %v2915_v38 = vand.u32 2147483648, %v11710_v49 }
 0x541   : > { %v12284_v24 = vpop.f32.mrf.mxu2 }
 0x542   : > { %v3005_v62 = vsub.f32 1.5, %v3004_v25  ;;  %v2858_v25 = vmul.f32 %v12297_v23, %v11614_v27  ;;  %v2898_v16 = vmul.f32 %v12249_v60, %v2897_v52  ;;  %v12333_v60 = vsel %vm2878_vm2, %v2879_v41, %v2877_v39 }
 0x543   : > { %v12286_v7 = vpop.f32.mrf.mxu0  ;;  %v2944_v52 = vmul.f32 0.5, %v2943_v63  ;;  %v2911_v41 = vmul.f32 %v2910_v20, %v11710_v49  ;;  %v3018_v20 = vmul.f32 %v12271_v12, %v3017_v51 }
 0x544   : > { %v12289_v28 = vpop.f32.mrf.mxu1  ;;  %v3006_v15 = vmul.f32 %v12255_v31, %v3005_v62  ;;  %v2961_v62 = vsel %vm2960_vm7, %v11538_v59, %v2959_v10  ;;  %v2859_v30 = vmul.f32 %v12297_v23, %v2858_v25  ;;  %v15977_v31 = vld [vmem:[#allocation109_spill] sm:$0xff]  ;;  %v2899_v18 = vmul.f32 %v2898_v16, %v11612_v11 }
 0x545   : > { %8913 = vrsqrt.f32 %v12289_v28  ;;  %v2934_v10 = vmul.f32 %v12269_v5, %v2933_v6  ;;  %v12358_v16 = vsel %vm2962_vm10, %v2963_v50, %v2961_v62  ;;  %v15979_v6 = vld [vmem:[#allocation146_spill] sm:$0xff]  ;;  %v2913_v12 = vsel %vm2912_vm12, %v11710_v49, %v2911_v41 }
 0x546   : > { %8915 = vrsqrt.f32 %v15975_v44  ;;  %v3007_v39 = vmul.f32 %v3006_v15, %v11672_v56  ;;  %v2860_v5 = vmul.f32 0.5, %v2859_v30  ;;  %v2901_v59 = vsel %vm2900_vm11, %v11612_v11, %v2899_v18  ;;  %v15980_v15 = vld [vmem:[#allocation122_spill] sm:$0xff] }
 0x547   : > { %v12301_v34 = vpop.permute.xlu1 %4992  ;;  %v2935_v30 = vmul.f32 %v2934_v10, %v11736_v40  ;;  %v3019_v18 = vmul.f32 %v3018_v20, %v11721_v53  ;;  %vm3292_vm2 = vcmp.eq.f32.partialorder %v12289_v28, inf  ;;  %vm2866_vm7 = vcmp.eq.f32.partialorder %v11614_v27, 0.0 }
 0x548   : > { %15976 = vst [vmem:[#allocation108_spill] sm:$0xff] %v12301_v34  ;;  %v2903_v34 = vand.u32 2147483648, %v11612_v11  ;;  %v3009_v62 = vsel %vm3008_vm15, %v11672_v56, %v3007_v39  ;;  %v2861_v10 = vsub.f32 1.5, %v2860_v5  ;;  %vm2888_vm10 = vcmp.eq.f32.partialorder %v15975_v44, inf }
 0x549   : > { %v12316_v36 = vpop.f32.mrf.mxu2  ;;  %v12405_v11 = vsel %vm3010_vm6, %v3011_v58, %v3009_v62  ;;  %vm3294_vm12 = vcmp.eq.f32.partialorder %v12289_v28, 0.0  ;;  %vm3022_vm6 = vcmp.eq.f32.partialorder %v11721_v53, 0.0 }
 0x54a   : > { %v12391_v1 = vsel %vm2902_vm13, %v2903_v34, %v2901_v59  ;;  %v2862_v59 = vmul.f32 %v12297_v23, %v2861_v10  ;;  %vm2890_vm13 = vcmp.eq.f32.partialorder %v15975_v44, 0.0 }
 0x54b   : > { %v12318_v14 = vpop.eup %8913  ;;  %v12323_v2 = vpop.f32.mrf.mxu0 }
 0x54c   : > { %v3286_v17 = vmul.f32 %v12318_v14, %v12289_v28  ;;  %8917 = vrsqrt.f32 %v12323_v2  ;;  %v12329_v9 = vpop.eup %8915  ;;  %v12387_v32 = vpop.f32.mrf.mxu1  ;;  %vm3280_vm9 = vcmp.eq.f32.partialorder %v12323_v2, inf  ;;  %vm3282_vm11 = vcmp.eq.f32.partialorder %v12323_v2, 0.0 }
 0x54d   : > { %8919 = vrsqrt.f32 %v15977_v31 }
 0x54e   : > { %v3287_v13 = vmul.f32 %v12318_v14, %v3286_v17  ;;  %v2882_v17 = vmul.f32 %v12329_v9, %v15975_v44  ;;  %8921 = vrsqrt.f32 %v15979_v6 }
 0x54f   : > { %v12348_v63 = vpop.permute.xlu1 %5020 }
 0x550   : > { %15978 = vst [vmem:[#allocation101_spill] sm:$0xff] %v12348_v63  ;;  %v2945_v63 = vsub.f32 1.5, %v2944_v52  ;;  %v3288_v0 = vmul.f32 0.5, %v3287_v13  ;;  %v2883_v13 = vmul.f32 %v12329_v9, %v2882_v17  ;;  %v12396_v17 = vsel %vm2914_vm3, %v2915_v38, %v2913_v12  ;;  %v15982_v12 = vld [vmem:[#allocation125_spill] sm:$0xff] }
 0x551   : > { %v12364_v25 = vpop.f32.mrf.mxu2  ;;  %v12412_v38 = vsel %vm2936_vm8, %v11736_v40, %v2935_v30 }
 0x552   : > { %v8918_v29 = vpop.eup %8917  ;;  %8923 = vrsqrt.f32 %v12364_v25  ;;  %v2946_v41 = vmul.f32 %v12282_v4, %v2945_v63  ;;  %v3289_v3 = vsub.f32 1.5, %v3288_v0  ;;  %v15981_v63 = vld [vmem:[#allocation118_spill] sm:$0xff]  ;;  %v2884_v34 = vmul.f32 0.5, %v2883_v13 }
 0x553   : > { %v3274_v50 = vmul.f32 %v8918_v29, %v12323_v2  ;;  %v12374_v51 = vpop.f32.mrf.mxu0  ;;  %v12376_v52 = vpop.eup %8919  ;;  %vm3304_vm15 = vcmp.eq.f32.partialorder %v12364_v25, inf  ;;  %vm3306_vm3 = vcmp.eq.f32.partialorder %v12364_v25, 0.0 }
 0x554   : > { %8925 = vrsqrt.f32 %v12374_v51  ;;  %v2918_v4 = vmul.f32 %v12376_v52, %v15977_v31  ;;  %v12401_v35 = vpop.eup %8921  ;;  %v12420_v56 = vmul.f32 %v2946_v41, %v11761_v48  ;;  %v3290_v62 = vmul.f32 %v12318_v14, %v3289_v3 }
 0x555   : > { %8927 = vrsqrt.f32 %v15980_v15  ;;  %v3275_v42 = vmul.f32 %v8918_v29, %v3274_v50  ;;  %v2885_v23 = vsub.f32 1.5, %v2884_v34  ;;  %v2966_v3 = vmul.f32 %v12401_v35, %v15979_v6 }
 0x556   : > { %8929 = vrsqrt.f32 %v15981_v63  ;;  %v2919_v41 = vmul.f32 %v12376_v52, %v2918_v4  ;;  %v2863_v34 = vmul.f32 %v2862_v59, %v11614_v27  ;;  %v3291_v10 = vmul.f32 %v3290_v62, %v12289_v28 }
 0x557   : > { %v3276_v20 = vmul.f32 0.5, %v3275_v42  ;;  %v4541_v50 = vpop.permute.xlu1 %4540  ;;  %8931 = vrsqrt.f32 %v12387_v32  ;;  %v12417_v42 = vsel %vm3020_vm4, %v11721_v53, %v3019_v18  ;;  %v2967_v59 = vmul.f32 %v12401_v35, %v2966_v3 }
 0x558   : > { %v4590_v49 = vsel %vm784_vm1, %v4541_v50, 0.0  ;;  %v8924_v0 = vpop.eup %8923  ;;  %8933 = vrsqrt.f32 %v15982_v12  ;;  %v2920_v18 = vmul.f32 0.5, %v2919_v41  ;;  %v2886_v41 = vmul.f32 %v12329_v9, %v2885_v23 }
 0x559   : > { %v3277_v58 = vsub.f32 1.5, %v3276_v20  ;;  %4591 = vadd.xlane.f32.xlu1 %v4590_v49  ;;  %v3298_v30 = vmul.f32 %v8924_v0, %v12364_v25  ;;  %v12428_v13 = vpop.f32.mrf.mxu2  ;;  %v3293_v37 = vsel %vm3292_vm2, %v12289_v28, %v3291_v10  ;;  %v3307_v23 = vand.u32 2147483648, %v12364_v25 }
 0x55a   : > { %v12422_v5 = vpop.eup %8925  ;;  %8935 = vrsqrt.f32 %v12428_v13  ;;  %v2968_v22 = vmul.f32 0.5, %v2967_v59  ;;  %vm3328_vm8 = vcmp.eq.f32.partialorder %v12374_v51, inf  ;;  %vm3330_vm4 = vcmp.eq.f32.partialorder %v12374_v51, 0.0 }
 0x55b   : > { %v12430_v50 = vpop.eup %8927  ;;  %v3278_v20 = vmul.f32 %v8918_v29, %v3277_v58  ;;  %v3322_v49 = vmul.f32 %v12422_v5, %v12374_v51  ;;  %v3299_v14 = vmul.f32 %v8924_v0, %v3298_v30  ;;  %vm2972_vm2 = vcmp.eq.f32.partialorder %v15979_v6, inf }
 0x55c   : > { %v12440_v39 = vpop.eup %8929  ;;  %v3026_v58 = vmul.f32 %v12430_v50, %v15980_v15 }
 0x55d   : > { %v3279_v43 = vmul.f32 %v3278_v20, %v12323_v2  ;;  %v3323_v29 = vmul.f32 %v12422_v5, %v3322_v49  ;;  %v12446_v4 = vpop.eup %8931  ;;  %v3300_v30 = vmul.f32 0.5, %v3299_v14  ;;  %v3283_v20 = vand.u32 2147483648, %v12323_v2 }
 0x55e   : > { %v12454_v21 = vpop.eup %8933  ;;  %v2978_v14 = vmul.f32 %v12440_v39, %v15981_v63  ;;  %v3334_v33 = vmul.f32 %v12446_v4, %v12387_v32 }
 0x55f   : > { %v3324_v46 = vmul.f32 0.5, %v3323_v29  ;;  %v3281_v49 = vsel %vm3280_vm9, %v12323_v2, %v3279_v43  ;;  %v3301_v62 = vsub.f32 1.5, %v3300_v30  ;;  %v3295_v29 = vand.u32 2147483648, %v12289_v28 }
 0x560   : > { %v12471_v43 = vpop.eup %8935  ;;  %v2990_v2 = vmul.f32 %v12454_v21, %v15982_v12  ;;  %v3284_v9 = vsel %vm3282_vm11, %v3283_v20, %v3281_v49  ;;  %v2921_v30 = vsub.f32 1.5, %v2920_v18  ;;  %v2887_v28 = vmul.f32 %v2886_v41, %v15975_v44 }
 0x561   : > { %v3302_v3 = vmul.f32 %v8924_v0, %v3301_v62  ;;  %v3325_v47 = vsub.f32 1.5, %v3324_v46  ;;  %v2865_v46 = vsel %vm2864_vm5, %v11614_v27, %v2863_v34  ;;  %v12484_v0 = vsel %vm3294_vm12, %v3295_v29, %v3293_v37  ;;  %v15983_v29 = vld [vmem:[#allocation117_spill] sm:$0xff] }
 0x562   : > { %v3335_v20 = vmul.f32 %v12446_v4, %v3334_v33  ;;  %v3369_v49 = vperm.slane %v3284_v9, 0  ;;  %v3346_v62 = vmul.f32 %v12471_v43, %v12428_v13  ;;  %v2979_v34 = vmul.f32 %v12440_v39, %v2978_v14 }
 0x563   : > { %v3303_v10 = vmul.f32 %v3302_v3, %v12364_v25  ;;  %v3326_v59 = vmul.f32 %v12422_v5, %v3325_v47  ;;  %v3027_v3 = vmul.f32 %v12430_v50, %v3026_v58  ;;  %v2991_v41 = vmul.f32 %v12454_v21, %v2990_v2 }
 0x564   : > { %v2922_v33 = vmul.f32 %v12376_v52, %v2921_v30  ;;  %8937 = vrsqrt.f32 %v15983_v29  ;;  %v2969_v9 = vsub.f32 1.5, %v2968_v22  ;;  %v15984_v47 = vand.u32 2147483648, %v11614_v27 }
 0x565   : > { %v3305_v18 = vsel %vm3304_vm15, %v12364_v25, %v3303_v10  ;;  %v2889_v58 = vsel %vm2888_vm10, %v15975_v44, %v2887_v28  ;;  %v3370_v14 = vperm.slane %v12484_v0, 0  ;;  %v3336_v2 = vmul.f32 0.5, %v3335_v20 }
 0x566   : > { %v12495_v37 = vsel %vm3306_vm3, %v3307_v23, %v3305_v18  ;;  %v2868_v5 = vsel %vm2866_vm7, %v15984_v47, %v2865_v46  ;;  %v3378_v52 = vmul.f32 %v3369_v49, %v12333_v60  ;;  %v3327_v30 = vmul.f32 %v3326_v59, %v12374_v51 }
 0x567   : > { %v3377_v23 = vmul.f32 %v3369_v49, %v2868_v5  ;;  %v3347_v22 = vmul.f32 %v12471_v43, %v3346_v62  ;;  %v3028_v10 = vmul.f32 0.5, %v3027_v3  ;;  %v2980_v18 = vmul.f32 0.5, %v2979_v34 }
 0x568   : > { %v2992_v25 = vmul.f32 0.5, %v2991_v41  ;;  %v15985_v46 = vand.u32 2147483648, %v15975_v44  ;;  %v2923_v20 = vmul.f32 %v2922_v33, %v15977_v31  ;;  %v2970_v47 = vmul.f32 %v12401_v35, %v2969_v9 }
 0x569   : > { %v15986_v60 = vperm.slane %v12495_v37, 0  ;;  %v3337_v62 = vsub.f32 1.5, %v3336_v2  ;;  %v3331_v3 = vand.u32 2147483648, %v12374_v51  ;;  %v3329_v34 = vsel %vm3328_vm8, %v12374_v51, %v3327_v30 }
 0x56a   : > { %v2892_v28 = vsel %vm2890_vm13, %v15985_v46, %v2889_v58  ;;  %v12526_v44 = vpop.eup %8937  ;;  %v3348_v41 = vmul.f32 0.5, %v3347_v22  ;;  %v12529_v35 = vmax.f32 %v3378_v52, 1e-06  ;;  %v12531_v33 = vmax.f32 %v3377_v23, 1e-06 }
 0x56b   : > { %v2414_v27 = vpop.f32.mrf.mxu3  ;;  %v3381_v49 = vmul.f32 %v15986_v60, %v12396_v17  ;;  %v3379_v59 = vmul.f32 %v3370_v14, %v2892_v28  ;;  %v15987_v17 = vand.u32 2147483648, %v11721_v53  ;;  %vm2924_vm5 = vcmp.eq.f32.partialorder %v15977_v31, inf }
 0x56c   : > { %2432 = vst.msk [vmem:[#allocation2 + $0x78] sm:$0xff] %vm784_vm1, %v2414_v27  ;;  %v2981_v5 = vsub.f32 1.5, %v2980_v18  ;;  %v2993_v58 = vsub.f32 1.5, %v2992_v25  ;;  %v3029_v2 = vsub.f32 1.5, %v3028_v10  ;;  %vm2926_vm9 = vcmp.eq.f32.partialorder %v15977_v31, 0.0 }
 0x56d   : > { %v12538_v9 = vsel %vm3022_vm6, %v15987_v17, %v12417_v42  ;;  %8939 = vrcp.f32 %v12529_v35  ;;  %v12543_v52 = vmax.f32 %v3381_v49, 1e-06  ;;  %v3038_v23 = vmul.f32 %v12526_v44, %v15983_v29 }
 0x56e   : > { %v3338_v30 = vmul.f32 %v12446_v4, %v3337_v62  ;;  %v12550_v53 = vsel %vm3330_vm4, %v3331_v3, %v3329_v34  ;;  %8941 = vrcp.f32 %v12531_v33  ;;  %v2925_v42 = vsel %vm2924_vm5, %v15977_v31, %v2923_v20 }
 0x56f   : > { %v2971_v25 = vmul.f32 %v2970_v47, %v15979_v6  ;;  %v3349_v22 = vsub.f32 1.5, %v3348_v41  ;;  %v12555_v10 = vmax.f32 %v3379_v59, 1e-06  ;;  %v2927_v18 = vand.u32 2147483648, %v15977_v31 }
 0x570   : > { %v2982_v27 = vmul.f32 %v12440_v39, %v2981_v5  ;;  %v2994_v4 = vmul.f32 %v12454_v21, %v2993_v58  ;;  %v12564_v46 = vmul.f32 %v12430_v50, %v3029_v2  ;;  %v2975_v28 = vand.u32 2147483648, %v15979_v6 }
 0x571   : > { %v3373_v20 = vperm.slane %v12550_v53, 0  ;;  %8943 = vrcp.f32 %v12543_v52  ;;  %v12571_v47 = vsel %vm2926_vm9, %v2927_v18, %v2925_v42  ;;  %v12574_v60 = vmul.f32 %v12526_v44, %v3038_v23 }
 0x572   : > { %v3339_v39 = vmul.f32 %v3338_v30, %v12387_v32  ;;  %v12579_v50 = vsel %vm2972_vm2, %v15979_v6, %v2971_v25  ;;  %vm3340_vm7 = vcmp.eq.f32.partialorder %v12387_v32, inf  ;;  %v3350_v59 = vmul.f32 %v12471_v43, %v3349_v22 }
 0x573   : > { %v12561_v51 = vpop.f32.mrf.mxu3  ;;  %v8940_v49 = vpop.eup %8939  ;;  %8945 = vrcp.f32 %v12555_v10  ;;  %v12585_v62 = vmul.f32 %v2982_v27, %v15981_v63  ;;  %v12588_v3 = vmul.f32 %v2994_v4, %v15982_v12  ;;  %v3385_v17 = vmul.f32 %v3373_v20, %v12358_v16 }
 0x574   : > { %v8942_v31 = vpop.eup %8941  ;;  %v3424_v41 = vmul.f32 %v8940_v49, %v12529_v35  ;;  %vm3352_vm10 = vcmp.eq.f32.partialorder %v12428_v13, inf  ;;  %v3432_v43 = vand.u32 2147483647, %v12529_v35  ;;  %v3434_v5 = vand.u32 2147483648, %v12529_v35 }
 0x575   : > { %v3410_v58 = vmul.f32 %v8942_v31, %v12531_v33  ;;  %v12602_v2 = vmul.f32 %v3370_v14, %v12391_v1  ;;  %v12605_v23 = vsel %vm3340_vm7, %v12387_v32, %v3339_v39  ;;  %v3355_v30 = vand.u32 2147483648, %v12428_v13 }
 0x576   : > { %v3425_v42 = vsub.f32 1.0, %v3424_v41  ;;  %v3351_v25 = vmul.f32 %v3350_v59, %v12428_v13  ;;  %vm3428_vm11 = vweird.f32 %v12529_v35  ;;  %v3418_v22 = vand.u32 2147483647, %v12531_v33 }
 0x577   : > { %v12608_v16 = vpop.eup %8943  ;;  %v3420_v18 = vand.u32 2147483648, %v12531_v33  ;;  %vm3354_vm12 = vcmp.eq.f32.partialorder %v12428_v13, 0.0  ;;  %vm3429_vm13 = vweird.f32 %v8940_v49  ;;  %v3411_v14 = vsub.f32 1.0, %v3410_v58 }
 0x578   : > { %v3426_v0 = vmul.f32 %v8940_v49, %v3425_v42  ;;  %v3466_v27 = vmul.f32 %v12608_v16, %v12543_v52  ;;  %vm12621_vm15 = vcmp.eq.f32.partialorder %v3432_v43, 8.507059e+37  ;;  %v3435_v59 = vor.u32 1.1754944e-38, %v3434_v5  ;;  %vm3430_vm8 = vmor %vm3428_vm11, %vm3429_vm13 }
 0x579   : > { %v12619_v4 = vpop.eup %8945  ;;  %vm3414_vm3 = vweird.f32 %v12531_v33  ;;  %v12626_v41 = vmax.f32 %v3385_v17, 1e-06  ;;  %v3412_v34 = vmul.f32 %v8942_v31, %v3411_v14  ;;  %vm3415_vm6 = vweird.f32 %v8942_v31 }
 0x57a   : > { %v3427_v21 = vadd.f32 %v8940_v49, %v3426_v0  ;;  %v3467_v42 = vsub.f32 1.0, %v3466_v27  ;;  %vm12630_vm4 = vcmp.eq.f32.partialorder %v3418_v22, 8.507059e+37  ;;  %v3421_v43 = vor.u32 1.1754944e-38, %v3420_v18  ;;  %vm3416_vm13 = vmor %vm3414_vm3, %vm3415_vm6 }
 0x57b   : > { %v12615_v1 = vpop.f32.mrf.mxu3  ;;  %vm3470_vm5 = vweird.f32 %v12543_v52  ;;  %v3438_v5 = vmul.f32 %v12619_v4, %v12555_v10  ;;  %vm2974_vm9 = vcmp.eq.f32.partialorder %v15979_v6, 0.0  ;;  %vm2984_vm2 = vcmp.eq.f32.partialorder %v15981_v63, inf }
 0x57c   : > { %vm3342_vm7 = vcmp.eq.f32.partialorder %v12387_v32, 0.0  ;;  %v3431_v17 = vsel %vm3430_vm8, %v8940_v49, %v3427_v21  ;;  %v3413_v0 = vadd.f32 %v8942_v31, %v3412_v34  ;;  %v3468_v35 = vmul.f32 %v12608_v16, %v3467_v42  ;;  %v12653_v42 = vld [vmem:[#allocation11 + $0x18] sm:$0xff] }
 0x57d   : > { %8947 = vrcp.f32 %v12626_v41  ;;  %vm2996_vm11 = vcmp.eq.f32.partialorder %v15982_v12, inf  ;;  %v3436_v22 = vsel %vm12621_vm15, %v3435_v59, %v3431_v17  ;;  %vm3471_vm0 = vweird.f32 %v12608_v16 }
 0x57e   : > { %v3476_v18 = vand.u32 2147483648, %v12543_v52  ;;  %v3439_v14 = vsub.f32 1.0, %v3438_v5  ;;  %v3634_v21 = vmul.f32 %v3436_v22, %v12244_v26  ;;  %v3417_v49 = vsel %vm3416_vm13, %v8942_v31, %v3413_v0  ;;  %vm12671_vm3 = vmor %vm3470_vm5, %vm3471_vm0  ;;  %v12676_v0 = vld [vmem:[#allocation12 + $0x18] sm:$0xff] }
 0x57f   : > { %v3474_v34 = vand.u32 2147483647, %v12543_v52  ;;  %v3448_v27 = vand.u32 2147483648, %v12555_v10  ;;  %v3422_v39 = vsel %vm12630_vm4, %v3421_v43, %v3417_v49  ;;  %v3469_v33 = vadd.f32 %v12608_v16, %v3468_v35  ;;  %v12678_v35 = vld [vmem:[#allocation11 + $0x10] sm:$0xff] }
 0x580   : > { %v3440_v59 = vmul.f32 %v12619_v4, %v3439_v14  ;;  %vm3443_vm15 = vweird.f32 %v12619_v4  ;;  %v3353_v26 = vsel %vm3352_vm10, %v12428_v13, %v3351_v25  ;;  %v3653_v31 = vmul.f32 %v12653_v42, %v3634_v21 }
 0x581   : > { %v3633_v5 = vmul.f32 %v3422_v39, %v12230_v45  ;;  %v3446_v43 = vand.u32 2147483647, %v12555_v10  ;;  %v3473_v45 = vsel %vm12671_vm3, %v12608_v16, %v3469_v33  ;;  %v3477_v25 = vor.u32 1.1754944e-38, %v3476_v18 }
 0x582   : > { %v3441_v22 = vadd.f32 %v12619_v4, %v3440_v59  ;;  %vm3442_vm10 = vweird.f32 %v12555_v10  ;;  %v15994_v14 = vperm.slane %v12495_v37, 0  ;;  %v12689_v49 = vadd.f32 %v12676_v0, %v3653_v31  ;;  %v12703_v10 = vld [vmem:[#allocation12 + $0x10] sm:$0xff] }
 0x583   : > { %v12665_v17 = vpop.f32.mrf.mxu3  ;;  %v8948_v52 = vpop.eup %8947  ;;  %v3652_v39 = vmul.f32 %v12678_v35, %v3633_v5  ;;  %vm3475_vm0 = vcmp.eq.f32.partialorder %v3474_v34, 8.507059e+37  ;;  %vm12694_vm6 = vmor %vm3442_vm10, %vm3443_vm15  ;;  %vm2986_vm8 = vcmp.eq.f32.partialorder %v15981_v63, 0.0  ;;  %v3356_v37 = vsel %vm3354_vm12, %v3355_v30, %v3353_v26 }
 0x584   : > { %v3382_v21 = vmul.f32 %v15994_v14, %v12571_v47  ;;  %v3478_v47 = vsel %vm3475_vm0, %v3477_v25, %v3473_v45  ;;  %v3445_v18 = vsel %vm12694_vm6, %v12619_v4, %v3441_v22  ;;  %v3449_v34 = vor.u32 1.1754944e-38, %v3448_v27 }
 0x585   : > { %vm2998_vm4 = vcmp.eq.f32.partialorder %v15982_v12, 0.0  ;;  %v3690_v33 = vsel %vm1960_vm14, %v12689_v49, -inf  ;;  %v12712_v59 = vadd.f32 %v12703_v10, %v3652_v39  ;;  %v3637_v31 = vmul.f32 %v3478_v47, %v12241_v57 }
 0x586   : > { %vm3447_vm5 = vcmp.eq.f32.partialorder %v3446_v43, 8.507059e+37  ;;  %v2976_v13 = vsel %vm2974_vm9, %v2975_v28, %v12579_v50  ;;  %v2985_v30 = vsel %vm2984_vm2, %v15981_v63, %v12585_v62  ;;  %3691 = vmax.xlane.f32.xlu2 %v3690_v33  ;;  %v3522_v27 = vmul.f32 %v8948_v52, %v12626_v41 }
 0x587   : > { %v3450_v4 = vsel %vm3447_vm5, %v3449_v34, %v3445_v18  ;;  %v2997_v57 = vsel %vm2996_vm11, %v15982_v12, %v12588_v3  ;;  %v3386_v26 = vmul.f32 %v3373_v20, %v2976_v13  ;;  %v3687_v6 = vsel %vm1960_vm14, %v12712_v59, -inf }
 0x588   : > { %v3656_v28 = vmul.f32 %v12678_v35, %v3637_v31  ;;  %v15997_v50 = vand.u32 2147483648, %v12387_v32  ;;  %v3375_v5 = vperm.slane %v3356_v37, 0  ;;  %3688 = vmax.xlane.f32.xlu0 %v3687_v6  ;;  %v3635_v58 = vmul.f32 %v3450_v4, %v12223_v8 }
 0x589   : > { %v3523_v43 = vsub.f32 1.0, %v3522_v27  ;;  %v3532_v53 = vand.u32 2147483648, %v12626_v41  ;;  %v12746_v45 = vmax.f32 %v3382_v21, 1e-06  ;;  %v12749_v25 = vmax.f32 %v12602_v2, 1e-06 }
 0x58a   : > { %v3344_v62 = vsel %vm3342_vm7, %v15997_v50, %v12605_v23  ;;  %v12741_v3 = vadd.f32 %v12703_v10, %v3656_v28  ;;  %v3654_v32 = vmul.f32 %v12678_v35, %v3635_v58  ;;  %vm3527_vm12 = vweird.f32 %v8948_v52 }
 0x58b   : > { %v12744_v20 = vpop.f32.mrf.mxu3  ;;  %v3524_v23 = vmul.f32 %v8948_v52, %v3523_v43  ;;  %v3530_v22 = vand.u32 2147483647, %v12626_v41  ;;  %v3374_v8 = vperm.slane %v3344_v62, 0  ;;  %8949 = vrcp.f32 %v12746_v45 }
 0x58c   : > { %v3699_v14 = vsel %vm1960_vm14, %v12741_v3, -inf  ;;  %v12756_v39 = vmax.f32 %v3386_v26, 1e-06  ;;  %v2999_v21 = vand.u32 2147483648, %v15982_v12  ;;  %v12760_v2 = vadd.f32 %v12703_v10, %v3654_v32 }
 0x58d   : > { %3700 = vmax.xlane.f32.xlu1 %v3699_v14  ;;  %v3525_v16 = vadd.f32 %v8948_v52, %v3524_v23  ;;  %vm3526_vm9 = vweird.f32 %v12626_v41  ;;  %v15998_v37 = vand.u32 2147483648, %v15981_v63  ;;  %v3389_v18 = vmul.f32 %v3375_v5, %v12405_v11 }
 0x58e   : > { %vm3528_vm2 = vmor %vm3526_vm9, %vm3527_vm12  ;;  %v3533_v34 = vor.u32 1.1754944e-38, %v3532_v53  ;;  %8951 = vrcp.f32 %v12749_v25  ;;  %v3000_v33 = vsel %vm2998_vm4, %v2999_v21, %v2997_v57  ;;  %vm3531_vm7 = vcmp.eq.f32.partialorder %v3530_v22, 8.507059e+37 }
 0x58f   : > { %v2988_v47 = vsel %vm2986_vm8, %v15998_v37, %v2985_v30  ;;  %v3529_v31 = vsel %vm3528_vm2, %v8948_v52, %v3525_v16  ;;  %v3488_v13 = vand.u32 2147483647, %v12746_v45  ;;  %v3693_v41 = vsel %vm1960_vm14, %v12760_v2, -inf }
 0x590   : > { %v3387_v4 = vmul.f32 %v3374_v8, %v2988_v47  ;;  %v3534_v27 = vsel %vm3531_vm7, %v3533_v34, %v3529_v31  ;;  %8953 = vrcp.f32 %v12756_v39  ;;  %v12776_v63 = vmul.f32 0.5, %v12574_v60  ;;  %3694 = vmax.xlane.f32.xlu0 %v3693_v41 }
 0x591   : > { %v12778_v11 = vmul.f32 %v3374_v8, %v3000_v33  ;;  %v3641_v12 = vmul.f32 %v3534_v27, %v12262_v19  ;;  %v3490_v52 = vand.u32 2147483648, %v12746_v45  ;;  %v8950_v30 = vpop.eup %8949  ;;  %v12783_v57 = vmul.f32 %v3375_v5, %v12538_v9 }
 0x592   : > { %vm3484_vm11 = vweird.f32 %v12746_v45  ;;  %v3460_v26 = vand.u32 2147483647, %v12749_v25  ;;  %v12789_v28 = vmax.f32 %v3389_v18, 1e-06  ;;  %v3480_v50 = vmul.f32 %v8950_v30, %v12746_v45 }
 0x593   : > { %v12787_v6 = vpop.f32.mrf.mxu3  ;;  %v3660_v60 = vmul.f32 %v12678_v35, %v3641_v12  ;;  %vm12793_vm13 = vcmp.eq.f32.partialorder %v3488_v13, 8.507059e+37  ;;  %vm3456_vm15 = vweird.f32 %v12749_v25  ;;  %v3462_v62 = vand.u32 2147483648, %v12749_v25 }
 0x594   : > { %v8952_v9 = vpop.eup %8951  ;;  %v3544_v5 = vand.u32 2147483647, %v12756_v39  ;;  %8955 = vrsqrt.f32 %v12787_v6  ;;  %v12801_v58 = vmax.f32 %v3387_v4, 1e-06  ;;  %v3481_v53 = vsub.f32 1.0, %v3480_v50 }
 0x595   : > { %v12804_v43 = vadd.f32 %v12703_v10, %v3660_v60  ;;  %v3491_v32 = vor.u32 1.1754944e-38, %v3490_v52  ;;  %v3452_v23 = vmul.f32 %v8952_v9, %v12749_v25  ;;  %vm3485_vm3 = vweird.f32 %v8950_v30 }
 0x596   : > { %v8954_v22 = vpop.eup %8953  ;;  %vm12807_vm10 = vcmp.eq.f32.partialorder %v3460_v26, 8.507059e+37  ;;  %v3546_v14 = vand.u32 2147483648, %v12756_v39  ;;  %8957 = vrcp.f32 %v12789_v28  ;;  %v3482_v16 = vmul.f32 %v8950_v30, %v3481_v53  ;;  %vm3486_vm4 = vmor %vm3484_vm11, %vm3485_vm3 }
 0x597   : > { %v3711_v21 = vsel %vm1960_vm14, %v12804_v43, -inf  ;;  %v3453_v37 = vsub.f32 1.0, %v3452_v23  ;;  %v3536_v47 = vmul.f32 %v8954_v22, %v12756_v39  ;;  %v3463_v18 = vor.u32 1.1754944e-38, %v3462_v62 }
 0x598   : > { %3712 = vmax.xlane.f32.xlu2 %v3711_v21  ;;  %vm3540_vm0 = vweird.f32 %v12756_v39  ;;  %vm12817_vm6 = vcmp.eq.f32.partialorder %v3544_v5, 8.507059e+37  ;;  %8959 = vrcp.f32 %v12801_v58  ;;  %v3483_v33 = vadd.f32 %v8950_v30, %v3482_v16 }
 0x599   : > { %v3454_v31 = vmul.f32 %v8952_v9, %v3453_v37  ;;  %vm3457_vm8 = vweird.f32 %v8952_v9  ;;  %v3537_v13 = vsub.f32 1.0, %v3536_v47  ;;  %vm3541_vm5 = vweird.f32 %v8954_v22 }
 0x59a   : > { %v8956_v4 = vpop.eup %8955  ;;  %v3547_v41 = vor.u32 1.1754944e-38, %v3546_v14  ;;  %v3319_v27 = vand.u32 2147483648, %v12787_v6  ;;  %v3586_v12 = vand.u32 2147483647, %v12789_v28  ;;  %v3487_v26 = vsel %vm3486_vm4, %v8950_v30, %v3483_v33  ;;  %vm3458_vm12 = vmor %vm3456_vm15, %vm3457_vm8 }
 0x59b   : > { %v12827_v52 = vpop.f32.mrf.mxu3  ;;  %v3455_v60 = vadd.f32 %v8952_v9, %v3454_v31  ;;  %v3538_v50 = vmul.f32 %v8954_v22, %v3537_v13  ;;  %v3310_v62 = vmul.f32 %v8956_v4, %v12787_v6  ;;  %v3492_v53 = vsel %vm12793_vm13, %v3491_v32, %v3487_v26  ;;  %vm3542_vm2 = vmor %vm3540_vm0, %vm3541_vm5 }
 0x59c   : > { %v8958_v5 = vpop.eup %8957  ;;  %vm3582_vm9 = vweird.f32 %v12789_v28  ;;  %v3588_v45 = vand.u32 2147483648, %v12789_v28  ;;  %8961 = vrsqrt.f32 %v12827_v52  ;;  %v3638_v30 = vmul.f32 %v3492_v53, %v12257_v54 }
 0x59d   : > { %v3459_v23 = vsel %vm3458_vm12, %v8952_v9, %v3455_v60  ;;  %v3539_v14 = vadd.f32 %v8954_v22, %v3538_v50  ;;  %v3311_v21 = vmul.f32 %v8956_v4, %v3310_v62  ;;  %vm3316_vm7 = vcmp.eq.f32.partialorder %v12787_v6, inf }
 0x59e   : > { %v12839_v16 = vpop.eup %8959  ;;  %v3464_v19 = vsel %vm12807_vm10, %v3463_v18, %v3459_v23  ;;  %v3578_v25 = vmul.f32 %v8958_v5, %v12789_v28  ;;  %vm12848_vm11 = vcmp.eq.f32.partialorder %v3586_v12, 8.507059e+37  ;;  %vm3554_vm13 = vweird.f32 %v12801_v58 }
 0x59f   : > { %v3558_v54 = vand.u32 2147483647, %v12801_v58  ;;  %v3560_v9 = vand.u32 2147483648, %v12801_v58  ;;  %v3657_v8 = vmul.f32 %v12653_v42, %v3638_v30  ;;  %v3636_v37 = vmul.f32 %v3464_v19, %v12232_v55 }
 0x5a0   : > { %v3543_v39 = vsel %vm3542_vm2, %v8954_v22, %v3539_v14  ;;  %v3312_v47 = vmul.f32 0.5, %v3311_v21  ;;  %vm3318_vm15 = vcmp.eq.f32.partialorder %v12787_v6, 0.0  ;;  %vm2938_vm3 = vcmp.eq.f32.partialorder %v11736_v40, 0.0 }
 0x5a1   : > { %v3548_v18 = vsel %vm12817_vm6, %v3547_v41, %v3543_v39  ;;  %v3579_v33 = vsub.f32 1.0, %v3578_v25  ;;  %v3550_v31 = vmul.f32 %v12839_v16, %v12801_v58  ;;  %v12864_v13 = vmax.f32 %v12783_v57, 1e-06 }
 0x5a2   : > { %v12867_v12 = vadd.f32 %v12676_v0, %v3657_v8  ;;  %v3655_v55 = vmul.f32 %v12653_v42, %v3636_v37  ;;  %v3642_v22 = vmul.f32 %v3548_v18, %v12286_v7  ;;  %v3313_v26 = vsub.f32 1.5, %v3312_v47  ;;  %v8962_v60 = vpop.eup %8961 }
 0x5a3   : > { %vm2948_vm10 = vcmp.eq.f32.partialorder %v11761_v48, inf  ;;  %v3580_v34 = vmul.f32 %v8958_v5, %v3579_v33  ;;  %vm3583_vm0 = vweird.f32 %v8958_v5  ;;  %v3551_v41 = vsub.f32 1.0, %v3550_v31 }
 0x5a4   : > { %vm3555_vm6 = vweird.f32 %v12839_v16  ;;  %v3702_v57 = vsel %vm1960_vm14, %v12867_v12, -inf  ;;  %v12876_v50 = vadd.f32 %v12676_v0, %v3655_v55  ;;  %v3661_v62 = vmul.f32 %v12653_v42, %v3642_v22  ;;  %vm3584_vm8 = vmor %vm3582_vm9, %vm3583_vm0 }
 0x5a5   : > { %v3314_v53 = vmul.f32 %v8956_v4, %v3313_v26  ;;  %3703 = vmax.xlane.f32.xlu1 %v3702_v57  ;;  %v3581_v7 = vadd.f32 %v8958_v5, %v3580_v34  ;;  %v3552_v30 = vmul.f32 %v12839_v16, %v3551_v41  ;;  %v3358_v23 = vmul.f32 %v8962_v60, %v12827_v52  ;;  %vm3556_vm5 = vmor %vm3554_vm13, %vm3555_vm6 }
 0x5a6   : > { %8963 = vrcp.f32 %v12864_v13  ;;  %v3696_v14 = vsel %vm1960_vm14, %v12876_v50, -inf  ;;  %v12885_v21 = vadd.f32 %v12676_v0, %v3661_v62  ;;  %v3589_v4 = vor.u32 1.1754944e-38, %v3588_v45 }
 0x5a7   : > { %v3315_v19 = vmul.f32 %v3314_v53, %v12787_v6  ;;  %3697 = vmax.xlane.f32.xlu0 %v3696_v14  ;;  %v3585_v25 = vsel %vm3584_vm8, %v8958_v5, %v3581_v7  ;;  %v3553_v8 = vadd.f32 %v12839_v16, %v3552_v30  ;;  %vm3559_vm4 = vcmp.eq.f32.partialorder %v3558_v54, 8.507059e+37 }
 0x5a8   : > { %v3359_v37 = vmul.f32 %v8962_v60, %v3358_v23  ;;  %v3714_v39 = vsel %vm1960_vm14, %v12885_v21, -inf  ;;  %v3590_v18 = vsel %vm12848_vm11, %v3589_v4, %v3585_v25  ;;  %v3561_v28 = vor.u32 1.1754944e-38, %v3560_v9 }
 0x5a9   : > { %v3317_v47 = vsel %vm3316_vm7, %v12787_v6, %v3315_v19  ;;  %3715 = vmax.xlane.f32.xlu2 %v3714_v39  ;;  %v3645_v45 = vmul.f32 %v3590_v18, %v12284_v24  ;;  %v3557_v54 = vsel %vm3556_vm5, %v12839_v16, %v3553_v8  ;;  %v16007_v32 = vand.u32 2147483648, %v11736_v40 }
 0x5aa   : > { %v12907_v5 = vsel %vm3318_vm15, %v3319_v27, %v3317_v47  ;;  %v3360_v33 = vmul.f32 0.5, %v3359_v37  ;;  %v3041_v9 = vsub.f32 1.5, %v12776_v63  ;;  %v3562_v55 = vsel %vm3559_vm4, %v3561_v28, %v3557_v54 }
 0x5ab   : > { %v2940_v58 = vsel %vm2938_vm3, %v16007_v32, %v12412_v38  ;;  %v3372_v31 = vperm.slane %v12907_v5, 0  ;;  %v3664_v6 = vmul.f32 %v12678_v35, %v3645_v45  ;;  %v3643_v27 = vmul.f32 %v3562_v55, %v12246_v61 }
 0x5ac   : > { %v8964_v22 = vpop.eup %8963  ;;  %v3361_v24 = vsub.f32 1.5, %v3360_v33  ;;  %v12921_v16 = vmax.f32 %v12778_v11, 1e-06  ;;  %v2949_v40 = vsel %vm2948_vm10, %v11761_v48, %v12420_v56  ;;  %v3031_v38 = vmul.f32 %v12564_v46, %v15980_v15 }
 0x5ad   : > { %v3383_v63 = vmul.f32 %v3372_v31, %v2940_v58  ;;  %v3592_v26 = vmul.f32 %v8964_v22, %v12864_v13  ;;  %v12933_v34 = vadd.f32 %v12703_v10, %v3664_v6  ;;  %v3662_v61 = vmul.f32 %v12678_v35, %v3643_v27 }
 0x5ae   : > { %v3362_v11 = vmul.f32 %v8962_v60, %v3361_v24  ;;  %8965 = vrcp.f32 %v12921_v16  ;;  %v3042_v41 = vmul.f32 %v12526_v44, %v3041_v9  ;;  %vm3364_vm12 = vcmp.eq.f32.partialorder %v12827_v52, inf }
 0x5af   : > { %v3593_v56 = vsub.f32 1.0, %v3592_v26  ;;  %v3602_v46 = vand.u32 2147483648, %v12864_v13  ;;  %v3723_v57 = vsel %vm1960_vm14, %v12933_v34, -inf  ;;  %v12943_v62 = vadd.f32 %v12703_v10, %v3662_v61 }
 0x5b0   : > { %v3363_v53 = vmul.f32 %v3362_v11, %v12827_v52  ;;  %v12946_v7 = vmax.f32 %v3383_v63, 1e-06  ;;  %3724 = vmax.xlane.f32.xlu0 %v3723_v57  ;;  %v3367_v60 = vand.u32 2147483648, %v12827_v52  ;;  %vm3597_vm9 = vweird.f32 %v8964_v22  ;;  %v16009_v57 = vld [vmem:[#allocation111_spill] sm:$0xff] }
 0x5b1   : > { %v3594_v30 = vmul.f32 %v8964_v22, %v3593_v56  ;;  %v3600_v44 = vand.u32 2147483647, %v12864_v13  ;;  %v3717_v23 = vsel %vm1960_vm14, %v12943_v62, -inf  ;;  %vm3366_vm2 = vcmp.eq.f32.partialorder %v12827_v52, 0.0 }
 0x5b2   : > { %v3365_v14 = vsel %vm3364_vm12, %v12827_v52, %v3363_v53  ;;  %8967 = vrcp.f32 %v12946_v7  ;;  %vm2950_vm7 = vcmp.eq.f32.partialorder %v11761_v48, 0.0  ;;  %v3043_v19 = vmul.f32 %v3042_v41, %v15983_v29  ;;  %3718 = vmax.xlane.f32.xlu2 %v3717_v23 }
 0x5b3   : > { %v3595_v4 = vadd.f32 %v8964_v22, %v3594_v30  ;;  %vm3596_vm11 = vweird.f32 %v12864_v13  ;;  %v16008_v8 = vand.u32 2147483648, %v11761_v48  ;;  %vm3032_vm13 = vcmp.eq.f32.partialorder %v15980_v15, inf }
 0x5b4   : > { %v8966_v25 = vpop.eup %8965  ;;  %vm3034_vm15 = vcmp.eq.f32.partialorder %v15980_v15, 0.0  ;;  %vm3598_vm3 = vmor %vm3596_vm11, %vm3597_vm9  ;;  %v3603_v52 = vor.u32 1.1754944e-38, %v3602_v46  ;;  %v3368_v39 = vsel %vm3366_vm2, %v3367_v60, %v3365_v14  ;;  %vm3601_vm10 = vcmp.eq.f32.partialorder %v3600_v44, 8.507059e+37 }
 0x5b5   : > { %v2952_v37 = vsel %vm2950_vm7, %v16008_v8, %v2949_v40  ;;  %v3599_v47 = vsel %vm3598_vm3, %v8964_v22, %v3595_v4  ;;  %v3564_v18 = vmul.f32 %v8966_v25, %v12921_v16  ;;  %v3033_v28 = vsel %vm3032_vm13, %v15980_v15, %v3031_v38 }
 0x5b6   : > { %v3035_v13 = vand.u32 2147483648, %v15980_v15  ;;  %vm3044_vm0 = vcmp.eq.f32.partialorder %v15983_v29, inf  ;;  %v3604_v48 = vsel %vm3601_vm10, %v3603_v52, %v3599_v47  ;;  %v3572_v32 = vand.u32 2147483647, %v12921_v16 }
 0x5b7   : > { %v3045_v45 = vsel %vm3044_vm0, %v15983_v29, %v3043_v19  ;;  %v3646_v54 = vmul.f32 %v3604_v48, %v12316_v36  ;;  %v3565_v33 = vsub.f32 1.0, %v3564_v18  ;;  %vm3046_vm6 = vcmp.eq.f32.partialorder %v15983_v29, 0.0 }
 0x5b8   : > { %v8968_v58 = vpop.eup %8967  ;;  %v3047_v9 = vand.u32 2147483648, %v15983_v29  ;;  %v3376_v55 = vperm.slane %v3368_v39, 0  ;;  %v3574_v22 = vand.u32 2147483648, %v12921_v16  ;;  %vm3569_vm8 = vweird.f32 %v8966_v25 }
 0x5b9   : > { %v3665_v6 = vmul.f32 %v12653_v42, %v3646_v54  ;;  %v3566_v27 = vmul.f32 %v8966_v25, %v3565_v33  ;;  %v3494_v24 = vmul.f32 %v8968_v58, %v12946_v7  ;;  %v3036_v36 = vsel %vm3034_vm15, %v3035_v13, %v3033_v28 }
 0x5ba   : > { %v3048_v40 = vsel %vm3046_vm6, %v3047_v9, %v3045_v45  ;;  %v3384_v38 = vmul.f32 %v3372_v31, %v2952_v37  ;;  %vm3568_vm4 = vweird.f32 %v12921_v16  ;;  %vm3573_vm5 = vcmp.eq.f32.partialorder %v3572_v32, 8.507059e+37 }
 0x5bb   : > { %v12981_v29 = vadd.f32 %v12676_v0, %v3665_v6  ;;  %v3567_v63 = vadd.f32 %v8966_v25, %v3566_v27  ;;  %v3495_v26 = vsub.f32 1.0, %v3494_v24  ;;  %v3392_v61 = vmul.f32 %v3376_v55, %v3048_v40  ;;  %vm3570_vm12 = vmor %vm3568_vm4, %vm3569_vm8  ;;  %v13002_v24 = vpop.permute.xlu0 %4544 }
 0x5bc   : > { %v3575_v11 = vor.u32 1.1754944e-38, %v3574_v22  ;;  %v3502_v41 = vand.u32 2147483647, %v12946_v7  ;;  %v3504_v15 = vand.u32 2147483648, %v12946_v7  ;;  %vm3499_vm9 = vweird.f32 %v8968_v58 }
 0x5bd   : > { %v3726_v56 = vsel %vm1960_vm14, %v12981_v29, -inf  ;;  %v3571_v5 = vsel %vm3570_vm12, %v8966_v25, %v3567_v63  ;;  %v3496_v31 = vmul.f32 %v8968_v58, %v3495_v26  ;;  %v3391_v16 = vmul.f32 %v3376_v55, %v3036_v36 }
 0x5be   : > { %3727 = vmax.xlane.f32.xlu0 %v3726_v56  ;;  %v3576_v46 = vsel %vm3573_vm5, %v3575_v11, %v3571_v5  ;;  %vm3498_vm2 = vweird.f32 %v12946_v7  ;;  %vm3503_vm11 = vcmp.eq.f32.partialorder %v3502_v41, 8.507059e+37  ;;  %v3505_v30 = vor.u32 1.1754944e-38, %v3504_v15 }
 0x5bf   : > { %v3644_v53 = vmul.f32 %v3576_v46, %v16009_v57  ;;  %v3497_v60 = vadd.f32 %v8968_v58, %v3496_v31  ;;  %vm3500_vm7 = vmor %vm3498_vm2, %vm3499_vm9  ;;  %v3408_v14 = vmax.f32 %v3392_v61, 1e-06  ;;  %v3400_v19 = vmax.f32 %v3384_v38, 1e-06 }
 0x5c0   : > { %v3407_v25 = vmax.f32 %v3391_v16, 1e-06 }
 0x5c1   : > { %v3663_v44 = vmul.f32 %v12653_v42, %v3644_v53  ;;  %v3501_v23 = vsel %vm3500_vm7, %v8968_v58, %v3497_v60  ;;  %8969 = vrcp.f32 %v3408_v14  ;;  %v3628_v54 = vand.u32 2147483647, %v3408_v14 }
 0x5c2   : > { %v3506_v4 = vsel %vm3503_vm11, %v3505_v30, %v3501_v23  ;;  %8971 = vrcp.f32 %v3400_v19  ;;  %v3630_v58 = vand.u32 2147483648, %v3408_v14  ;;  %v3516_v9 = vand.u32 2147483647, %v3400_v19 }
 0x5c3   : > { %v12991_v8 = vadd.f32 %v12676_v0, %v3663_v44  ;;  %v3639_v37 = vmul.f32 %v3506_v4, %v12561_v51  ;;  %8973 = vrcp.f32 %v3407_v25  ;;  %v3518_v55 = vand.u32 2147483648, %v3400_v19  ;;  %v13015_v4 = vpop.permute.xlu2 %4554 }
 0x5c4   : > { %vm3624_vm3 = vweird.f32 %v3408_v14  ;;  %vm3512_vm10 = vweird.f32 %v3400_v19  ;;  %v3614_v36 = vand.u32 2147483647, %v3407_v25  ;;  %v3616_v40 = vand.u32 2147483648, %v3407_v25 }
 0x5c5   : > { %v3720_v7 = vsel %vm1960_vm14, %v12991_v8, -inf  ;;  %v3658_v52 = vmul.f32 %v12678_v35, %v3639_v37  ;;  %vm3629_vm8 = vcmp.eq.f32.partialorder %v3628_v54, 8.507059e+37  ;;  %v3631_v61 = vor.u32 1.1754944e-38, %v3630_v58  ;;  %v13027_v37 = vpop.permute.xlu1 %4542 }
 0x5c6   : > { %3721 = vmax.xlane.f32.xlu2 %v3720_v7  ;;  %v3519_v11 = vor.u32 1.1754944e-38, %v3518_v55  ;;  %vm3610_vm5 = vweird.f32 %v3407_v25  ;;  %vm3517_vm12 = vcmp.eq.f32.partialorder %v3516_v9, 8.507059e+37  ;;  %v3617_v16 = vor.u32 1.1754944e-38, %v3616_v40 }
 0x5c7   : > { %v12998_v39 = vadd.f32 %v12703_v10, %v3658_v52  ;;  %v8970_v47 = vpop.eup %8969  ;;  %vm3615_vm2 = vcmp.eq.f32.partialorder %v3614_v36, 8.507059e+37 }
 0x5c8   : > { %v8972_v28 = vpop.eup %8971  ;;  %v3620_v13 = vmul.f32 %v8970_v47, %v3408_v14  ;;  %vm3625_vm13 = vweird.f32 %v8970_v47 }
 0x5c9   : > { %v3705_v18 = vsel %vm1960_vm14, %v12998_v39, -inf  ;;  %v3508_v51 = vmul.f32 %v8972_v28, %v3400_v19  ;;  %v8974_v48 = vpop.eup %8973  ;;  %vm3513_vm15 = vweird.f32 %v8972_v28  ;;  %vm3626_vm0 = vmor %vm3624_vm3, %vm3625_vm13 }
 0x5ca   : > { %3706 = vmax.xlane.f32.xlu1 %v3705_v18  ;;  %v3621_v45 = vsub.f32 1.0, %v3620_v13  ;;  %v3606_v32 = vmul.f32 %v8974_v48, %v3407_v25  ;;  %vm3611_vm6 = vweird.f32 %v8974_v48  ;;  %vm3514_vm4 = vmor %vm3512_vm10, %vm3513_vm15 }
 0x5cb   : > { %v3509_v33 = vsub.f32 1.0, %v3508_v51  ;;  %vm3612_vm9 = vmor %vm3610_vm5, %vm3611_vm6  ;;  %v13031_v7 = vpop.permute.xlu2 %4548 }
 0x5cc   : > { %v3622_v22 = vmul.f32 %v8970_v47, %v3621_v45  ;;  %v3607_v27 = vsub.f32 1.0, %v3606_v32 }
 0x5cd   : > { %v3510_v6 = vmul.f32 %v8972_v28, %v3509_v33 }
 0x5ce   : > { %v3623_v38 = vadd.f32 %v8970_v47, %v3622_v22  ;;  %v3608_v26 = vmul.f32 %v8974_v48, %v3607_v27 }
 0x5cf   : > { %v3511_v63 = vadd.f32 %v8972_v28, %v3510_v6 }
 0x5d0   : > { %v3627_v41 = vsel %vm3626_vm0, %v8970_v47, %v3623_v38  ;;  %v3609_v56 = vadd.f32 %v8974_v48, %v3608_v26  ;;  %v13035_v47 = vpop.permute.xlu1 %4556 }
 0x5d1   : > { %v3515_v15 = vsel %vm3514_vm4, %v8972_v28, %v3511_v63  ;;  %v3632_v5 = vsel %vm3629_vm8, %v3631_v61, %v3627_v41 }
 0x5d2   : > { %v3520_v31 = vsel %vm3517_vm12, %v3519_v11, %v3515_v15  ;;  %v3648_v46 = vmul.f32 %v3632_v5, %v12744_v20  ;;  %v3613_v53 = vsel %vm3612_vm9, %v8974_v48, %v3609_v56  ;;  %v13017_v20 = vpop.permute.xlu0 %4546 }
 0x5d3   : > { %v3640_v57 = vmul.f32 %v3520_v31, %v12615_v1  ;;  %v3618_v60 = vsel %vm3615_vm2, %v3617_v16, %v3613_v53  ;;  %v13037_v18 = vpop.xlane.xlu2 %4585 }
 0x5d4   : > { %v3667_v30 = vmul.f32 %v12653_v42, %v3648_v46  ;;  %v3647_v23 = vmul.f32 %v3618_v60, %v12665_v17  ;;  %vm4639_vm7 = vcmp.eq.f32.partialorder %v13037_v18, inf  ;;  %vm4641_vm11 = vcmp.eq.f32.partialorder %v13037_v18, 0.0 }
 0x5d5   : > { %v3659_v44 = vmul.f32 %v12653_v42, %v3640_v57 }
 0x5d6   : > { %v13010_v14 = vadd.f32 %v12676_v0, %v3667_v30  ;;  %v3666_v42 = vmul.f32 %v12678_v35, %v3647_v23 }
 0x5d7   : > { %v13013_v19 = vadd.f32 %v12676_v0, %v3659_v44 }
 0x5d8   : > { %v3732_v1 = vsel %vm1960_vm14, %v13010_v14, -inf  ;;  %v13025_v17 = vadd.f32 %v12703_v10, %v3666_v42  ;;  %v13041_v28 = vpop.permute.xlu1 %4558 }
 0x5d9   : > { %v3708_v25 = vsel %vm1960_vm14, %v13013_v19, -inf  ;;  %3733 = vmax.xlane.f32.xlu2 %v3732_v1 }
 0x5da   : > { %3709 = vmax.xlane.f32.xlu1 %v3708_v25  ;;  %v3729_v0 = vsel %vm1960_vm14, %v13025_v17, -inf  ;;  %v13033_v52 = vpop.permute.xlu0 %4560 }
 0x5db   : > { %v13045_v13 = vpop.xlane.xlu2 %4609 }
 0x5dc   : > { %vm4735_vm3 = vcmp.eq.f32.partialorder %v13045_v13, inf  ;;  %vm4737_vm10 = vcmp.eq.f32.partialorder %v13045_v13, 0.0 }
 0x5e0   : > { %v13047_v45 = vpop.permute.xlu1 %4562 }
 0x5e2   : > { %3730 = vmax.xlane.f32.xlu1 %v3729_v0  ;;  %v13039_v35 = vpop.permute.xlu0 %4550 }
 0x5e8   : > { %v13053_v22 = vpop.permute.xlu1 %4564 }
 0x5ea   : > { %v13043_v10 = vpop.xlane.xlu0 %4588 }
 0x5eb   : > { %vm4651_vm13 = vcmp.eq.f32.partialorder %v13043_v10, inf  ;;  %vm4653_vm15 = vcmp.eq.f32.partialorder %v13043_v10, 0.0 }
 0x5f0   : > { %v13061_v63 = vpop.xlane.xlu1 %4591 }
 0x5f1   : > { %vm4663_vm0 = vcmp.eq.f32.partialorder %v13061_v63, inf  ;;  %vm4665_vm6 = vcmp.eq.f32.partialorder %v13061_v63, 0.0 }
 0x5f9   : > { %v3692_v51 = vpop.xlane.xlu2 %3691 }
 0x5fa   : > { %v3736_v33 = vsub.f32 %v12689_v49, %v3692_v51 }
 0x5fb   : > { %v3689_v48 = vpop.xlane.xlu0 %3688 }
 0x5fc   : > { %v3735_v54 = vsub.f32 %v12712_v59, %v3689_v48  ;;  %v3753_v58 = vmul.f32 1.442695, %v3736_v33 }
 0x5fe   : > { %v3751_v32 = vmul.f32 1.442695, %v3735_v54 }
 0x600   : > { %8975 = vpow2.f32 %v3751_v32  ;;  %v3701_v11 = vpop.xlane.xlu1 %3700 }
 0x601   : > { %8977 = vpow2.f32 %v3753_v58  ;;  %v3739_v31 = vsub.f32 %v12741_v3, %v3701_v11 }
 0x603   : > { %v3695_v9 = vpop.xlane.xlu0 %3694  ;;  %v3759_v53 = vmul.f32 1.442695, %v3739_v31 }
 0x604   : > { %v3737_v6 = vsub.f32 %v12760_v2, %v3695_v9 }
 0x606   : > { %v13051_v55 = vpop.eup %8975  ;;  %v3755_v36 = vmul.f32 1.442695, %v3737_v6 }
 0x607   : > { %v3783_v27 = vsel %vm1960_vm14, %v13051_v55, 0.0  ;;  %v13059_v49 = vpop.eup %8977 }
 0x608   : > { %3784 = vadd.xlane.f32.xlu0 %v3783_v27  ;;  %8979 = vpow2.f32 %v3755_v36  ;;  %v3786_v26 = vsel %vm1960_vm14, %v13059_v49, 0.0 }
 0x60b   : > { %v3713_v40 = vpop.xlane.xlu2 %3712 }
 0x60c   : > { %v3743_v59 = vsub.f32 %v12804_v43, %v3713_v40 }
 0x60e   : > { %v3767_v38 = vmul.f32 1.442695, %v3743_v59  ;;  %v13065_v2 = vpop.eup %8979 }
 0x60f   : > { %v3789_v43 = vsel %vm1960_vm14, %v13065_v2, 0.0 }
 0x610   : > { %8981 = vpow2.f32 %v3767_v38  ;;  %3787 = vadd.xlane.f32.xlu0 %v3786_v26 }
 0x616   : > { %v13067_v61 = vpop.eup %8981 }
 0x617   : > { %v3807_v41 = vsel %vm1960_vm14, %v13067_v61, 0.0 }
 0x618   : > { %3808 = vadd.xlane.f32.xlu2 %v3807_v41  ;;  %3790 = vadd.xlane.f32.xlu0 %v3789_v43  ;;  %v3704_v60 = vpop.xlane.xlu1 %3703 }
 0x619   : > { %v3740_v44 = vsub.f32 %v12867_v12, %v3704_v60 }
 0x61a   : > { %v3698_v15 = vpop.xlane.xlu0 %3697 }
 0x61b   : > { %v3738_v56 = vsub.f32 %v12876_v50, %v3698_v15  ;;  %v3761_v0 = vmul.f32 1.442695, %v3740_v44 }
 0x61c   : > { %v3716_v5 = vpop.xlane.xlu2 %3715 }
 0x61d   : > { %v3757_v16 = vmul.f32 1.442695, %v3738_v56  ;;  %v3744_v46 = vsub.f32 %v12885_v21, %v3716_v5  ;;  %v4611_v5 = vsel %vm784_vm1, %v13015_v4, 0.0 }
 0x61f   : > { %8983 = vpow2.f32 %v3757_v16  ;;  %v3769_v57 = vmul.f32 1.442695, %v3744_v46 }
 0x621   : > { %8985 = vpow2.f32 %v3769_v57  ;;  %v4614_v57 = vsel %vm784_vm1, %v13035_v47, 0.0 }
 0x622   : > { %8987 = vpow2.f32 %v3759_v53 }
 0x623   : > { %v3725_v25 = vpop.xlane.xlu0 %3724 }
 0x624   : > { %v3747_v12 = vsub.f32 %v12933_v34, %v3725_v25  ;;  %v4593_v25 = vsel %vm784_vm1, %v13027_v37, 0.0 }
 0x625   : > { %v13076_v30 = vpop.eup %8983  ;;  %v3719_v23 = vpop.xlane.xlu2 %3718 }
 0x626   : > { %v3745_v1 = vsub.f32 %v12943_v62, %v3719_v23  ;;  %v3792_v50 = vsel %vm1960_vm14, %v13076_v30, 0.0  ;;  %v3775_v54 = vmul.f32 1.442695, %v3747_v12 }
 0x627   : > { %v13082_v3 = vpop.eup %8985  ;;  %3793 = vadd.xlane.f32.xlu2 %v3792_v50  ;;  %v4623_v50 = vsel %vm784_vm1, %v13047_v45, 0.0  ;;  %v4605_v45 = vsel %vm784_vm1, %v13039_v35, 0.0 }
 0x628   : > { %v3771_v21 = vmul.f32 1.442695, %v3745_v1  ;;  %v3810_v42 = vsel %vm1960_vm14, %v13082_v3, 0.0  ;;  %v13086_v51 = vpop.eup %8987  ;;  %v4617_v1 = vsel %vm784_vm1, %v13041_v28, 0.0  ;;  %v4599_v28 = vsel %vm784_vm1, %v13017_v20, 0.0 }
 0x629   : > { %3811 = vadd.xlane.f32.xlu1 %v3810_v42  ;;  %v3795_v62 = vsel %vm1960_vm14, %v13086_v51, 0.0  ;;  %v16010_v42 = vld [vmem:[#allocation91_spill] sm:$0xff] }
 0x62a   : > { %8989 = vpow2.f32 %v3771_v21  ;;  %v4620_v21 = vsel %vm784_vm1, %v13033_v52, 0.0  ;;  %v16011_v52 = vld [vmem:[#allocation126_spill] sm:$0xff] }
 0x62b   : > { %8991 = vpow2.f32 %v3761_v0 }
 0x62c   : > { %8993 = vpow2.f32 %v3775_v54 }
 0x62f   : > { %3796 = vadd.xlane.f32.xlu2 %v3795_v62  ;;  %v4626_v62 = vsel %vm784_vm1, %v13053_v22, 0.0  ;;  %v16013_v22 = vld [vmem:[#allocation121_spill] sm:$0xff] }
 0x630   : > { %v13091_v48 = vpop.eup %8989 }
 0x631   : > { %v3728_v33 = vpop.xlane.xlu0 %3727  ;;  %v3813_v32 = vsel %vm1960_vm14, %v13091_v48, 0.0  ;;  %v13095_v58 = vpop.eup %8991 }
 0x632   : > { %3814 = vadd.xlane.f32.xlu1 %v3813_v32  ;;  %v3748_v9 = vsub.f32 %v12981_v29, %v3728_v33  ;;  %v3798_v34 = vsel %vm1960_vm14, %v13095_v58, 0.0  ;;  %v13101_v40 = vpop.eup %8993  ;;  %v16012_v32 = vld [vmem:[#allocation141_spill] sm:$0xff] }
 0x633   : > { %v3819_v26 = vsel %vm1960_vm14, %v13101_v40, 0.0 }
 0x634   : > { %v3777_v6 = vmul.f32 1.442695, %v3748_v9 }
 0x636   : > { %8995 = vpow2.f32 %v3777_v6 }
 0x637   : > { %3799 = vadd.xlane.f32.xlu2 %v3798_v34 }
 0x639   : > { %v3722_v27 = vpop.xlane.xlu2 %3721 }
 0x63a   : > { %v3746_v36 = vsub.f32 %v12991_v8, %v3722_v27 }
 0x63c   : > { %v3773_v59 = vmul.f32 1.442695, %v3746_v36  ;;  %v13106_v41 = vpop.eup %8995  ;;  %v16014_v36 = vld [vmem:[#allocation138_spill] sm:$0xff] }
 0x63d   : > { %v3707_v38 = vpop.xlane.xlu1 %3706  ;;  %v3822_v15 = vsel %vm1960_vm14, %v13106_v41, 0.0 }
 0x63e   : > { %8997 = vpow2.f32 %v3773_v59  ;;  %v3741_v29 = vsub.f32 %v12998_v39, %v3707_v38  ;;  %v16015_v38 = vld [vmem:[#allocation128_spill] sm:$0xff] }
 0x63f   : > { %3820 = vadd.xlane.f32.xlu2 %v3819_v26  ;;  %v16016_v26 = vld [vmem:[#allocation136_spill] sm:$0xff] }
 0x640   : > { %v3763_v11 = vmul.f32 1.442695, %v3741_v29 }
 0x642   : > { %8999 = vpow2.f32 %v3763_v11 }
 0x644   : > { %v13108_v43 = vpop.eup %8997 }
 0x645   : > { %v3816_v8 = vsel %vm1960_vm14, %v13108_v43, 0.0 }
 0x646   : > { %3817 = vadd.xlane.f32.xlu1 %v3816_v8 }
 0x647   : > { %3823 = vadd.xlane.f32.xlu2 %v3822_v15  ;;  %v4602_v15 = vsel %vm784_vm1, %v13031_v7, 0.0 }
 0x648   : > { %v13114_v56 = vpop.eup %8999 }
 0x649   : > { %v3801_v39 = vsel %vm1960_vm14, %v13114_v56, 0.0 }
 0x64a   : > { %3802 = vadd.xlane.f32.xlu0 %v3801_v39 }
 0x64c   : > { %v13148_v12 = vpop.xlane.xlu2 %3733 }
 0x64d   : > { %v3710_v31 = vpop.xlane.xlu1 %3709 }
 0x64e   : > { %4612 = vadd.xlane.f32.xlu1 %v4611_v5  ;;  %v3742_v16 = vsub.f32 %v13013_v19, %v3710_v31  ;;  %v16018_v31 = vld [vmem:[#allocation104_spill] sm:$0xff] }
 0x650   : > { %v3765_v46 = vmul.f32 1.442695, %v3742_v16 }
 0x652   : > { %9001 = vpow2.f32 %v3765_v46 }
 0x655   : > { %v3731_v53 = vpop.xlane.xlu1 %3730 }
 0x656   : > { %4615 = vadd.xlane.f32.xlu1 %v4614_v57  ;;  %v3749_v60 = vsub.f32 %v13025_v17, %v3731_v53  ;;  %v4596_v17 = vsel %vm784_vm1, %v13002_v24, 0.0  ;;  %v16019_v53 = vld [vmem:[#allocation114_spill] sm:$0xff] }
 0x658   : > { %v3779_v44 = vmul.f32 1.442695, %v3749_v60  ;;  %v13124_v23 = vpop.eup %9001  ;;  %v16021_v60 = vld [vmem:[#allocation131_spill] sm:$0xff] }
 0x659   : > { %v3804_v4 = vsel %vm1960_vm14, %v13124_v23, 0.0 }
 0x65a   : > { %9003 = vpow2.f32 %v3779_v44  ;;  %3805 = vadd.xlane.f32.xlu0 %v3804_v4  ;;  %v16022_v44 = vld [vmem:[#allocation105_spill] sm:$0xff]  ;;  %v16024_v4 = vld [vmem:[#allocation115_spill] sm:$0xff] }
 0x65e   : > { %4618 = vadd.xlane.f32.xlu1 %v4617_v1 }
 0x660   : > { %v13130_v19 = vpop.eup %9003 }
 0x661   : > { %v3825_v47 = vsel %vm1960_vm14, %v13130_v19, 0.0 }
 0x662   : > { %3826 = vadd.xlane.f32.xlu2 %v3825_v47  ;;  %4597 = vadd.xlane.f32.xlu0 %v4596_v17  ;;  %v16025_v47 = vld [vmem:[#allocation127_spill] sm:$0xff]  ;;  %v16026_v17 = vld [vmem:[#allocation116_spill] sm:$0xff] }
 0x666   : > { %4624 = vadd.xlane.f32.xlu1 %v4623_v50 }
 0x66a   : > { %4594 = vadd.xlane.f32.xlu0 %v4593_v25  ;;  %v16027_v25 = vld [vmem:[#allocation132_spill] sm:$0xff] }
 0x672   : > { %4600 = vadd.xlane.f32.xlu0 %v4599_v28 }
 0x67a   : > { %4566 = vrot.lane.b32.xlu2 %v16010_v42, %s9636_s19  ;;  %4621 = vadd.xlane.f32.xlu0 %v4620_v21  ;;  %v16028_v21 = vld [vmem:[#allocation35_spill] sm:$0xff] }
 0x67b   : > { %v3785_v24 = vpop.xlane.xlu0 %3784 }
 0x67c   : > { %9005 = vrcp.f32 %v3785_v24 }
 0x682   : > { %v9006_v0 = vpop.eup %9005  ;;  %4606 = vadd.xlane.f32.xlu0 %v4605_v45 }
 0x683   : > { %v3847_v37 = vmul.f32 %v9006_v0, %v13051_v55  ;;  %v3788_v20 = vpop.xlane.xlu0 %3787 }
 0x684   : > { %9007 = vrcp.f32 %v3788_v20 }
 0x685   : > { %8272 = vmatmul.msk.f32.vlgmr.msra.gmra.mxu0 %vm1960_vm14, %v3847_v37  ;;  %v16029_v37 = vld [vmem:[#allocation93_spill] sm:$0xff] }
 0x686   : > { %8288 = vmatpush.xpose.msk.msra.mxu0 %vm784_vm1, %v16011_v52  ;;  %v16031_v52 = vld [vmem:[#allocation98_spill] sm:$0xff] }
 0x68a   : > { %v9008_v54 = vpop.eup %9007  ;;  %8289 = vmatpush.xpose.msk.msra.mxu0 %vm784_vm1, %v16012_v32  ;;  %4627 = vadd.xlane.f32.xlu0 %v4626_v62  ;;  %v16032_v62 = vld [vmem:[#allocation135_spill] sm:$0xff]  ;;  %v16034_v32 = vld [vmem:[#allocation112_spill] sm:$0xff] }
 0x68b   : > { %v3809_v33 = vpop.xlane.xlu2 %3808  ;;  %v3791_v35 = vpop.xlane.xlu0 %3790  ;;  %v3848_v55 = vmul.f32 %v9008_v54, %v13059_v49 }
 0x68c   : > { %9009 = vrcp.f32 %v3809_v33 }
 0x68d   : > { %9011 = vrcp.f32 %v3791_v35  ;;  %8273 = vmatmul.msk.f32.gmra.mxu0 %vm1960_vm14, %v3848_v55  ;;  %v16035_v35 = vld [vmem:[#allocation143_spill] sm:$0xff] }
 0x692   : > { %v9010_v9 = vpop.eup %9009 }
 0x693   : > { %v9012_v34 = vpop.eup %9011  ;;  %v3855_v6 = vmul.f32 %v9010_v9, %v13067_v61  ;;  %v16036_v9 = vld [vmem:[#allocation30_spill] sm:$0xff] }
 0x694   : > { %v3849_v27 = vmul.f32 %v9012_v34, %v13065_v2  ;;  %v16017_v2 = vld [vmem:[#allocation148_spill] sm:$0xff]  ;;  %v16037_v34 = vld [vmem:[#allocation145_spill] sm:$0xff] }
 0x695   : > { %8280 = vmatmul.msk.f32.vlgmr.msrb.gmra.mxu0 %vm1960_vm14, %v3855_v6  ;;  %v16039_v6 = vld [vmem:[#allocation139_spill] sm:$0xff] }
 0x696   : > { %8274 = vmatmul.msk.f32.vlgmr.msrb.gmra.mxu1 %vm1960_vm14, %v3849_v27  ;;  %8304 = vmatpush.xpose.msk.msrb.mxu0 %vm784_vm1, %v16014_v36  ;;  %v16040_v27 = vld [vmem:[#allocation94_spill] sm:$0xff]  ;;  %v16042_v36 = vmov 1.0  }
 0x697   : > { %8292 = vmatpush.xpose.msk.msrb.mxu1 %vm784_vm1, %v16013_v22 }
 0x69a   : > { %v3794_v49 = vpop.xlane.xlu2 %3793  ;;  %8305 = vmatpush.xpose.msk.msrb.mxu0 %vm784_vm1, %v16016_v26  ;;  %v16046_v26 = vld [vmem:[#allocation60_spill] sm:$0xff] }
 0x69b   : > { %9013 = vrcp.f32 %v3794_v49  ;;  %8293 = vmatpush.xpose.msk.msrb.mxu1 %vm784_vm1, %v16015_v38  ;;  %v16043_v49 = vld [vmem:[#allocation113_spill] sm:$0xff]  ;;  %v16045_v38 = vld [vmem:[#allocation119_spill] sm:$0xff] }
 0x69c   : > { %v3812_v59 = vpop.xlane.xlu1 %3811 }
 0x69d   : > { %9015 = vrcp.f32 %v3812_v59  ;;  %v16044_v59 = vld [vmem:[#allocation129_spill] sm:$0xff] }
 0x69e   : > { %8679 = vrot.lane.b32.xlu0 %v16017_v2, %s9637_s2  ;;  %v16047_v2 = vld [vmem:[#allocation123_spill] sm:$0xff] }
 0x6a1   : > { %v9014_v61 = vpop.eup %9013 }
 0x6a2   : > { %v3797_v29 = vpop.xlane.xlu2 %3796  ;;  %v3850_v11 = vmul.f32 %v9014_v61, %v13076_v30 }
 0x6a3   : > { %v9016_v8 = vpop.eup %9015  ;;  %9017 = vrcp.f32 %v3797_v29  ;;  %4603 = vadd.xlane.f32.xlu2 %v4602_v15  ;;  %v16048_v29 = vld [vmem:[#allocation96_spill] sm:$0xff] }
 0x6a4   : > { %8275 = vmatmul.msk.f32.gmra.mxu1 %vm1960_vm14, %v3850_v11  ;;  %v3856_v39 = vmul.f32 %v9016_v8, %v13082_v3  ;;  %v16020_v3 = vld [vmem:[#allocation133_spill] sm:$0xff]  ;;  %v16049_v15 = vld [vmem:[#allocation36_spill] sm:$0xff] }
 0x6a5   : > { %v3815_v5 = vpop.xlane.xlu1 %3814 }
 0x6a6   : > { %9019 = vrcp.f32 %v3815_v5  ;;  %8281 = vmatmul.msk.f32.gmra.mxu0 %vm1960_vm14, %v3856_v39  ;;  %8689 = vrot.lane.b32.xlu0 %v16018_v31, %s9637_s2  ;;  %v16050_v5 = vld [vmem:[#allocation92_spill] sm:$0xff] }
 0x6a9   : > { %v9018_v16 = vpop.eup %9017 }
 0x6aa   : > { %v3851_v30 = vmul.f32 %v9018_v16, %v13086_v51  ;;  %v3800_v46 = vpop.xlane.xlu2 %3799  ;;  %v16023_v51 = vld [vmem:[#allocation107_spill] sm:$0xff]  ;;  %v16051_v16 = vld [vmem:[#allocation137_spill] sm:$0xff] }
 0x6ab   : > { %9021 = vrcp.f32 %v3800_v46 }
 0x6ac   : > { %v9020_v57 = vpop.eup %9019  ;;  %8276 = vmatmul.msk.f32.vlgmr.msra.gmra.mxu2 %vm1960_vm14, %v3851_v30  ;;  %v16052_v30 = vld [vmem:[#allocation45_spill] sm:$0xff] }
 0x6ad   : > { %v3857_v7 = vmul.f32 %v9020_v57, %v13091_v48  ;;  %8296 = vmatpush.xpose.msk.msra.mxu2 %vm784_vm1, %v16019_v53  ;;  %v16054_v57 = vld [vmem:[#allocation90_spill] sm:$0xff] }
 0x6ae   : > { %8290 = vmatmul.msk.f32.vlgmr.msra.gmra.mxu0 %vm784_vm1, %v16020_v3  ;;  %8699 = vrot.lane.b32.xlu0 %v16023_v51, %s9637_s2  ;;  %v16056_v3 = vld [vmem:[#allocation38_spill] sm:$0xff]  ;;  %v16057_v51 = vld [vmem:[#allocation144_spill] sm:$0xff] }
 0x6af   : > { %8282 = vmatmul.msk.f32.vlgmr.msra.gmra.mxu1 %vm1960_vm14, %v3857_v7  ;;  %8320 = vmatpush.xpose.msk.msra.mxu0 %vm784_vm1, %v16021_v60  ;;  %v16055_v7 = vld [vmem:[#allocation86_spill] sm:$0xff] }
 0x6b0   : > { %8308 = vmatpush.xpose.msk.msra.mxu1 %vm784_vm1, %v16022_v44 }
 0x6b1   : > { %8297 = vmatpush.xpose.msk.msra.mxu2 %vm784_vm1, %v16024_v4  ;;  %v9022_v48 = vpop.eup %9021  ;;  %v16058_v4 = vld [vmem:[#allocation147_spill] sm:$0xff] }
 0x6b2   : > { %v3821_v1 = vpop.xlane.xlu2 %3820  ;;  %v3852_v50 = vmul.f32 %v9022_v48, %v13095_v58  ;;  %v16030_v58 = vld [vmem:[#allocation149_spill] sm:$0xff] }
 0x6b3   : > { %9023 = vrcp.f32 %v3821_v1  ;;  %8321 = vmatpush.xpose.msk.msra.mxu0 %vm784_vm1, %v16025_v47  ;;  %v16059_v1 = vld [vmem:[#allocation102_spill] sm:$0xff]  ;;  %v16061_v47 = vld [vmem:[#allocation88_spill] sm:$0xff] }
 0x6b4   : > { %8309 = vmatpush.xpose.msk.msra.mxu1 %vm784_vm1, %v16026_v17  ;;  %8277 = vmatmul.msk.f32.gmra.mxu2 %vm1960_vm14, %v3852_v50  ;;  %v16062_v50 = vld [vmem:[#allocation108_spill] sm:$0xff] }
 0x6b6   : > { %8291 = vmatmul.msk.f32.gmra.mxu0 %vm784_vm1, %v16027_v25  ;;  %6044 = vrot.lane.b32.xlu0 %v16028_v21, %s9638_s7  ;;  %v16063_v25 = vld [vmem:[#allocation40_spill] sm:$0xff] }
 0x6b9   : > { %v3818_v28 = vpop.xlane.xlu1 %3817  ;;  %v9024_v24 = vpop.eup %9023 }
 0x6ba   : > { %9025 = vrcp.f32 %v3818_v28  ;;  %v3824_v45 = vpop.xlane.xlu2 %3823  ;;  %v3859_v0 = vmul.f32 %v9024_v24, %v13101_v40  ;;  %v16033_v40 = vld [vmem:[#allocation51_spill] sm:$0xff]  ;;  %v16064_v24 = vld [vmem:[#allocation130_spill] sm:$0xff] }
 0x6bb   : > { %9027 = vrcp.f32 %v3824_v45  ;;  %8669 = vrot.lane.b32.xlu2 %v16029_v37, %s9637_s2  ;;  %v16065_v45 = vld [vmem:[#allocation106_spill] sm:$0xff] }
 0x6bc   : > { %8284 = vmatmul.msk.f32.vlgmr.msrb.gmra.mxu2 %vm1960_vm14, %v3859_v0  ;;  %v16066_v0 = vld [vmem:[#allocation47_spill] sm:$0xff] }
 0x6bd   : > { %8312 = vmatpush.xpose.msk.msrb.mxu2 %vm784_vm1, %v16032_v62  ;;  %v3803_v22 = vpop.xlane.xlu0 %3802  ;;  %v16070_v62 = vld [vmem:[#allocation50_spill] sm:$0xff] }
 0x6be   : > { %8306 = vmatmul.msk.f32.vlgmr.msrb.gmra.mxu0 %vm784_vm1, %v16030_v58  ;;  %6161 = vrot.lane.b32.xlu0 %v16033_v40, %s9638_s7  ;;  %9029 = vrcp.f32 %v3803_v22  ;;  %v16068_v58 = vld [vmem:[#allocation25_spill] sm:$0xff] }
 0x6bf   : > { %8332 = vmatpush.xpose.msk.msrb.mxu0 %vm784_vm1, %v16031_v52  ;;  %v16069_v52 = vld [vmem:[#allocation48_spill] sm:$0xff] }
 0x6c0   : > { %v9026_v20 = vpop.eup %9025 }
 0x6c1   : > { %v3858_v54 = vmul.f32 %v9026_v20, %v13108_v43  ;;  %v9028_v33 = vpop.eup %9027  ;;  %8313 = vmatpush.xpose.msk.msrb.mxu2 %vm784_vm1, %v16035_v35  ;;  %v16038_v43 = vld [vmem:[#allocation44_spill] sm:$0xff]  ;;  %v16072_v35 = vld [vmem:[#allocation54_spill] sm:$0xff] }
 0x6c2   : > { %v3860_v55 = vmul.f32 %v9028_v33, %v13106_v41  ;;  %v16041_v41 = vld [vmem:[#allocation110_spill] sm:$0xff]  ;;  %v8673_v33 = vpack.i.bf16 %v16033_v40, %v16028_v21 }
 0x6c3   : > { %8283 = vmatmul.msk.f32.gmra.mxu1 %vm1960_vm14, %v3858_v54  ;;  %8333 = vmatpush.xpose.msk.msrb.mxu0 %vm784_vm1, %v16034_v32  ;;  %v16071_v54 = vld [vmem:[#allocation57_spill] sm:$0xff] }
 0x6c4   : > { %6005 = vrot.lane.b32.xlu2 %v16036_v9, %s9638_s7  ;;  %8285 = vmatmul.msk.f32.gmra.mxu2 %vm1960_vm14, %v3860_v55  ;;  %v9030_v61 = vpop.eup %9029  ;;  %v16073_v55 = vld [vmem:[#allocation39_spill] sm:$0xff] }
 0x6c5   : > { %v3853_v11 = vmul.f32 %v9030_v61, %v13114_v56  ;;  %v16053_v56 = vld [vmem:[#allocation142_spill] sm:$0xff]  ;;  %v13330_v9 = vpack.i.bf16 %v16063_v25, %v16073_v55 }
 0x6c6   : > { %8307 = vmatmul.msk.f32.gmra.mxu0 %vm784_vm1, %v16037_v34  ;;  %6040 = vrot.lane.b32.xlu0 %v16038_v43, %s9638_s7  ;;  %v16075_v43 = vld [vmem:[#allocation32_spill] sm:$0xff] }
 0x6c7   : > { %8278 = vmatmul.msk.f32.vlgmr.msra.gmra.mxu3 %vm1960_vm14, %v3853_v11  ;;  %16074 = vst [vmem:[#allocation109_spill] sm:$0xff] %v13330_v9  ;;  %v16086_v11 = vld [vmem:[#allocation33_spill] sm:$0xff] }
 0x6c8   : > { %8300 = vmatpush.xpose.msk.msra.mxu3 %vm784_vm1, %v16051_v16 }
 0x6cb   : > { %8294 = vmatmul.msk.f32.vlgmr.msrb.gmra.mxu1 %vm784_vm1, %v16039_v6  ;;  %v16077_v6 = vld [vmem:[#allocation31_spill] sm:$0xff] }
 0x6cc   : > { %8323 = vmatpush.xpose.msk.msrb.mxu1 %vm784_vm1, %v16040_v27  ;;  %8694 = vrot.lane.b32.xlu2 %v16041_v41, %s9637_s2  ;;  %v16078_v27 = vld [vmem:[#allocation55_spill] sm:$0xff] }
 0x6cd   : > { %8298 = vmatmul.msk.f32.vlgmr.msra.gmra.mxu2 %vm784_vm1, %v16044_v59  ;;  %v3806_v8 = vpop.xlane.xlu0 %3805  ;;  %8301 = vmatpush.xpose.msk.msra.mxu3 %vm784_vm1, %v16055_v7  ;;  %v16081_v59 = vld [vmem:[#allocation24_spill] sm:$0xff] }
 0x6ce   : > { %8322 = vmatmul.msk.f32.vlgmr.msra.gmra.mxu0 %vm784_vm1, %v16042_v36  ;;  %8326 = vmatpush.xpose.msk.msra.mxu2 %vm784_vm1, %v16045_v38  ;;  %9031 = vrcp.f32 %v3806_v8  ;;  %v16087_v8 = vld [vmem:[#allocation59_spill] sm:$0xff]  ;;  %v16090_v7 = vld [vmem:[#allocation28_spill] sm:$0xff] }
 0x6cf   : > { %6601 = vrot.lane.b32.xlu0 %v16046_v26, %s9638_s7  ;;  %v16082_v26 = vld [vmem:[#allocation61_spill] sm:$0xff] }
 0x6d0   : > { %8324 = vmatpush.xpose.msk.msrb.mxu1 %vm784_vm1, %v16043_v49  ;;  %v3750_v49 = vsub.f32 %v13010_v14, %v13148_v12 }
 0x6d2   : > { %8327 = vmatpush.xpose.msk.msra.mxu2 %vm784_vm1, %v16048_v29  ;;  %v3781_v38 = vmul.f32 1.442695, %v3750_v49 }
 0x6d3   : > { %8295 = vmatmul.msk.f32.gmra.mxu1 %vm784_vm1, %v16047_v2 }
 0x6d4   : > { %6042 = vrot.lane.b32.xlu2 %v16049_v15, %s9638_s7  ;;  %v9032_v46 = vpop.eup %9031 }
 0x6d5   : > { %v3827_v39 = vpop.xlane.xlu2 %3826  ;;  %8299 = vmatmul.msk.f32.gmra.mxu2 %vm784_vm1, %v16050_v5  ;;  %v3854_v53 = vmul.f32 %v9032_v46, %v13124_v23  ;;  %v16060_v23 = vld [vmem:[#allocation58_spill] sm:$0xff]  ;;  %v13292_v28 = vpop.xlane.xlu0 %4597 }
 0x6d6   : > { %8334 = vmatmul.msk.f32.vlgmr.msrb.gmra.mxu0 %vm784_vm1, %v16042_v36  ;;  %9033 = vrcp.f32 %v3827_v39 }
 0x6d7   : > { %6122 = vrot.lane.b32.xlu0 %v16052_v30, %s9638_s7  ;;  %8279 = vmatmul.msk.f32.gmra.mxu3 %vm1960_vm14, %v3854_v53  ;;  %9035 = vpow2.f32 %v3781_v38 }
 0x6d8   : > { %9037 = vrsqrt.f32 %v13037_v18 }
 0x6d9   : > { %9039 = vrsqrt.f32 %v13043_v10 }
 0x6da   : > { %9041 = vrsqrt.f32 %v13045_v13 }
 0x6db   : > { %8310 = vmatmul.msk.f32.vlgmr.msra.gmra.mxu1 %vm784_vm1, %v16053_v56  ;;  %9043 = vrsqrt.f32 %v13061_v63 }
 0x6dc   : > { %8335 = vmatpush.xpose.msk.msra.mxu1 %vm784_vm1, %v16054_v57  ;;  %6155 = vrot.lane.b32.xlu2 %v16056_v3, %s9638_s7  ;;  %v9034_v44 = vpop.eup %9033  ;;  %v16091_v3 = vld [vmem:[#allocation52_spill] sm:$0xff] }
 0x6dd   : > { %v4567_v60 = vpop.permute.xlu2 %4566  ;;  %8314 = vmatmul.msk.f32.vlgmr.msrb.gmra.mxu2 %vm784_vm1, %v16058_v4  ;;  %v3861_v17 = vmul.f32 %v9034_v44, %v13130_v19  ;;  %v16067_v19 = vld [vmem:[#allocation124_spill] sm:$0xff]  ;;  %v13309_v20 = vpop.xlane.xlu0 %4594 }
 0x6de   : > { %v4629_v48 = vsel %vm784_vm1, %v4567_v60, 0.0  ;;  %8338 = vmatpush.xpose.msk.msrb.mxu2 %vm784_vm1, %v16059_v1  ;;  %v13364_v14 = vpop.eup %9035  ;;  %v16093_v4 = vld [vmem:[#allocation68_spill] sm:$0xff]  ;;  %v16095_v1 = vld [vmem:[#allocation37_spill] sm:$0xff] }
 0x6df   : > { %6239 = vrot.lane.b32.xlu0 %v16060_v23, %s9638_s7  ;;  %4630 = vadd.xlane.f32.xlu1 %v4629_v48  ;;  %v3828_v56 = vsel %vm1960_vm14, %v13364_v14, 0.0 }
 0x6e0   : > { %8336 = vmatpush.xpose.msk.msra.mxu1 %vm784_vm1, %v16057_v51  ;;  %8286 = vmatmul.msk.f32.vlgmr.msrb.gmra.mxu3 %vm1960_vm14, %v3861_v17  ;;  %v13386_v51 = vpop.xlane.xlu1 %4612  ;;  %v16096_v17 = vld [vmem:[#allocation65_spill] sm:$0xff] }
 0x6e1   : > { %8316 = vmatpush.xpose.msk.msrb.mxu3 %vm784_vm1, %v16065_v45  ;;  %v16098_v45 = vld [vmem:[#allocation43_spill] sm:$0xff]  ;;  %9045 = vrsqrt.f32 %v13386_v51  ;;  %vm4747_vm8 = vcmp.eq.f32.partialorder %v13386_v51, inf }
 0x6e2   : > { %8339 = vmatpush.xpose.msk.msrb.mxu2 %vm784_vm1, %v16062_v50 }
 0x6e3   : > { %8311 = vmatmul.msk.f32.gmra.mxu1 %vm784_vm1, %v16061_v47 }
 0x6e4   : > { %6081 = vrot.lane.b32.xlu2 %v16063_v25, %s9638_s7 }
 0x6e5   : > { %8315 = vmatmul.msk.f32.gmra.mxu2 %vm784_vm1, %v16064_v24  ;;  %8317 = vmatpush.xpose.msk.msrb.mxu3 %vm784_vm1, %v16067_v19  ;;  %v13323_v32 = vpop.xlane.xlu0 %4600 }
 0x6e7   : > { %6120 = vrot.lane.b32.xlu0 %v16066_v0, %s9638_s7 }
 0x6e8   : > { %v13402_v24 = vpop.xlane.xlu1 %4615 }
 0x6e9   : > { %9047 = vrsqrt.f32 %v13402_v24  ;;  %vm4759_vm4 = vcmp.eq.f32.partialorder %v13402_v24, inf  ;;  %vm4761_vm2 = vcmp.eq.f32.partialorder %v13402_v24, 0.0 }
 0x6eb   : > { %8325 = vmatmul.msk.f32.vlgmr.msrb.gmra.mxu1 %vm784_vm1, %v16042_v36 }
 0x6ec   : > { %6077 = vrot.lane.b32.xlu2 %v16068_v58, %s9638_s7  ;;  %v16100_v58 = vld [vmem:[#allocation103_spill] sm:$0xff] }
 0x6ed   : > { %8328 = vmatmul.msk.f32.vlgmr.msra.gmra.mxu2 %vm784_vm1, %v16042_v36  ;;  %v13334_v34 = vpop.xlane.xlu0 %4621 }
 0x6ef   : > { %6116 = vrot.lane.b32.xlu0 %v16069_v52, %s9638_s7 }
 0x6f3   : > { %8337 = vmatmul.msk.f32.vlgmr.msra.gmra.mxu1 %vm784_vm1, %v16042_v36 }
 0x6f4   : > { %6157 = vrot.lane.b32.xlu2 %v16070_v62, %s9638_s7  ;;  %v16101_v62 = vld [vmem:[#allocation66_spill] sm:$0xff] }
 0x6f5   : > { %8340 = vmatmul.msk.f32.vlgmr.msrb.gmra.mxu2 %vm784_vm1, %v16042_v36  ;;  %v13344_v22 = vpop.xlane.xlu0 %4606 }
 0x6f6   : > { %16079 = vst [vmem:[#allocation122_spill] sm:$0xff] %v13344_v22 }
 0x6f7   : > { %6196 = vrot.lane.b32.xlu0 %v16071_v54, %s9638_s7  ;;  %v16102_v54 = vld [vmem:[#allocation62_spill] sm:$0xff] }
 0x6f8   : > { %8674 = vrot.lane.b32.xlu1 %v8673_v33, %s9637_s2 }
 0x6fc   : > { %6200 = vrot.lane.b32.xlu2 %v16072_v35, %s9638_s7 }
 0x6fd   : > { %v13356_v61 = vpop.xlane.xlu0 %4627 }
 0x6fe   : > { %16084 = vst [vmem:[#allocation117_spill] sm:$0xff] %v13356_v61 }
 0x700   : > { %8684 = vrot.lane.b32.xlu1 %v13330_v9, %s9637_s2  ;;  %v4654_v9 = vand.u32 2147483648, %v13043_v10 }
 0x702   : > { %v13338_v40 = vpop.f32.mrf.mxu0 }
 0x703   : > { %16076 = vst [vmem:[#allocation146_spill] sm:$0xff] %v13338_v40 }
 0x704   : > { %6079 = vrot.lane.b32.xlu2 %v16075_v43, %s9638_s7  ;;  %v13424_v43 = vpop.xlane.xlu1 %4618 }
 0x705   : > { %9049 = vrsqrt.f32 %v13424_v43  ;;  %vm4771_vm12 = vcmp.eq.f32.partialorder %v13424_v43, inf }
 0x708   : > { %6003 = vrot.lane.b32.xlu1 %v16077_v6, %s9638_s7 }
 0x70a   : > { %v13346_v41 = vpop.f32.mrf.mxu0 }
 0x70b   : > { %16080 = vst [vmem:[#allocation118_spill] sm:$0xff] %v13346_v41 }
 0x70c   : > { %6198 = vrot.lane.b32.xlu2 %v16078_v27, %s9638_s7 }
 0x710   : > { %5999 = vrot.lane.b32.xlu1 %v16081_v59, %s9638_s7  ;;  %v13366_v39 = vpop.permute.xlu0 %8679  ;;  %v16106_v59 = vld [vmem:[#allocation56_spill] sm:$0xff] }
 0x712   : > { %v13358_v29 = vpop.f32.mrf.mxu0 }
 0x713   : > { %16085 = vst [vmem:[#allocation111_spill] sm:$0xff] %v13358_v29  ;;  %v13368_v16 = vpop.f32.mrf.mxu1 }
 0x714   : > { %6599 = vrot.lane.b32.xlu2 %v16082_v26, %s9638_s7  ;;  %16088 = vst [vmem:[#allocation126_spill] sm:$0xff] %v13368_v16 }
 0x716   : > { %v13354_v2 = vpop.xlane.xlu2 %4603 }
 0x717   : > { %16083 = vst [vmem:[#allocation125_spill] sm:$0xff] %v13354_v2 }
 0x718   : > { %6001 = vrot.lane.b32.xlu1 %v16086_v11, %s9638_s7  ;;  %v13378_v53 = vpop.permute.xlu0 %8689 }
 0x71c   : > { %6237 = vrot.lane.b32.xlu2 %v16087_v8, %s9638_s7  ;;  %v4642_v8 = vand.u32 2147483648, %v13037_v18 }
 0x71e   : > { %v8670_v12 = vpop.permute.xlu2 %8669 }
 0x71f   : > { %v8671_v5 = vunpack.i.l.bf16 %v8670_v12  ;;  %v8672_v57 = vunpack.i.h.bf16 %v8670_v12  ;;  %v16107_v12 = vld [vmem:[#allocation75_spill] sm:$0xff] }
 0x720   : > { %6083 = vrot.lane.b32.xlu1 %v16073_v55, %s9638_s7  ;;  %v13398_v50 = vpop.permute.xlu0 %8699  ;;  %v9038_v55 = vpop.eup %9037 }
 0x721   : > { %3829 = vadd.xlane.f32.xlu0 %v3828_v56  ;;  %5664 = vmatpush.msra.mxu0 %v8671_v5  ;;  %v13382_v60 = vpop.f32.mrf.mxu1  ;;  %v9040_v6 = vpop.eup %9039  ;;  %v4633_v38 = vmul.f32 %v9038_v55, %v13037_v18 }
 0x722   : > { %16092 = vst [vmem:[#allocation121_spill] sm:$0xff] %v13382_v60  ;;  %v9042_v27 = vpop.eup %9041  ;;  %v4645_v11 = vmul.f32 %v9040_v6, %v13043_v10 }
 0x723   : > { %v13374_v46 = vpop.f32.mrf.mxu0  ;;  %5665 = vmatpush.msra.mxu0 %v8672_v57  ;;  %v13436_v5 = vpop.eup %9043  ;;  %v4729_v56 = vmul.f32 %v9042_v27, %v13045_v13  ;;  %v16108_v57 = vld [vmem:[#allocation69_spill] sm:$0xff] }
 0x724   : > { %16089 = vst [vmem:[#allocation141_spill] sm:$0xff] %v13374_v46  ;;  %6233 = vrot.lane.b32.xlu2 %v16090_v7, %s9638_s7  ;;  %v4634_v7 = vmul.f32 %v9038_v55, %v4633_v38 }
 0x726   : > { %v4635_v38 = vmul.f32 0.5, %v4634_v7  ;;  %v16113_v7 = vld [vmem:[#allocation74_spill] sm:$0xff] }
 0x728   : > { %6159 = vrot.lane.b32.xlu1 %v16091_v3, %s9638_s7  ;;  %v13420_v33 = vpop.permute.xlu0 %6044 }
 0x729   : > { %16103 = vst [vmem:[#allocation148_spill] sm:$0xff] %v13420_v33 }
 0x72b   : > { %v13384_v44 = vpop.f32.mrf.mxu0 }
 0x72c   : > { %6629 = vrot.lane.b32.xlu2 %v16093_v4, %s9638_s7  ;;  %v13400_v25 = vpop.f32.mrf.mxu1  ;;  %v4646_v4 = vmul.f32 %v9040_v6, %v4645_v11 }
 0x72d   : > { %16097 = vst [vmem:[#allocation128_spill] sm:$0xff] %v13400_v25 }
 0x72f   : > { %v13390_v48 = vpop.f32.mrf.mxu2 }
 0x730   : > { %16094 = vst [vmem:[#allocation138_spill] sm:$0xff] %v13390_v48  ;;  %6038 = vrot.lane.b32.xlu1 %v16095_v1, %s9638_s7  ;;  %v4657_v1 = vmul.f32 %v13436_v5, %v13061_v63 }
 0x733   : > { %v13394_v47 = vpop.f32.mrf.mxu0 }
 0x734   : > { %6278 = vrot.lane.b32.xlu2 %v16096_v17, %s9638_s7  ;;  %v4730_v17 = vmul.f32 %v9042_v27, %v4729_v56  ;;  %v16112_v56 = vld [vmem:[#allocation70_spill] sm:$0xff] }
 0x735   : > { %6235 = vrot.lane.b32.xlu0 %v16098_v45, %s9638_s7  ;;  %v13446_v45 = vpop.permute.xlu0 %6161 }
 0x736   : > { %16109 = vst [vmem:[#allocation131_spill] sm:$0xff] %v13446_v45  ;;  %v4731_v40 = vmul.f32 0.5, %v4730_v17 }
 0x737   : > { %v13407_v19 = vpop.f32.mrf.mxu2 }
 0x738   : > { %16099 = vst [vmem:[#allocation136_spill] sm:$0xff] %v13407_v19  ;;  %8704 = vrot.lane.b32.xlu1 %v16100_v58, %s9637_s2 }
 0x73b   : > { %v13412_v52 = vpop.f32.mrf.mxu0 }
 0x73c   : > { %6276 = vrot.lane.b32.xlu2 %v16101_v62, %s9638_s7  ;;  %v13449_v62 = vpop.xlane.xlu1 %4624 }
 0x73d   : > { %6657 = vrot.lane.b32.xlu0 %v16102_v54, %s9638_s7 }
 0x73f   : > { %v13426_v49 = vpop.f32.mrf.mxu2 }
 0x740   : > { %v13422_v35 = vpop.f32.mrf.mxu1  ;;  %16105 = vst [vmem:[#allocation133_spill] sm:$0xff] %v13426_v49  ;;  %6194 = vrot.lane.b32.xlu1 %v16106_v59, %s9638_s7  ;;  %v16111_v59 = vld [vmem:[#allocation49_spill] sm:$0xff] }
 0x741   : > { %16104 = vst [vmem:[#allocation114_spill] sm:$0xff] %v13422_v35 }
 0x743   : > { %v13431_v26 = vpop.f32.mrf.mxu0 }
 0x744   : > { %6274 = vrot.lane.b32.xlu2 %v16107_v12, %s9638_s7  ;;  %v4647_v12 = vmul.f32 0.5, %v4646_v4 }
 0x745   : > { %6272 = vrot.lane.b32.xlu0 %v16108_v57, %s9638_s7  ;;  %v4658_v57 = vmul.f32 %v13436_v5, %v4657_v1 }
 0x746   : > { %v4648_v1 = vsub.f32 1.5, %v4647_v12 }
 0x747   : > { %v13451_v54 = vpop.f32.mrf.mxu2  ;;  %v4659_v35 = vmul.f32 0.5, %v4658_v57  ;;  %v13489_v57 = vpop.permute.xlu0 %6040 }
 0x748   : > { %v13441_v3 = vpop.f32.mrf.mxu1  ;;  %16110 = vst [vmem:[#allocation105_spill] sm:$0xff] %v13451_v54  ;;  %6118 = vrot.lane.b32.xlu1 %v16111_v59, %s9638_s7  ;;  %v13463_v54 = vpop.eup %9045  ;;  %v4636_v59 = vsub.f32 1.5, %v4635_v38  ;;  %v16114_v38 = vld [vmem:[#allocation71_spill] sm:$0xff] }
 0x749   : > { %v13470_v4 = vpop.eup %9047  ;;  %v4741_v17 = vmul.f32 %v13463_v54, %v13386_v51  ;;  %16115 = vst [vmem:[#allocation107_spill] sm:$0xff] %v13489_v57  ;;  %v4660_v16 = vsub.f32 1.5, %v4659_v35  ;;  %v16116_v35 = vld [vmem:[#allocation78_spill] sm:$0xff] }
 0x74a   : > { %v13472_v25 = vpop.eup %9049  ;;  %v4637_v12 = vmul.f32 %v9038_v55, %v4636_v59 }
 0x74b   : > { %v13456_v11 = vpop.f32.mrf.mxu0  ;;  %v4742_v59 = vmul.f32 %v13463_v54, %v4741_v17  ;;  %v4765_v41 = vmul.f32 %v13472_v25, %v13424_v43 }
 0x74c   : > { %9051 = vrsqrt.f32 %v13456_v11  ;;  %6713 = vrot.lane.b32.xlu2 %v16112_v56, %s9638_s7  ;;  %v4732_v56 = vsub.f32 1.5, %v4731_v40  ;;  %v4753_v40 = vmul.f32 %v13470_v4, %v13402_v24  ;;  %vm5055_vm5 = vcmp.eq.f32.partialorder %v13456_v11, inf }
 0x74d   : > { %9053 = vrsqrt.f32 %v13449_v62  ;;  %6683 = vrot.lane.b32.xlu0 %v16113_v7, %s9638_s7  ;;  %v4766_v30 = vmul.f32 %v13472_v25, %v4765_v41  ;;  %vm5057_vm9 = vcmp.eq.f32.partialorder %v13456_v11, 0.0 }
 0x74e   : > { %9055 = vrsqrt.f32 %v13292_v28  ;;  %v4733_v55 = vmul.f32 %v9042_v27, %v4732_v56 }
 0x74f   : > { %9057 = vrsqrt.f32 %v13309_v20  ;;  %v13557_v33 = vpop.permute.xlu0 %6601 }
 0x750   : > { %v13468_v49 = vpop.f32.mrf.mxu1  ;;  %9059 = vrsqrt.f32 %v13323_v32  ;;  %v13480_v7 = vpop.f32.mrf.mxu2  ;;  %6627 = vrot.lane.b32.xlu1 %v16114_v38, %s9638_s7  ;;  %v4649_v38 = vmul.f32 %v9040_v6, %v4648_v1  ;;  %v4638_v1 = vmul.f32 %v4637_v12, %v13037_v18  ;;  %v4734_v0 = vmul.f32 %v4733_v55, %v13045_v13 }
 0x751   : > { %9061 = vrsqrt.f32 %v13334_v34 }
 0x752   : > { %v13477_v46 = vpop.eup %9051  ;;  %v4650_v31 = vmul.f32 %v4649_v38, %v13043_v10  ;;  %v4738_v38 = vand.u32 2147483648, %v13045_v13  ;;  %v4640_v41 = vsel %vm4639_vm7, %v13037_v18, %v4638_v1  ;;  %v4736_v1 = vsel %vm4735_vm3, %v13045_v13, %v4734_v0 }
 0x753   : > { %v13484_v29 = vpop.eup %9053  ;;  %v5049_v19 = vmul.f32 %v13477_v46, %v13456_v11  ;;  %v13493_v48 = vpop.f32.mrf.mxu0  ;;  %vm4795_vm7 = vcmp.eq.f32.partialorder %v13449_v62, inf  ;;  %vm4689_vm3 = vcmp.eq.f32.partialorder %v13292_v28, 0.0 }
 0x754   : > { %v13495_v60 = vpop.eup %9055  ;;  %9063 = vrsqrt.f32 %v13493_v48  ;;  %v4789_v6 = vmul.f32 %v13484_v29, %v13449_v62  ;;  %v13574_v18 = vsel %vm4737_vm10, %v4738_v38, %v4736_v1  ;;  %vm4675_vm10 = vcmp.eq.f32.partialorder %v13309_v20, inf }
 0x755   : > { %v5050_v58 = vmul.f32 %v13477_v46, %v5049_v19  ;;  %6741 = vrot.lane.b32.xlu0 %v16116_v35, %s9638_s7  ;;  %v13510_v27 = vpop.eup %9057  ;;  %v4754_v19 = vmul.f32 %v13470_v4, %v4753_v40  ;;  %v4681_v56 = vmul.f32 %v13495_v60, %v13292_v28  ;;  %v4661_v35 = vmul.f32 %v13436_v5, %v4660_v16  ;;  %v16117_v5 = vld [vmem:[#allocation64_spill] sm:$0xff] }
 0x756   : > { %v13519_v23 = vpop.eup %9059  ;;  %v4743_v40 = vmul.f32 0.5, %v4742_v59  ;;  %v4790_v37 = vmul.f32 %v13484_v29, %v4789_v6  ;;  %v4669_v42 = vmul.f32 %v13510_v27, %v13309_v20  ;;  %v4652_v6 = vsel %vm4651_vm13, %v13043_v10, %v4650_v31 }
 0x757   : > { %v13525_v12 = vpop.eup %9061  ;;  %v5051_v15 = vmul.f32 0.5, %v5050_v58  ;;  %v4755_v58 = vmul.f32 0.5, %v4754_v19  ;;  %v4682_v55 = vmul.f32 %v13495_v60, %v4681_v56  ;;  %v4662_v57 = vmul.f32 %v4661_v35, %v13061_v63 }
 0x758   : > { %v13517_v17 = vpop.f32.mrf.mxu1  ;;  %v13536_v16 = vpop.f32.mrf.mxu2  ;;  %6655 = vrot.lane.b32.xlu1 %v16117_v5, %s9638_s7  ;;  %v4693_v45 = vmul.f32 %v13519_v23, %v13323_v32  ;;  %v4777_v5 = vmul.f32 %v13525_v12, %v13334_v34  ;;  %v4744_v19 = vsub.f32 1.5, %v4743_v40  ;;  %v4767_v56 = vmul.f32 0.5, %v4766_v30 }
 0x759   : > { %v5052_v61 = vsub.f32 1.5, %v5051_v15  ;;  %v13561_v31 = vsel %vm4641_vm11, %v4642_v8, %v4640_v41  ;;  %v4791_v35 = vmul.f32 0.5, %v4790_v37  ;;  %v4670_v2 = vmul.f32 %v13510_v27, %v4669_v42 }
 0x75a   : > { %v13529_v21 = vpop.eup %9063  ;;  %v13567_v36 = vsel %vm4653_vm15, %v4654_v9, %v4652_v6  ;;  %v4756_v0 = vsub.f32 1.5, %v4755_v58  ;;  %v4683_v30 = vmul.f32 0.5, %v4682_v55  ;;  %v4664_v37 = vsel %vm4663_vm0, %v13061_v63, %v4662_v57  ;;  %v16118_v57 = vld [vmem:[#allocation72_spill] sm:$0xff] }
 0x75b   : > { %v5097_v59 = vmul.f32 %v13529_v21, %v13493_v48  ;;  %v4694_v42 = vmul.f32 %v13519_v23, %v4693_v45  ;;  %v4778_v15 = vmul.f32 %v13525_v12, %v4777_v5  ;;  %v4666_v10 = vand.u32 2147483648, %v13061_v63 }
 0x75c   : > { %v4745_v9 = vmul.f32 %v13463_v54, %v4744_v19  ;;  %v4768_v8 = vsub.f32 1.5, %v4767_v56  ;;  %v5053_v41 = vmul.f32 %v13477_v46, %v5052_v61  ;;  %v4792_v58 = vsub.f32 1.5, %v4791_v35 }
 0x75d   : > { %v5098_v22 = vmul.f32 %v13529_v21, %v5097_v59  ;;  %v4671_v55 = vmul.f32 0.5, %v4670_v2  ;;  %v4757_v45 = vmul.f32 %v13470_v4, %v4756_v0  ;;  %v4684_v59 = vsub.f32 1.5, %v4683_v30  ;;  %v13603_v30 = vpop.permute.xlu0 %6122 }
 0x75e   : > { %v13589_v6 = vsel %vm4665_vm6, %v4666_v10, %v4664_v37  ;;  %v4695_v63 = vmul.f32 0.5, %v4694_v42  ;;  %v4779_v61 = vmul.f32 0.5, %v4778_v15  ;;  %v4762_v2 = vand.u32 2147483648, %v13402_v24  ;;  %16119 = vst [vmem:[#allocation115_spill] sm:$0xff] %v13603_v30 }
 0x75f   : > { %v5099_v13 = vmul.f32 0.5, %v5098_v22  ;;  %v4746_v22 = vmul.f32 %v4745_v9, %v13386_v51  ;;  %v4769_v46 = vmul.f32 %v13472_v25, %v4768_v8  ;;  %v5054_v5 = vmul.f32 %v5053_v41, %v13456_v11  ;;  %v13621_v41 = vpop.permute.xlu2 %6005 }
 0x760   : > { %v13570_v40 = vpop.f32.mrf.mxu1  ;;  %v13583_v38 = vpop.f32.mrf.mxu2  ;;  %6685 = vrot.lane.b32.xlu1 %v16118_v57, %s9638_s7  ;;  %v4793_v1 = vmul.f32 %v13484_v29, %v4792_v58  ;;  %v4672_v4 = vsub.f32 1.5, %v4671_v55  ;;  %v4758_v56 = vmul.f32 %v4757_v45, %v13402_v24  ;;  %v4774_v35 = vand.u32 2147483648, %v13424_v43 }
 0x761   : > { %v5100_v19 = vsub.f32 1.5, %v5099_v13  ;;  %v4685_v0 = vmul.f32 %v13495_v60, %v4684_v59  ;;  %v4696_v25 = vsub.f32 1.5, %v4695_v63  ;;  %v4780_v42 = vsub.f32 1.5, %v4779_v61  ;;  %v16120_v13 = vld [vmem:[#allocation73_spill] sm:$0xff] }
 0x762   : > { %v5058_v29 = vand.u32 2147483648, %v13456_v11  ;;  %v13612_v15 = vsel %vm4747_vm8, %v13386_v51, %v4746_v22  ;;  %v4770_v10 = vmul.f32 %v4769_v46, %v13424_v43  ;;  %v5056_v9 = vsel %vm5055_vm5, %v13456_v11, %v5054_v5 }
 0x763   : > { %v4794_v60 = vmul.f32 %v4793_v1, %v13449_v62  ;;  %v4673_v8 = vmul.f32 %v13510_v27, %v4672_v4  ;;  %v5101_v58 = vmul.f32 %v13529_v21, %v5100_v19  ;;  %v4760_v57 = vsel %vm4759_vm4, %v13402_v24, %v4758_v56  ;;  %v13659_v19 = vpop.xlane.xlu1 %4630 }
 0x764   : > { %vm4773_vm11 = vcmp.eq.f32.partialorder %v13424_v43, 0.0  ;;  %vm4797_vm13 = vcmp.eq.f32.partialorder %v13449_v62, 0.0  ;;  %v4798_v45 = vand.u32 2147483648, %v13449_v62  ;;  %vm4687_vm15 = vcmp.eq.f32.partialorder %v13292_v28, inf }
 0x765   : > { %v4690_v27 = vand.u32 2147483648, %v13292_v28  ;;  %v4686_v21 = vmul.f32 %v4685_v0, %v13292_v28  ;;  %v4697_v59 = vmul.f32 %v13519_v23, %v4696_v25  ;;  %v4781_v63 = vmul.f32 %v13525_v12, %v4780_v42 }
 0x766   : > { %v13641_v61 = vsel %vm5057_vm9, %v5058_v29, %v5056_v9  ;;  %v4772_v22 = vsel %vm4771_vm12, %v13424_v43, %v4770_v10  ;;  %vm4677_vm0 = vcmp.eq.f32.partialorder %v13309_v20, 0.0  ;;  %v4678_v46 = vand.u32 2147483648, %v13309_v20  ;;  %v13674_v9 = vpop.permute.xlu0 %6239 }
 0x767   : > { %v4796_v23 = vsel %vm4795_vm7, %v13449_v62, %v4794_v60  ;;  %v4674_v11 = vmul.f32 %v4673_v8, %v13309_v20  ;;  %vm4699_vm6 = vcmp.eq.f32.partialorder %v13323_v32, inf  ;;  %v5102_v12 = vmul.f32 %v5101_v58, %v13493_v48  ;;  %16121 = vst [vmem:[#allocation127_spill] sm:$0xff] %v13674_v9 }
 0x768   : > { %v13605_v37 = vpop.f32.mrf.mxu1  ;;  %v13624_v55 = vpop.f32.mrf.mxu2  ;;  %6711 = vrot.lane.b32.xlu1 %v16120_v13, %s9638_s7  ;;  %v4702_v1 = vand.u32 2147483648, %v13323_v32  ;;  %v5144_v4 = vperm.slane %v13641_v61, 0  ;;  %vm5103_vm8 = vcmp.eq.f32.partialorder %v13493_v48, inf  ;;  %v4688_v25 = vsel %vm4687_vm15, %v13292_v28, %v4686_v21 }
 0x769   : > { %9065 = vrsqrt.f32 %v13605_v37  ;;  %v4698_v42 = vmul.f32 %v4697_v59, %v13323_v32  ;;  %v4782_v29 = vmul.f32 %v4781_v63, %v13334_v34  ;;  %vm4701_vm4 = vcmp.eq.f32.partialorder %v13323_v32, 0.0 }
 0x76a   : > { %vm4783_vm5 = vcmp.eq.f32.partialorder %v13334_v34, inf  ;;  %vm4785_vm12 = vcmp.eq.f32.partialorder %v13334_v34, 0.0  ;;  %v5106_v10 = vand.u32 2147483648, %v13493_v48  ;;  %v4676_v8 = vsel %vm4675_vm10, %v13309_v20, %v4674_v11 }
 0x76b   : > { %v4786_v58 = vand.u32 2147483648, %v13334_v34  ;;  %v5104_v13 = vsel %vm5103_vm8, %v13493_v48, %v5102_v12  ;;  %vm5105_vm9 = vcmp.eq.f32.partialorder %v13493_v48, 0.0  ;;  %v5152_v59 = vmul.f32 %v5144_v4, %v13561_v31  ;;  %v13698_v48 = vpop.permute.xlu2 %8694 }
 0x76c   : > { %v13691_v61 = vsel %vm4761_vm2, %v4762_v2, %v4760_v57  ;;  %v4700_v11 = vsel %vm4699_vm6, %v13323_v32, %v4698_v42  ;;  %v4784_v12 = vsel %vm4783_vm5, %v13334_v34, %v4782_v29  ;;  %v13704_v31 = vsel %vm4773_vm11, %v4774_v35, %v4772_v22 }
 0x76d   : > { %v13708_v24 = vsel %vm4797_vm13, %v4798_v45, %v4796_v23  ;;  %v8682_v2 = vunpack.i.h.bf16 %v13366_v39  ;;  %v8681_v57 = vunpack.i.l.bf16 %v13366_v39  ;;  %v8691_v54 = vunpack.i.l.bf16 %v13378_v53  ;;  %v8675_v45 = vpop.permute.xlu1 %8674 }
 0x76e   : > { %v4679_v43 = vsel %vm4677_vm0, %v4678_v46, %v4676_v8  ;;  %v13720_v62 = vsel %vm4689_vm3, %v4690_v27, %v4688_v25  ;;  %vm5067_vm2 = vcmp.eq.f32.partialorder %v13605_v37, inf  ;;  %v13724_v22 = vmax.f32 %v5152_v59, 1e-06  ;;  %v13749_v32 = vpop.permute.xlu0 %6120 }
 0x76f   : > { %v9066_v5 = vpop.eup %9065  ;;  %vm5069_vm7 = vcmp.eq.f32.partialorder %v13605_v37, 0.0  ;;  %v8702_v27 = vunpack.i.h.bf16 %v13398_v50  ;;  %v13739_v8 = vsel %vm4785_vm12, %v4786_v58, %v4784_v12  ;;  %16122 = vst [vmem:[#allocation116_spill] sm:$0xff] %v13749_v32  ;;  %v8697_v34 = vunpack.i.h.bf16 %v13698_v48 }
 0x770   : > { %v5061_v56 = vmul.f32 %v9066_v5, %v13605_v37  ;;  %v13662_v0 = vpop.f32.mrf.mxu1  ;;  %v13684_v21 = vpop.f32.mrf.mxu2  ;;  %vm5189_vm10 = vweird.f32 %v13724_v22 }
 0x771   : > { %9067 = vrsqrt.f32 %v13662_v0  ;;  %vm5115_vm11 = vcmp.eq.f32.partialorder %v13662_v0, inf  ;;  %vm5117_vm13 = vcmp.eq.f32.partialorder %v13662_v0, 0.0  ;;  %vm5079_vm15 = vcmp.eq.f32.partialorder %v13684_v21, inf }
 0x772   : > { %v5062_v60 = vmul.f32 %v9066_v5, %v5061_v56  ;;  %9069 = vrsqrt.f32 %v13684_v21  ;;  %v13712_v56 = vsel %vm5105_vm9, %v5106_v10, %v5104_v13  ;;  %v5070_v10 = vand.u32 2147483648, %v13605_v37 }
 0x773   : > { %v5148_v23 = vperm.slane %v13712_v56, 0  ;;  %v8676_v13 = vunpack.i.l.bf16 %v8675_v45  ;;  %9071 = vrcp.f32 %v13724_v22  ;;  %vm5081_vm3 = vcmp.eq.f32.partialorder %v13684_v21, 0.0 }
 0x774   : > { %v5063_v63 = vmul.f32 0.5, %v5062_v60  ;;  %v8692_v60 = vunpack.i.h.bf16 %v13378_v53  ;;  %v8677_v53 = vunpack.i.h.bf16 %v8675_v45 }
 0x775   : > { %5699 = vmatpush.msrb.mxu1 %v8676_v13  ;;  %v13756_v58 = vmul.f32 %v5148_v23, %v13574_v18 }
 0x776   : > { %v5064_v42 = vsub.f32 1.5, %v5063_v63  ;;  %5804 = vmatpush.msrb.mxu0 %v8677_v53  ;;  %v13744_v63 = vmul.f32 %v5144_v4, %v13567_v36  ;;  %v8685_v53 = vpop.permute.xlu1 %8684 }
 0x777   : > { %v9068_v29 = vpop.eup %9067  ;;  %5700 = vmatpush.msrb.mxu1 %v8681_v57 }
 0x778   : > { %v5065_v35 = vmul.f32 %v9066_v5, %v5064_v42  ;;  %v5109_v39 = vmul.f32 %v9068_v29, %v13662_v0  ;;  %v9070_v20 = vpop.eup %9069  ;;  %v13734_v5 = vsel %vm4701_vm4, %v4702_v1, %v4700_v11  ;;  %v13741_v59 = vpop.f32.mrf.mxu2  ;;  %5805 = vmatpush.msrb.mxu0 %v8682_v2 }
 0x779   : > { %v5073_v25 = vmul.f32 %v9070_v20, %v13684_v21  ;;  %9073 = vrsqrt.f32 %v13741_v59  ;;  %5839 = vmatpush.msra.mxu1 %v8691_v54  ;;  %v9072_v18 = vpop.eup %9071  ;;  %v8686_v54 = vunpack.i.l.bf16 %v8685_v53  ;;  %vm5127_vm0 = vcmp.eq.f32.partialorder %v13741_v59, inf }
 0x77a   : > { %v5066_v46 = vmul.f32 %v5065_v35, %v13605_v37  ;;  %v5110_v28 = vmul.f32 %v9068_v29, %v5109_v39  ;;  %v13762_v35 = vpop.permute.xlu2 %6042  ;;  %v5118_v39 = vand.u32 2147483648, %v13662_v0  ;;  %vm5129_vm6 = vcmp.eq.f32.partialorder %v13741_v59, 0.0 }
 0x77b   : > { %v5074_v4 = vmul.f32 %v9070_v20, %v5073_v25  ;;  %5840 = vmatpush.msra.mxu1 %v8692_v60  ;;  %5734 = vmatpush.msra.mxu2 %v8686_v54  ;;  %vm5190_vm8 = vweird.f32 %v9072_v18 }
 0x77c   : > { %v5068_v42 = vsel %vm5067_vm2, %v13605_v37, %v5066_v46  ;;  %v5111_v1 = vmul.f32 0.5, %v5110_v28  ;;  %v5185_v46 = vmul.f32 %v9072_v18, %v13724_v22  ;;  %vm5191_vm4 = vmor %vm5189_vm10, %vm5190_vm8 }
 0x77d   : > { %v5071_v36 = vsel %vm5069_vm7, %v5070_v10, %v5068_v42  ;;  %v5075_v45 = vmul.f32 0.5, %v5074_v4  ;;  %v5082_v10 = vand.u32 2147483648, %v13684_v21 }
 0x77e   : > { %v5145_v11 = vperm.slane %v5071_v36, 0  ;;  %v5112_v12 = vsub.f32 1.5, %v5111_v1  ;;  %v8687_v36 = vunpack.i.h.bf16 %v8685_v53  ;;  %v5186_v60 = vsub.f32 1.0, %v5185_v46 }
 0x77f   : > { %v5076_v13 = vsub.f32 1.5, %v5075_v45  ;;  %v9074_v28 = vpop.eup %9073 }
 0x780   : > { %v5154_v37 = vmul.f32 %v5145_v11, %v13589_v6  ;;  %v5155_v2 = vmul.f32 %v5145_v11, %v4679_v43  ;;  %v5113_v57 = vmul.f32 %v9068_v29, %v5112_v12  ;;  %v5193_v6 = vand.u32 2147483647, %v13724_v22  ;;  %5735 = vmatpush.msra.mxu2 %v8687_v36 }
 0x781   : > { %v5077_v29 = vmul.f32 %v9070_v20, %v5076_v13  ;;  %v5121_v43 = vmul.f32 %v9074_v28, %v13741_v59  ;;  %v5195_v11 = vand.u32 2147483648, %v13724_v22 }
 0x782   : > { %v13771_v25 = vmax.f32 %v5154_v37, 1e-06  ;;  %v13773_v42 = vmax.f32 %v5155_v2, 1e-06  ;;  %v5114_v1 = vmul.f32 %v5113_v57, %v13662_v0  ;;  %v13788_v2 = vpop.permute.xlu0 %6116  ;;  %5874 = vmatpush.msrb.mxu2 %v8697_v34  ;;  %v5187_v57 = vmul.f32 %v9072_v18, %v5186_v60 }
 0x783   : > { %v5078_v12 = vmul.f32 %v5077_v29, %v13684_v21  ;;  %v5122_v45 = vmul.f32 %v9074_v28, %v5121_v43  ;;  %16123 = vst [vmem:[#allocation132_spill] sm:$0xff] %v13788_v2  ;;  %v13802_v29 = vpop.permute.xlu2 %6155  ;;  %vm5194_vm5 = vcmp.eq.f32.partialorder %v5193_v6, 8.507059e+37  ;;  %v16177_v2 = vld [vmem:[#allocation125_spill] sm:$0xff] }
 0x784   : > { %9075 = vrcp.f32 %v13771_v25  ;;  %v5116_v4 = vsel %vm5115_vm11, %v13662_v0, %v5114_v1  ;;  %v5130_v0 = vand.u32 2147483648, %v13741_v59  ;;  %5875 = vmatpush.msrb.mxu2 %v8702_v27  ;;  %v5188_v34 = vadd.f32 %v9072_v18, %v5187_v57  ;;  %16124 = vst [vmem:[#allocation149_spill] sm:$0xff] %v13802_v29 }
 0x785   : > { %9077 = vrcp.f32 %v13773_v42  ;;  %v5119_v20 = vsel %vm5117_vm13, %v5118_v39, %v5116_v4  ;;  %v5080_v53 = vsel %vm5079_vm15, %v13684_v21, %v5078_v12  ;;  %v5123_v13 = vmul.f32 0.5, %v5122_v45 }
 0x786   : > { %v5149_v37 = vperm.slane %v5119_v20, 0  ;;  %v5221_v39 = vand.u32 2147483647, %v13771_v25  ;;  %v5083_v46 = vsel %vm5081_vm3, %v5082_v10, %v5080_v53  ;;  %v5223_v1 = vand.u32 2147483648, %v13771_v25 }
 0x787   : > { %v5146_v36 = vperm.slane %v5083_v46, 0  ;;  %v5124_v60 = vsub.f32 1.5, %v5123_v13  ;;  %v5196_v4 = vor.u32 1.1754944e-38, %v5195_v11  ;;  %v5192_v21 = vsel %vm5191_vm4, %v9072_v18, %v5188_v34  ;;  %v13828_v13 = vld [vmem:[#allocation12 + $0x20] sm:$0xff] }
 0x788   : > { %v5162_v54 = vmul.f32 %v5149_v37, %v13691_v61  ;;  %v5163_v43 = vmul.f32 %v5149_v37, %v13704_v31  ;;  %vm5217_vm12 = vweird.f32 %v13771_v25  ;;  %v13813_v31 = vld [vmem:[#allocation11 + $0x20] sm:$0xff]  ;;  %v5235_v37 = vand.u32 2147483647, %v13773_v42 }
 0x789   : > { %v5156_v10 = vmul.f32 %v5146_v36, %v13720_v62  ;;  %v5125_v12 = vmul.f32 %v9074_v28, %v5124_v60  ;;  %v5197_v45 = vsel %vm5194_vm5, %v5196_v4, %v5192_v21  ;;  %v5157_v22 = vmul.f32 %v5146_v36, %v13734_v5 }
 0x78a   : > { %v9076_v61 = vpop.eup %9075  ;;  %v13807_v20 = vmax.f32 %v5162_v54, 1e-06  ;;  %v5408_v11 = vmul.f32 %v5197_v45, %v13384_v44  ;;  %vm13819_vm9 = vcmp.eq.f32.partialorder %v5221_v39, 8.507059e+37  ;;  %v5224_v6 = vor.u32 1.1754944e-38, %v5223_v1 }
 0x78b   : > { %v13810_v27 = vpop.eup %9077  ;;  %v5213_v57 = vmul.f32 %v9076_v61, %v13771_v25  ;;  %v13823_v53 = vmax.f32 %v5163_v43, 1e-06  ;;  %v13825_v62 = vmax.f32 %v5156_v10, 1e-06  ;;  %v5126_v28 = vmul.f32 %v5125_v12, %v13741_v59  ;;  %v13845_v43 = vpop.permute.xlu0 %6196 }
 0x78c   : > { %vm5231_vm2 = vweird.f32 %v13773_v42  ;;  %v5237_v5 = vand.u32 2147483648, %v13773_v42  ;;  %9079 = vrcp.f32 %v13807_v20  ;;  %v5427_v44 = vmul.f32 %v13813_v31, %v5408_v11  ;;  %16127 = vst [vmem:[#allocation98_spill] sm:$0xff] %v13845_v43 }
 0x78d   : > { %v5214_v39 = vsub.f32 1.0, %v5213_v57  ;;  %v5227_v54 = vmul.f32 %v13810_v27, %v13773_v42  ;;  %9081 = vrcp.f32 %v13825_v62  ;;  %v5128_v46 = vsel %vm5127_vm0, %v13741_v59, %v5126_v28 }
 0x78e   : > { %vm5218_vm7 = vweird.f32 %v9076_v61  ;;  %v13841_v34 = vmax.f32 %v13744_v63, 1e-06  ;;  %v13843_v1 = vmax.f32 %v5157_v22, 1e-06  ;;  %v5131_v36 = vsel %vm5129_vm6, %v5130_v0, %v5128_v46  ;;  %v13861_v0 = vpop.permute.xlu2 %6081 }
 0x78f   : > { %v13850_v60 = vadd.f32 %v13828_v13, %v5427_v44  ;;  %v5215_v4 = vmul.f32 %v9076_v61, %v5214_v39  ;;  %v5150_v21 = vperm.slane %v5131_v36, 0  ;;  %v5228_v10 = vsub.f32 1.0, %v5227_v54  ;;  %16130 = vst [vmem:[#allocation135_spill] sm:$0xff] %v13861_v0  ;;  %vm5219_vm13 = vmor %vm5217_vm12, %vm5218_vm7 }
 0x790   : > { %vm13852_vm11 = vcmp.eq.f32.partialorder %v5235_v37, 8.507059e+37  ;;  %9083 = vrcp.f32 %v13841_v34  ;;  %v5209_v59 = vand.u32 2147483648, %v13841_v34  ;;  %vm5232_vm15 = vweird.f32 %v13810_v27 }
 0x791   : > { %9085 = vrcp.f32 %v13823_v53  ;;  %v5462_v63 = vsel %vm1960_vm14, %v13850_v60, -inf  ;;  %v5216_v45 = vadd.f32 %v9076_v61, %v5215_v4  ;;  %v5164_v22 = vmul.f32 %v5150_v21, %v13739_v8  ;;  %vm5233_vm10 = vmor %vm5231_vm2, %vm5232_vm15  ;;  %v13891_v4 = vpop.permute.xlu1 %6003 }
 0x792   : > { %v5165_v11 = vmul.f32 %v5150_v21, %v13708_v24  ;;  %5463 = vmax.xlane.f32.xlu0 %v5462_v63  ;;  %v5229_v37 = vmul.f32 %v13810_v27, %v5228_v10  ;;  %v13870_v57 = vpop.eup %9079  ;;  %9087 = vrcp.f32 %v13843_v1  ;;  %v5238_v44 = vor.u32 1.1754944e-38, %v5237_v5 }
 0x793   : > { %v5220_v28 = vsel %vm5219_vm13, %v9076_v61, %v5216_v45  ;;  %v5207_v39 = vand.u32 2147483647, %v13841_v34  ;;  %v13874_v8 = vpop.eup %9081  ;;  %vm5203_vm3 = vweird.f32 %v13841_v34  ;;  %v5249_v54 = vand.u32 2147483647, %v13825_v62 }
 0x794   : > { %v5225_v24 = vsel %vm13819_vm9, %v5224_v6, %v5220_v28  ;;  %v5230_v25 = vadd.f32 %v13810_v27, %v5229_v37  ;;  %v5210_v61 = vor.u32 1.1754944e-38, %v5209_v59  ;;  %v5241_v5 = vmul.f32 %v13874_v8, %v13825_v62 }
 0x795   : > { %v5410_v46 = vmul.f32 %v5225_v24, %v13441_v3  ;;  %vm5245_vm0 = vweird.f32 %v13825_v62  ;;  %v13887_v18 = vmax.f32 %v5164_v22, 1e-06  ;;  %v13889_v6 = vmax.f32 %v5165_v11, 1e-06  ;;  %v3830_v22 = vpop.xlane.xlu0 %3829 }
 0x796   : > { %v9084_v36 = vpop.eup %9083  ;;  %v5234_v21 = vsel %vm5233_vm10, %v13810_v27, %v5230_v25  ;;  %v5325_v3 = vmul.f32 %v13870_v57, %v13807_v20  ;;  %vm4749_vm6 = vcmp.eq.f32.partialorder %v13386_v51, 0.0  ;;  %vm13903_vm8 = vcmp.eq.f32.partialorder %v5207_v39, 8.507059e+37  ;;  %v13919_v39 = vld [vmem:[#allocation11 + $0x28] sm:$0xff] }
 0x797   : > { %v13896_v42 = vpop.eup %9085  ;;  %v5429_v10 = vmul.f32 %v13813_v31, %v5410_v46  ;;  %v5239_v63 = vsel %vm13852_vm11, %v5238_v44, %v5234_v21  ;;  %v5199_v45 = vmul.f32 %v9084_v36, %v13841_v34  ;;  %vm5246_vm4 = vweird.f32 %v13874_v8 }
 0x798   : > { %v5411_v27 = vmul.f32 %v5239_v63, %v13468_v49  ;;  %v5242_v11 = vsub.f32 1.0, %v5241_v5  ;;  %vm13909_vm5 = vcmp.eq.f32.partialorder %v5249_v54, 8.507059e+37  ;;  %v5251_v28 = vand.u32 2147483648, %v13825_v62  ;;  %v13914_v12 = vpop.eup %9087  ;;  %v13928_v63 = vpop.permute.xlu2 %6077  ;;  %vm13935_vm2 = vmor %vm5245_vm0, %vm5246_vm4 }
 0x799   : > { %v13917_v44 = vadd.f32 %v13828_v13, %v5429_v10  ;;  %v5200_v24 = vsub.f32 1.0, %v5199_v45  ;;  %vm5204_vm12 = vweird.f32 %v9084_v36  ;;  %v5326_v25 = vsub.f32 1.0, %v5325_v3  ;;  %16135 = vst [vmem:[#allocation51_spill] sm:$0xff] %v13928_v63 }
 0x79a   : > { %v5430_v46 = vmul.f32 %v13919_v39, %v5411_v27  ;;  %9089 = vrcp.f32 %v3830_v22  ;;  %v5243_v49 = vmul.f32 %v13874_v8, %v5242_v11  ;;  %vm5330_vm9 = vweird.f32 %v13870_v57  ;;  %vm13948_vm7 = vmor %vm5203_vm3, %vm5204_vm12 }
 0x79b   : > { %v5468_v54 = vsel %vm1960_vm14, %v13917_v44, -inf  ;;  %v5201_v5 = vmul.f32 %v9084_v36, %v5200_v24  ;;  %v5327_v21 = vmul.f32 %v13870_v57, %v5326_v25  ;;  %v5333_v10 = vand.u32 2147483647, %v13807_v20  ;;  %v13943_v24 = vld [vmem:[#allocation12 + $0x28] sm:$0xff] }
 0x79c   : > { %5469 = vmax.xlane.f32.xlu0 %v5468_v54  ;;  %v5244_v3 = vadd.f32 %v13874_v8, %v5243_v49  ;;  %v5252_v22 = vor.u32 1.1754944e-38, %v5251_v28  ;;  %v5335_v27 = vand.u32 2147483648, %v13807_v20  ;;  %v13941_v11 = vmax.f32 %v13756_v58, 1e-06 }
 0x79d   : > { %v5202_v25 = vadd.f32 %v9084_v36, %v5201_v5  ;;  %v5328_v62 = vadd.f32 %v13870_v57, %v5327_v21  ;;  %vm5329_vm11 = vweird.f32 %v13807_v20  ;;  %v5255_v28 = vmul.f32 %v13914_v12, %v13843_v1 }
 0x79e   : > { %v13957_v58 = vadd.f32 %v13943_v24, %v5430_v46  ;;  %v5248_v54 = vsel %vm13935_vm2, %v13874_v8, %v5244_v3  ;;  %vm5331_vm13 = vmor %vm5329_vm11, %vm5330_vm9  ;;  %v5336_v34 = vor.u32 1.1754944e-38, %v5335_v27  ;;  %9091 = vrcp.f32 %v13941_v11  ;;  %v13975_v3 = vpop.permute.xlu1 %5999 }
 0x79f   : > { %v5206_v5 = vsel %vm13948_vm7, %v9084_v36, %v5202_v25  ;;  %v5253_v20 = vsel %vm13909_vm5, %v5252_v22, %v5248_v54  ;;  %v5332_v21 = vsel %vm5331_vm13, %v13870_v57, %v5328_v62  ;;  %vm5334_vm15 = vcmp.eq.f32.partialorder %v5333_v10, 8.507059e+37 }
 0x7a0   : > { %v9090_v46 = vpop.eup %9089  ;;  %v16140_v45 = vand.u32 2147483648, %v13386_v51  ;;  %v5211_v27 = vsel %vm13903_vm8, %v5210_v61, %v5206_v5  ;;  %v5412_v36 = vmul.f32 %v5253_v20, %v13480_v7  ;;  %v5337_v25 = vsel %vm5334_vm15, %v5336_v34, %v5332_v21  ;;  %v14005_v34 = vpop.permute.xlu2 %6157 }
 0x7a1   : > { %9093 = vrcp.f32 %v13887_v18  ;;  %v5409_v57 = vmul.f32 %v5211_v27, %v13394_v47  ;;  %v5418_v37 = vmul.f32 %v5337_v25, %v13517_v17  ;;  %v5256_v10 = vsub.f32 1.0, %v5255_v28  ;;  %16141 = vst [vmem:[#allocation112_spill] sm:$0xff] %v14005_v34 }
 0x7a2   : > { %v4751_v8 = vsel %vm4749_vm6, %v16140_v45, %v13612_v15  ;;  %9095 = vrcp.f32 %v13889_v6  ;;  %v5471_v51 = vsel %vm1960_vm14, %v13957_v58, -inf  ;;  %v5431_v15 = vmul.f32 %v13813_v31, %v5412_v36 }
 0x7a3   : > { %v5161_v22 = vmul.f32 %v5148_v23, %v4751_v8  ;;  %v5428_v7 = vmul.f32 %v13919_v39, %v5409_v57  ;;  %v5437_v61 = vmul.f32 %v13813_v31, %v5418_v37  ;;  %v5257_v59 = vmul.f32 %v13914_v12, %v5256_v10 }
 0x7a4   : > { %vm5260_vm3 = vweird.f32 %v13914_v12  ;;  %v9092_v47 = vpop.eup %9091  ;;  %5472 = vmax.xlane.f32.xlu0 %v5471_v51  ;;  %v13994_v17 = vadd.f32 %v13828_v13, %v5431_v15  ;;  %v5263_v56 = vand.u32 2147483647, %v13843_v1  ;;  %v5265_v23 = vand.u32 2147483648, %v13843_v1 }
 0x7a5   : > { %v3862_v49 = vmul.f32 %v9090_v46, %v13364_v14  ;;  %v14000_v62 = vadd.f32 %v13943_v24, %v5428_v7  ;;  %v5297_v28 = vmul.f32 %v9092_v47, %v13941_v11  ;;  %vm5301_vm10 = vweird.f32 %v13941_v11 }
 0x7a6   : > { %v5305_v54 = vand.u32 2147483647, %v13941_v11  ;;  %v5474_v5 = vsel %vm1960_vm14, %v13994_v17, -inf  ;;  %v14010_v20 = vadd.f32 %v13828_v13, %v5437_v61  ;;  %v5258_v21 = vadd.f32 %v13914_v12, %v5257_v59  ;;  %v14028_v15 = vpop.permute.xlu1 %6001 }
 0x7a7   : > { %vm5259_vm0 = vweird.f32 %v13843_v1  ;;  %8287 = vmatmul.msk.f32.gmra.mxu3 %vm1960_vm14, %v3862_v49  ;;  %v14015_v14 = vpop.eup %9093  ;;  %v5465_v46 = vsel %vm1960_vm14, %v14000_v62, -inf  ;;  %5475 = vmax.xlane.f32.xlu2 %v5474_v5  ;;  %v5298_v45 = vsub.f32 1.0, %v5297_v28  ;;  %v5266_v8 = vor.u32 1.1754944e-38, %v5265_v23  ;;  %16142 = vst [vmem:[#allocation143_spill] sm:$0xff] %v14028_v15 }
 0x7a8   : > { %vm5261_vm6 = vmor %vm5259_vm0, %vm5260_vm3  ;;  %v5339_v27 = vmul.f32 %v13896_v42, %v13823_v53  ;;  %v14023_v36 = vpop.eup %9095  ;;  %5466 = vmax.xlane.f32.xlu1 %v5465_v46  ;;  %vm5302_vm8 = vweird.f32 %v9092_v47  ;;  %v5307_v1 = vand.u32 2147483648, %v13941_v11  ;;  %vm5264_vm4 = vcmp.eq.f32.partialorder %v5263_v56, 8.507059e+37 }
 0x7a9   : > { %v5262_v25 = vsel %vm5261_vm6, %v13914_v12, %v5258_v21  ;;  %v5299_v57 = vmul.f32 %v9092_v47, %v5298_v45  ;;  %v5347_v51 = vand.u32 2147483647, %v13823_v53  ;;  %v5349_v61 = vand.u32 2147483648, %v13823_v53  ;;  %vm5303_vm12 = vmor %vm5301_vm10, %vm5302_vm8 }
 0x7aa   : > { %v5267_v37 = vsel %vm5264_vm4, %v5266_v8, %v5262_v25  ;;  %v5340_v10 = vsub.f32 1.0, %v5339_v27  ;;  %v14032_v59 = vmax.f32 %v5161_v22, 1e-06  ;;  %v5353_v23 = vmul.f32 %v14015_v14, %v13887_v18  ;;  %v16143_v8 = vld [vmem:[#allocation140_spill] sm:$0xff] }
 0x7ab   : > { %v5413_v7 = vmul.f32 %v5267_v37, %v13536_v16  ;;  %v5492_v12 = vsel %vm1960_vm14, %v14010_v20, -inf  ;;  %v5300_v56 = vadd.f32 %v9092_v47, %v5299_v57  ;;  %vm5344_vm5 = vweird.f32 %v13896_v42 }
 0x7ac   : > { %v5341_v49 = vmul.f32 %v13896_v42, %v5340_v10  ;;  %5493 = vmax.xlane.f32.xlu0 %v5492_v12  ;;  %vm5306_vm9 = vcmp.eq.f32.partialorder %v5305_v54, 8.507059e+37  ;;  %v5308_v16 = vor.u32 1.1754944e-38, %v5307_v1  ;;  %9097 = vrcp.f32 %v14032_v59  ;;  %v14058_v1 = vpop.permute.xlu2 %6200 }
 0x7ad   : > { %v5432_v22 = vmul.f32 %v13919_v39, %v5413_v7  ;;  %v5304_v28 = vsel %vm5303_vm12, %v9092_v47, %v5300_v56  ;;  %vm5343_vm2 = vweird.f32 %v13823_v53  ;;  %v5354_v21 = vsub.f32 1.0, %v5353_v23  ;;  %v16144_v53 = vld [vmem:[#allocation99_spill] sm:$0xff] }
 0x7ae   : > { %v5342_v5 = vadd.f32 %v13896_v42, %v5341_v49  ;;  %v5309_v46 = vsel %vm5306_vm9, %v5308_v16, %v5304_v28  ;;  %vm5345_vm7 = vmor %vm5343_vm2, %vm5344_vm5  ;;  %vm5348_vm11 = vcmp.eq.f32.partialorder %v5347_v51, 8.507059e+37  ;;  %v5350_v11 = vor.u32 1.1754944e-38, %v5349_v61  ;;  %v16145_v16 = vld [vmem:[#allocation95_spill] sm:$0xff] }
 0x7af   : > { %v14048_v45 = vadd.f32 %v13943_v24, %v5432_v22  ;;  %8302 = vmatmul.msk.f32.vlgmr.msra.gmra.mxu3 %vm784_vm1, %v16143_v8  ;;  %v5416_v54 = vmul.f32 %v5309_v46, %v13412_v52  ;;  %v5355_v47 = vmul.f32 %v14015_v14, %v5354_v21  ;;  %vm5358_vm13 = vweird.f32 %v14015_v14  ;;  %v14080_v22 = vpop.permute.xlu1 %6083 }
 0x7b0   : > { %v5346_v27 = vsel %vm5345_vm7, %v13896_v42, %v5342_v5  ;;  %8329 = vmatpush.xpose.msk.msra.mxu3 %vm784_vm1, %v16144_v53  ;;  %v5361_v37 = vand.u32 2147483647, %v13887_v18  ;;  %v5363_v10 = vand.u32 2147483648, %v13887_v18  ;;  %v5367_v7 = vmul.f32 %v14023_v36, %v13889_v6  ;;  %16146 = vst [vmem:[#allocation30_spill] sm:$0xff] %v14080_v22 }
 0x7b1   : > { %v5477_v25 = vsel %vm1960_vm14, %v14048_v45, -inf  ;;  %v5351_v57 = vsel %vm5348_vm11, %v5350_v11, %v5346_v27  ;;  %v5435_v52 = vmul.f32 %v13813_v31, %v5416_v54  ;;  %v5356_v51 = vadd.f32 %v14015_v14, %v5355_v47  ;;  %v16147_v27 = vld [vmem:[#allocation89_spill] sm:$0xff] }
 0x7b2   : > { %5478 = vmax.xlane.f32.xlu2 %v5477_v25  ;;  %v5419_v42 = vmul.f32 %v5351_v57, %v13570_v40  ;;  %v9098_v61 = vpop.eup %9097  ;;  %v5321_v23 = vand.u32 2147483648, %v14032_v59  ;;  %vm5357_vm15 = vweird.f32 %v13887_v18  ;;  %v5364_v40 = vor.u32 1.1754944e-38, %v5363_v10 }
 0x7b3   : > { %v14072_v12 = vadd.f32 %v13828_v13, %v5435_v52  ;;  %v5311_v49 = vmul.f32 %v9098_v61, %v14032_v59  ;;  %vm5359_vm3 = vmor %vm5357_vm15, %vm5358_vm13  ;;  %vm5362_vm10 = vcmp.eq.f32.partialorder %v5361_v37, 8.507059e+37  ;;  %v5368_v18 = vsub.f32 1.0, %v5367_v7 }
 0x7b4   : > { %v5438_v56 = vmul.f32 %v13919_v39, %v5419_v42  ;;  %8330 = vmatpush.xpose.msk.msra.mxu3 %vm784_vm1, %v16145_v16  ;;  %v5360_v28 = vsel %vm5359_vm3, %v14015_v14, %v5356_v51  ;;  %v5377_v5 = vand.u32 2147483648, %v13889_v6  ;;  %vm5372_vm0 = vweird.f32 %v14023_v36  ;;  %v14102_v42 = vpop.permute.xlu2 %6079 }
 0x7b5   : > { %v5486_v21 = vsel %vm1960_vm14, %v14072_v12, -inf  ;;  %v5312_v11 = vsub.f32 1.0, %v5311_v49  ;;  %v5365_v8 = vsel %vm5362_vm10, %v5364_v40, %v5360_v28  ;;  %v5369_v14 = vmul.f32 %v14023_v36, %v5368_v18  ;;  %16148 = vst [vmem:[#allocation145_spill] sm:$0xff] %v14102_v42 }
 0x7b6   : > { %v14087_v46 = vadd.f32 %v13943_v24, %v5438_v56  ;;  %5487 = vmax.xlane.f32.xlu1 %v5486_v21  ;;  %v5420_v54 = vmul.f32 %v5365_v8, %v13583_v38  ;;  %v5375_v47 = vand.u32 2147483647, %v13889_v6  ;;  %vm5316_vm6 = vweird.f32 %v9098_v61 }
 0x7b7   : > { %8303 = vmatmul.msk.f32.gmra.mxu3 %vm784_vm1, %v16147_v27  ;;  %v5313_v25 = vmul.f32 %v9098_v61, %v5312_v11  ;;  %v5319_v57 = vand.u32 2147483647, %v14032_v59  ;;  %v5370_v38 = vadd.f32 %v14023_v36, %v5369_v14  ;;  %vm5371_vm8 = vweird.f32 %v13889_v6  ;;  %v14112_v18 = vpop.permute.xlu1 %6159  ;;  %v16152_v27 = vld [vmem:[#allocation134_spill] sm:$0xff] }
 0x7b8   : > { %v5495_v53 = vsel %vm1960_vm14, %v14087_v46, -inf  ;;  %v5439_v37 = vmul.f32 %v13813_v31, %v5420_v54  ;;  %vm5315_vm4 = vweird.f32 %v14032_v59  ;;  %vm5373_vm5 = vmor %vm5371_vm8, %vm5372_vm0  ;;  %v5378_v52 = vor.u32 1.1754944e-38, %v5377_v5  ;;  %v16149_v5 = vld [vmem:[#allocation120_spill] sm:$0xff] }
 0x7b9   : > { %5496 = vmax.xlane.f32.xlu0 %v5495_v53  ;;  %v5314_v10 = vadd.f32 %v9098_v61, %v5313_v25  ;;  %vm5317_vm12 = vmor %vm5315_vm4, %vm5316_vm6  ;;  %v5322_v51 = vor.u32 1.1754944e-38, %v5321_v23  ;;  %v5374_v56 = vsel %vm5373_vm5, %v14023_v36, %v5370_v38  ;;  %vm5376_vm9 = vcmp.eq.f32.partialorder %v5375_v47, 8.507059e+37  ;;  %v16154_v47 = vld [vmem:[#allocation77_spill] sm:$0xff] }
 0x7ba   : > { %v14105_v7 = vadd.f32 %v13828_v13, %v5439_v37  ;;  %vm5320_vm2 = vcmp.eq.f32.partialorder %v5319_v57, 8.507059e+37  ;;  %v5379_v40 = vsel %vm5376_vm9, %v5378_v52, %v5374_v56  ;;  %v8696_v53 = vunpack.i.l.bf16 %v13698_v48  ;;  %v16158_v48 = vld [vmem:[#allocation76_spill] sm:$0xff] }
 0x7bb   : > { %v5318_v49 = vsel %vm5317_vm12, %v9098_v61, %v5314_v10  ;;  %v5421_v59 = vmul.f32 %v5379_v40, %v13624_v55  ;;  %v16150_v61 = vld [vmem:[#allocation97_spill] sm:$0xff]  ;;  %v16155_v57 = vmov 1.0   ;;  %v8701_v37 = vunpack.i.l.bf16 %v13398_v50  ;;  %v14143_v10 = vpop.permute.xlu0 %6235 }
 0x7bc   : > { %v5323_v16 = vsel %vm5320_vm2, %v5322_v51, %v5318_v49  ;;  %v5498_v6 = vsel %vm1960_vm14, %v14105_v7, -inf  ;;  %v16151_v55 = vld [vmem:[#allocation101_spill] sm:$0xff]  ;;  %v14128_v8 = vpop.permute.xlu2 %6198  ;;  %16156 = vst [vmem:[#allocation139_spill] sm:$0xff] %v14143_v10  ;;  %v16159_v49 = vld [vmem:[#allocation79_spill] sm:$0xff]  ;;  %vm4711_vm11 = vcmp.eq.f32.partialorder %v16177_v2, inf  ;;  %vm4713_vm10 = vcmp.eq.f32.partialorder %v16177_v2, 0.0 }
 0x7bd   : > { %v5417_v28 = vmul.f32 %v5323_v16, %v13431_v26  ;;  %5499 = vmax.xlane.f32.xlu2 %v5498_v6  ;;  %v5440_v23 = vmul.f32 %v13919_v39, %v5421_v59  ;;  %vm4819_vm4 = vcmp.eq.f32.partialorder %v13659_v19, inf  ;;  %vm4821_vm12 = vcmp.eq.f32.partialorder %v13659_v19, 0.0 }
 0x7bf   : > { %8318 = vmatmul.msk.f32.vlgmr.msrb.gmra.mxu3 %vm784_vm1, %v16149_v5  ;;  %v5436_v36 = vmul.f32 %v13919_v39, %v5417_v28  ;;  %v5459_v21 = vadd.f32 %v13943_v24, %v5440_v23  ;;  %v14133_v14 = vpop.permute.xlu1 %6038 }
 0x7c0   : > { %8341 = vmatpush.xpose.msk.msrb.mxu3 %vm784_vm1, %v16150_v61  ;;  %16153 = vst [vmem:[#allocation44_spill] sm:$0xff] %v14133_v14 }
 0x7c1   : > { %v14122_v11 = vadd.f32 %v13943_v24, %v5436_v36  ;;  %v5501_v54 = vsel %vm1960_vm14, %v5459_v21, -inf }
 0x7c3   : > { %v5489_v26 = vsel %vm1960_vm14, %v14122_v11, -inf  ;;  %v14153_v50 = vpop.permute.xlu0 %6657 }
 0x7c4   : > { %8342 = vmatpush.xpose.msk.msrb.mxu3 %vm784_vm1, %v16151_v55  ;;  %5490 = vmax.xlane.f32.xlu1 %v5489_v26  ;;  %v14138_v25 = vpop.permute.xlu2 %6599  ;;  %16160 = vst [vmem:[#allocation110_spill] sm:$0xff] %v14153_v50  ;;  %v14173_v26 = vpop.f32.mrf.mxu3 }
 0x7c5   : > { %5502 = vmax.xlane.f32.xlu2 %v5501_v54  ;;  %16169 = vst [vmem:[#allocation142_spill] sm:$0xff] %v14173_v26 }
 0x7c7   : > { %8319 = vmatmul.msk.f32.gmra.mxu3 %vm784_vm1, %v16152_v27  ;;  %v8705_v38 = vpop.permute.xlu1 %8704 }
 0x7c8   : > { %v8706_v52 = vunpack.i.l.bf16 %v8705_v38  ;;  %v8707_v51 = vunpack.i.h.bf16 %v8705_v38 }
 0x7cb   : > { %v14157_v16 = vpop.permute.xlu0 %6272 }
 0x7cc   : > { %v14147_v56 = vpop.permute.xlu2 %6237  ;;  %16162 = vst [vmem:[#allocation129_spill] sm:$0xff] %v14157_v16  ;;  %v14179_v27 = vpop.f32.mrf.mxu3 }
 0x7cd   : > { %6767 = vrot.lane.b32.xlu0 %v16154_v47, %s9638_s7  ;;  %16157 = vst [vmem:[#allocation94_spill] sm:$0xff] %v14147_v56 }
 0x7ce   : > { %16171 = vst [vmem:[#allocation86_spill] sm:$0xff] %v14179_v27 }
 0x7cf   : > { %8331 = vmatmul.msk.f32.vlgmr.msra.gmra.mxu3 %vm784_vm1, %v16155_v57 }
 0x7d0   : > { %5769 = vmatpush.msra.mxu3 %v8696_v53 }
 0x7d2   : > { %5770 = vmatpush.msra.mxu3 %v8701_v37 }
 0x7d3   : > { %v14161_v59 = vpop.permute.xlu0 %6683 }
 0x7d4   : > { %v14155_v40 = vpop.permute.xlu2 %6233  ;;  %16164 = vst [vmem:[#allocation60_spill] sm:$0xff] %v14161_v59  ;;  %v16175_v59 = vld [vmem:[#allocation122_spill] sm:$0xff] }
 0x7d5   : > { %16161 = vst [vmem:[#allocation113_spill] sm:$0xff] %v14155_v40  ;;  %vm4723_vm7 = vcmp.eq.f32.partialorder %v16175_v59, inf  ;;  %vm4725_vm3 = vcmp.eq.f32.partialorder %v16175_v59, 0.0 }
 0x7d7   : > { %8343 = vmatmul.msk.f32.vlgmr.msrb.gmra.mxu3 %vm784_vm1, %v16155_v57 }
 0x7d8   : > { %5909 = vmatpush.msrb.mxu3 %v8706_v52  ;;  %v14184_v52 = vpop.f32.mrf.mxu3 }
 0x7d9   : > { %16172 = vst [vmem:[#allocation38_spill] sm:$0xff] %v14184_v52 }
 0x7da   : > { %5910 = vmatpush.msrb.mxu3 %v8707_v51 }
 0x7db   : > { %v14165_v23 = vpop.permute.xlu0 %6741 }
 0x7dc   : > { %v14159_v6 = vpop.permute.xlu2 %6629  ;;  %16166 = vst [vmem:[#allocation96_spill] sm:$0xff] %v14165_v23 }
 0x7dd   : > { %6769 = vrot.lane.b32.xlu1 %v16158_v48, %s9638_s7  ;;  %6739 = vrot.lane.b32.xlu2 %v16159_v49, %s9638_s7  ;;  %16163 = vst [vmem:[#allocation119_spill] sm:$0xff] %v14159_v6 }
 0x7e4   : > { %v14163_v28 = vpop.permute.xlu2 %6278 }
 0x7e5   : > { %16165 = vst [vmem:[#allocation123_spill] sm:$0xff] %v14163_v28 }
 0x7ec   : > { %v14167_v5 = vpop.permute.xlu2 %6276 }
 0x7ed   : > { %16167 = vst [vmem:[#allocation92_spill] sm:$0xff] %v14167_v5 }
 0x7f4   : > { %v14171_v61 = vpop.permute.xlu2 %6274 }
 0x7f5   : > { %16168 = vst [vmem:[#allocation137_spill] sm:$0xff] %v14171_v61 }
 0x7fc   : > { %v14177_v54 = vpop.permute.xlu2 %6713 }
 0x7fd   : > { %16170 = vst [vmem:[#allocation90_spill] sm:$0xff] %v14177_v54 }
 0x805   : > { %v14169_v36 = vpop.xlane.xlu0 %5463 }
 0x80f   : > { %v14175_v55 = vpop.xlane.xlu0 %5469 }
 0x817   : > { %v5473_v47 = vpop.xlane.xlu0 %5472 }
 0x818   : > { %v5513_v53 = vsub.f32 %v13957_v58, %v5473_v47 }
 0x81a   : > { %v5532_v37 = vmul.f32 1.442695, %v5513_v53  ;;  %v14182_v38 = vpop.xlane.xlu2 %5475 }
 0x81c   : > { %9099 = vpow2.f32 %v5532_v37  ;;  %v14200_v37 = vpop.permute.xlu1 %6194 }
 0x81d   : > { %16174 = vst [vmem:[#allocation147_spill] sm:$0xff] %v14200_v37 }
 0x822   : > { %v14186_v51 = vpop.eup %9099 }
 0x823   : > { %v5567_v48 = vsel %vm1960_vm14, %v14186_v51, 0.0 }
 0x824   : > { %5568 = vadd.xlane.f32.xlu2 %v5567_v48 }
 0x825   : > { %v14190_v49 = vpop.xlane.xlu2 %5478 }
 0x82a   : > { %v14192_v26 = vpop.f32.mrf.mxu3 }
 0x82b   : > { %16173 = vst [vmem:[#allocation144_spill] sm:$0xff] %v14192_v26  ;;  %v14208_v26 = vpop.permute.xlu1 %6118 }
 0x82c   : > { %16178 = vst [vmem:[#allocation88_spill] sm:$0xff] %v14208_v26 }
 0x830   : > { %v14194_v27 = vpop.xlane.xlu2 %5499 }
 0x832   : > { %v14196_v61 = vpop.f32.mrf.mxu3 }
 0x833   : > { %v14218_v30 = vpop.permute.xlu1 %6627 }
 0x834   : > { %16180 = vst [vmem:[#allocation108_spill] sm:$0xff] %v14218_v30 }
 0x838   : > { %v5503_v58 = vpop.xlane.xlu2 %5502 }
 0x839   : > { %v5523_v47 = vsub.f32 %v5459_v21, %v5503_v58 }
 0x83a   : > { %v14198_v53 = vpop.f32.mrf.mxu3 }
 0x83b   : > { %v5552_v52 = vmul.f32 1.442695, %v5523_v47  ;;  %v16179_v47 = vld [vmem:[#allocation117_spill] sm:$0xff]  ;;  %v14222_v9 = vpop.permute.xlu1 %6655 }
 0x83c   : > { %16181 = vst [vmem:[#allocation40_spill] sm:$0xff] %v14222_v9  ;;  %vm4807_vm8 = vcmp.eq.f32.partialorder %v16179_v47, inf  ;;  %vm4809_vm5 = vcmp.eq.f32.partialorder %v16179_v47, 0.0 }
 0x83d   : > { %9101 = vpow2.f32 %v5552_v52 }
 0x83e   : > { %9103 = vrsqrt.f32 %v16175_v59 }
 0x83f   : > { %9105 = vrsqrt.f32 %v16177_v2 }
 0x840   : > { %9107 = vrsqrt.f32 %v16179_v47 }
 0x841   : > { %9109 = vrsqrt.f32 %v13659_v19 }
 0x842   : > { %v14202_v16 = vpop.f32.mrf.mxu3 }
 0x843   : > { %v14205_v48 = vpop.eup %9101 }
 0x844   : > { %16176 = vst [vmem:[#allocation102_spill] sm:$0xff] %v14205_v48  ;;  %v5597_v5 = vsel %vm1960_vm14, %v14205_v48, 0.0  ;;  %v9104_v21 = vpop.eup %9103 }
 0x845   : > { %5598 = vadd.xlane.f32.xlu2 %v5597_v5  ;;  %v9106_v58 = vpop.eup %9105  ;;  %v4717_v52 = vmul.f32 %v9104_v21, %v16175_v59 }
 0x846   : > { %v4705_v32 = vmul.f32 %v9106_v58, %v16177_v2  ;;  %v9108_v40 = vpop.eup %9107 }
 0x847   : > { %v4718_v10 = vmul.f32 %v9104_v21, %v4717_v52  ;;  %v9110_v50 = vpop.eup %9109  ;;  %v4801_v43 = vmul.f32 %v9108_v40, %v16179_v47 }
 0x848   : > { %v4706_v26 = vmul.f32 %v9106_v58, %v4705_v32  ;;  %v4813_v57 = vmul.f32 %v9110_v50, %v13659_v19 }
 0x849   : > { %v4719_v5 = vmul.f32 0.5, %v4718_v10  ;;  %v4802_v48 = vmul.f32 %v9108_v40, %v4801_v43 }
 0x84a   : > { %v14212_v28 = vpop.f32.mrf.mxu3  ;;  %v4707_v63 = vmul.f32 0.5, %v4706_v26  ;;  %v4814_v34 = vmul.f32 %v9110_v50, %v4813_v57  ;;  %v14227_v57 = vpop.permute.xlu1 %6685 }
 0x84b   : > { %v4720_v23 = vsub.f32 1.5, %v4719_v5  ;;  %v4803_v6 = vmul.f32 0.5, %v4802_v48  ;;  %v4714_v48 = vand.u32 2147483648, %v16177_v2 }
 0x84c   : > { %v4708_v56 = vsub.f32 1.5, %v4707_v63  ;;  %v4815_v10 = vmul.f32 0.5, %v4814_v34 }
 0x84d   : > { %v4721_v32 = vmul.f32 %v9104_v21, %v4720_v23  ;;  %v4804_v5 = vsub.f32 1.5, %v4803_v6 }
 0x84e   : > { %v4709_v29 = vmul.f32 %v9106_v58, %v4708_v56  ;;  %v4816_v63 = vsub.f32 1.5, %v4815_v10 }
 0x84f   : > { %v4722_v26 = vmul.f32 %v4721_v32, %v16175_v59  ;;  %v4805_v23 = vmul.f32 %v9108_v40, %v4804_v5 }
 0x850   : > { %v4710_v43 = vmul.f32 %v4709_v29, %v16177_v2 }
 0x851   : > { %v4806_v40 = vmul.f32 %v4805_v23, %v16179_v47  ;;  %v4822_v23 = vand.u32 2147483648, %v13659_v19 }
 0x852   : > { %v4933_v42 = vpop.f32.mrf.mxu3 }
 0x853   : > { %9111 = vrsqrt.f32 %v4933_v42  ;;  %vm5091_vm13 = vcmp.eq.f32.partialorder %v4933_v42, inf  ;;  %v5094_v6 = vand.u32 2147483648, %v4933_v42  ;;  %vm5093_vm15 = vcmp.eq.f32.partialorder %v4933_v42, 0.0 }
 0x859   : > { %v9112_v37 = vpop.eup %9111 }
 0x85a   : > { %v5085_v30 = vmul.f32 %v9112_v37, %v4933_v42  ;;  %v5045_v52 = vpop.f32.mrf.mxu3 }
 0x85b   : > { %9113 = vrsqrt.f32 %v5045_v52  ;;  %vm5139_vm0 = vcmp.eq.f32.partialorder %v5045_v52, inf  ;;  %v5142_v5 = vand.u32 2147483648, %v5045_v52  ;;  %vm5141_vm6 = vcmp.eq.f32.partialorder %v5045_v52, 0.0 }
 0x85c   : > { %v5086_v54 = vmul.f32 %v9112_v37, %v5085_v30  ;;  %v4724_v30 = vsel %vm4723_vm7, %v16175_v59, %v4722_v26 }
 0x85e   : > { %v5087_v14 = vmul.f32 0.5, %v5086_v54  ;;  %v4817_v54 = vmul.f32 %v9110_v50, %v4816_v63 }
 0x860   : > { %v5088_v0 = vsub.f32 1.5, %v5087_v14  ;;  %v4712_v14 = vsel %vm4711_vm11, %v16177_v2, %v4710_v43  ;;  %v4818_v50 = vmul.f32 %v4817_v54, %v13659_v19  ;;  %v14240_v2 = vpop.permute.xlu1 %6711 }
 0x861   : > { %v9114_v22 = vpop.eup %9113  ;;  %v4715_v58 = vsel %vm4713_vm10, %v4714_v48, %v4712_v14 }
 0x862   : > { %v5089_v15 = vmul.f32 %v9112_v37, %v5088_v0  ;;  %v5133_v9 = vmul.f32 %v9114_v22, %v5045_v52  ;;  %v4726_v37 = vand.u32 2147483648, %v16175_v59  ;;  %v4808_v59 = vsel %vm4807_vm8, %v16179_v47, %v4806_v40 }
 0x864   : > { %v5090_v34 = vmul.f32 %v5089_v15, %v4933_v42  ;;  %v5134_v56 = vmul.f32 %v9114_v22, %v5133_v9  ;;  %v4727_v32 = vsel %vm4725_vm3, %v4726_v37, %v4724_v30  ;;  %v4820_v30 = vsel %vm4819_vm4, %v13659_v19, %v4818_v50 }
 0x866   : > { %v5092_v29 = vsel %vm5091_vm13, %v4933_v42, %v5090_v34  ;;  %v5135_v0 = vmul.f32 0.5, %v5134_v56 }
 0x867   : > { %v5095_v21 = vsel %vm5093_vm15, %v5094_v6, %v5092_v29  ;;  %v4823_v29 = vsel %vm4821_vm12, %v4822_v23, %v4820_v30 }
 0x868   : > { %v5147_v15 = vperm.slane %v5095_v21, 0  ;;  %v5136_v9 = vsub.f32 1.5, %v5135_v0 }
 0x86a   : > { %v5158_v10 = vmul.f32 %v5147_v15, %v4715_v58  ;;  %v5159_v42 = vmul.f32 %v5147_v15, %v4727_v32  ;;  %v5137_v26 = vmul.f32 %v9114_v22, %v5136_v9  ;;  %v4810_v22 = vand.u32 2147483648, %v16179_v47 }
 0x86c   : > { %v5174_v43 = vmax.f32 %v5158_v10, 1e-06  ;;  %v5175_v63 = vmax.f32 %v5159_v42, 1e-06  ;;  %v5138_v34 = vmul.f32 %v5137_v26, %v5045_v52  ;;  %v4811_v54 = vsel %vm4809_vm5, %v4810_v22, %v4808_v59 }
 0x86d   : > { %v5510_v10 = vsub.f32 %v13850_v60, %v14169_v36 }
 0x86e   : > { %9115 = vrcp.f32 %v5174_v43  ;;  %v5140_v56 = vsel %vm5139_vm0, %v5045_v52, %v5138_v34  ;;  %v14250_v52 = vpop.xlane.xlu1 %5466  ;;  %v5277_v58 = vand.u32 2147483647, %v5174_v43  ;;  %v5279_v19 = vand.u32 2147483648, %v5174_v43 }
 0x86f   : > { %v5143_v14 = vsel %vm5141_vm6, %v5142_v5, %v5140_v56  ;;  %9117 = vrcp.f32 %v5175_v63  ;;  %vm5273_vm2 = vweird.f32 %v5174_v43  ;;  %v5291_v59 = vand.u32 2147483647, %v5175_v63 }
 0x870   : > { %v5151_v6 = vperm.slane %v5143_v14, 0  ;;  %vm5278_vm11 = vcmp.eq.f32.partialorder %v5277_v58, 8.507059e+37  ;;  %v5280_v34 = vor.u32 1.1754944e-38, %v5279_v19  ;;  %v5293_v30 = vand.u32 2147483648, %v5175_v63 }
 0x871   : > { %vm5287_vm15 = vweird.f32 %v5175_v63  ;;  %vm5292_vm10 = vcmp.eq.f32.partialorder %v5291_v59, 8.507059e+37 }
 0x872   : > { %v5166_v0 = vmul.f32 %v5151_v6, %v4811_v54  ;;  %v5167_v37 = vmul.f32 %v5151_v6, %v4823_v29 }
 0x874   : > { %v9116_v48 = vpop.eup %9115  ;;  %v5182_v21 = vmax.f32 %v5166_v0, 1e-06  ;;  %v14248_v15 = vmax.f32 %v5167_v37, 1e-06 }
 0x875   : > { %v5269_v9 = vmul.f32 %v9116_v48, %v5174_v43  ;;  %v9118_v40 = vpop.eup %9117  ;;  %vm5274_vm9 = vweird.f32 %v9116_v48 }
 0x876   : > { %9119 = vrcp.f32 %v5182_v21  ;;  %v5283_v50 = vmul.f32 %v9118_v40, %v5175_v63  ;;  %vm5275_vm7 = vmor %vm5273_vm2, %vm5274_vm9  ;;  %vm5288_vm13 = vweird.f32 %v9118_v40  ;;  %v5389_v54 = vand.u32 2147483647, %v5182_v21  ;;  %v14256_v60 = vpop.xlane.xlu1 %5487 }
 0x877   : > { %9121 = vrcp.f32 %v14248_v15  ;;  %v5270_v47 = vsub.f32 1.0, %v5269_v9  ;;  %v5391_v37 = vand.u32 2147483648, %v5182_v21  ;;  %vm5289_vm3 = vmor %vm5287_vm15, %vm5288_vm13  ;;  %v5294_v9 = vor.u32 1.1754944e-38, %v5293_v30 }
 0x878   : > { %v5284_v26 = vsub.f32 1.0, %v5283_v50  ;;  %v5405_v63 = vand.u32 2147483648, %v14248_v15  ;;  %vm5385_vm8 = vweird.f32 %v5182_v21  ;;  %vm5390_vm5 = vcmp.eq.f32.partialorder %v5389_v54, 8.507059e+37 }
 0x879   : > { %v5271_v32 = vmul.f32 %v9116_v48, %v5270_v47  ;;  %v5392_v59 = vor.u32 1.1754944e-38, %v5391_v37  ;;  %vm5399_vm12 = vweird.f32 %v14248_v15  ;;  %v5526_v54 = vmul.f32 1.442695, %v5510_v10 }
 0x87a   : > { %v5285_v23 = vmul.f32 %v9118_v40, %v5284_v26 }
 0x87b   : > { %v5272_v42 = vadd.f32 %v9116_v48, %v5271_v32  ;;  %9123 = vpow2.f32 %v5526_v54  ;;  %v16182_v54 = vld [vmem:[#allocation42_spill] sm:$0xff] }
 0x87c   : > { %v9120_v5 = vpop.eup %9119  ;;  %v5286_v43 = vadd.f32 %v9118_v40, %v5285_v23 }
 0x87d   : > { %v9122_v56 = vpop.eup %9121  ;;  %v5276_v22 = vsel %vm5275_vm7, %v9116_v48, %v5272_v42  ;;  %v5381_v14 = vmul.f32 %v9120_v5, %v5182_v21  ;;  %vm5386_vm0 = vweird.f32 %v9120_v5  ;;  %v5403_v42 = vand.u32 2147483647, %v14248_v15 }
 0x87e   : > { %v5281_v6 = vsel %vm5278_vm11, %v5280_v34, %v5276_v22  ;;  %v5395_v29 = vmul.f32 %v9122_v56, %v14248_v15  ;;  %v5290_v58 = vsel %vm5289_vm3, %v9118_v40, %v5286_v43  ;;  %vm5400_vm6 = vweird.f32 %v9122_v56  ;;  %vm5387_vm4 = vmor %vm5385_vm8, %vm5386_vm0 }
 0x87f   : > { %v5414_v36 = vmul.f32 %v5281_v6, %v14196_v61  ;;  %v5382_v0 = vsub.f32 1.0, %v5381_v14  ;;  %v5295_v32 = vsel %vm5292_vm10, %v5294_v9, %v5290_v58  ;;  %vm5401_vm9 = vmor %vm5399_vm12, %vm5400_vm6  ;;  %v5406_v14 = vor.u32 1.1754944e-38, %v5405_v63 }
 0x880   : > { %v5396_v48 = vsub.f32 1.0, %v5395_v29  ;;  %v5415_v26 = vmul.f32 %v5295_v32, %v14198_v53  ;;  %vm5404_vm2 = vcmp.eq.f32.partialorder %v5403_v42, 8.507059e+37 }
 0x881   : > { %v5433_v47 = vmul.f32 %v13813_v31, %v5414_v36  ;;  %v5383_v19 = vmul.f32 %v9120_v5, %v5382_v0  ;;  %v5491_v36 = vpop.xlane.xlu1 %5490 }
 0x882   : > { %v5397_v50 = vmul.f32 %v9122_v56, %v5396_v48  ;;  %v5434_v22 = vmul.f32 %v13919_v39, %v5415_v26 }
 0x883   : > { %v14263_v61 = vadd.f32 %v13828_v13, %v5433_v47  ;;  %v5384_v34 = vadd.f32 %v9120_v5, %v5383_v19  ;;  %v5494_v47 = vpop.xlane.xlu0 %5493 }
 0x884   : > { %v5398_v30 = vadd.f32 %v9122_v56, %v5397_v50  ;;  %v14272_v43 = vadd.f32 %v13943_v24, %v5434_v22 }
 0x885   : > { %v5480_v40 = vsel %vm1960_vm14, %v14263_v61, -inf  ;;  %v5388_v23 = vsel %vm5387_vm4, %v9120_v5, %v5384_v34  ;;  %v5511_v5 = vsub.f32 %v14000_v62, %v14250_v52  ;;  %v5518_v52 = vsub.f32 %v14072_v12, %v14256_v60 }
 0x886   : > { %5481 = vmax.xlane.f32.xlu1 %v5480_v40  ;;  %v5393_v6 = vsel %vm5390_vm5, %v5392_v59, %v5388_v23  ;;  %v5402_v29 = vsel %vm5401_vm9, %v9122_v56, %v5398_v30  ;;  %v5519_v56 = vsub.f32 %v14122_v11, %v5491_v36  ;;  %v5512_v11 = vsub.f32 %v13917_v44, %v14175_v55 }
 0x887   : > { %v5422_v53 = vmul.f32 %v5393_v6, %v14202_v16  ;;  %v5407_v21 = vsel %vm5404_vm2, %v5406_v14, %v5402_v29  ;;  %v5483_v16 = vsel %vm1960_vm14, %v14272_v43, -inf  ;;  %v5542_v58 = vmul.f32 1.442695, %v5518_v52 }
 0x888   : > { %v5423_v0 = vmul.f32 %v5407_v21, %v14212_v28  ;;  %v5544_v28 = vmul.f32 1.442695, %v5519_v56  ;;  %v5520_v44 = vsub.f32 %v14010_v20, %v5494_v47  ;;  %v5515_v12 = vsub.f32 %v14048_v45, %v14190_v49 }
 0x889   : > { %v5441_v15 = vmul.f32 %v13813_v31, %v5422_v53  ;;  %v5528_v31 = vmul.f32 1.442695, %v5511_v5  ;;  %v5522_v45 = vsub.f32 %v14105_v7, %v14194_v27  ;;  %v14346_v36 = vpop.permute.xlu1 %6769 }
 0x88a   : > { %v5442_v9 = vmul.f32 %v13919_v39, %v5423_v0  ;;  %v5546_v32 = vmul.f32 1.442695, %v5520_v44  ;;  %v5536_v50 = vmul.f32 1.442695, %v5515_v12 }
 0x88b   : > { %v14279_v37 = vadd.f32 %v13828_v13, %v5441_v15  ;;  %v14290_v13 = vpop.eup %9123  ;;  %9125 = vpow2.f32 %v5528_v31  ;;  %v5497_v42 = vpop.xlane.xlu0 %5496  ;;  %v5550_v40 = vmul.f32 1.442695, %v5522_v45  ;;  %v16183_v45 = vld [vmem:[#allocation26_spill] sm:$0xff] }
 0x88c   : > { %v14288_v62 = vadd.f32 %v13943_v24, %v5442_v9  ;;  %9127 = vpow2.f32 %v5544_v28  ;;  %v5558_v39 = vsel %vm1960_vm14, %v14290_v13, 0.0  ;;  %v5530_v24 = vmul.f32 1.442695, %v5512_v11 }
 0x88d   : > { %v5504_v10 = vsel %vm1960_vm14, %v14279_v37, -inf  ;;  %v5521_v20 = vsub.f32 %v14087_v46, %v5497_v42  ;;  %v5514_v46 = vsub.f32 %v13994_v17, %v14182_v38 }
 0x88e   : > { %5484 = vmax.xlane.f32.xlu1 %v5483_v16  ;;  %5505 = vmax.xlane.f32.xlu0 %v5504_v10  ;;  %v5507_v48 = vsel %vm1960_vm14, %v14288_v62, -inf  ;;  %9129 = vpow2.f32 %v5530_v24 }
 0x88f   : > { %9131 = vpow2.f32 %v5542_v58  ;;  %v5548_v30 = vmul.f32 1.442695, %v5521_v20  ;;  %v5534_v14 = vmul.f32 1.442695, %v5514_v46  ;;  %v16186_v46 = vld [vmem:[#allocation131_spill] sm:$0xff] }
 0x890   : > { %9133 = vpow2.f32 %v5546_v32 }
 0x891   : > { %v14300_v19 = vpop.eup %9125  ;;  %9135 = vpow2.f32 %v5536_v50 }
 0x892   : > { %v14302_v63 = vpop.eup %9127  ;;  %v5561_v55 = vsel %vm1960_vm14, %v14300_v19, 0.0  ;;  %9137 = vpow2.f32 %v5548_v30 }
 0x893   : > { %v5585_v60 = vsel %vm1960_vm14, %v14302_v63, 0.0  ;;  %9139 = vpow2.f32 %v5550_v40  ;;  %v14348_v15 = vpop.permute.xlu0 %6767  ;;  %v16184_v40 = vld [vmem:[#allocation85_spill] sm:$0xff] }
 0x894   : > { %v14311_v26 = vpop.eup %9129  ;;  %9141 = vpow2.f32 %v5534_v14 }
 0x895   : > { %v14313_v34 = vpop.eup %9131  ;;  %v5564_v59 = vsel %vm1960_vm14, %v14311_v26, 0.0 }
 0x896   : > { %5559 = vadd.xlane.f32.xlu1 %v5558_v39  ;;  %5508 = vmax.xlane.f32.xlu0 %v5507_v48  ;;  %v5582_v49 = vsel %vm1960_vm14, %v14313_v34, 0.0  ;;  %v14322_v22 = vpop.eup %9133 }
 0x897   : > { %v14324_v23 = vpop.eup %9135  ;;  %v5588_v27 = vsel %vm1960_vm14, %v14322_v22, 0.0 }
 0x898   : > { %v5573_v7 = vsel %vm1960_vm14, %v14324_v23, 0.0  ;;  %v14332_v6 = vpop.eup %9137 }
 0x899   : > { %v14334_v29 = vpop.eup %9139  ;;  %v5591_v17 = vsel %vm1960_vm14, %v14332_v6, 0.0 }
 0x89a   : > { %v5594_v53 = vsel %vm1960_vm14, %v14334_v29, 0.0  ;;  %v14340_v38 = vpop.eup %9141 }
 0x89b   : > { %v5570_v21 = vsel %vm1960_vm14, %v14340_v38, 0.0 }
 0x89e   : > { %5562 = vadd.xlane.f32.xlu1 %v5561_v55  ;;  %5586 = vadd.xlane.f32.xlu0 %v5585_v60  ;;  %v14371_v60 = vpop.permute.xlu2 %6739 }
 0x8a6   : > { %5583 = vadd.xlane.f32.xlu1 %v5582_v49  ;;  %5565 = vadd.xlane.f32.xlu0 %v5564_v59 }
 0x8ae   : > { %5574 = vadd.xlane.f32.xlu1 %v5573_v7  ;;  %5589 = vadd.xlane.f32.xlu0 %v5588_v27  ;;  %v16187_v27 = vld [vmem:[#allocation81_spill] sm:$0xff] }
 0x8b6   : > { %5595 = vadd.xlane.f32.xlu1 %v5594_v53  ;;  %5592 = vadd.xlane.f32.xlu0 %v5591_v17 }
 0x8be   : > { %5571 = vadd.xlane.f32.xlu0 %v5570_v21 }
 0x8d2   : > { %6313 = vrot.lane.b32.xlu0 %v16182_v54, %s9638_s7  ;;  %v16189_v54 = vld [vmem:[#allocation27_spill] sm:$0xff] }
 0x8f9   : > { %v5482_v0 = vpop.xlane.xlu1 %5481 }
 0x8fa   : > { %v5516_v5 = vsub.f32 %v14263_v61, %v5482_v0 }
 0x8fc   : > { %v5538_v56 = vmul.f32 1.442695, %v5516_v5 }
 0x8fe   : > { %9143 = vpow2.f32 %v5538_v56 }
 0x901   : > { %v5506_v16 = vpop.xlane.xlu0 %5505  ;;  %v5485_v10 = vpop.xlane.xlu1 %5484 }
 0x902   : > { %v5524_v9 = vsub.f32 %v14279_v37, %v5506_v16  ;;  %v5517_v31 = vsub.f32 %v14272_v43, %v5485_v10  ;;  %v16195_v10 = vld [vmem:[#allocation44_spill] sm:$0xff] }
 0x904   : > { %v14353_v28 = vpop.eup %9143  ;;  %v5554_v11 = vmul.f32 1.442695, %v5524_v9  ;;  %v5540_v52 = vmul.f32 1.442695, %v5517_v31 }
 0x905   : > { %v5576_v39 = vsel %vm1960_vm14, %v14353_v28, 0.0 }
 0x906   : > { %9145 = vpow2.f32 %v5554_v11  ;;  %5577 = vadd.xlane.f32.xlu2 %v5576_v39  ;;  %v16196_v11 = vld [vmem:[#allocation149_spill] sm:$0xff] }
 0x907   : > { %9147 = vpow2.f32 %v5540_v52  ;;  %v16197_v52 = vld [vmem:[#allocation119_spill] sm:$0xff] }
 0x909   : > { %v14357_v48 = vpop.xlane.xlu0 %5508  ;;  %v5560_v61 = vpop.xlane.xlu1 %5559 }
 0x90a   : > { %9149 = vrcp.f32 %v5560_v61  ;;  %v16200_v61 = vld [vmem:[#allocation107_spill] sm:$0xff] }
 0x90c   : > { %v14359_v47 = vpop.eup %9145 }
 0x90d   : > { %v14361_v24 = vpop.eup %9147  ;;  %v5600_v43 = vsel %vm1960_vm14, %v14359_v47, 0.0 }
 0x90e   : > { %5601 = vadd.xlane.f32.xlu0 %v5600_v43  ;;  %v5579_v37 = vsel %vm1960_vm14, %v14361_v24, 0.0  ;;  %v16201_v43 = vld [vmem:[#allocation112_spill] sm:$0xff] }
 0x90f   : > { %5580 = vadd.xlane.f32.xlu1 %v5579_v37  ;;  %v16202_v37 = vld [vmem:[#allocation127_spill] sm:$0xff] }
 0x910   : > { %v9150_v58 = vpop.eup %9149 }
 0x911   : > { %v5622_v44 = vmul.f32 %v9150_v58, %v14290_v13  ;;  %v5587_v12 = vpop.xlane.xlu0 %5586  ;;  %v5563_v55 = vpop.xlane.xlu1 %5562 }
 0x912   : > { %9151 = vrcp.f32 %v5563_v55  ;;  %v5569_v13 = vpop.xlane.xlu2 %5568 }
 0x913   : > { %8344 = vmatmul.msk.f32.vlgmr.msra.gmra.mxu0 %vm1960_vm14, %v5622_v44 }
 0x914   : > { %8360 = vmatpush.xpose.msk.msra.mxu0 %vm784_vm1, %v13621_v41 }
 0x918   : > { %8361 = vmatpush.xpose.msk.msra.mxu0 %vm784_vm1, %v13891_v4  ;;  %v9152_v32 = vpop.eup %9151 }
 0x919   : > { %v5566_v50 = vpop.xlane.xlu0 %5565  ;;  %v5584_v42 = vpop.xlane.xlu1 %5583  ;;  %v5623_v20 = vmul.f32 %v9152_v32, %v14300_v19  ;;  %v16185_v19 = vld [vmem:[#allocation148_spill] sm:$0xff]  ;;  %v16205_v32 = vld [vmem:[#allocation147_spill] sm:$0xff] }
 0x91a   : > { %9153 = vrcp.f32 %v5566_v50  ;;  %v5599_v9 = vpop.xlane.xlu2 %5598  ;;  %v16206_v50 = vld [vmem:[#allocation96_spill] sm:$0xff] }
 0x91b   : > { %9155 = vrcp.f32 %v5584_v42  ;;  %8345 = vmatmul.msk.f32.gmra.mxu0 %vm1960_vm14, %v5623_v20  ;;  %v16207_v42 = vmov 1.0   ;;  %v16208_v20 = vld [vmem:[#allocation51_spill] sm:$0xff] }
 0x91c   : > { %9157 = vrcp.f32 %v5569_v13  ;;  %v16209_v13 = vld [vmem:[#allocation98_spill] sm:$0xff] }
 0x91d   : > { %9159 = vrcp.f32 %v5587_v12  ;;  %v16203_v12 = vld [vmem:[#allocation94_spill] sm:$0xff] }
 0x91e   : > { %6311 = vrot.lane.b32.xlu2 %v16183_v45, %s9638_s7  ;;  %v16210_v45 = vld [vmem:[#allocation110_spill] sm:$0xff] }
 0x920   : > { %v9154_v49 = vpop.eup %9153 }
 0x921   : > { %v9156_v41 = vpop.eup %9155  ;;  %v5624_v59 = vmul.f32 %v9154_v49, %v14311_v26  ;;  %v5590_v4 = vpop.xlane.xlu0 %5589  ;;  %v16211_v49 = vld [vmem:[#allocation40_spill] sm:$0xff] }
 0x922   : > { %v5630_v30 = vmul.f32 %v9156_v41, %v14313_v34  ;;  %6317 = vrot.lane.b32.xlu0 %v16184_v40, %s9638_s7  ;;  %v9158_v7 = vpop.eup %9157  ;;  %9161 = vrcp.f32 %v5590_v4  ;;  %v16188_v34 = vld [vmem:[#allocation80_spill] sm:$0xff]  ;;  %v5575_v5 = vpop.xlane.xlu1 %5574  ;;  %v16212_v41 = vld [vmem:[#allocation145_spill] sm:$0xff]  ;;  %v16215_v4 = vld [vmem:[#allocation34_spill] sm:$0xff] }
 0x923   : > { %8346 = vmatmul.msk.f32.vlgmr.msrb.gmra.mxu1 %vm1960_vm14, %v5624_v59  ;;  %v9160_v26 = vpop.eup %9159  ;;  %v5625_v53 = vmul.f32 %v9158_v7, %v14186_v51  ;;  %v16190_v51 = vld [vmem:[#allocation67_spill] sm:$0xff]  ;;  %v16214_v59 = vld [vmem:[#allocation113_spill] sm:$0xff] }
 0x924   : > { %8352 = vmatmul.msk.f32.vlgmr.msrb.gmra.mxu0 %vm1960_vm14, %v5630_v30  ;;  %8364 = vmatpush.xpose.msk.msrb.mxu1 %vm784_vm1, %v16185_v19  ;;  %v5631_v17 = vmul.f32 %v9160_v26, %v14302_v63  ;;  %v16216_v30 = vld [vmem:[#allocation139_spill] sm:$0xff] }
 0x925   : > { %8376 = vmatpush.xpose.msk.msrb.mxu0 %vm784_vm1, %v16186_v46 }
 0x926   : > { %6795 = vrot.lane.b32.xlu2 %v16187_v27, %s9638_s7 }
 0x928   : > { %6797 = vrot.lane.b32.xlu1 %v16188_v34, %s9638_s7  ;;  %8365 = vmatpush.xpose.msk.msrb.mxu1 %vm784_vm1, %v13762_v35  ;;  %v9162_v21 = vpop.eup %9161 }
 0x929   : > { %8377 = vmatpush.xpose.msk.msrb.mxu0 %vm784_vm1, %v14112_v18  ;;  %v5593_v14 = vpop.xlane.xlu0 %5592  ;;  %v5632_v0 = vmul.f32 %v9162_v21, %v14322_v22 }
 0x92a   : > { %9163 = vrcp.f32 %v5593_v14  ;;  %v5596_v56 = vpop.xlane.xlu1 %5595  ;;  %v16218_v14 = vld [vmem:[#allocation116_spill] sm:$0xff] }
 0x92b   : > { %8347 = vmatmul.msk.f32.gmra.mxu1 %vm1960_vm14, %v5625_v53 }
 0x92c   : > { %8353 = vmatmul.msk.f32.gmra.mxu0 %vm1960_vm14, %v5631_v17 }
 0x92e   : > { %6319 = vrot.lane.b32.xlu2 %v16189_v54, %s9638_s7  ;;  %v16219_v54 = vld [vmem:[#allocation123_spill] sm:$0xff] }
 0x930   : > { %v9164_v18 = vpop.eup %9163 }
 0x931   : > { %v5572_v35 = vpop.xlane.xlu0 %5571 }
 0x932   : > { %9165 = vrcp.f32 %v5572_v35  ;;  %v16221_v35 = vld [vmem:[#allocation92_spill] sm:$0xff] }
 0x933   : > { %8354 = vmatmul.msk.f32.vlgmr.msra.gmra.mxu1 %vm1960_vm14, %v5632_v0  ;;  %9167 = vrcp.f32 %v5575_v5  ;;  %v16220_v0 = vld [vmem:[#allocation41_spill] sm:$0xff] }
 0x934   : > { %8362 = vmatmul.msk.f32.vlgmr.msra.gmra.mxu0 %vm784_vm1, %v13975_v3  ;;  %8380 = vmatpush.xpose.msk.msra.mxu1 %vm784_vm1, %v14058_v1  ;;  %v5633_v3 = vmul.f32 %v9164_v18, %v14332_v6  ;;  %v16192_v1 = vld [vmem:[#allocation30_spill] sm:$0xff]  ;;  %9169 = vrcp.f32 %v5596_v56  ;;  %v16194_v6 = vld [vmem:[#allocation135_spill] sm:$0xff] }
 0x935   : > { %8392 = vmatpush.xpose.msk.msra.mxu0 %vm784_vm1, %v13557_v33  ;;  %v16191_v33 = vld [vmem:[#allocation143_spill] sm:$0xff]  ;;  %9171 = vrcp.f32 %v5599_v9  ;;  %v16226_v9 = vld [vmem:[#allocation60_spill] sm:$0xff] }
 0x936   : > { %6323 = vrot.lane.b32.xlu2 %v16190_v51, %s9638_s7 }
 0x938   : > { %v9166_v63 = vpop.eup %9165  ;;  %8381 = vmatpush.xpose.msk.msra.mxu1 %vm784_vm1, %v14128_v8  ;;  %v16193_v8 = vld [vmem:[#allocation84_spill] sm:$0xff] }
 0x939   : > { %v5626_v22 = vmul.f32 %v9166_v63, %v14340_v38  ;;  %8393 = vmatpush.xpose.msk.msra.mxu0 %vm784_vm1, %v14138_v25  ;;  %v9168_v16 = vpop.eup %9167  ;;  %v5525_v25 = vsub.f32 %v14288_v62, %v14357_v48  ;;  %v16198_v62 = vld [vmem:[#allocation90_spill] sm:$0xff] }
 0x93a   : > { %v5627_v38 = vmul.f32 %v9168_v16, %v14324_v23  ;;  %v9170_v39 = vpop.eup %9169  ;;  %v16199_v23 = vld [vmem:[#allocation108_spill] sm:$0xff] }
 0x93b   : > { %8348 = vmatmul.msk.f32.vlgmr.msra.gmra.mxu2 %vm1960_vm14, %v5626_v22  ;;  %8355 = vmatmul.msk.f32.gmra.mxu1 %vm1960_vm14, %v5633_v3  ;;  %v5556_v31 = vmul.f32 1.442695, %v5525_v25  ;;  %v5634_v48 = vmul.f32 %v9170_v39, %v14334_v29  ;;  %v9172_v58 = vpop.eup %9171  ;;  %v16204_v29 = vld [vmem:[#allocation102_spill] sm:$0xff]  ;;  %v16223_v25 = vld [vmem:[#allocation87_spill] sm:$0xff] }
 0x93c   : > { %8363 = vmatmul.msk.f32.gmra.mxu0 %vm784_vm1, %v16191_v33  ;;  %8368 = vmatpush.xpose.msk.msra.mxu2 %vm784_vm1, %v16192_v1  ;;  %v5635_v55 = vmul.f32 %v9172_v58, %v16204_v29  ;;  %v16222_v1 = vld [vmem:[#allocation82_spill] sm:$0xff]  ;;  %v16229_v58 = vld [vmem:[#allocation137_spill] sm:$0xff] }
 0x93d   : > { %9173 = vpow2.f32 %v5556_v31 }
 0x93e   : > { %6325 = vrot.lane.b32.xlu2 %v16193_v8, %s9638_s7 }
 0x940   : > { %8369 = vmatpush.xpose.msk.msra.mxu2 %vm784_vm1, %v16194_v6 }
 0x943   : > { %8349 = vmatmul.msk.f32.gmra.mxu2 %vm1960_vm14, %v5627_v38  ;;  %8366 = vmatmul.msk.f32.vlgmr.msrb.gmra.mxu1 %vm784_vm1, %v16195_v10  ;;  %v14453_v44 = vpop.eup %9173  ;;  %v16224_v38 = vld [vmem:[#allocation29_spill] sm:$0xff]  ;;  %v16225_v10 = vld [vmem:[#allocation132_spill] sm:$0xff] }
 0x944   : > { %8378 = vmatmul.msk.f32.vlgmr.msrb.gmra.mxu0 %vm784_vm1, %v16196_v11  ;;  %8395 = vmatpush.xpose.msk.msrb.mxu1 %vm784_vm1, %v16197_v52  ;;  %v6314_v19 = vpop.permute.xlu0 %6313 }
 0x945   : > { %8404 = vmatpush.xpose.msk.msrb.mxu0 %vm784_vm1, %v16198_v62  ;;  %v6362_v5 = vsel %vm784_vm1, %v6314_v19, 0.0  ;;  %v16227_v62 = vld [vmem:[#allocation88_spill] sm:$0xff] }
 0x948   : > { %8396 = vmatpush.xpose.msk.msrb.mxu1 %vm784_vm1, %v16199_v23 }
 0x949   : > { %8405 = vmatpush.xpose.msk.msrb.mxu0 %vm784_vm1, %v14240_v2  ;;  %v5603_v2 = vsel %vm1960_vm14, %v14453_v44, 0.0 }
 0x94b   : > { %8356 = vmatmul.msk.f32.vlgmr.msrb.gmra.mxu2 %vm1960_vm14, %v5634_v48  ;;  %8367 = vmatmul.msk.f32.gmra.mxu1 %vm784_vm1, %v16200_v61 }
 0x94c   : > { %8379 = vmatmul.msk.f32.gmra.mxu0 %vm784_vm1, %v16201_v43  ;;  %8384 = vmatpush.xpose.msk.msrb.mxu2 %vm784_vm1, %v16202_v37  ;;  %v16228_v43 = vld [vmem:[#allocation129_spill] sm:$0xff] }
 0x950   : > { %8385 = vmatpush.xpose.msk.msrb.mxu2 %vm784_vm1, %v16203_v12 }
 0x952   : > { %5604 = vadd.xlane.f32.xlu1 %v5603_v2 }
 0x953   : > { %8357 = vmatmul.msk.f32.gmra.mxu2 %vm1960_vm14, %v5635_v55  ;;  %8382 = vmatmul.msk.f32.vlgmr.msra.gmra.mxu1 %vm784_vm1, %v16205_v32  ;;  %v16231_v55 = vld [vmem:[#allocation53_spill] sm:$0xff] }
 0x954   : > { %8407 = vmatpush.xpose.msk.msra.mxu1 %vm784_vm1, %v16206_v50  ;;  %8394 = vmatmul.msk.f32.vlgmr.msra.gmra.mxu0 %vm784_vm1, %v16207_v42 }
 0x958   : > { %8408 = vmatpush.xpose.msk.msra.mxu1 %vm784_vm1, %v14371_v60  ;;  %v16213_v60 = vld [vmem:[#allocation63_spill] sm:$0xff] }
 0x95b   : > { %8370 = vmatmul.msk.f32.vlgmr.msra.gmra.mxu2 %vm784_vm1, %v16208_v20  ;;  %8383 = vmatmul.msk.f32.gmra.mxu1 %vm784_vm1, %v16209_v13  ;;  %v16233_v20 = vld [vmem:[#allocation46_spill] sm:$0xff] }
 0x95c   : > { %8398 = vmatpush.xpose.msk.msra.mxu2 %vm784_vm1, %v16210_v45  ;;  %8406 = vmatmul.msk.f32.vlgmr.msrb.gmra.mxu0 %vm784_vm1, %v16207_v42 }
 0x960   : > { %8399 = vmatpush.xpose.msk.msra.mxu2 %vm784_vm1, %v16211_v49 }
 0x963   : > { %8371 = vmatmul.msk.f32.gmra.mxu2 %vm784_vm1, %v16212_v41  ;;  %8397 = vmatmul.msk.f32.vlgmr.msrb.gmra.mxu1 %vm784_vm1, %v16207_v42 }
 0x96b   : > { %6315 = vrot.lane.b32.xlu1 %v16213_v60, %s9638_s7  ;;  %8386 = vmatmul.msk.f32.vlgmr.msrb.gmra.mxu2 %vm784_vm1, %v16214_v59 }
 0x96c   : > { %8410 = vmatpush.xpose.msk.msrb.mxu2 %vm784_vm1, %v14346_v36  ;;  %8409 = vmatmul.msk.f32.vlgmr.msra.gmra.mxu1 %vm784_vm1, %v16207_v42 }
 0x970   : > { %8411 = vmatpush.xpose.msk.msrb.mxu2 %vm784_vm1, %v14348_v15  ;;  %v16217_v15 = vld [vmem:[#allocation115_spill] sm:$0xff] }
 0x973   : > { %6321 = vrot.lane.b32.xlu1 %v16215_v4, %s9638_s7  ;;  %8387 = vmatmul.msk.f32.gmra.mxu2 %vm784_vm1, %v16216_v30 }
 0x979   : > { %v5578_v40 = vpop.xlane.xlu2 %5577 }
 0x97a   : > { %9175 = vrcp.f32 %v5578_v40 }
 0x97b   : > { %8400 = vmatmul.msk.f32.vlgmr.msra.gmra.mxu2 %vm784_vm1, %v16207_v42 }
 0x980   : > { %v9176_v46 = vpop.eup %9175 }
 0x981   : > { %v5628_v36 = vmul.f32 %v9176_v46, %v14353_v28  ;;  %v6312_v7 = vpop.permute.xlu2 %6311  ;;  %v5602_v34 = vpop.xlane.xlu0 %5601 }
 0x982   : > { %v6359_v27 = vsel %vm784_vm1, %v6312_v7, 0.0  ;;  %v5581_v26 = vpop.xlane.xlu1 %5580 }
 0x983   : > { %9177 = vrcp.f32 %v5581_v26  ;;  %8350 = vmatmul.msk.f32.vlgmr.msra.gmra.mxu3 %vm1960_vm14, %v5628_v36  ;;  %6360 = vadd.xlane.f32.xlu0 %v6359_v27 }
 0x984   : > { %8372 = vmatpush.xpose.msk.msra.mxu3 %vm784_vm1, %v16217_v15  ;;  %8412 = vmatmul.msk.f32.vlgmr.msrb.gmra.mxu2 %vm784_vm1, %v16207_v42  ;;  %9179 = vrcp.f32 %v5602_v34 }
 0x988   : > { %8373 = vmatpush.xpose.msk.msra.mxu3 %vm784_vm1, %v16218_v14 }
 0x989   : > { %v9178_v53 = vpop.eup %9177 }
 0x98a   : > { %v5629_v28 = vmul.f32 %v9178_v53, %v14361_v24  ;;  %v9180_v17 = vpop.eup %9179  ;;  %v6796_v24 = vpop.permute.xlu2 %6795 }
 0x98b   : > { %v5636_v21 = vmul.f32 %v9180_v17, %v14359_v47 }
 0x98c   : > { %8351 = vmatmul.msk.f32.gmra.mxu3 %vm1960_vm14, %v5629_v28 }
 0x990   : > { %v14521_v3 = vpop.f32.mrf.mxu0 }
 0x992   : > { %v6320_v47 = vpop.permute.xlu2 %6319 }
 0x993   : > { %v6371_v63 = vsel %vm784_vm1, %v6320_v47, 0.0 }
 0x994   : > { %8358 = vmatmul.msk.f32.vlgmr.msrb.gmra.mxu3 %vm1960_vm14, %v5636_v21  ;;  %v6318_v18 = vpop.permute.xlu0 %6317 }
 0x995   : > { %8388 = vmatpush.xpose.msk.msrb.mxu3 %vm784_vm1, %v16219_v54  ;;  %v6368_v51 = vsel %vm784_vm1, %v6318_v18, 0.0 }
 0x997   : > { %6327 = vrot.lane.b32.xlu0 %v16220_v0, %s9638_s7 }
 0x998   : > { %v14525_v56 = vpop.f32.mrf.mxu0 }
 0x999   : > { %8389 = vmatpush.xpose.msk.msrb.mxu3 %vm784_vm1, %v16221_v35 }
 0x99a   : > { %v6798_v22 = vpop.permute.xlu1 %6797  ;;  %v6324_v2 = vpop.permute.xlu2 %6323 }
 0x99b   : > { %v6377_v14 = vsel %vm784_vm1, %v6324_v2, 0.0  ;;  %v16236_v2 = vld [vmem:[#allocation83_spill] sm:$0xff] }
 0x99d   : > { %6363 = vadd.xlane.f32.xlu1 %v6362_v5 }
 0x9a0   : > { %v14546_v39 = vpop.f32.mrf.mxu1 }
 0x9a1   : > { %v14531_v6 = vpop.f32.mrf.mxu0 }
 0x9a2   : > { %v6326_v13 = vpop.permute.xlu2 %6325 }
 0x9a3   : > { %v6380_v49 = vsel %vm784_vm1, %v6326_v13, 0.0 }
 0x9a5   : > { %6369 = vadd.xlane.f32.xlu1 %v6368_v51 }
 0x9a8   : > { %v14556_v37 = vpop.f32.mrf.mxu1 }
 0x9a9   : > { %v14541_v31 = vpop.f32.mrf.mxu0 }
 0x9ad   : > { %6372 = vadd.xlane.f32.xlu1 %v6371_v63 }
 0x9b0   : > { %v14565_v29 = vpop.f32.mrf.mxu1 }
 0x9b1   : > { %16230 = vst [vmem:[#allocation130_spill] sm:$0xff] %v14565_v29 }
 0x9b8   : > { %v14577_v45 = vpop.f32.mrf.mxu1 }
 0x9b9   : > { %16234 = vst [vmem:[#allocation124_spill] sm:$0xff] %v14577_v45 }
 0x9be   : > { %v14548_v48 = vpop.f32.mrf.mxu2 }
 0x9c0   : > { %v14586_v59 = vpop.f32.mrf.mxu1 }
 0x9c5   : > { %v5605_v33 = vpop.xlane.xlu1 %5604 }
 0x9c6   : > { %9181 = vrcp.f32 %v5605_v33  ;;  %6331 = vrot.lane.b32.xlu1 %v16222_v1, %s9638_s7 }
 0x9c8   : > { %v14590_v19 = vpop.f32.mrf.mxu1 }
 0x9cc   : > { %v9182_v16 = vpop.eup %9181 }
 0x9cd   : > { %v5637_v8 = vmul.f32 %v9182_v16, %v14453_v44  ;;  %v14561_v44 = vpop.f32.mrf.mxu2 }
 0x9ce   : > { %6333 = vrot.lane.b32.xlu1 %v16223_v25, %s9638_s7 }
 0x9cf   : > { %8359 = vmatmul.msk.f32.gmra.mxu3 %vm1960_vm14, %v5637_v8 }
 0x9d0   : > { %v14594_v27 = vpop.f32.mrf.mxu1 }
 0x9d5   : > { %v14571_v32 = vpop.f32.mrf.mxu2 }
 0x9d6   : > { %6335 = vrot.lane.b32.xlu1 %v16224_v38, %s9638_s7  ;;  %16232 = vst [vmem:[#allocation106_spill] sm:$0xff] %v14571_v32 }
 0x9d7   : > { %8374 = vmatmul.msk.f32.vlgmr.msra.gmra.mxu3 %vm784_vm1, %v16225_v10 }
 0x9d8   : > { %8401 = vmatpush.xpose.msk.msra.mxu3 %vm784_vm1, %v14227_v57  ;;  %v14551_v57 = vpop.f32.mrf.mxu0  ;;  %v14602_v5 = vpop.f32.mrf.mxu1 }
 0x9dc   : > { %8402 = vmatpush.xpose.msk.msra.mxu3 %vm784_vm1, %v16226_v9 }
 0x9dd   : > { %v6316_v11 = vpop.permute.xlu1 %6315  ;;  %v14582_v41 = vpop.f32.mrf.mxu2 }
 0x9de   : > { %v6365_v52 = vsel %vm784_vm1, %v6316_v11, 0.0  ;;  %16235 = vst [vmem:[#allocation25_spill] sm:$0xff] %v14582_v41 }
 0x9df   : > { %6366 = vadd.xlane.f32.xlu2 %v6365_v52  ;;  %8375 = vmatmul.msk.f32.gmra.mxu3 %vm784_vm1, %v16227_v62 }
 0x9e0   : > { %v14563_v12 = vpop.f32.mrf.mxu0  ;;  %v14609_v33 = vpop.f32.mrf.mxu1 }
 0x9e1   : > { %vm6842_vm10 = vcmp.eq.f32.partialorder %v14609_v33, inf  ;;  %vm6844_vm6 = vcmp.eq.f32.partialorder %v14609_v33, 0.0 }
 0x9e5   : > { %v6322_v23 = vpop.permute.xlu1 %6321  ;;  %v14588_v30 = vpop.f32.mrf.mxu2 }
 0x9e6   : > { %v6374_v61 = vsel %vm784_vm1, %v6322_v23, 0.0 }
 0x9e7   : > { %6375 = vadd.xlane.f32.xlu0 %v6374_v61  ;;  %8390 = vmatmul.msk.f32.vlgmr.msrb.gmra.mxu3 %vm784_vm1, %v16228_v43 }
 0x9e8   : > { %8413 = vmatpush.xpose.msk.msrb.mxu3 %vm784_vm1, %v6798_v22  ;;  %v14573_v50 = vpop.f32.mrf.mxu0 }
 0x9ec   : > { %8414 = vmatpush.xpose.msk.msrb.mxu3 %vm784_vm1, %v6796_v24 }
 0x9ed   : > { %v14592_v36 = vpop.f32.mrf.mxu2 }
 0x9ef   : > { %8391 = vmatmul.msk.f32.gmra.mxu3 %vm784_vm1, %v16229_v58 }
 0x9f0   : > { %v14584_v60 = vpop.f32.mrf.mxu0 }
 0x9f5   : > { %v14599_v21 = vpop.f32.mrf.mxu2 }
 0x9f6   : > { %v6361_v40 = vpop.xlane.xlu0 %6360 }
 0x9f7   : > { %6329 = vrot.lane.b32.xlu2 %v16231_v55, %s9638_s7  ;;  %8403 = vmatmul.msk.f32.vlgmr.msra.gmra.mxu3 %vm784_vm1, %v16207_v42  ;;  %vm6414_vm13 = vcmp.eq.f32.partialorder %v6361_v40, inf  ;;  %v6417_v52 = vand.u32 2147483648, %v6361_v40  ;;  %vm6416_vm15 = vcmp.eq.f32.partialorder %v6361_v40, 0.0 }
 0x9f8   : > { %v6624_v4 = vpop.f32.mrf.mxu0 }
 0x9f9   : > { %9183 = vrsqrt.f32 %v6624_v4  ;;  %vm6830_vm7 = vcmp.eq.f32.partialorder %v6624_v4, inf  ;;  %v6833_v1 = vand.u32 2147483648, %v6624_v4  ;;  %vm6832_vm11 = vcmp.eq.f32.partialorder %v6624_v4, 0.0 }
 0x9fa   : > { %9185 = vrsqrt.f32 %v6361_v40 }
 0x9fb   : > { %6337 = vrot.lane.b32.xlu0 %v16233_v20, %s9638_s7 }
 0x9fd   : > { %v14606_v47 = vpop.f32.mrf.mxu2 }
 0x9ff   : > { %8415 = vmatmul.msk.f32.vlgmr.msrb.gmra.mxu3 %vm784_vm1, %v16207_v42  ;;  %v9184_v46 = vpop.eup %9183 }
 0xa00   : > { %6381 = vadd.xlane.f32.xlu1 %v6380_v49  ;;  %v6824_v7 = vmul.f32 %v9184_v46, %v6624_v4  ;;  %v9186_v42 = vpop.eup %9185 }
 0xa01   : > { %v6408_v34 = vmul.f32 %v9186_v42, %v6361_v40 }
 0xa02   : > { %v6825_v15 = vmul.f32 %v9184_v46, %v6824_v7 }
 0xa03   : > { %v6409_v28 = vmul.f32 %v9186_v42, %v6408_v34 }
 0xa04   : > { %v6826_v53 = vmul.f32 0.5, %v6825_v15 }
 0xa05   : > { %v6410_v35 = vmul.f32 0.5, %v6409_v28  ;;  %v14616_v9 = vpop.f32.mrf.mxu2 }
 0xa06   : > { %v6827_v0 = vsub.f32 1.5, %v6826_v53  ;;  %v14619_v62 = vpop.f32.mrf.mxu3  ;;  %v16237_v53 = vld [vmem:[#allocation91_spill] sm:$0xff]  ;;  %vm6854_vm4 = vcmp.eq.f32.partialorder %v14616_v9, inf  ;;  %vm6856_vm12 = vcmp.eq.f32.partialorder %v14616_v9, 0.0 }
 0xa07   : > { %v6411_v51 = vsub.f32 1.5, %v6410_v35 }
 0xa08   : > { %v6828_v18 = vmul.f32 %v9184_v46, %v6827_v0 }
 0xa09   : > { %v6328_v17 = vpop.permute.xlu0 %6327  ;;  %v6412_v22 = vmul.f32 %v9186_v42, %v6411_v51 }
 0xa0a   : > { %v6383_v54 = vsel %vm784_vm1, %v6328_v17, 0.0  ;;  %v6829_v63 = vmul.f32 %v6828_v18, %v6624_v4 }
 0xa0b   : > { %v6413_v25 = vmul.f32 %v6412_v22, %v6361_v40 }
 0xa0c   : > { %v6831_v8 = vsel %vm6830_vm7, %v6624_v4, %v6829_v63 }
 0xa0d   : > { %v14614_v10 = vsel %vm6832_vm11, %v6833_v1, %v6831_v8  ;;  %v6415_v11 = vsel %vm6414_vm13, %v6361_v40, %v6413_v25 }
 0xa0e   : > { %v6919_v43 = vperm.slane %v14614_v10, 0  ;;  %v6418_v58 = vsel %vm6416_vm15, %v6417_v52, %v6415_v11 }
 0xa0f   : > { %v14633_v34 = vpop.f32.mrf.mxu3 }
 0xa10   : > { %v14596_v26 = vpop.xlane.xlu1 %6363  ;;  %v6927_v4 = vmul.f32 %v6919_v43, %v6418_v58 }
 0xa11   : > { %9187 = vrsqrt.f32 %v14596_v26  ;;  %vm6426_vm3 = vcmp.eq.f32.partialorder %v14596_v26, inf  ;;  %vm6428_vm0 = vcmp.eq.f32.partialorder %v14596_v26, 0.0 }
 0xa12   : > { %9189 = vrsqrt.f32 %v14609_v33  ;;  %v14631_v15 = vmax.f32 %v6927_v4, 1e-06 }
 0xa14   : > { %vm6964_vm9 = vweird.f32 %v14631_v15 }
 0xa17   : > { %v9188_v38 = vpop.eup %9187 }
 0xa18   : > { %v14604_v24 = vpop.xlane.xlu1 %6369  ;;  %v6420_v23 = vmul.f32 %v9188_v38, %v14596_v26  ;;  %v9190_v61 = vpop.eup %9189 }
 0xa19   : > { %9191 = vrsqrt.f32 %v14604_v24  ;;  %v6836_v13 = vmul.f32 %v9190_v61, %v14609_v33  ;;  %vm6450_vm8 = vcmp.eq.f32.partialorder %v14604_v24, inf  ;;  %vm6452_vm2 = vcmp.eq.f32.partialorder %v14604_v24, 0.0 }
 0xa1a   : > { %9193 = vrsqrt.f32 %v14616_v9  ;;  %v6421_v20 = vmul.f32 %v9188_v38, %v6420_v23 }
 0xa1b   : > { %v6837_v42 = vmul.f32 %v9190_v61, %v6836_v13 }
 0xa1c   : > { %v6422_v7 = vmul.f32 0.5, %v6421_v20 }
 0xa1d   : > { %v6838_v0 = vmul.f32 0.5, %v6837_v42 }
 0xa1f   : > { %v9192_v49 = vpop.eup %9191  ;;  %v6839_v22 = vsub.f32 1.5, %v6838_v0  ;;  %v6845_v0 = vand.u32 2147483648, %v14609_v33 }
 0xa20   : > { %6378 = vadd.xlane.f32.xlu2 %v6377_v14  ;;  %v14611_v16 = vpop.xlane.xlu1 %6372  ;;  %v9194_v46 = vpop.eup %9193  ;;  %v6444_v40 = vmul.f32 %v9192_v49, %v14604_v24 }
 0xa21   : > { %9195 = vrsqrt.f32 %v14611_v16  ;;  %v6848_v14 = vmul.f32 %v9194_v46, %v14616_v9  ;;  %v6840_v58 = vmul.f32 %v9190_v61, %v6839_v22  ;;  %vm6462_vm11 = vcmp.eq.f32.partialorder %v14611_v16, inf }
 0xa22   : > { %v6445_v35 = vmul.f32 %v9192_v49, %v6444_v40  ;;  %9197 = vrcp.f32 %v14631_v15  ;;  %vm6464_vm15 = vcmp.eq.f32.partialorder %v14611_v16, 0.0 }
 0xa23   : > { %v6849_v18 = vmul.f32 %v9194_v46, %v6848_v14  ;;  %v6841_v42 = vmul.f32 %v6840_v58, %v14609_v33 }
 0xa24   : > { %v6446_v1 = vmul.f32 0.5, %v6445_v35 }
 0xa25   : > { %6384 = vadd.xlane.f32.xlu0 %v6383_v54  ;;  %v6423_v54 = vsub.f32 1.5, %v6422_v7  ;;  %v6850_v8 = vmul.f32 0.5, %v6849_v18 }
 0xa26   : > { %v6447_v20 = vsub.f32 1.5, %v6446_v1 }
 0xa27   : > { %v9196_v17 = vpop.eup %9195  ;;  %v6424_v63 = vmul.f32 %v9188_v38, %v6423_v54  ;;  %v6851_v13 = vsub.f32 1.5, %v6850_v8 }
 0xa28   : > { %v6456_v51 = vmul.f32 %v9196_v17, %v14611_v16  ;;  %v14642_v10 = vpop.eup %9197  ;;  %v6448_v40 = vmul.f32 %v9192_v49, %v6447_v20 }
 0xa29   : > { %v6425_v23 = vmul.f32 %v6424_v63, %v14596_v26  ;;  %v6960_v38 = vmul.f32 %v14642_v10, %v14631_v15  ;;  %v6852_v61 = vmul.f32 %v9194_v46, %v6851_v13  ;;  %vm6965_vm5 = vweird.f32 %v14642_v10 }
 0xa2a   : > { %v6457_v11 = vmul.f32 %v9196_v17, %v6456_v51  ;;  %v6843_v51 = vsel %vm6842_vm10, %v14609_v33, %v6841_v42  ;;  %v6449_v49 = vmul.f32 %v6448_v40, %v14604_v24  ;;  %vm14685_vm7 = vmor %vm6964_vm9, %vm6965_vm5 }
 0xa2b   : > { %v6427_v7 = vsel %vm6426_vm3, %v14596_v26, %v6425_v23  ;;  %v6961_v14 = vsub.f32 1.0, %v6960_v38  ;;  %v6853_v46 = vmul.f32 %v6852_v61, %v14616_v9  ;;  %v14669_v1 = vsel %vm6844_vm6, %v6845_v0, %v6843_v51 }
 0xa2c   : > { %v6458_v4 = vmul.f32 0.5, %v6457_v11  ;;  %v6970_v11 = vand.u32 2147483648, %v14631_v15  ;;  %v6968_v23 = vand.u32 2147483647, %v14631_v15  ;;  %v6465_v51 = vand.u32 2147483648, %v14611_v16 }
 0xa2d   : > { %v6962_v18 = vmul.f32 %v14642_v10, %v6961_v14  ;;  %v6855_v20 = vsel %vm6854_vm4, %v14616_v9, %v6853_v46 }
 0xa2e   : > { %v6459_v35 = vsub.f32 1.5, %v6458_v4  ;;  %v6971_v14 = vor.u32 1.1754944e-38, %v6970_v11  ;;  %vm6969_vm13 = vcmp.eq.f32.partialorder %v6968_v23, 8.507059e+37 }
 0xa2f   : > { %v6963_v33 = vadd.f32 %v14642_v10, %v6962_v18 }
 0xa30   : > { %v6460_v8 = vmul.f32 %v9196_v17, %v6459_v35  ;;  %v6920_v17 = vperm.slane %v14669_v1, 0 }
 0xa31   : > { %v6967_v15 = vsel %vm14685_vm7, %v14642_v10, %v6963_v33  ;;  %v14713_v33 = vld [vmem:[#allocation11 + $0x30] sm:$0xff] }
 0xa32   : > { %v6972_v35 = vsel %vm6969_vm13, %v6971_v14, %v6967_v15 }
 0xa38   : > { %6339 = vrot.lane.b32.xlu2 %v16236_v2, %s9638_s7  ;;  %v14626_v55 = vpop.permute.xlu1 %6331  ;;  %v14646_v2 = vpop.f32.mrf.mxu3 }
 0xa39   : > { %16238 = vst [vmem:[#allocation48_spill] sm:$0xff] %v14646_v2 }
 0xa40   : > { %6341 = vrot.lane.b32.xlu2 %v16237_v53, %s9638_s7  ;;  %v14638_v28 = vpop.permute.xlu1 %6333  ;;  %v6429_v53 = vand.u32 2147483648, %v14596_v26  ;;  %s9561_s7 = scalar_lea.hbm %s15445_s10, 256 }
 0xa41   : > { %p9563_p9 = scmp.lt.s32.totalorder %s9561_s7, %s9557_s6 }
 0xa42   : > { %v6430_v54 = vsel %vm6428_vm0, %v6429_v53, %v6427_v7  ;;  %v6461_v7 = vmul.f32 %v6460_v8, %v14611_v16 }
 0xa43   : > { %v6928_v26 = vmul.f32 %v6919_v43, %v6430_v54  ;;  %v6453_v43 = vand.u32 2147483648, %v14604_v24  ;;  %p9564_p8 = por %p9563_p9, %p9562_p7 }
 0xa44   : > { %v6463_v18 = vsel %vm6462_vm11, %v14611_v16, %v6461_v7  ;;  %v14725_v7 = vld [vmem:[#allocation12 + $0x30] sm:$0xff] }
 0xa45   : > { %v14680_v58 = vmax.f32 %v6928_v26, 1e-06  ;;  %v7183_v26 = vmul.f32 %v6972_v35, %v14551_v57  ;;  %v6466_v1 = vsel %vm6464_vm15, %v6465_v51, %v6463_v18  ;;  %p9565_p5 = pnand %p9564_p8, %p9560_p13 }
 0xa47   : > { %v7202_v57 = vmul.f32 %v14713_v33, %v7183_v26  ;;  %v6984_v51 = vand.u32 2147483648, %v14680_v58  ;;  %vm6978_vm6 = vweird.f32 %v14680_v58 }
 0xa48   : > { %v6336_v25 = vpop.permute.xlu1 %6335 }
 0xa49   : > { %v6395_v52 = vsel %vm784_vm1, %v6336_v25, 0.0  ;;  %v6451_v25 = vsel %vm6450_vm8, %v14604_v24, %v6449_v49 }
 0xa4a   : > { %6396 = vadd.xlane.f32.xlu0 %v6395_v52  ;;  %v6857_v52 = vand.u32 2147483648, %v14616_v9  ;;  %v6454_v4 = vsel %vm6452_vm2, %v6453_v43, %v6451_v25 }
 0xa4b   : > { %v6930_v10 = vmul.f32 %v6920_v17, %v6454_v4 }
 0xa4c   : > { %v14699_v53 = vsel %vm6856_vm12, %v6857_v52, %v6855_v20  ;;  %v6389_v20 = vsel %vm784_vm1, %v14626_v55, 0.0 }
 0xa4d   : > { %v6921_v49 = vperm.slane %v14699_v53, 0  ;;  %v14711_v46 = vmax.f32 %v6930_v10, 1e-06 }
 0xa4f   : > { %v6931_v23 = vmul.f32 %v6921_v49, %v6466_v1  ;;  %vm7006_vm2 = vweird.f32 %v14711_v46 }
 0xa52   : > { %v14661_v63 = vpop.xlane.xlu2 %6366  ;;  %v14663_v22 = vpop.f32.mrf.mxu3 }
 0xa53   : > { %16239 = vst [vmem:[#allocation50_spill] sm:$0xff] %v14663_v22  ;;  %9199 = vrsqrt.f32 %v14661_v63  ;;  %vm6438_vm3 = vcmp.eq.f32.partialorder %v14661_v63, inf  ;;  %vm6440_vm10 = vcmp.eq.f32.partialorder %v14661_v63, 0.0 }
 0xa59   : > { %v9200_v38 = vpop.eup %9199 }
 0xa5a   : > { %v6432_v42 = vmul.f32 %v9200_v38, %v14661_v63  ;;  %v6330_v40 = vpop.permute.xlu2 %6329  ;;  %v14695_v24 = vpop.xlane.xlu0 %6375 }
 0xa5b   : > { %v6386_v61 = vsel %vm784_vm1, %v6330_v40, 0.0  ;;  %9201 = vrsqrt.f32 %v14695_v24  ;;  %v14703_v54 = vpop.f32.mrf.mxu3  ;;  %v14732_v40 = vmax.f32 %v6931_v23, 1e-06  ;;  %vm6474_vm8 = vcmp.eq.f32.partialorder %v14695_v24, inf }
 0xa5c   : > { %9203 = vrcp.f32 %v14680_v58  ;;  %v6433_v0 = vmul.f32 %v9200_v38, %v6432_v42  ;;  %6387 = vadd.xlane.f32.xlu1 %v6386_v61  ;;  %v14735_v61 = vadd.f32 %v14725_v7, %v7202_v57  ;;  %vm6476_vm4 = vcmp.eq.f32.partialorder %v14695_v24, 0.0 }
 0xa5d   : > { %9205 = vrcp.f32 %v14711_v46  ;;  %v6985_v23 = vor.u32 1.1754944e-38, %v6984_v51 }
 0xa5e   : > { %v6434_v9 = vmul.f32 0.5, %v6433_v0  ;;  %v6392_v0 = vsel %vm784_vm1, %v14638_v28, 0.0  ;;  %9207 = vrcp.f32 %v14732_v40  ;;  %v7237_v28 = vsel %vm1960_vm14, %v14735_v61, -inf }
 0xa60   : > { %v6435_v8 = vsub.f32 1.5, %v6434_v9 }
 0xa61   : > { %v9202_v25 = vpop.eup %9201 }
 0xa62   : > { %v9204_v11 = vpop.eup %9203  ;;  %v6436_v43 = vmul.f32 %v9200_v38, %v6435_v8  ;;  %v6468_v52 = vmul.f32 %v9202_v25, %v14695_v24  ;;  %v6441_v38 = vand.u32 2147483648, %v14661_v63 }
 0xa63   : > { %v14720_v16 = vpop.f32.mrf.mxu3  ;;  %v6974_v15 = vmul.f32 %v9204_v11, %v14680_v58  ;;  %vm6979_vm0 = vweird.f32 %v9204_v11  ;;  %v14741_v26 = vpop.eup %9205 }
 0xa64   : > { %v6437_v13 = vmul.f32 %v6436_v43, %v14661_v63  ;;  %v6469_v4 = vmul.f32 %v9202_v25, %v6468_v52  ;;  %6390 = vadd.xlane.f32.xlu1 %v6389_v20  ;;  %vm6980_vm5 = vmor %vm6978_vm6, %vm6979_vm0  ;;  %vm7007_vm9 = vweird.f32 %v14741_v26  ;;  %vm7020_vm6 = vweird.f32 %v14732_v40 }
 0xa65   : > { %v6975_v10 = vsub.f32 1.0, %v6974_v15  ;;  %v14760_v15 = vld [vmem:[#allocation11 + $0x38] sm:$0xff]  ;;  %vm7008_vm11 = vmor %vm7006_vm2, %vm7007_vm9 }
 0xa66   : > { %v6439_v55 = vsel %vm6438_vm3, %v14661_v63, %v6437_v13  ;;  %v6470_v42 = vmul.f32 0.5, %v6469_v4  ;;  %v6982_v63 = vand.u32 2147483647, %v14680_v58  ;;  %v7002_v13 = vmul.f32 %v14741_v26, %v14711_v46 }
 0xa67   : > { %v6442_v14 = vsel %vm6440_vm10, %v6441_v38, %v6439_v55  ;;  %v6976_v9 = vmul.f32 %v9204_v11, %v6975_v10  ;;  %v14769_v10 = vpop.eup %9207 }
 0xa68   : > { %v6929_v35 = vmul.f32 %v6920_v17, %v6442_v14  ;;  %v6471_v18 = vsub.f32 1.5, %v6470_v42  ;;  %vm6983_vm12 = vcmp.eq.f32.partialorder %v6982_v63, 8.507059e+37  ;;  %v14767_v14 = vld [vmem:[#allocation12 + $0x38] sm:$0xff]  ;;  %vm7021_vm0 = vweird.f32 %v14769_v10 }
 0xa69   : > { %6393 = vadd.xlane.f32.xlu2 %v6392_v0  ;;  %v6977_v17 = vadd.f32 %v9204_v11, %v6976_v9 }
 0xa6a   : > { %v14743_v1 = vmax.f32 %v6929_v35, 1e-06  ;;  %v6472_v8 = vmul.f32 %v9202_v25, %v6471_v18  ;;  %v6477_v25 = vand.u32 2147483648, %v14695_v24 }
 0xa6b   : > { %v14746_v43 = vpop.f32.mrf.mxu3  ;;  %v6981_v57 = vsel %vm6980_vm5, %v9204_v11, %v6977_v17 }
 0xa6c   : > { %v6473_v52 = vmul.f32 %v6472_v8, %v14695_v24  ;;  %7238 = vmax.xlane.f32.xlu1 %v7237_v28  ;;  %9209 = vrcp.f32 %v14743_v1  ;;  %v6986_v38 = vsel %vm6983_vm12, %v6985_v23, %v6981_v57  ;;  %v7012_v23 = vand.u32 2147483648, %v14711_v46 }
 0xa6d   : > { %v6338_v20 = vpop.permute.xlu0 %6337  ;;  %v7184_v42 = vmul.f32 %v6986_v38, %v14563_v12  ;;  %vm6992_vm13 = vweird.f32 %v14743_v1 }
 0xa6e   : > { %v6475_v58 = vsel %vm6474_vm8, %v14695_v24, %v6473_v52  ;;  %v6398_v4 = vsel %vm784_vm1, %v6338_v20, 0.0  ;;  %v7003_v24 = vsub.f32 1.0, %v7002_v13  ;;  %v6998_v52 = vand.u32 2147483648, %v14743_v1  ;;  %vm7022_vm8 = vmor %vm7020_vm6, %vm7021_vm0 }
 0xa6f   : > { %v6478_v55 = vsel %vm6476_vm4, %v6477_v25, %v6475_v58  ;;  %6399 = vadd.xlane.f32.xlu0 %v6398_v4  ;;  %v7203_v0 = vmul.f32 %v14760_v15, %v7184_v42  ;;  %v6996_v13 = vand.u32 2147483647, %v14743_v1  ;;  %v7010_v58 = vand.u32 2147483647, %v14711_v46 }
 0xa70   : > { %v14765_v11 = vmul.f32 %v6921_v49, %v6478_v55  ;;  %v7004_v53 = vmul.f32 %v14741_v26, %v7003_v24  ;;  %v7016_v49 = vmul.f32 %v14769_v10, %v14732_v40  ;;  %v6999_v24 = vor.u32 1.1754944e-38, %v6998_v52 }
 0xa71   : > { %v14777_v51 = vadd.f32 %v14767_v14, %v7203_v0  ;;  %vm6997_vm3 = vcmp.eq.f32.partialorder %v6996_v13, 8.507059e+37  ;;  %vm7011_vm10 = vcmp.eq.f32.partialorder %v7010_v58, 8.507059e+37 }
 0xa72   : > { %v9210_v9 = vpop.eup %9209  ;;  %v7005_v28 = vadd.f32 %v14741_v26, %v7004_v53  ;;  %v7017_v17 = vsub.f32 1.0, %v7016_v49 }
 0xa73   : > { %v14772_v35 = vpop.f32.mrf.mxu3  ;;  %v14774_v18 = vpop.xlane.xlu1 %6381  ;;  %v7240_v12 = vsel %vm1960_vm14, %v14777_v51, -inf  ;;  %v6988_v63 = vmul.f32 %v9210_v9, %v14743_v1  ;;  %vm6993_vm7 = vweird.f32 %v9210_v9 }
 0xa74   : > { %9211 = vrsqrt.f32 %v14774_v18  ;;  %7241 = vmax.xlane.f32.xlu1 %v7240_v12  ;;  %v7009_v55 = vsel %vm7008_vm11, %v14741_v26, %v7005_v28  ;;  %v7018_v42 = vmul.f32 %v14769_v10, %v7017_v17  ;;  %vm6994_vm15 = vmor %vm6992_vm13, %vm6993_vm7  ;;  %v7013_v12 = vor.u32 1.1754944e-38, %v7012_v23 }
 0xa75   : > { %v6989_v8 = vsub.f32 1.0, %v6988_v63  ;;  %v7024_v26 = vand.u32 2147483647, %v14732_v40  ;;  %v7026_v28 = vand.u32 2147483648, %v14732_v40  ;;  %vm6498_vm9 = vcmp.eq.f32.partialorder %v14774_v18, inf }
 0xa76   : > { %v7014_v63 = vsel %vm7011_vm10, %v7013_v12, %v7009_v55  ;;  %vm6500_vm2 = vcmp.eq.f32.partialorder %v14774_v18, 0.0 }
 0xa77   : > { %v6990_v57 = vmul.f32 %v9210_v9, %v6989_v8  ;;  %v7186_v23 = vmul.f32 %v7014_v63, %v14590_v19  ;;  %vm7025_vm4 = vcmp.eq.f32.partialorder %v7024_v26, 8.507059e+37 }
 0xa79   : > { %v6991_v38 = vadd.f32 %v9210_v9, %v6990_v57  ;;  %v7019_v57 = vadd.f32 %v14769_v10, %v7018_v42  ;;  %v7205_v42 = vmul.f32 %v14760_v15, %v7186_v23 }
 0xa7a   : > { %v9212_v25 = vpop.eup %9211 }
 0xa7b   : > { %v14791_v20 = vpop.f32.mrf.mxu3  ;;  %v6492_v4 = vmul.f32 %v9212_v25, %v14774_v18  ;;  %v6995_v53 = vsel %vm6994_vm15, %v9210_v9, %v6991_v38  ;;  %v7023_v58 = vsel %vm7022_vm8, %v14769_v10, %v7019_v57 }
 0xa7c   : > { %9213 = vrsqrt.f32 %v14791_v20  ;;  %v7000_v49 = vsel %vm6997_vm3, %v6999_v24, %v6995_v53  ;;  %v14818_v53 = vadd.f32 %v14767_v14, %v7205_v42  ;;  %vm6866_vm5 = vcmp.eq.f32.partialorder %v14791_v20, inf }
 0xa7d   : > { %v6493_v0 = vmul.f32 %v9212_v25, %v6492_v4  ;;  %v7185_v8 = vmul.f32 %v7000_v49, %v14586_v59  ;;  %v7027_v4 = vor.u32 1.1754944e-38, %v7026_v28  ;;  %vm6868_vm12 = vcmp.eq.f32.partialorder %v14791_v20, 0.0  ;;  %v6736_v49 = vpop.f32.mrf.mxu0 }
 0xa7e   : > { %9215 = vrsqrt.f32 %v6736_v49  ;;  %v7246_v57 = vsel %vm1960_vm14, %v14818_v53, -inf  ;;  %vm6878_vm7 = vcmp.eq.f32.partialorder %v6736_v49, inf  ;;  %vm6880_vm13 = vcmp.eq.f32.partialorder %v6736_v49, 0.0 }
 0xa7f   : > { %v6494_v46 = vmul.f32 0.5, %v6493_v0  ;;  %v7204_v52 = vmul.f32 %v14713_v33, %v7185_v8  ;;  %v7028_v0 = vsel %vm7025_vm4, %v7027_v4, %v7023_v58 }
 0xa80   : > { %v7187_v10 = vmul.f32 %v7028_v0, %v14588_v30 }
 0xa81   : > { %v6495_v17 = vsub.f32 1.5, %v6494_v46  ;;  %v14810_v13 = vadd.f32 %v14725_v7, %v7204_v52 }
 0xa82   : > { %v9214_v1 = vpop.eup %9213  ;;  %v7206_v30 = vmul.f32 %v14713_v33, %v7187_v10 }
 0xa83   : > { %v6860_v9 = vmul.f32 %v9214_v1, %v14791_v20  ;;  %v6496_v38 = vmul.f32 %v9212_v25, %v6495_v17  ;;  %v7243_v40 = vsel %vm1960_vm14, %v14810_v13, -inf  ;;  %v6869_v25 = vand.u32 2147483648, %v14791_v20 }
 0xa84   : > { %7244 = vmax.xlane.f32.xlu1 %v7243_v40  ;;  %v9216_v23 = vpop.eup %9215 }
 0xa85   : > { %v6861_v59 = vmul.f32 %v9214_v1, %v6860_v9  ;;  %v6497_v19 = vmul.f32 %v6496_v38, %v14774_v18  ;;  %v6872_v58 = vmul.f32 %v9216_v23, %v6736_v49 }
 0xa87   : > { %v6862_v55 = vmul.f32 0.5, %v6861_v59  ;;  %v6499_v63 = vsel %vm6498_vm9, %v14774_v18, %v6497_v19  ;;  %v6873_v38 = vmul.f32 %v9216_v23, %v6872_v58 }
 0xa89   : > { %v6863_v24 = vsub.f32 1.5, %v6862_v55  ;;  %v6874_v55 = vmul.f32 0.5, %v6873_v38 }
 0xa8b   : > { %v6864_v12 = vmul.f32 %v9214_v1, %v6863_v24  ;;  %v6501_v1 = vand.u32 2147483648, %v14774_v18  ;;  %v6875_v40 = vsub.f32 1.5, %v6874_v55 }
 0xa8c   : > { %7247 = vmax.xlane.f32.xlu1 %v7246_v57 }
 0xa8d   : > { %v6865_v46 = vmul.f32 %v6864_v12, %v14791_v20  ;;  %v6502_v17 = vsel %vm6500_vm2, %v6501_v1, %v6499_v63  ;;  %v6876_v19 = vmul.f32 %v9216_v23, %v6875_v40  ;;  %v14848_v40 = vpop.f32.mrf.mxu2 }
 0xa8e   : > { %vm6902_vm9 = vcmp.eq.f32.partialorder %v14848_v40, inf }
 0xa8f   : > { %v6867_v8 = vsel %vm6866_vm5, %v14791_v20, %v6865_v46  ;;  %v14841_v20 = vadd.f32 %v14725_v7, %v7206_v30 }
 0xa90   : > { %v14832_v26 = vsel %vm6868_vm12, %v6869_v25, %v6867_v8  ;;  %v6877_v25 = vmul.f32 %v6876_v19, %v6736_v49 }
 0xa91   : > { %v6922_v28 = vperm.slane %v14832_v26, 0  ;;  %v7249_v4 = vsel %vm1960_vm14, %v14841_v20, -inf }
 0xa92   : > { %v6879_v58 = vsel %vm6878_vm7, %v6736_v49, %v6877_v25  ;;  %vm6904_vm7 = vcmp.eq.f32.partialorder %v14848_v40, 0.0 }
 0xa93   : > { %v6934_v9 = vmul.f32 %v6922_v28, %v6502_v17  ;;  %v14838_v52 = vpop.xlane.xlu2 %6378  ;;  %v6881_v17 = vand.u32 2147483648, %v6736_v49 }
 0xa94   : > { %7250 = vmax.xlane.f32.xlu1 %v7249_v4  ;;  %vm6486_vm12 = vcmp.eq.f32.partialorder %v14838_v52, inf  ;;  %vm6488_vm2 = vcmp.eq.f32.partialorder %v14838_v52, 0.0 }
 0xa95   : > { %v6950_v59 = vmax.f32 %v6934_v9, 1e-06  ;;  %v14850_v19 = vsel %vm6880_vm13, %v6881_v17, %v6879_v58 }
 0xa96   : > { %v16243_v2 = vperm.slane %v14850_v19, 0 }
 0xa97   : > { %9217 = vrcp.f32 %v6950_v59  ;;  %v7068_v8 = vand.u32 2147483648, %v6950_v59  ;;  %v7066_v1 = vand.u32 2147483647, %v6950_v59  ;;  %vm7062_vm15 = vweird.f32 %v6950_v59 }
 0xa98   : > { %v6385_v18 = vpop.xlane.xlu0 %6384 }
 0xa99   : > { %9219 = vrsqrt.f32 %v6385_v18  ;;  %v7069_v55 = vor.u32 1.1754944e-38, %v7068_v8  ;;  %vm7067_vm10 = vcmp.eq.f32.partialorder %v7066_v1, 8.507059e+37  ;;  %v6513_v8 = vand.u32 2147483648, %v6385_v18 }
 0xa9a   : > { %9221 = vrsqrt.f32 %v14838_v52  ;;  %vm6512_vm0 = vcmp.eq.f32.partialorder %v6385_v18, 0.0 }
 0xa9b   : > { %v6340_v42 = vpop.permute.xlu2 %6339  ;;  %9223 = vrsqrt.f32 %v14848_v40 }
 0xa9c   : > { %v6401_v0 = vsel %vm784_vm1, %v6340_v42, 0.0 }
 0xa9d   : > { %v9218_v24 = vpop.eup %9217  ;;  %6402 = vadd.xlane.f32.xlu0 %v6401_v0 }
 0xa9e   : > { %v7058_v12 = vmul.f32 %v9218_v24, %v6950_v59  ;;  %vm7063_vm11 = vweird.f32 %v9218_v24  ;;  %v15612_v59 = vperm.slane %v14850_v19, 0 }
 0xa9f   : > { %v9220_v10 = vpop.eup %9219  ;;  %vm7064_vm3 = vmor %vm7062_vm15, %vm7063_vm11 }
 0xaa0   : > { %v6504_v46 = vmul.f32 %v9220_v10, %v6385_v18  ;;  %v7059_v63 = vsub.f32 1.0, %v7058_v12  ;;  %v9222_v49 = vpop.eup %9221 }
 0xaa1   : > { %v9224_v17 = vpop.eup %9223 }
 0xaa2   : > { %v6505_v57 = vmul.f32 %v9220_v10, %v6504_v46  ;;  %v7060_v30 = vmul.f32 %v9218_v24, %v7059_v63 }
 0xaa3   : > { %v6342_v9 = vpop.permute.xlu2 %6341 }
 0xaa4   : > { %v6506_v23 = vmul.f32 0.5, %v6505_v57  ;;  %v6404_v4 = vsel %vm784_vm1, %v6342_v9, 0.0  ;;  %v7061_v38 = vadd.f32 %v9218_v24, %v7060_v30  ;;  %vm6510_vm1 = vcmp.eq.f32.partialorder %v6385_v18, inf }
 0xaa5   : > { %6405 = vadd.xlane.f32.xlu0 %v6404_v4  ;;  %v6480_v30 = vmul.f32 %v9222_v49, %v14838_v52  ;;  %v6896_v4 = vmul.f32 %v9224_v17, %v14848_v40 }
 0xaa6   : > { %v6507_v42 = vsub.f32 1.5, %v6506_v23  ;;  %v7065_v0 = vsel %vm7064_vm3, %v9218_v24, %v7061_v38 }
 0xaa7   : > { %v7070_v12 = vsel %vm7067_vm10, %v7069_v55, %v7065_v0  ;;  %v6481_v58 = vmul.f32 %v9222_v49, %v6480_v30  ;;  %v6897_v55 = vmul.f32 %v9224_v17, %v6896_v4  ;;  %v16242_v0 = vld [vmem:[#allocation93_spill] sm:$0xff] }
 0xaa8   : > { %v6508_v46 = vmul.f32 %v9220_v10, %v6507_v42  ;;  %v7190_v63 = vmul.f32 %v7070_v12, %v14720_v16 }
 0xaa9   : > { %v6482_v38 = vmul.f32 0.5, %v6481_v58  ;;  %v6898_v12 = vmul.f32 0.5, %v6897_v55 }
 0xaaa   : > { %v6509_v25 = vmul.f32 %v6508_v46, %v6385_v18  ;;  %v7209_v57 = vmul.f32 %v14760_v15, %v7190_v63 }
 0xaab   : > { %v6483_v42 = vsub.f32 1.5, %v6482_v38 }
 0xaac   : > { %v6511_v24 = vsel %vm6510_vm1, %v6385_v18, %v6509_v25  ;;  %v14858_v1 = vadd.f32 %v14767_v14, %v7209_v57 }
 0xaad   : > { %v6514_v10 = vsel %vm6512_vm0, %v6513_v8, %v6511_v24  ;;  %v6484_v25 = vmul.f32 %v9222_v49, %v6483_v42  ;;  %v6899_v8 = vsub.f32 1.5, %v6898_v12 }
 0xaae   : > { %v6935_v16 = vmul.f32 %v15612_v59, %v6514_v10  ;;  %v7258_v9 = vsel %vm1960_vm14, %v14858_v1, -inf }
 0xaaf   : > { %7259 = vmax.xlane.f32.xlu1 %v7258_v9  ;;  %v6485_v58 = vmul.f32 %v6484_v25, %v14838_v52  ;;  %v6900_v4 = vmul.f32 %v9224_v17, %v6899_v8  ;;  %v6905_v25 = vand.u32 2147483648, %v14848_v40 }
 0xab0   : > { %v6951_v23 = vmax.f32 %v6935_v16, 1e-06 }
 0xab1   : > { %v6487_v42 = vsel %vm6486_vm12, %v14838_v52, %v6485_v58  ;;  %v6901_v12 = vmul.f32 %v6900_v4, %v14848_v40 }
 0xab2   : > { %9225 = vrcp.f32 %v6951_v23  ;;  %v7082_v57 = vand.u32 2147483648, %v6951_v23  ;;  %v7080_v10 = vand.u32 2147483647, %v6951_v23  ;;  %vm7076_vm8 = vweird.f32 %v6951_v23 }
 0xab4   : > { %v7083_v9 = vor.u32 1.1754944e-38, %v7082_v57  ;;  %vm7081_vm5 = vcmp.eq.f32.partialorder %v7080_v10, 8.507059e+37  ;;  %v6903_v57 = vsel %vm6902_vm9, %v14848_v40, %v6901_v12  ;;  %v14884_v10 = vpop.f32.mrf.mxu1 }
 0xab8   : > { %v9226_v18 = vpop.eup %9225 }
 0xab9   : > { %8709 = vrot.lane.b32.xlu0 %v16242_v0, %s9639_s22  ;;  %v7072_v46 = vmul.f32 %v9226_v18, %v6951_v23  ;;  %vm7077_vm6 = vweird.f32 %v9226_v18 }
 0xaba   : > { %vm7078_vm4 = vmor %vm7076_vm8, %vm7077_vm6  ;;  %vm6890_vm8 = vcmp.eq.f32.partialorder %v14884_v10, inf }
 0xabb   : > { %v7073_v63 = vsub.f32 1.0, %v7072_v46 }
 0xabd   : > { %v6397_v24 = vpop.xlane.xlu0 %6396  ;;  %v7074_v30 = vmul.f32 %v9226_v18, %v7073_v63  ;;  %v6489_v63 = vand.u32 2147483648, %v14838_v52 }
 0xabe   : > { %9227 = vrsqrt.f32 %v6397_v24  ;;  %vm6558_vm11 = vcmp.eq.f32.partialorder %v6397_v24, inf  ;;  %vm6560_vm13 = vcmp.eq.f32.partialorder %v6397_v24, 0.0 }
 0xabf   : > { %v7075_v16 = vadd.f32 %v9226_v18, %v7074_v30  ;;  %9229 = vrsqrt.f32 %v14884_v10 }
 0xac1   : > { %v7079_v38 = vsel %vm7078_vm4, %v9226_v18, %v7075_v16  ;;  %vm6892_vm4 = vcmp.eq.f32.partialorder %v14884_v10, 0.0 }
 0xac2   : > { %v7084_v55 = vsel %vm7081_vm5, %v7083_v9, %v7079_v38  ;;  %v14888_v9 = vsel %vm6904_vm7, %v6905_v25, %v6903_v57 }
 0xac3   : > { %v7191_v0 = vmul.f32 %v7084_v55, %v14573_v50  ;;  %v6490_v50 = vsel %vm6488_vm2, %v6489_v63, %v6487_v42  ;;  %v15611_v38 = vperm.slane %v14888_v9, 0 }
 0xac4   : > { %v9228_v49 = vpop.eup %9227  ;;  %v6933_v52 = vmul.f32 %v6922_v28, %v6490_v50 }
 0xac5   : > { %v6552_v46 = vmul.f32 %v9228_v49, %v6397_v24  ;;  %v7210_v23 = vmul.f32 %v14713_v33, %v7191_v0  ;;  %v6561_v0 = vand.u32 2147483648, %v6397_v24 }
 0xac6   : > { %v6949_v4 = vmax.f32 %v6933_v52, 1e-06 }
 0xac7   : > { %v6553_v17 = vmul.f32 %v9228_v49, %v6552_v46  ;;  %v14877_v18 = vadd.f32 %v14725_v7, %v7210_v23  ;;  %v9230_v46 = vpop.eup %9229 }
 0xac8   : > { %vm7048_vm1 = vweird.f32 %v6949_v4 }
 0xac9   : > { %v6554_v8 = vmul.f32 0.5, %v6553_v17  ;;  %v7261_v30 = vsel %vm1960_vm14, %v14877_v18, -inf  ;;  %v14900_v17 = vmax.f32 %v14765_v11, 1e-06 }
 0xaca   : > { %7262 = vmax.xlane.f32.xlu2 %v7261_v30 }
 0xacb   : > { %v6555_v16 = vsub.f32 1.5, %v6554_v8  ;;  %vm7034_vm5 = vweird.f32 %v14900_v17 }
 0xacd   : > { %v6556_v58 = vmul.f32 %v9228_v49, %v6555_v16  ;;  %v6884_v49 = vmul.f32 %v9230_v46, %v14884_v10 }
 0xacf   : > { %v6557_v40 = vmul.f32 %v6556_v58, %v6397_v24  ;;  %v6388_v55 = vpop.xlane.xlu1 %6387  ;;  %v6885_v57 = vmul.f32 %v9230_v46, %v6884_v49 }
 0xad0   : > { %9231 = vrsqrt.f32 %v6388_v55  ;;  %vm6522_vm15 = vcmp.eq.f32.partialorder %v6388_v55, inf  ;;  %vm6524_vm10 = vcmp.eq.f32.partialorder %v6388_v55, 0.0 }
 0xad1   : > { %v6559_v42 = vsel %vm6558_vm11, %v6397_v24, %v6557_v40  ;;  %9233 = vrcp.f32 %v6949_v4  ;;  %v6886_v16 = vmul.f32 0.5, %v6885_v57 }
 0xad2   : > { %v6562_v12 = vsel %vm6560_vm13, %v6561_v0, %v6559_v42 }
 0xad3   : > { %v14894_v26 = vmul.f32 %v15611_v38, %v6562_v12  ;;  %v7054_v12 = vand.u32 2147483648, %v6949_v4  ;;  %v6525_v38 = vand.u32 2147483648, %v6388_v55 }
 0xad5   : > { %v7055_v22 = vor.u32 1.1754944e-38, %v7054_v12 }
 0xad6   : > { %v9232_v28 = vpop.eup %9231 }
 0xad7   : > { %v6516_v23 = vmul.f32 %v9232_v28, %v6388_v55  ;;  %v14897_v63 = vpop.xlane.xlu1 %6390  ;;  %v9234_v50 = vpop.eup %9233 }
 0xad8   : > { %9235 = vrsqrt.f32 %v14897_v63  ;;  %v7044_v30 = vmul.f32 %v9234_v50, %v6949_v4  ;;  %vm7049_vm3 = vweird.f32 %v9234_v50 }
 0xad9   : > { %v6517_v25 = vmul.f32 %v9232_v28, %v6516_v23  ;;  %9237 = vrcp.f32 %v14900_v17  ;;  %v7052_v23 = vand.u32 2147483647, %v6949_v4  ;;  %vm7050_vm0 = vmor %vm7048_vm1, %vm7049_vm3  ;;  %vm6534_vm1 = vcmp.eq.f32.partialorder %v14897_v63, inf }
 0xada   : > { %v7045_v58 = vsub.f32 1.0, %v7044_v30 }
 0xadb   : > { %v6518_v24 = vmul.f32 0.5, %v6517_v25  ;;  %vm7053_vm6 = vcmp.eq.f32.partialorder %v7052_v23, 8.507059e+37 }
 0xadc   : > { %v14904_v8 = vpop.xlane.xlu2 %6393  ;;  %v7046_v42 = vmul.f32 %v9234_v50, %v7045_v58 }
 0xadd   : > { %v6519_v52 = vsub.f32 1.5, %v6518_v24  ;;  %9239 = vrsqrt.f32 %v14904_v8  ;;  %v6887_v24 = vsub.f32 1.5, %v6886_v16  ;;  %vm6546_vm9 = vcmp.eq.f32.partialorder %v14904_v8, inf }
 0xade   : > { %v14909_v11 = vpop.eup %9235  ;;  %v7047_v57 = vadd.f32 %v9234_v50, %v7046_v42  ;;  %vm6548_vm11 = vcmp.eq.f32.partialorder %v14904_v8, 0.0 }
 0xadf   : > { %v6520_v40 = vmul.f32 %v9232_v28, %v6519_v52  ;;  %v14907_v0 = vpop.xlane.xlu1 %7238  ;;  %v14911_v25 = vpop.eup %9237  ;;  %v6528_v52 = vmul.f32 %v14909_v11, %v14897_v63  ;;  %v6888_v45 = vmul.f32 %v9230_v46, %v6887_v24 }
 0xae0   : > { %v7051_v41 = vsel %vm7050_vm0, %v9234_v50, %v7047_v57  ;;  %vm7035_vm12 = vweird.f32 %v14911_v25 }
 0xae1   : > { %v6521_v49 = vmul.f32 %v6520_v40, %v6388_v55  ;;  %v6529_v4 = vmul.f32 %v14909_v11, %v6528_v52  ;;  %vm14962_vm7 = vmor %vm7034_vm5, %vm7035_vm12 }
 0xae2   : > { %v14913_v59 = vpop.xlane.xlu0 %6399 }
 0xae3   : > { %v9240_v30 = vpop.eup %9239  ;;  %v6523_v28 = vsel %vm6522_vm15, %v6388_v55, %v6521_v49  ;;  %9241 = vrsqrt.f32 %v14913_v59  ;;  %v7030_v55 = vmul.f32 %v14911_v25, %v14900_v17  ;;  %v7056_v49 = vsel %vm7053_vm6, %v7055_v22, %v7051_v41 }
 0xae4   : > { %v6526_v58 = vsel %vm6524_vm10, %v6525_v38, %v6523_v28  ;;  %v6540_v40 = vmul.f32 %v9240_v30, %v14904_v8  ;;  %v7189_v38 = vmul.f32 %v7056_v49, %v14703_v54  ;;  %v6889_v22 = vmul.f32 %v6888_v45, %v14884_v10 }
 0xae5   : > { %v6936_v16 = vmul.f32 %v16243_v2, %v6526_v58  ;;  %v7031_v50 = vsub.f32 1.0, %v7030_v55  ;;  %v6530_v46 = vmul.f32 0.5, %v6529_v4  ;;  %vm6570_vm0 = vcmp.eq.f32.partialorder %v14913_v59, inf }
 0xae6   : > { %v6541_v42 = vmul.f32 %v9240_v30, %v6540_v40  ;;  %v7208_v2 = vmul.f32 %v14713_v33, %v7189_v38  ;;  %vm6536_vm6 = vcmp.eq.f32.partialorder %v14897_v63, 0.0 }
 0xae7   : > { %v14924_v32 = vmax.f32 %v6936_v16, 1e-06  ;;  %v7242_v19 = vpop.xlane.xlu1 %7241  ;;  %v7032_v40 = vmul.f32 %v14911_v25, %v7031_v50  ;;  %v6893_v16 = vand.u32 2147483648, %v14884_v10 }
 0xae8   : > { %v6542_v28 = vmul.f32 0.5, %v6541_v42  ;;  %v7286_v41 = vsub.f32 %v14777_v51, %v7242_v19  ;;  %v14934_v24 = vadd.f32 %v14725_v7, %v7208_v2  ;;  %v6891_v51 = vsel %vm6890_vm8, %v14884_v10, %v6889_v22 }
 0xae9   : > { %v9242_v29 = vpop.eup %9241  ;;  %9243 = vrcp.f32 %v14924_v32  ;;  %v6531_v42 = vsub.f32 1.5, %v6530_v46  ;;  %v7033_v38 = vadd.f32 %v14911_v25, %v7032_v40  ;;  %v6894_v2 = vsel %vm6892_vm4, %v6893_v16, %v6891_v51 }
 0xaea   : > { %v6543_v12 = vsub.f32 1.5, %v6542_v28  ;;  %v6564_v23 = vmul.f32 %v9242_v29, %v14913_v59  ;;  %v7303_v52 = vmul.f32 1.442695, %v7286_v41  ;;  %v7255_v58 = vsel %vm1960_vm14, %v14934_v24, -inf }
 0xaeb   : > { %7256 = vmax.xlane.f32.xlu0 %v7255_v58  ;;  %v7038_v28 = vand.u32 2147483647, %v14900_v17  ;;  %v7040_v10 = vand.u32 2147483648, %v14900_v17  ;;  %v6532_v50 = vmul.f32 %v14909_v11, %v6531_v42  ;;  %v7096_v41 = vand.u32 2147483648, %v14924_v32 }
 0xaec   : > { %v6544_v54 = vmul.f32 %v9240_v30, %v6543_v12  ;;  %v6565_v57 = vmul.f32 %v9242_v29, %v6564_v23  ;;  %9245 = vpow2.f32 %v7303_v52  ;;  %v6549_v23 = vand.u32 2147483648, %v14904_v8 }
 0xaed   : > { %vm7090_vm13 = vweird.f32 %v14924_v32  ;;  %v7041_v16 = vor.u32 1.1754944e-38, %v7040_v10  ;;  %v6924_v17 = vperm.slane %v6894_v2, 0  ;;  %v7097_v51 = vor.u32 1.1754944e-38, %v7096_v41 }
 0xaee   : > { %v6566_v55 = vmul.f32 0.5, %v6565_v57  ;;  %v6545_v30 = vmul.f32 %v6544_v54, %v14904_v8  ;;  %v7094_v57 = vand.u32 2147483647, %v14924_v32  ;;  %vm7039_vm3 = vcmp.eq.f32.partialorder %v7038_v28, 8.507059e+37 }
 0xaef   : > { %v9244_v45 = vpop.eup %9243  ;;  %v6537_v28 = vand.u32 2147483648, %v14897_v63  ;;  %vm6572_vm8 = vcmp.eq.f32.partialorder %v14913_v59, 0.0 }
 0xaf0   : > { %v6567_v49 = vsub.f32 1.5, %v6566_v55  ;;  %v7086_v4 = vmul.f32 %v9244_v45, %v14924_v32  ;;  %v6547_v12 = vsel %vm6546_vm9, %v14904_v8, %v6545_v30  ;;  %vm7091_vm2 = vweird.f32 %v9244_v45 }
 0xaf1   : > { %v6550_v58 = vsel %vm6548_vm11, %v6549_v23, %v6547_v12  ;;  %v6533_v55 = vmul.f32 %v6532_v50, %v14897_v63  ;;  %vm7092_vm15 = vmor %vm7090_vm13, %vm7091_vm2  ;;  %vm7095_vm10 = vcmp.eq.f32.partialorder %v7094_v57, 8.507059e+37  ;;  %v16246_v57 = vperm.slane %v14888_v9, 0 }
 0xaf2   : > { %v7087_v19 = vsub.f32 1.0, %v7086_v4  ;;  %v14955_v22 = vpop.eup %9245  ;;  %v6568_v46 = vmul.f32 %v9242_v29, %v6567_v49  ;;  %v7037_v29 = vsel %vm14962_vm7, %v14911_v25, %v7033_v38  ;;  %v6938_v49 = vmul.f32 %v6924_v17, %v6550_v58 }
 0xaf3   : > { %v7336_v11 = vsel %vm1960_vm14, %v14955_v22, 0.0  ;;  %v7042_v30 = vsel %vm7039_vm3, %v7041_v16, %v7037_v29  ;;  %v6535_v32 = vsel %vm6534_vm1, %v14897_v63, %v6533_v55 }
 0xaf4   : > { %v7088_v54 = vmul.f32 %v9244_v45, %v7087_v19  ;;  %7337 = vadd.xlane.f32.xlu1 %v7336_v11  ;;  %v6569_v8 = vmul.f32 %v6568_v46, %v14913_v59  ;;  %v7188_v2 = vmul.f32 %v7042_v30, %v14592_v36  ;;  %v6954_v50 = vmax.f32 %v6938_v49, 1e-06 }
 0xaf5   : > { %v6538_v12 = vsel %vm6536_vm6, %v6537_v28, %v6535_v32  ;;  %v7285_v36 = vsub.f32 %v14735_v61, %v14907_v0 }
 0xaf6   : > { %v7089_v40 = vadd.f32 %v9244_v45, %v7088_v54  ;;  %v6571_v19 = vsel %vm6570_vm0, %v14913_v59, %v6569_v8  ;;  %v7207_v63 = vmul.f32 %v14760_v15, %v7188_v2  ;;  %v6937_v54 = vmul.f32 %v6924_v17, %v6538_v12 }
 0xaf7   : > { %v7245_v38 = vpop.xlane.xlu1 %7244  ;;  %v7301_v52 = vmul.f32 1.442695, %v7285_v36  ;;  %vm7118_vm5 = vweird.f32 %v6954_v50 }
 0xaf8   : > { %v7093_v42 = vsel %vm7092_vm15, %v9244_v45, %v7089_v40  ;;  %v7287_v45 = vsub.f32 %v14810_v13, %v7245_v38  ;;  %v14999_v58 = vadd.f32 %v14767_v14, %v7207_v63  ;;  %v6953_v61 = vmax.f32 %v6937_v54, 1e-06 }
 0xaf9   : > { %v7098_v4 = vsel %vm7095_vm10, %v7097_v51, %v7093_v42  ;;  %v7124_v42 = vand.u32 2147483648, %v6954_v50 }
 0xafa   : > { %v7192_v25 = vmul.f32 %v7098_v4, %v14584_v60  ;;  %v6573_v60 = vand.u32 2147483648, %v14913_v59  ;;  %v7305_v23 = vmul.f32 1.442695, %v7287_v45  ;;  %v7252_v9 = vsel %vm1960_vm14, %v14999_v58, -inf }
 0xafb   : > { %v7122_v4 = vand.u32 2147483647, %v6954_v50  ;;  %vm7104_vm7 = vweird.f32 %v6953_v61 }
 0xafc   : > { %v7211_v10 = vmul.f32 %v14760_v15, %v7192_v25  ;;  %v6574_v46 = vsel %vm6572_vm8, %v6573_v60, %v6571_v19  ;;  %9247 = vpow2.f32 %v7305_v23  ;;  %v7125_v19 = vor.u32 1.1754944e-38, %v7124_v42 }
 0xafd   : > { %9249 = vrcp.f32 %v6954_v50  ;;  %v6940_v59 = vmul.f32 %v16246_v57, %v6574_v46  ;;  %vm7123_vm9 = vcmp.eq.f32.partialorder %v7122_v4, 8.507059e+37  ;;  %v7110_v46 = vand.u32 2147483648, %v6953_v61 }
 0xafe   : > { %v14988_v41 = vadd.f32 %v14767_v14, %v7211_v10  ;;  %9251 = vpow2.f32 %v7301_v52 }
 0xaff   : > { %v7248_v11 = vpop.xlane.xlu1 %7247  ;;  %v15003_v40 = vmax.f32 %v6940_v59, 1e-06 }
 0xb00   : > { %v7264_v13 = vsel %vm1960_vm14, %v14988_v41, -inf  ;;  %v7288_v29 = vsub.f32 %v14818_v53, %v7248_v11 }
 0xb01   : > { %7265 = vmax.xlane.f32.xlu2 %v7264_v13  ;;  %v7152_v52 = vand.u32 2147483648, %v15003_v40  ;;  %vm7146_vm15 = vweird.f32 %v15003_v40 }
 0xb02   : > { %v15001_v0 = vpop.eup %9247  ;;  %v7307_v16 = vmul.f32 1.442695, %v7288_v29 }
 0xb03   : > { %v9250_v55 = vpop.eup %9249  ;;  %v7339_v17 = vsel %vm1960_vm14, %v15001_v0, 0.0  ;;  %v7153_v42 = vor.u32 1.1754944e-38, %v7152_v52 }
 0xb04   : > { %9253 = vpow2.f32 %v7307_v16  ;;  %7340 = vadd.xlane.f32.xlu1 %v7339_v17  ;;  %v7114_v53 = vmul.f32 %v9250_v55, %v6954_v50  ;;  %v15010_v8 = vpop.eup %9251  ;;  %vm7119_vm4 = vweird.f32 %v9250_v55  ;;  %v7108_v50 = vand.u32 2147483647, %v6953_v61 }
 0xb05   : > { %9255 = vrcp.f32 %v6953_v61  ;;  %v7333_v2 = vsel %vm1960_vm14, %v15010_v8, 0.0  ;;  %vm7120_vm12 = vmor %vm7118_vm5, %vm7119_vm4  ;;  %v7111_v17 = vor.u32 1.1754944e-38, %v7110_v46  ;;  %v16250_v46 = vld [vmem:[#allocation47_spill] sm:$0xff] }
 0xb06   : > { %9257 = vrcp.f32 %v15003_v40  ;;  %v7115_v51 = vsub.f32 1.0, %v7114_v53  ;;  %vm7109_vm3 = vcmp.eq.f32.partialorder %v7108_v50, 8.507059e+37  ;;  %v16251_v50 = vld [vmem:[#allocation109_spill] sm:$0xff] }
 0xb07   : > { %v7251_v63 = vpop.xlane.xlu1 %7250 }
 0xb08   : > { %v7116_v49 = vmul.f32 %v9250_v55, %v7115_v51  ;;  %v7289_v16 = vsub.f32 %v14841_v20, %v7251_v63  ;;  %v6955_v63 = vmax.f32 %v14894_v26, 1e-06 }
 0xb09   : > { %7253 = vmax.xlane.f32.xlu2 %v7252_v9 }
 0xb0a   : > { %v15012_v30 = vpop.eup %9253  ;;  %v7117_v28 = vadd.f32 %v9250_v55, %v7116_v49  ;;  %v7309_v20 = vmul.f32 1.442695, %v7289_v16  ;;  %vm7132_vm6 = vweird.f32 %v6955_v63 }
 0xb0b   : > { %v9256_v25 = vpop.eup %9255  ;;  %v7342_v32 = vsel %vm1960_vm14, %v15012_v30, 0.0 }
 0xb0c   : > { %v9258_v38 = vpop.eup %9257  ;;  %7343 = vadd.xlane.f32.xlu0 %v7342_v32  ;;  %v7121_v45 = vsel %vm7120_vm12, %v9250_v55, %v7117_v28  ;;  %v7100_v10 = vmul.f32 %v9256_v25, %v6953_v61  ;;  %vm7105_vm2 = vweird.f32 %v9256_v25  ;;  %v16247_v28 = vld [vmem:[#allocation35_spill] sm:$0xff]  ;;  %9259 = vpow2.f32 %v7309_v20 }
 0xb0d   : > { %v7126_v60 = vsel %vm7123_vm9, %v7125_v19, %v7121_v45  ;;  %v7142_v12 = vmul.f32 %v9258_v38, %v15003_v40  ;;  %vm7147_vm11 = vweird.f32 %v9258_v38  ;;  %vm7106_vm13 = vmor %vm7104_vm7, %vm7105_vm2  ;;  %v16248_v19 = vld [vmem:[#allocation36_spill] sm:$0xff] }
 0xb0e   : > { %v7194_v23 = vmul.f32 %v7126_v60, %v14602_v5  ;;  %v7101_v36 = vsub.f32 1.0, %v7100_v10  ;;  %v7150_v5 = vand.u32 2147483647, %v15003_v40  ;;  %vm7148_vm10 = vmor %vm7146_vm15, %vm7147_vm11  ;;  %v8713_v45 = vpack.i.bf16 %v16248_v19, %v16247_v28 }
 0xb0f   : > { %v7143_v13 = vsub.f32 1.0, %v7142_v12  ;;  %v7138_v28 = vand.u32 2147483648, %v6955_v63 }
 0xb10   : > { %v7213_v54 = vmul.f32 %v14760_v15, %v7194_v23  ;;  %v7102_v57 = vmul.f32 %v9256_v25, %v7101_v36  ;;  %v15027_v55 = vpop.xlane.xlu0 %6402  ;;  %vm7151_vm1 = vcmp.eq.f32.partialorder %v7150_v5, 8.507059e+37  ;;  %v16249_v36 = vld [vmem:[#allocation45_spill] sm:$0xff] }
 0xb11   : > { %7334 = vadd.xlane.f32.xlu2 %v7333_v2  ;;  %v7144_v59 = vmul.f32 %v9258_v38, %v7143_v13  ;;  %v8723_v13 = vpack.i.bf16 %v16250_v46, %v16249_v36  ;;  %vm6582_vm9 = vcmp.eq.f32.partialorder %v15027_v55, inf  ;;  %vm6584_vm2 = vcmp.eq.f32.partialorder %v15027_v55, 0.0 }
 0xb12   : > { %v15023_v11 = vadd.f32 %v14767_v14, %v7213_v54  ;;  %v7103_v29 = vadd.f32 %v9256_v25, %v7102_v57 }
 0xb13   : > { %v7145_v53 = vadd.f32 %v9258_v38, %v7144_v59 }
 0xb14   : > { %v7270_v61 = vsel %vm1960_vm14, %v15023_v11, -inf  ;;  %v7107_v9 = vsel %vm7106_vm13, %v9256_v25, %v7103_v29 }
 0xb15   : > { %7271 = vmax.xlane.f32.xlu0 %v7270_v61  ;;  %v7112_v51 = vsel %vm7109_vm3, %v7111_v17, %v7107_v9  ;;  %v7149_v4 = vsel %vm7148_vm10, %v9258_v38, %v7145_v53 }
 0xb16   : > { %v7193_v49 = vmul.f32 %v7112_v51, %v14594_v27  ;;  %v7154_v32 = vsel %vm7151_vm1, %v7153_v42, %v7149_v4 }
 0xb17   : > { %v7196_v40 = vmul.f32 %v7154_v32, %v14606_v47 }
 0xb18   : > { %v7212_v2 = vmul.f32 %v14713_v33, %v7193_v49  ;;  %v15047_v33 = vpop.xlane.xlu0 %6405 }
 0xb19   : > { %v7215_v10 = vmul.f32 %v14760_v15, %v7196_v40  ;;  %vm6594_vm7 = vcmp.eq.f32.partialorder %v15047_v33, inf  ;;  %vm6596_vm11 = vcmp.eq.f32.partialorder %v15047_v33, 0.0 }
 0xb1a   : > { %v15038_v25 = vadd.f32 %v14725_v7, %v7212_v2  ;;  %v15051_v7 = vpop.eup %9259 }
 0xb1b   : > { %v15045_v38 = vadd.f32 %v14767_v14, %v7215_v10  ;;  %v7345_v15 = vsel %vm1960_vm14, %v15051_v7, 0.0  ;;  %v6820_v14 = vpop.f32.mrf.mxu3  ;;  %v7136_v10 = vand.u32 2147483647, %v6955_v63 }
 0xb1c   : > { %v7267_v27 = vsel %vm1960_vm14, %v15038_v25, -inf  ;;  %9261 = vrsqrt.f32 %v6820_v14  ;;  %vm6914_vm8 = vcmp.eq.f32.partialorder %v6820_v14, inf  ;;  %vm6916_vm5 = vcmp.eq.f32.partialorder %v6820_v14, 0.0 }
 0xb1d   : > { %8714 = vrot.lane.b32.xlu1 %v8713_v45, %s9639_s22  ;;  %7268 = vmax.xlane.f32.xlu2 %v7267_v27  ;;  %v7276_v47 = vsel %vm1960_vm14, %v15045_v38, -inf  ;;  %9263 = vrsqrt.f32 %v15027_v55  ;;  %vm7137_vm12 = vcmp.eq.f32.partialorder %v7136_v10, 8.507059e+37 }
 0xb1e   : > { %7277 = vmax.xlane.f32.xlu0 %v7276_v47  ;;  %9265 = vrcp.f32 %v6955_v63  ;;  %v6917_v47 = vand.u32 2147483648, %v6820_v14 }
 0xb1f   : > { %9267 = vrsqrt.f32 %v15047_v33 }
 0xb22   : > { %v9262_v54 = vpop.eup %9261 }
 0xb23   : > { %v6908_v57 = vmul.f32 %v9262_v54, %v6820_v14  ;;  %v9264_v59 = vpop.eup %9263 }
 0xb24   : > { %v9266_v52 = vpop.eup %9265  ;;  %v6576_v5 = vmul.f32 %v9264_v59, %v15027_v55 }
 0xb25   : > { %7346 = vadd.xlane.f32.xlu2 %v7345_v15  ;;  %v6909_v29 = vmul.f32 %v9262_v54, %v6908_v57  ;;  %v7128_v16 = vmul.f32 %v9266_v52, %v6955_v63  ;;  %v9268_v9 = vpop.eup %9267  ;;  %vm7133_vm0 = vweird.f32 %v9266_v52  ;;  %v7139_v15 = vor.u32 1.1754944e-38, %v7138_v28 }
 0xb26   : > { %v6577_v61 = vmul.f32 %v9264_v59, %v6576_v5  ;;  %v6588_v42 = vmul.f32 %v9268_v9, %v15047_v33  ;;  %vm7134_vm4 = vmor %vm7132_vm6, %vm7133_vm0 }
 0xb27   : > { %v6910_v17 = vmul.f32 0.5, %v6909_v29  ;;  %v7129_v26 = vsub.f32 1.0, %v7128_v16 }
 0xb28   : > { %v6578_v51 = vmul.f32 0.5, %v6577_v61  ;;  %v6589_v32 = vmul.f32 %v9268_v9, %v6588_v42 }
 0xb29   : > { %v6911_v53 = vsub.f32 1.5, %v6910_v17  ;;  %v7130_v49 = vmul.f32 %v9266_v52, %v7129_v26  ;;  %v15074_v17 = vld [vmem:[#allocation11 + $0x30] sm:$0xff] }
 0xb2a   : > { %v6579_v20 = vsub.f32 1.5, %v6578_v51  ;;  %v6590_v45 = vmul.f32 0.5, %v6589_v32 }
 0xb2b   : > { %v8710_v60 = vpop.permute.xlu0 %8709  ;;  %v6912_v4 = vmul.f32 %v9262_v54, %v6911_v53  ;;  %v7131_v2 = vadd.f32 %v9266_v52, %v7130_v49  ;;  %v15079_v53 = vld [vmem:[#allocation12 + $0x30] sm:$0xff] }
 0xb2c   : > { %v8711_v12 = vunpack.i.l.bf16 %v8710_v60  ;;  %v8712_v23 = vunpack.i.h.bf16 %v8710_v60  ;;  %v6580_v19 = vmul.f32 %v9264_v59, %v6579_v20 }
 0xb2d   : > { %v6913_v40 = vmul.f32 %v6912_v4, %v6820_v14  ;;  %v7135_v27 = vsel %vm7134_vm4, %v9266_v52, %v7131_v2  ;;  %vm4207_vm4 = vcmask 130112  }
 0xb2e   : > { %7439 = vmatpush.msra.mxu0 %v8711_v12  ;;  %v6581_v12 = vmul.f32 %v6580_v19, %v15027_v55  ;;  %v7140_v36 = vsel %vm7137_vm12, %v7139_v15, %v7135_v27  ;;  %vm7757_vm12 = vcmask 261312  }
 0xb2f   : > { %v6915_v60 = vsel %vm6914_vm8, %v6820_v14, %v6913_v40  ;;  %v7195_v63 = vmul.f32 %v7140_v36, %v14599_v21 }
 0xb30   : > { %7440 = vmatpush.msra.mxu0 %v8712_v23  ;;  %v6591_v23 = vsub.f32 1.5, %v6590_v45  ;;  %v6918_v46 = vsel %vm6916_vm5, %v6917_v47, %v6915_v60  ;;  %v7260_v47 = vpop.xlane.xlu1 %7259  ;;  %vm5982_vm5 = vcmask 195712  }
 0xb31   : > { %v6926_v59 = vperm.slane %v6918_v46, 0  ;;  %v7214_v61 = vmul.f32 %v15074_v17, %v7195_v63  ;;  %v7292_v36 = vsub.f32 %v14858_v1, %v7260_v47 }
 0xb32   : > { %8724 = vrot.lane.b32.xlu0 %v8723_v13, %s9639_s22  ;;  %v6583_v13 = vsel %vm6582_vm9, %v15027_v55, %v6581_v12  ;;  %v6592_v54 = vmul.f32 %v9268_v9, %v6591_v23 }
 0xb33   : > { %v7315_v63 = vmul.f32 1.442695, %v7292_v36 }
 0xb34   : > { %v6593_v16 = vmul.f32 %v6592_v54, %v15047_v33 }
 0xb3d   : > { %8719 = vrot.lane.b32.xlu2 %v16251_v50, %s9639_s22  ;;  %v7263_v57 = vpop.xlane.xlu2 %7262  ;;  %v6585_v50 = vand.u32 2147483648, %v15027_v55  ;;  %v6595_v55 = vsel %vm6594_vm7, %v15047_v33, %v6593_v16 }
 0xb3e   : > { %v7293_v29 = vsub.f32 %v14877_v18, %v7263_v57  ;;  %v15082_v18 = vadd.f32 %v15079_v53, %v7214_v61 }
 0xb3f   : > { %v6586_v52 = vsel %vm6584_vm2, %v6585_v50, %v6583_v13  ;;  %v16252_v13 = vld [vmem:[#allocation100_spill] sm:$0xff] }
 0xb40   : > { %v6941_v26 = vmul.f32 %v6926_v59, %v6586_v52  ;;  %v7317_v21 = vmul.f32 1.442695, %v7293_v29  ;;  %v7273_v49 = vsel %vm1960_vm14, %v15082_v18, -inf }
 0xb42   : > { %v6957_v51 = vmax.f32 %v6941_v26, 1e-06 }
 0xb44   : > { %vm7160_vm15 = vweird.f32 %v6957_v51  ;;  %v7164_v52 = vand.u32 2147483647, %v6957_v51 }
 0xb46   : > { %vm7165_vm10 = vcmp.eq.f32.partialorder %v7164_v52, 8.507059e+37 }
 0xb5e   : > { %v7257_v14 = vpop.xlane.xlu0 %7256 }
 0xb5f   : > { %v7291_v5 = vsub.f32 %v14934_v24, %v7257_v14  ;;  %v6597_v24 = vand.u32 2147483648, %v15047_v33 }
 0xb61   : > { %v7313_v9 = vmul.f32 1.442695, %v7291_v5  ;;  %v6598_v42 = vsel %vm6596_vm11, %v6597_v24, %v6595_v55 }
 0xb62   : > { %v6942_v20 = vmul.f32 %v6926_v59, %v6598_v42  ;;  %v7166_v59 = vand.u32 2147483648, %v6957_v51 }
 0xb63   : > { %9269 = vpow2.f32 %v7313_v9  ;;  %v16253_v9 = vld [vmem:[#allocation104_spill] sm:$0xff] }
 0xb64   : > { %9271 = vpow2.f32 %v7317_v21  ;;  %v6958_v40 = vmax.f32 %v6942_v20, 1e-06  ;;  %v7167_v1 = vor.u32 1.1754944e-38, %v7166_v59 }
 0xb65   : > { %9273 = vrcp.f32 %v6957_v51 }
 0xb66   : > { %7274 = vmax.xlane.f32.xlu2 %v7273_v49  ;;  %9275 = vrcp.f32 %v6958_v40  ;;  %v7180_v24 = vand.u32 2147483648, %v6958_v40  ;;  %vm7174_vm0 = vweird.f32 %v6958_v40  ;;  %v7178_v49 = vand.u32 2147483647, %v6958_v40 }
 0xb67   : > { %v7338_v50 = vpop.xlane.xlu1 %7337 }
 0xb68   : > { %vm7179_vm8 = vcmp.eq.f32.partialorder %v7178_v49, 8.507059e+37  ;;  %v16257_v49 = vld [vmem:[#allocation118_spill] sm:$0xff] }
 0xb69   : > { %v15088_v4 = vpop.eup %9269 }
 0xb6a   : > { %v7351_v32 = vsel %vm1960_vm14, %v15088_v4, 0.0  ;;  %v15092_v2 = vpop.eup %9271 }
 0xb6b   : > { %7352 = vadd.xlane.f32.xlu0 %v7351_v32  ;;  %v9274_v28 = vpop.eup %9273  ;;  %v7357_v33 = vsel %vm1960_vm14, %v15092_v2, 0.0 }
 0xb6c   : > { %v7156_v45 = vmul.f32 %v9274_v28, %v6957_v51  ;;  %v9276_v27 = vpop.eup %9275  ;;  %vm7161_vm13 = vweird.f32 %v9274_v28 }
 0xb6d   : > { %v7170_v23 = vmul.f32 %v9276_v27, %v6958_v40  ;;  %vm7162_vm3 = vmor %vm7160_vm15, %vm7161_vm13  ;;  %vm7175_vm1 = vweird.f32 %v9276_v27 }
 0xb6e   : > { %7358 = vadd.xlane.f32.xlu2 %v7357_v33  ;;  %v7157_v10 = vsub.f32 1.0, %v7156_v45  ;;  %vm7176_vm6 = vmor %vm7174_vm0, %vm7175_vm1  ;;  %v7181_v33 = vor.u32 1.1754944e-38, %v7180_v24  ;;  %v16254_v45 = vld [vmem:[#allocation58_spill] sm:$0xff] }
 0xb6f   : > { %v7171_v57 = vsub.f32 1.0, %v7170_v23 }
 0xb70   : > { %v7158_v12 = vmul.f32 %v9274_v28, %v7157_v10  ;;  %v16255_v10 = vld [vmem:[#allocation59_spill] sm:$0xff] }
 0xb71   : > { %v7172_v29 = vmul.f32 %v9276_v27, %v7171_v57  ;;  %v8738_v47 = vpack.i.bf16 %v16255_v10, %v16254_v45 }
 0xb72   : > { %v7159_v54 = vadd.f32 %v9274_v28, %v7158_v12 }
 0xb73   : > { %v7173_v26 = vadd.f32 %v9276_v27, %v7172_v29 }
 0xb74   : > { %v15096_v19 = vpop.xlane.xlu2 %7265 }
 0xb75   : > { %v7177_v32 = vsel %vm7176_vm6, %v9276_v27, %v7173_v26 }
 0xb76   : > { %v7182_v40 = vsel %vm7179_vm8, %v7181_v33, %v7177_v32 }
 0xb77   : > { %v7341_v55 = vpop.xlane.xlu1 %7340 }
 0xb7c   : > { %v7254_v15 = vpop.xlane.xlu2 %7253 }
 0xb7d   : > { %v7290_v60 = vsub.f32 %v14999_v58, %v7254_v15  ;;  %v7163_v58 = vsel %vm7162_vm3, %v9274_v28, %v7159_v54 }
 0xb7e   : > { %v7168_v61 = vsel %vm7165_vm10, %v7167_v1, %v7163_v58 }
 0xb7f   : > { %v7311_v46 = vmul.f32 1.442695, %v7290_v60  ;;  %8729 = vrot.lane.b32.xlu0 %v16252_v13, %s9639_s22  ;;  %v7197_v42 = vmul.f32 %v7168_v61, %v14746_v43  ;;  %v7344_v28 = vpop.xlane.xlu0 %7343 }
 0xb81   : > { %9277 = vpow2.f32 %v7311_v46  ;;  %v7198_v46 = vmul.f32 %v7182_v40, %v14772_v35  ;;  %v16261_v40 = vld [vmem:[#allocation136_spill] sm:$0xff] }
 0xb84   : > { %v7335_v14 = vpop.xlane.xlu2 %7334 }
 0xb85   : > { %9279 = vrcp.f32 %v7335_v14  ;;  %v16256_v14 = vld [vmem:[#allocation103_spill] sm:$0xff] }
 0xb86   : > { %9281 = vpow2.f32 %v7315_v63 }
 0xb87   : > { %v15102_v5 = vpop.eup %9277  ;;  %8734 = vrot.lane.b32.xlu0 %v16253_v9, %s9639_s22  ;;  %9283 = vrcp.f32 %v7338_v50 }
 0xb88   : > { %v7348_v16 = vsel %vm1960_vm14, %v15102_v5, 0.0  ;;  %9285 = vrcp.f32 %v7341_v55  ;;  %v7272_v35 = vpop.xlane.xlu0 %7271 }
 0xb89   : > { %7349 = vadd.xlane.f32.xlu1 %v7348_v16  ;;  %9287 = vrcp.f32 %v7344_v28  ;;  %v7296_v58 = vsub.f32 %v15023_v11, %v7272_v35 }
 0xb8b   : > { %v9280_v21 = vpop.eup %9279  ;;  %v7323_v9 = vmul.f32 1.442695, %v7296_v58  ;;  %v16267_v58 = vld [vmem:[#allocation114_spill] sm:$0xff] }
 0xb8c   : > { %v7397_v51 = vmul.f32 %v9280_v21, %v15010_v8  ;;  %v15110_v20 = vpop.eup %9281  ;;  %v7216_v8 = vmul.f32 %v15074_v17, %v7197_v42  ;;  %v7294_v17 = vsub.f32 %v14988_v41, %v15096_v19 }
 0xb8d   : > { %v7354_v15 = vsel %vm1960_vm14, %v15110_v20, 0.0  ;;  %v9284_v43 = vpop.eup %9283 }
 0xb8e   : > { %8416 = vmatmul.msk.f32.vlgmr.msra.gmra.mxu0 %vm1960_vm14, %v7397_v51  ;;  %v9286_v12 = vpop.eup %9285  ;;  %v7398_v27 = vmul.f32 %v9284_v43, %v14955_v22  ;;  %v15121_v36 = vadd.f32 %v15079_v53, %v7216_v8  ;;  %v9329_v53 = vld [vmem:[#allocation11 + $0x38] sm:$0xff]  ;;  %v7319_v52 = vmul.f32 1.442695, %v7294_v17  ;;  %v16259_v8 = vld [vmem:[#allocation121_spill] sm:$0xff]  ;;  %v16260_v43 = vld [vmem:[#allocation138_spill] sm:$0xff] }
 0xb8f   : > { %8739 = vrot.lane.b32.xlu0 %v8738_v47, %s9639_s22  ;;  %v8715_v60 = vpop.permute.xlu1 %8714  ;;  %v7399_v57 = vmul.f32 %v9286_v12, %v15001_v0  ;;  %v7217_v50 = vmul.f32 %v9329_v53, %v7198_v46  ;;  %v9288_v41 = vpop.eup %9287  ;;  %v9330_v0 = vld [vmem:[#allocation12 + $0x38] sm:$0xff]  ;;  %v16263_v46 = vld [vmem:[#allocation86_spill] sm:$0xff] }
 0xb90   : > { %v8716_v23 = vunpack.i.l.bf16 %v8715_v60  ;;  %v7269_v13 = vpop.xlane.xlu2 %7268  ;;  %v8717_v54 = vunpack.i.h.bf16 %v8715_v60  ;;  %v7279_v22 = vsel %vm1960_vm14, %v15121_v36, -inf  ;;  %v7400_v29 = vmul.f32 %v9288_v41, %v15012_v30 }
 0xb91   : > { %7355 = vadd.xlane.f32.xlu1 %v7354_v15  ;;  %v7295_v63 = vsub.f32 %v15038_v25, %v7269_v13  ;;  %v15134_v19 = vadd.f32 %v9330_v0, %v7217_v50  ;;  %v7278_v11 = vpop.xlane.xlu0 %7277  ;;  %v16258_v15 = vld [vmem:[#allocation126_spill] sm:$0xff] }
 0xb92   : > { %7474 = vmatpush.msrb.mxu1 %v8716_v23  ;;  %v7298_v55 = vsub.f32 %v15045_v38, %v7278_v11 }
 0xb93   : > { %v7321_v59 = vmul.f32 1.442695, %v7295_v63  ;;  %v7282_v1 = vsel %vm1960_vm14, %v15134_v19, -inf }
 0xb94   : > { %7475 = vmatpush.msrb.mxu1 %v8717_v54  ;;  %v7327_v32 = vmul.f32 1.442695, %v7298_v55 }
 0xb95   : > { %8418 = vmatmul.msk.f32.vlgmr.msrb.gmra.mxu1 %vm1960_vm14, %v7399_v57  ;;  %9289 = vpow2.f32 %v7321_v59  ;;  %v16264_v57 = vld [vmem:[#allocation111_spill] sm:$0xff] }
 0xb96   : > { %8417 = vmatmul.msk.f32.gmra.mxu0 %vm1960_vm14, %v7398_v27  ;;  %9291 = vpow2.f32 %v7319_v52 }
 0xb97   : > { %8744 = vrot.lane.b32.xlu0 %v16256_v14, %s9639_s22  ;;  %v16266_v14 = vld [vmem:[#allocation128_spill] sm:$0xff] }
 0xb98   : > { %v7347_v25 = vpop.xlane.xlu2 %7346 }
 0xb99   : > { %7280 = vmax.xlane.f32.xlu1 %v7279_v22  ;;  %9293 = vrcp.f32 %v7347_v25  ;;  %v16265_v22 = vld [vmem:[#allocation141_spill] sm:$0xff] }
 0xb9a   : > { %9295 = vpow2.f32 %v7323_v9 }
 0xb9b   : > { %v15140_v16 = vpop.eup %9289  ;;  %9297 = vpow2.f32 %v7327_v32  ;;  %v16269_v32 = vld [vmem:[#allocation105_spill] sm:$0xff] }
 0xb9c   : > { %v7363_v61 = vsel %vm1960_vm14, %v15140_v16, 0.0  ;;  %v15147_v30 = vpop.eup %9291 }
 0xb9d   : > { %8419 = vmatmul.msk.f32.gmra.mxu1 %vm1960_vm14, %v7400_v29  ;;  %7364 = vadd.xlane.f32.xlu2 %v7363_v61  ;;  %v7360_v51 = vsel %vm1960_vm14, %v15147_v30, 0.0 }
 0xb9f   : > { %5934 = vrot.lane.b32.xlu0 %v14521_v3, %s9640_s30  ;;  %v9294_v21 = vpop.eup %9293 }
 0xba0   : > { %v8720_v26 = vpop.permute.xlu2 %8719  ;;  %v7401_v3 = vmul.f32 %v9294_v21, %v15051_v7  ;;  %v15156_v38 = vpop.eup %9295 }
 0xba1   : > { %7283 = vmax.xlane.f32.xlu1 %v7282_v1  ;;  %v8721_v24 = vunpack.i.l.bf16 %v8720_v26  ;;  %v8722_v42 = vunpack.i.h.bf16 %v8720_v26  ;;  %v7366_v10 = vsel %vm1960_vm14, %v15156_v38, 0.0  ;;  %v15162_v7 = vpop.eup %9297  ;;  %v16268_v26 = vld [vmem:[#allocation133_spill] sm:$0xff] }
 0xba2   : > { %v7372_v47 = vsel %vm1960_vm14, %v15162_v7, 0.0 }
 0xba3   : > { %7509 = vmatpush.msra.mxu2 %v8721_v24 }
 0xba4   : > { %v8725_v28 = vpop.permute.xlu0 %8724 }
 0xba5   : > { %7510 = vmatpush.msra.mxu2 %v8722_v42  ;;  %v8726_v33 = vunpack.i.l.bf16 %v8725_v28  ;;  %v8727_v45 = vunpack.i.h.bf16 %v8725_v28 }
 0xba6   : > { %8420 = vmatmul.msk.f32.vlgmr.msra.gmra.mxu2 %vm1960_vm14, %v7401_v3 }
 0xba7   : > { %4161 = vrot.lane.b32.xlu0 %v16257_v49, %s9641_s18  ;;  %7544 = vmatpush.msra.mxu3 %v8726_v33 }
 0xba9   : > { %7361 = vadd.xlane.f32.xlu1 %v7360_v51  ;;  %7545 = vmatpush.msra.mxu3 %v8727_v45 }
 0xbaf   : > { %5936 = vrot.lane.b32.xlu0 %v14525_v56, %s9640_s30  ;;  %v16262_v56 = vld [vmem:[#allocation142_spill] sm:$0xff] }
 0xbb1   : > { %7367 = vadd.xlane.f32.xlu1 %v7366_v10 }
 0xbb7   : > { %4163 = vrot.lane.b32.xlu0 %v16258_v15, %s9641_s18  ;;  %v16270_v15 = vld [vmem:[#allocation38_spill] sm:$0xff] }
 0xbb9   : > { %7373 = vadd.xlane.f32.xlu1 %v7372_v47 }
 0xbbf   : > { %4165 = vrot.lane.b32.xlu0 %v16259_v8, %s9641_s18 }
 0xbc7   : > { %4167 = vrot.lane.b32.xlu0 %v16260_v43, %s9641_s18 }
 0xbcf   : > { %4169 = vrot.lane.b32.xlu0 %v16261_v40, %s9641_s18 }
 0xbd7   : > { %4171 = vrot.lane.b32.xlu0 %v16262_v56, %s9641_s18 }
 0xbd9   : > { %v7275_v60 = vpop.xlane.xlu2 %7274 }
 0xbda   : > { %v7297_v12 = vsub.f32 %v15082_v18, %v7275_v60 }
 0xbdc   : > { %v7325_v27 = vmul.f32 1.442695, %v7297_v12  ;;  %v16271_v12 = vld [vmem:[#allocation144_spill] sm:$0xff] }
 0xbde   : > { %v7353_v23 = vpop.xlane.xlu0 %7352 }
 0xbdf   : > { %9299 = vrcp.f32 %v7353_v23  ;;  %4173 = vrot.lane.b32.xlu0 %v16263_v46, %s9641_s18 }
 0xbe0   : > { %9301 = vpow2.f32 %v7325_v27 }
 0xbe1   : > { %v7359_v63 = vpop.xlane.xlu2 %7358 }
 0xbe2   : > { %9303 = vrcp.f32 %v7359_v63  ;;  %v16272_v63 = vld [vmem:[#allocation146_spill] sm:$0xff] }
 0xbe5   : > { %v9300_v13 = vpop.eup %9299 }
 0xbe6   : > { %v7403_v54 = vmul.f32 %v9300_v13, %v15088_v4  ;;  %v15180_v17 = vpop.eup %9301 }
 0xbe7   : > { %4175 = vrot.lane.b32.xlu0 %v16264_v57, %s9641_s18  ;;  %v7369_v18 = vsel %vm1960_vm14, %v15180_v17, 0.0 }
 0xbe8   : > { %8422 = vmatmul.msk.f32.vlgmr.msra.gmra.mxu3 %vm1960_vm14, %v7403_v54  ;;  %7370 = vadd.xlane.f32.xlu2 %v7369_v18  ;;  %v9304_v50 = vpop.eup %9303 }
 0xbe9   : > { %v7405_v59 = vmul.f32 %v9304_v50, %v15092_v2 }
 0xbef   : > { %4177 = vrot.lane.b32.xlu0 %v16265_v22, %s9641_s18 }
 0xbf1   : > { %v8730_v53 = vpop.permute.xlu0 %8729 }
 0xbf2   : > { %v8731_v35 = vunpack.i.l.bf16 %v8730_v53  ;;  %v8732_v4 = vunpack.i.h.bf16 %v8730_v53 }
 0xbf4   : > { %7579 = vmatpush.msrb.mxu0 %v8731_v35 }
 0xbf6   : > { %7580 = vmatpush.msrb.mxu0 %v8732_v4 }
 0xbf7   : > { %4179 = vrot.lane.b32.xlu0 %v16266_v14, %s9641_s18  ;;  %8424 = vmatmul.msk.f32.vlgmr.msrb.gmra.mxu0 %vm1960_vm14, %v7405_v59 }
 0xbf9   : > { %v8735_v52 = vpop.permute.xlu0 %8734 }
 0xbfa   : > { %v8736_v0 = vunpack.i.l.bf16 %v8735_v52  ;;  %v8737_v25 = vunpack.i.h.bf16 %v8735_v52 }
 0xbfc   : > { %v7350_v41 = vpop.xlane.xlu1 %7349  ;;  %7614 = vmatpush.msra.mxu1 %v8736_v0 }
 0xbfd   : > { %9305 = vrcp.f32 %v7350_v41 }
 0xbfe   : > { %7615 = vmatpush.msra.mxu1 %v8737_v25 }
 0xbff   : > { %4181 = vrot.lane.b32.xlu0 %v16267_v58, %s9641_s18 }
 0xc01   : > { %v8740_v1 = vpop.permute.xlu0 %8739 }
 0xc02   : > { %v8741_v9 = vunpack.i.l.bf16 %v8740_v1  ;;  %v8742_v11 = vunpack.i.h.bf16 %v8740_v1  ;;  %v16274_v1 = vld [vmem:[#allocation124_spill] sm:$0xff] }
 0xc03   : > { %v9306_v29 = vpop.eup %9305 }
 0xc04   : > { %v7356_v61 = vpop.xlane.xlu1 %7355  ;;  %v7402_v2 = vmul.f32 %v9306_v29, %v15102_v5  ;;  %7649 = vmatpush.msrb.mxu2 %v8741_v9  ;;  %v7791_v9 = vld [vmem:[#allocation14 + $0x8] sm:$0xff] }
 0xc05   : > { %9307 = vrcp.f32 %v7356_v61 }
 0xc06   : > { %8421 = vmatmul.msk.f32.gmra.mxu2 %vm1960_vm14, %v7402_v2  ;;  %v7792_v2 = vld [vmem:[#allocation14 + $0x10] sm:$0xff] }
 0xc07   : > { %7650 = vmatpush.msrb.mxu2 %v8742_v11  ;;  %4183 = vrot.lane.b32.xlu0 %v16268_v26, %s9641_s18  ;;  %v16275_v26 = vld [vmem:[#allocation106_spill] sm:$0xff] }
 0xc09   : > { %v8745_v55 = vpop.permute.xlu0 %8744 }
 0xc0a   : > { %v8746_v42 = vunpack.i.l.bf16 %v8745_v55  ;;  %v8747_v5 = vunpack.i.h.bf16 %v8745_v55 }
 0xc0b   : > { %v9308_v21 = vpop.eup %9307  ;;  %v7442_v18 = vpop.f32.mrf.mxu0 }
 0xc0c   : > { %v7281_v24 = vpop.xlane.xlu1 %7280  ;;  %v7404_v51 = vmul.f32 %v9308_v21, %v15110_v20  ;;  %7684 = vmatpush.msrb.mxu3 %v8746_v42 }
 0xc0d   : > { %v7299_v3 = vsub.f32 %v15121_v36, %v7281_v24 }
 0xc0e   : > { %8423 = vmatmul.msk.f32.gmra.mxu3 %vm1960_vm14, %v7404_v51 }
 0xc0f   : > { %v7329_v49 = vmul.f32 1.442695, %v7299_v3  ;;  %7685 = vmatpush.msrb.mxu3 %v8747_v5  ;;  %4185 = vrot.lane.b32.xlu0 %v16269_v32, %s9641_s18  ;;  %v7790_v3 = vld [vmem:[#allocation14] sm:$0xff] }
 0xc10   : > { %v7365_v10 = vpop.xlane.xlu2 %7364 }
 0xc11   : > { %9309 = vpow2.f32 %v7329_v49  ;;  %v15204_v28 = vpop.permute.xlu0 %5934  ;;  %v16276_v49 = vld [vmem:[#allocation25_spill] sm:$0xff] }
 0xc12   : > { %9311 = vrcp.f32 %v7365_v10 }
 0xc14   : > { %v7284_v33 = vpop.xlane.xlu1 %7283 }
 0xc15   : > { %v7300_v45 = vsub.f32 %v15134_v19, %v7284_v33 }
 0xc17   : > { %v15207_v20 = vpop.eup %9309  ;;  %v7331_v36 = vmul.f32 1.442695, %v7300_v45  ;;  %4187 = vrot.lane.b32.xlu0 %v16270_v15, %s9641_s18 }
 0xc18   : > { %v7375_v47 = vsel %vm1960_vm14, %v15207_v20, 0.0  ;;  %v9312_v40 = vpop.eup %9311 }
 0xc19   : > { %9313 = vpow2.f32 %v7331_v36  ;;  %7376 = vadd.xlane.f32.xlu2 %v7375_v47  ;;  %v4162_v8 = vpop.permute.xlu0 %4161  ;;  %v7407_v19 = vmul.f32 %v9312_v40, %v15140_v16  ;;  %v16278_v36 = vld [vmem:[#allocation50_spill] sm:$0xff] }
 0xc1a   : > { %4209 = vst.msk [vmem:[#allocation2 + $0x8] sm:$0xff] %vm4207_vm4, %v4162_v8 }
 0xc1b   : > { %8426 = vmatmul.msk.f32.vlgmr.msra.gmra.mxu1 %vm1960_vm14, %v7407_v19 }
 0xc1c   : > { %v7362_v43 = vpop.xlane.xlu1 %7361 }
 0xc1d   : > { %9315 = vrcp.f32 %v7362_v43 }
 0xc1f   : > { %v15215_v56 = vpop.eup %9313  ;;  %4189 = vrot.lane.b32.xlu0 %v16271_v12, %s9641_s18 }
 0xc20   : > { %v7378_v60 = vsel %vm1960_vm14, %v15215_v56, 0.0 }
 0xc21   : > { %7379 = vadd.xlane.f32.xlu1 %v7378_v60  ;;  %v5937_v27 = vpop.permute.xlu0 %5936 }
 0xc22   : > { %5984 = vst.msk [vmem:[#allocation2 + $0x8] sm:$0xff] %vm5982_vm5, %v5937_v27 }
 0xc23   : > { %v9316_v23 = vpop.eup %9315 }
 0xc24   : > { %v7368_v46 = vpop.xlane.xlu1 %7367  ;;  %v7406_v13 = vmul.f32 %v9316_v23, %v15147_v30  ;;  %v7445_v30 = vpop.f32.mrf.mxu0 }
 0xc25   : > { %9317 = vrcp.f32 %v7368_v46 }
 0xc26   : > { %8425 = vmatmul.msk.f32.gmra.mxu0 %vm1960_vm14, %v7406_v13 }
 0xc29   : > { %v4164_v54 = vpop.permute.xlu0 %4163  ;;  %v7512_v59 = vpop.f32.mrf.mxu2 }
 0xc2a   : > { %4210 = vst.msk [vmem:[#allocation2 + $0x10] sm:$0xff] %vm4207_vm4, %v4164_v54 }
 0xc2b   : > { %v9318_v16 = vpop.eup %9317 }
 0xc2c   : > { %v7408_v57 = vmul.f32 %v9318_v16, %v15156_v38  ;;  %v7477_v38 = vpop.f32.mrf.mxu1 }
 0xc2e   : > { %8427 = vmatmul.msk.f32.gmra.mxu1 %vm1960_vm14, %v7408_v57 }
 0xc31   : > { %4159 = vrot.lane.b32.xlu2 %v16272_v63, %s9641_s18  ;;  %v4166_v22 = vpop.permute.xlu0 %4165 }
 0xc32   : > { %4211 = vst.msk [vmem:[#allocation2 + $0x18] sm:$0xff] %vm4207_vm4, %v4166_v22 }
 0xc34   : > { %v7480_v35 = vpop.f32.mrf.mxu1 }
 0xc39   : > { %7711 = vrot.lane.b32.xlu2 %v7445_v30, %s9642_s17  ;;  %v4168_v53 = vpop.permute.xlu0 %4167 }
 0xc3a   : > { %7709 = vrot.lane.b32.xlu1 %v7442_v18, %s9642_s17  ;;  %4212 = vst.msk [vmem:[#allocation2 + $0x20] sm:$0xff] %vm4207_vm4, %v4168_v53 }
 0xc41   : > { %7713 = vrot.lane.b32.xlu2 %v7477_v38, %s9642_s17  ;;  %v4170_v50 = vpop.permute.xlu0 %4169 }
 0xc42   : > { %5938 = vrot.lane.b32.xlu1 %v14546_v39, %s9640_s30  ;;  %4213 = vst.msk [vmem:[#allocation2 + $0x28] sm:$0xff] %vm4207_vm4, %v4170_v50 }
 0xc49   : > { %7715 = vrot.lane.b32.xlu2 %v7480_v35, %s9642_s17  ;;  %v4172_v4 = vpop.permute.xlu0 %4171 }
 0xc4a   : > { %5940 = vrot.lane.b32.xlu1 %v14556_v37, %s9640_s30  ;;  %4214 = vst.msk [vmem:[#allocation2 + $0x30] sm:$0xff] %vm4207_vm4, %v4172_v4  ;;  %v7374_v37 = vpop.xlane.xlu1 %7373 }
 0xc51   : > { %7717 = vrot.lane.b32.xlu2 %v7512_v59, %s9642_s17  ;;  %v4174_v14 = vpop.permute.xlu0 %4173 }
 0xc52   : > { %5942 = vrot.lane.b32.xlu1 %v14548_v48, %s9640_s30  ;;  %4215 = vst.msk [vmem:[#allocation2 + $0x38] sm:$0xff] %vm4207_vm4, %v4174_v14 }
 0xc59   : > { %v4176_v39 = vpop.permute.xlu0 %4175 }
 0xc5a   : > { %5944 = vrot.lane.b32.xlu1 %v14561_v44, %s9640_s30  ;;  %4216 = vst.msk [vmem:[#allocation2 + $0x40] sm:$0xff] %vm4207_vm4, %v4176_v39 }
 0xc5b   : > { %v7371_v52 = vpop.xlane.xlu2 %7370 }
 0xc5c   : > { %9319 = vrcp.f32 %v7371_v52 }
 0xc5d   : > { %9321 = vrcp.f32 %v7374_v37 }
 0xc61   : > { %v4178_v41 = vpop.permute.xlu0 %4177 }
 0xc62   : > { %5946 = vrot.lane.b32.xlu1 %v14619_v62, %s9640_s30  ;;  %4217 = vst.msk [vmem:[#allocation2 + $0x48] sm:$0xff] %vm4207_vm4, %v4178_v41  ;;  %v9320_v0 = vpop.eup %9319 }
 0xc63   : > { %v7409_v48 = vmul.f32 %v9320_v0, %v15180_v17  ;;  %v9322_v44 = vpop.eup %9321 }
 0xc64   : > { %v7410_v58 = vmul.f32 %v9322_v44, %v15162_v7 }
 0xc65   : > { %8428 = vmatmul.msk.f32.vlgmr.msrb.gmra.mxu2 %vm1960_vm14, %v7409_v48 }
 0xc69   : > { %v4180_v25 = vpop.permute.xlu0 %4179 }
 0xc6a   : > { %5948 = vrot.lane.b32.xlu1 %v14633_v34, %s9640_s30  ;;  %4218 = vst.msk [vmem:[#allocation2 + $0x50] sm:$0xff] %vm4207_vm4, %v4180_v25  ;;  %v16273_v34 = vld [vmem:[#allocation130_spill] sm:$0xff] }
 0xc6b   : > { %v7547_v11 = vpop.f32.mrf.mxu3 }
 0xc6d   : > { %8429 = vmatmul.msk.f32.gmra.mxu2 %vm1960_vm14, %v7410_v58 }
 0xc71   : > { %v4182_v62 = vpop.permute.xlu0 %4181 }
 0xc72   : > { %5950 = vrot.lane.b32.xlu1 %v14531_v6, %s9640_s30  ;;  %4219 = vst.msk [vmem:[#allocation2 + $0x58] sm:$0xff] %vm4207_vm4, %v4182_v62 }
 0xc74   : > { %v7582_v10 = vpop.f32.mrf.mxu0 }
 0xc79   : > { %v4184_v17 = vpop.permute.xlu0 %4183 }
 0xc7a   : > { %5952 = vrot.lane.b32.xlu1 %v14541_v31, %s9640_s30  ;;  %4220 = vst.msk [vmem:[#allocation2 + $0x60] sm:$0xff] %vm4207_vm4, %v4184_v17  ;;  %v7793_v31 = vld [vmem:[#allocation14 + $0x18] sm:$0xff] }
 0xc7b   : > { %7858 = vmatpush.msra.mxu0 %v7793_v31 }
 0xc7d   : > { %7859 = vmatpush.msra.mxu0 %v7792_v2 }
 0xc7f   : > { %7860 = vmatpush.msra.mxu0 %v7791_v9 }
 0xc81   : > { %v4186_v29 = vpop.permute.xlu0 %4185  ;;  %7861 = vmatpush.msra.mxu0 %v7790_v3 }
 0xc82   : > { %5954 = vrot.lane.b32.xlu1 %v16273_v34, %s9640_s30  ;;  %4221 = vst.msk [vmem:[#allocation2 + $0x68] sm:$0xff] %vm4207_vm4, %v4186_v29 }
 0xc89   : > { %v7515_v7 = vpop.f32.mrf.mxu2  ;;  %v4188_v6 = vpop.permute.xlu0 %4187 }
 0xc8a   : > { %5956 = vrot.lane.b32.xlu1 %v16274_v1, %s9640_s30  ;;  %7719 = vrot.lane.b32.xlu2 %v7515_v7, %s9642_s17  ;;  %4222 = vst.msk [vmem:[#allocation2 + $0x70] sm:$0xff] %vm4207_vm4, %v4188_v6 }
 0xc8c   : > { %v7377_v61 = vpop.xlane.xlu2 %7376 }
 0xc8d   : > { %9323 = vrcp.f32 %v7377_v61  ;;  %v15339_v61 = vld [vmem:[%s15444_s9] ss:$0 sm:$0xff] }
 0xc91   : > { %v4190_v55 = vpop.permute.xlu0 %4189  ;;  %v7550_v5 = vpop.f32.mrf.mxu3 }
 0xc92   : > { %5958 = vrot.lane.b32.xlu1 %v16275_v26, %s9640_s30  ;;  %7721 = vrot.lane.b32.xlu2 %v7547_v11, %s9642_s17  ;;  %4223 = vst.msk [vmem:[#allocation2 + $0x78] sm:$0xff] %vm4207_vm4, %v4190_v55 }
 0xc93   : > { %v9324_v21 = vpop.eup %9323 }
 0xc94   : > { %v7411_v24 = vmul.f32 %v9324_v21, %v15207_v20  ;;  %v7380_v51 = vpop.xlane.xlu1 %7379  ;;  %v4160_v42 = vpop.permute.xlu2 %4159  ;;  %v16277_v20 = vld [vmem:[#allocation48_spill] sm:$0xff] }
 0xc95   : > { %9325 = vrcp.f32 %v7380_v51  ;;  %4208 = vst.msk [vmem:[#allocation2] sm:$0xff] %vm4207_vm4, %v4160_v42 }
 0xc96   : > { %8430 = vmatmul.msk.f32.vlgmr.msrb.gmra.mxu3 %vm1960_vm14, %v7411_v24  ;;  %5983 = vst.msk [vmem:[#allocation2] sm:$0xff] %vm5982_vm5, %v15204_v28 }
 0xc98   : > { %v7617_v15 = vpop.f32.mrf.mxu1 }
 0xc9a   : > { %5960 = vrot.lane.b32.xlu1 %v16276_v49, %s9640_s30  ;;  %7723 = vrot.lane.b32.xlu2 %v7550_v5, %s9642_s17 }
 0xc9b   : > { %v9326_v32 = vpop.eup %9325 }
 0xc9c   : > { %v7412_v33 = vmul.f32 %v9326_v32, %v15215_v56  ;;  %v7712_v45 = vpop.permute.xlu2 %7711 }
 0xc9d   : > { %7759 = vst.msk [vmem:[#allocation2 + $0x8] sm:$0xff] %vm7757_vm12, %v7712_v45 }
 0xc9e   : > { %8431 = vmatmul.msk.f32.gmra.mxu3 %vm1960_vm14, %v7412_v33  ;;  %vm16279_vm14 = vcmask 261120  }
 0xc9f   : > { %vm16280_vm9 = vmmov %vm16279_vm14 }
 0xca0   : > { %vm16281_vm2 = vmmov %vm16280_vm9 }
 0xca1   : > { %vm16282_vm7 = vmmov %vm16281_vm2 }
 0xca2   : > { %5962 = vrot.lane.b32.xlu1 %v16277_v20, %s9640_s30  ;;  %7725 = vrot.lane.b32.xlu2 %v7582_v10, %s9642_s17  ;;  %vm16283_vm11 = vmmov %vm16281_vm2 }
 0xca3   : > { %v7585_v28 = vpop.f32.mrf.mxu0  ;;  %vm16284_vm13 = vmmov %vm16281_vm2 }
 0xca4   : > { %v7714_v8 = vpop.permute.xlu2 %7713  ;;  %v7775_v12 = vld [vmem:[#allocation2 + $0x8] sm:$0xff]  ;;  %vm16285_vm15 = vmmov %vm16281_vm2 }
 0xca5   : > { %vm16286_vm3 = vmmov %vm16281_vm2 }
 0xca6   : > { %vm16287_vm10 = vmmov %vm16281_vm2 }
 0xca7   : > { %vm16288_vm1 = vmmov %vm16281_vm2 }
 0xca8   : > { %vm16289_vm0 = vmmov %vm16288_vm1 }
 0xca9   : > { %vm16290_vm6 = vmmov %vm16289_vm0 }
 0xcaa   : > { %5964 = vrot.lane.b32.xlu1 %v16278_v36, %s9640_s30  ;;  %7727 = vrot.lane.b32.xlu2 %v7585_v28, %s9642_s17  ;;  %vm16291_vm8 = vmmov %vm16289_vm0 }
 0xcab   : > { %v7620_v19 = vpop.f32.mrf.mxu1  ;;  %vm16292_vm4 = vmmov %vm16289_vm0 }
 0xcac   : > { %v7710_v47 = vpop.permute.xlu1 %7709  ;;  %v7716_v56 = vpop.permute.xlu2 %7715 }
 0xcad   : > { %7758 = vst.msk [vmem:[#allocation2] sm:$0xff] %vm7757_vm12, %v7710_v47 }
 0xcb2   : > { %7729 = vrot.lane.b32.xlu2 %v7617_v15, %s9642_s17 }
 0xcb4   : > { %v5939_v43 = vpop.permute.xlu1 %5938  ;;  %v7774_v40 = vld [vmem:[#allocation2] sm:$0xff]  ;;  %v7718_v46 = vpop.permute.xlu2 %7717 }
 0xcb5   : > { %5985 = vst.msk [vmem:[#allocation2 + $0x10] sm:$0xff] %vm5982_vm5, %v5939_v43  ;;  %8432 = vmatmul.msk.f32.vlgmr.msra.gmra.mxu0 %vm16279_vm14, %v7774_v40  ;;  %vm16294_vm14 = vmmov %vm16289_vm0 }
 0xcb6   : > { %7760 = vst.msk [vmem:[#allocation2 + $0x10] sm:$0xff] %vm7757_vm12, %v7714_v8 }
 0xcba   : > { %7731 = vrot.lane.b32.xlu2 %v7620_v19, %s9642_s17 }
 0xcbc   : > { %v5941_v60 = vpop.permute.xlu1 %5940 }
 0xcbd   : > { %5986 = vst.msk [vmem:[#allocation2 + $0x18] sm:$0xff] %vm5982_vm5, %v5941_v60  ;;  %8433 = vmatmul.msk.f32.gmra.mxu0 %vm16280_vm9, %v7775_v12  ;;  %v7776_v27 = vld [vmem:[#allocation2 + $0x10] sm:$0xff]  ;;  %vm16295_vm9 = vmmov %vm16289_vm0 }
 0xcbe   : > { %7761 = vst.msk [vmem:[#allocation2 + $0x18] sm:$0xff] %vm7757_vm12, %v7716_v56 }
 0xcc4   : > { %v5943_v23 = vpop.permute.xlu1 %5942 }
 0xcc5   : > { %5987 = vst.msk [vmem:[#allocation2 + $0x20] sm:$0xff] %vm5982_vm5, %v5943_v23  ;;  %8434 = vmatmul.msk.f32.gmra.mxu0 %vm16281_vm2, %v7776_v27  ;;  %v7777_v16 = vld [vmem:[#allocation2 + $0x18] sm:$0xff]  ;;  %vm16296_vm2 = vmmov %vm16289_vm0 }
 0xcc6   : > { %7762 = vst.msk [vmem:[#allocation2 + $0x20] sm:$0xff] %vm7757_vm12, %v7718_v46 }
 0xccc   : > { %v5945_v13 = vpop.permute.xlu1 %5944 }
 0xccd   : > { %5988 = vst.msk [vmem:[#allocation2 + $0x28] sm:$0xff] %vm5982_vm5, %v5945_v13  ;;  %8435 = vmatmul.msk.f32.gmra.mxu0 %vm16282_vm7, %v7777_v16  ;;  %v7778_v57 = vld [vmem:[#allocation2 + $0x20] sm:$0xff]  ;;  %vm16297_vm7 = vmmov %vm16289_vm0 }
 0xcd4   : > { %v5947_v54 = vpop.permute.xlu1 %5946 }
 0xcd5   : > { %5989 = vst.msk [vmem:[#allocation2 + $0x30] sm:$0xff] %vm5982_vm5, %v5947_v54  ;;  %8436 = vmatmul.msk.f32.gmra.mxu0 %vm16283_vm11, %v7778_v57  ;;  %vm16298_vm11 = vmmov %vm16289_vm0 }
 0xcdc   : > { %v5949_v18 = vpop.permute.xlu1 %5948 }
 0xcdd   : > { %5990 = vst.msk [vmem:[#allocation2 + $0x38] sm:$0xff] %vm5982_vm5, %v5949_v18 }
 0xce4   : > { %v5951_v63 = vpop.permute.xlu1 %5950  ;;  %v7720_v22 = vpop.permute.xlu2 %7719 }
 0xce5   : > { %5991 = vst.msk [vmem:[#allocation2 + $0x40] sm:$0xff] %vm5982_vm5, %v5951_v63 }
 0xce6   : > { %7763 = vst.msk [vmem:[#allocation2 + $0x28] sm:$0xff] %vm7757_vm12, %v7720_v22 }
 0xce8   : > { %v7652_v30 = vpop.f32.mrf.mxu2 }
 0xce9   : > { %7733 = vrot.lane.b32.xlu2 %v7652_v30, %s9642_s17 }
 0xcec   : > { %v5953_v53 = vpop.permute.xlu1 %5952  ;;  %v7722_v38 = vpop.permute.xlu2 %7721 }
 0xced   : > { %5992 = vst.msk [vmem:[#allocation2 + $0x48] sm:$0xff] %vm5982_vm5, %v5953_v53  ;;  %v7779_v50 = vld [vmem:[#allocation2 + $0x28] sm:$0xff] }
 0xcee   : > { %7764 = vst.msk [vmem:[#allocation2 + $0x30] sm:$0xff] %vm7757_vm12, %v7722_v38  ;;  %8437 = vmatmul.msk.f32.gmra.mxu0 %vm16284_vm13, %v7779_v50  ;;  %vm16299_vm13 = vmmov %vm16289_vm0 }
 0xcf0   : > { %v7655_v35 = vpop.f32.mrf.mxu2 }
 0xcf1   : > { %7735 = vrot.lane.b32.xlu2 %v7655_v35, %s9642_s17 }
 0xcf4   : > { %v5955_v4 = vpop.permute.xlu1 %5954  ;;  %v7724_v59 = vpop.permute.xlu2 %7723 }
 0xcf5   : > { %5993 = vst.msk [vmem:[#allocation2 + $0x50] sm:$0xff] %vm5982_vm5, %v5955_v4  ;;  %v7780_v14 = vld [vmem:[#allocation2 + $0x30] sm:$0xff] }
 0xcf6   : > { %7765 = vst.msk [vmem:[#allocation2 + $0x38] sm:$0xff] %vm7757_vm12, %v7724_v59  ;;  %8438 = vmatmul.msk.f32.gmra.mxu0 %vm16285_vm15, %v7780_v14  ;;  %vm16300_vm15 = vmmov %vm16289_vm0 }
 0xcfc   : > { %v5957_v39 = vpop.permute.xlu1 %5956  ;;  %v7726_v52 = vpop.permute.xlu2 %7725 }
 0xcfd   : > { %5994 = vst.msk [vmem:[#allocation2 + $0x58] sm:$0xff] %vm5982_vm5, %v5957_v39  ;;  %v7781_v37 = vld [vmem:[#allocation2 + $0x38] sm:$0xff] }
 0xcfe   : > { %7766 = vst.msk [vmem:[#allocation2 + $0x40] sm:$0xff] %vm7757_vm12, %v7726_v52  ;;  %8439 = vmatmul.msk.f32.gmra.mxu0 %vm16286_vm3, %v7781_v37  ;;  %vm16301_vm3 = vmmov %vm16289_vm0 }
 0xd04   : > { %v5959_v41 = vpop.permute.xlu1 %5958  ;;  %v7728_v0 = vpop.permute.xlu2 %7727 }
 0xd05   : > { %5995 = vst.msk [vmem:[#allocation2 + $0x60] sm:$0xff] %vm5982_vm5, %v5959_v41  ;;  %v7782_v48 = vld [vmem:[#allocation2 + $0x40] sm:$0xff] }
 0xd06   : > { %7767 = vst.msk [vmem:[#allocation2 + $0x48] sm:$0xff] %vm7757_vm12, %v7728_v0  ;;  %8440 = vmatmul.msk.f32.gmra.mxu0 %vm16287_vm10, %v7782_v48  ;;  %vm16302_vm10 = vmmov %vm16289_vm0 }
 0xd0c   : > { %v5961_v44 = vpop.permute.xlu1 %5960  ;;  %v7730_v25 = vpop.permute.xlu2 %7729 }
 0xd0d   : > { %5996 = vst.msk [vmem:[#allocation2 + $0x68] sm:$0xff] %vm5982_vm5, %v5961_v44  ;;  %v7783_v58 = vld [vmem:[#allocation2 + $0x48] sm:$0xff] }
 0xd0e   : > { %7768 = vst.msk [vmem:[#allocation2 + $0x50] sm:$0xff] %vm7757_vm12, %v7730_v25  ;;  %8441 = vmatmul.msk.f32.gmra.mxu0 %vm16288_vm1, %v7783_v58  ;;  %vm16303_vm1 = vmmov %vm16289_vm0 }
 0xd14   : > { %v5963_v62 = vpop.permute.xlu1 %5962  ;;  %v7732_v17 = vpop.permute.xlu2 %7731 }
 0xd15   : > { %5997 = vst.msk [vmem:[#allocation2 + $0x70] sm:$0xff] %vm5982_vm5, %v5963_v62  ;;  %v7784_v34 = vld [vmem:[#allocation2 + $0x50] sm:$0xff] }
 0xd16   : > { %7769 = vst.msk [vmem:[#allocation2 + $0x58] sm:$0xff] %vm7757_vm12, %v7732_v17  ;;  %8442 = vmatmul.msk.f32.gmra.mxu0 %vm16289_vm0, %v7784_v34 }
 0xd19   : > { %v7687_v29 = vpop.f32.mrf.mxu3 }
 0xd1a   : > { %7737 = vrot.lane.b32.xlu2 %v7687_v29, %s9642_s17 }
 0xd1c   : > { %v5965_v7 = vpop.permute.xlu1 %5964 }
 0xd1d   : > { %5998 = vst.msk [vmem:[#allocation2 + $0x78] sm:$0xff] %vm5982_vm5, %v5965_v7  ;;  %v7785_v1 = vld [vmem:[#allocation2 + $0x58] sm:$0xff]  ;;  %vm16293_vm5 = vmmov %vm16289_vm0 }
 0xd1e   : > { %8443 = vmatmul.msk.f32.gmra.mxu0 %vm16290_vm6, %v7785_v1  ;;  %vm16305_vm6 = vmmov %vm16289_vm0 }
 0xd21   : > { %v7690_v6 = vpop.f32.mrf.mxu3 }
 0xd22   : > { %7739 = vrot.lane.b32.xlu2 %v7690_v6, %s9642_s17 }
 0xd32   : > { %v7863_v31 = vpop.f32.mrf.mxu0 }
 0xd33   : > { %v7864_v2 = vadd.f32 %v15339_v61, %v7863_v31 }
 0xd35   : > { %7911 = vst.msk [vmem:[%s15343_s24] sm:$0xff] %vm16291_vm8, %v7864_v2  ;;  %vm16306_vm8 = vmmov %vm16289_vm0 }
 0xd3a   : > { %v7866_v9 = vpop.f32.mrf.mxu0 }
 0xd3b   : > { %v7867_v11 = vadd.f32 %v15339_v61, %v7866_v9 }
 0xd3d   : > { %7912 = vst.msk [vmem:[%s15343_s24 + $0x8] sm:$0xff] %vm16292_vm4, %v7867_v11  ;;  %vm16307_vm4 = vmmov %vm16289_vm0 }
 0xd42   : > { %v7869_v26 = vpop.f32.mrf.mxu0 }
 0xd43   : > { %v7870_v21 = vadd.f32 %v15339_v61, %v7869_v26  ;;  %v7734_v55 = vpop.permute.xlu2 %7733 }
 0xd44   : > { %7770 = vst.msk [vmem:[#allocation2 + $0x60] sm:$0xff] %vm7757_vm12, %v7734_v55 }
 0xd45   : > { %7913 = vst.msk [vmem:[%s15343_s24 + $0x10] sm:$0xff] %vm16293_vm5, %v7870_v21  ;;  %vm16308_vm5 = vmmov %vm16289_vm0 }
 0xd4a   : > { %v7872_v24 = vpop.f32.mrf.mxu0 }
 0xd4b   : > { %v7873_v51 = vadd.f32 %v15339_v61, %v7872_v24  ;;  %v7736_v42 = vpop.permute.xlu2 %7735  ;;  %v7786_v3 = vld [vmem:[#allocation2 + $0x60] sm:$0xff] }
 0xd4c   : > { %7771 = vst.msk [vmem:[#allocation2 + $0x68] sm:$0xff] %vm7757_vm12, %v7736_v42  ;;  %8444 = vmatmul.msk.f32.gmra.mxu0 %vm16295_vm9, %v7786_v3 }
 0xd4d   : > { %7914 = vst.msk [vmem:[%s15343_s24 + $0x18] sm:$0xff] %vm16294_vm14, %v7873_v51  ;;  %vm16309_vm14 = vmmov %vm16289_vm0 }
 0xd52   : > { %v7875_v5 = vpop.f32.mrf.mxu0 }
 0xd53   : > { %v7876_v49 = vadd.f32 %v15339_v61, %v7875_v5  ;;  %v7787_v32 = vld [vmem:[#allocation2 + $0x68] sm:$0xff] }
 0xd54   : > { %8445 = vmatmul.msk.f32.gmra.mxu0 %vm16297_vm7, %v7787_v32 }
 0xd55   : > { %7915 = vst.msk [vmem:[%s15343_s24 + $0x20] sm:$0xff] %vm16296_vm2, %v7876_v49 }
 0xd6b   : > { %v7878_v33 = vpop.f32.mrf.mxu0 }
 0xd6c   : > { %v7879_v45 = vadd.f32 %v15339_v61, %v7878_v33 }
 0xd6e   : > { %7916 = vst.msk [vmem:[%s15343_s24 + $0x28] sm:$0xff] %vm16298_vm11, %v7879_v45 }
 0xd73   : > { %v7881_v10 = vpop.f32.mrf.mxu0 }
 0xd74   : > { %v7882_v20 = vadd.f32 %v15339_v61, %v7881_v10  ;;  %v7738_v28 = vpop.permute.xlu2 %7737 }
 0xd75   : > { %7772 = vst.msk [vmem:[#allocation2 + $0x70] sm:$0xff] %vm7757_vm12, %v7738_v28 }
 0xd76   : > { %7917 = vst.msk [vmem:[%s15343_s24 + $0x30] sm:$0xff] %vm16299_vm13, %v7882_v20 }
 0xd7b   : > { %v7884_v36 = vpop.f32.mrf.mxu0 }
 0xd7c   : > { %v7885_v47 = vadd.f32 %v15339_v61, %v7884_v36  ;;  %v7740_v15 = vpop.permute.xlu2 %7739  ;;  %v7788_v8 = vld [vmem:[#allocation2 + $0x70] sm:$0xff] }
 0xd7d   : > { %7773 = vst.msk [vmem:[#allocation2 + $0x78] sm:$0xff] %vm7757_vm12, %v7740_v15  ;;  %8446 = vmatmul.msk.f32.gmra.mxu0 %vm16300_vm15, %v7788_v8  ;;  %vm16304_vm12 = vmmov %vm16289_vm0 }
 0xd7e   : > { %7918 = vst.msk [vmem:[%s15343_s24 + $0x38] sm:$0xff] %vm16301_vm3, %v7885_v47 }
 0xd83   : > { %v7887_v43 = vpop.f32.mrf.mxu0 }
 0xd84   : > { %v7888_v40 = vadd.f32 %v15339_v61, %v7887_v43  ;;  %v7789_v19 = vld [vmem:[#allocation2 + $0x78] sm:$0xff] }
 0xd85   : > { %8447 = vmatmul.msk.f32.gmra.mxu0 %vm16302_vm10, %v7789_v19 }
 0xd86   : > { %7919 = vst.msk [vmem:[%s15343_s24 + $0x40] sm:$0xff] %vm16303_vm1, %v7888_v40 }
 0xd8b   : > { %v7890_v56 = vpop.f32.mrf.mxu0 }
 0xd8c   : > { %v7891_v60 = vadd.f32 %v15339_v61, %v7890_v56 }
 0xd8e   : > { %7920 = vst.msk [vmem:[%s15343_s24 + $0x48] sm:$0xff] %vm16304_vm12, %v7891_v60 }
 0xd93   : > { %v7893_v12 = vpop.f32.mrf.mxu0 }
 0xd94   : > { %v7894_v23 = vadd.f32 %v15339_v61, %v7893_v12 }
 0xd96   : > { %7921 = vst.msk [vmem:[%s15343_s24 + $0x50] sm:$0xff] %vm16289_vm0, %v7894_v23 }
 0xd9b   : > { %v7896_v27 = vpop.f32.mrf.mxu0 }
 0xd9c   : > { %v7897_v46 = vadd.f32 %v15339_v61, %v7896_v27 }
 0xd9e   : > { %7922 = vst.msk [vmem:[%s15343_s24 + $0x58] sm:$0xff] %vm16305_vm6, %v7897_v46 }
 0xdc9   : > { %v7899_v13 = vpop.f32.mrf.mxu0 }
 0xdca   : > { %v7900_v16 = vadd.f32 %v15339_v61, %v7899_v13 }
 0xdcc   : > { %7923 = vst.msk [vmem:[%s15343_s24 + $0x60] sm:$0xff] %vm16306_vm8, %v7900_v16 }
 0xdd1   : > { %v7902_v54 = vpop.f32.mrf.mxu0 }
 0xdd2   : > { %v7903_v57 = vadd.f32 %v15339_v61, %v7902_v54 }
 0xdd4   : > { %7924 = vst.msk [vmem:[%s15343_s24 + $0x68] sm:$0xff] %vm16307_vm4, %v7903_v57 }
 0xdfa   : > { %v7905_v18 = vpop.f32.mrf.mxu0 }
 0xdfb   : > { %v7906_v63 = vadd.f32 %v15339_v61, %v7905_v18 }
 0xdfd   : > { %7925 = vst.msk [vmem:[%s15343_s24 + $0x70] sm:$0xff] %vm16308_vm5, %v7906_v63 }
 0xe02   : > { %v7908_v22 = vpop.f32.mrf.mxu0 }
 0xe03   : > { %v7909_v30 = vadd.f32 %v15339_v61, %v7908_v22 }
 0xe05   : > { %7926 = vst.msk [vmem:[%s15343_s24 + $0x78] sm:$0xff] %vm16309_vm14, %v7909_v30 }
 0xe06   : > { %9568 = shalt.err (!%p9565_p5)
}
 0xe07   : > { %s9643_s4 = smov 128  }
 0xe08   : > { %8496 = dma.vmem_to_hbm [thread:$0]  (%p9804_p0), %s7942_s25, 2048, %s7944_s11, %s7928_s27, %s9643_s4, %s9643_s4, %s9641_s18  }
 0xe09 PF: > { %s7958_s17 = sand.u32 1, %s9611_s13   ;;  %p16310_p10 = scmp.ge.s32.totalorder %s9623_s16, 2 }
 0xe0a   : > { %s7959_s15 = scalar_lea.sflag [#allocation5], %s7958_s17 }
 0xe0b   : > { %p8522_p11 = pnand %p16310_p10, %p9810_p6 }
 0xe0d   : > { %p8523_p12 = pneg %p8522_p11 }
 0xe0f   : > { %9606 = dma.done.wait (%p8523_p12), %s7959_s15, 2048  }
 0xe10   : > { %9608 = vsyncadd (%p8523_p12), %s7959_s15, 4294965248  ;;  %s16311_s21 = sld [smem:[#allocation22_spill]]  ;;  %p28_p2 = scmp.ge.s32.totalorder %s9780_s28, 4  }
 0xe11   : > { %s16312_s15 = sld [smem:[#allocation23_spill]]  ;;  %s16313_s13 = smov %s9615_s14 }
 0xe12   : > { %s16315_s16 = smov %s9780_s28  ;;  %30 = sbr.rel (!%p28_p2) target bundleno = 16 (0x10), region = 144 }
 0xe16   : > { %s16314_s14 = smov %s16311_s21 }
 0xe17   :  { %7965 = vsyncpa [#allocation4], 1 }
 0xe18   :  { %7967 = vsyncpa [#allocation4 + $0x1], 1 }
 0xe19   :  { %7968 = vsyncpa [#allocation7], 1 }
 0xe1a   :  { %7970 = vsyncpa [#allocation7 + $0x1], 1 }
 0xe1b   :  { %7971 = vsyncpa [#allocation10], 1 }
 0xe1c   :  { %7972 = vsyncpa [#allocation13], 1 }
 0xe1d   :  { %7973 = vsyncpa [#allocation5], 1 }
 0xe1e   :  { %7975 = vsyncpa [#allocation5 + $0x1], 1 }

</bundles_post_ra>
